<compile_context>
chip_gen: v6e
topology: v6e:2x2x1
jax: 0.10.0
libtpu: 0.0.40
codegen_flags: <defaults>
</compile_context>

<pallas_src>
import math

import numpy as np
import jax
import jax.numpy as jnp
from jax.experimental import pallas as pl
from jax.experimental.pallas import tpu as pltpu

NUM_HEADS = 8                 # hard-coded default of every sub-module
LN_EPS = 1e-5                 # torch.nn.LayerNorm default eps
NEG_INF = -1e9                # masked_fill value used by the module
DOT_DTYPE = jnp.bfloat16      # MXU input dtype (accumulation is always f32)


# ----------------------------------------------------------------------------
# in-kernel helpers
# ----------------------------------------------------------------------------
def _mm(a, b):
    """Matmul with MXU-friendly input dtype and f32 accumulation."""
    return jnp.dot(a.astype(DOT_DTYPE), b.astype(DOT_DTYPE),
                   preferred_element_type=jnp.float32)


def _layer_norm(x, ln):
    """ln is (2, C): row 0 = gamma, row 1 = beta."""
    mean = jnp.mean(x, axis=-1, keepdims=True)
    var = jnp.mean((x - mean) ** 2, axis=-1, keepdims=True)
    return (x - mean) * jax.lax.rsqrt(var + LN_EPS) * ln[0:1, :] + ln[1:2, :]


def _ffn(x, wf1, bf1, wf2, bf2):
    h = jnp.maximum(_mm(x, wf1) + bf1, 0.0)
    return _mm(h, wf2) + bf2


# TODO(synk): exact (erf) nn.GELU is implemented with the A&S 7.1.26 erf
# polynomial (max abs err ~1.5e-7, i.e. f32-noise level) because lax.erf has no
# guaranteed Mosaic lowering.
_ERF_P = 0.3275911
_ERF_A = (0.254829592, -0.284496736, 1.421413741, -1.453152027, 1.061405429)


def _erf(x):
    sgn = jnp.where(x >= 0.0, 1.0, -1.0)
    ax = jnp.abs(x)
    t = 1.0 / (1.0 + _ERF_P * ax)
    a1, a2, a3, a4, a5 = _ERF_A
    poly = ((((a5 * t + a4) * t + a3) * t + a2) * t + a1) * t
    return sgn * (1.0 - poly * jnp.exp(-ax * ax))


def _gelu(x):
    return 0.5 * x * (1.0 + _erf(x * (1.0 / math.sqrt(2.0))))


def _mha(q, k, v, mask_row, head_mask, wo, bo):
    """All-heads attention + fused out-projection using 3 full-width matmuls.

    q: (Lq, H)  (the 1/sqrt(head_dim) scale is already folded into the q proj)
    k, v: (Lk, H);  mask_row: (1, Lk) float {0,1}
    head_mask: (NUM_HEADS*Lq, H) block-diagonal head selector (host constant)
    wo: (H, Dout); bo: (1, Dout).  Returns (Lq, Dout) in f32.
    """
    lq = q.shape[0]
    # Stack q once per head along sublanes and zero the other heads' columns,
    # so ONE (NH*Lq, H) x (Lk, H)^T matmul yields every per-head score block
    # and a single softmax (one max / one sum / one reciprocal) covers all heads.
    q_stack = jnp.concatenate([q.astype(jnp.float32)] * NUM_HEADS, axis=0)
    q_stack = q_stack * head_mask
    s = jax.lax.dot_general(q_stack.astype(DOT_DTYPE), k.astype(DOT_DTYPE),
                            (((1,), (1,)), ((), ())),
                            preferred_element_type=jnp.float32)   # (NH*Lq, Lk)
    s = jnp.where(mask_row > 0.0, s, NEG_INF)
    s = s - jnp.max(s, axis=-1, keepdims=True)
    p = jnp.exp(s)
    p = p * pl.reciprocal(jnp.sum(p, axis=-1, keepdims=True), approx=True)
    o = _mm(p, v)                          # (NH*Lq, H)
    o = o * head_mask                      # keep head h's columns in block h
    o_cat = o[0:lq, :]                     # head-concat via block-row sum
    for h in range(1, NUM_HEADS):
        o_cat = o_cat + o[h * lq:(h + 1) * lq, :]
    return _mm(o_cat, wo) + bo             # single fused out-projection


def _attn_block_tgva(fv, ft, tmask, vmcol, head_mask, refs):
    (wq, bq, wkv, bkv, wo, bo, ln1, wf1, bf1, wf2, bf2, ln2) = \
        [r[...] for r in refs]
    hidden = wq.shape[1]
    q = _mm(fv, wq) + bq                   # (L, hidden), scale folded into wq/bq
    kv = _mm(ft, wkv) + bkv                # fused k/v projection: (T, 2*hidden)
    k = kv[:, :hidden]
    v = kv[:, hidden:]
    attn = _mha(q, k, v, tmask, head_mask, wo, bo)       # (L, v_dim)
    x = _layer_norm(fv + attn, ln1)
    y = _layer_norm(x + _ffn(x, wf1, bf1, wf2, bf2), ln2)
    return y * vmcol                       # vid_mask multiply


def _compress_block(x, vmrow, head_mask, refs):
    (qpre, query, wkv, bkv, wo, bo, ln1, wf1, bf1, wf2, bf2, ln2) = \
        [r[...] for r in refs]
    dim = query.shape[1]
    kv = _mm(x, wkv) + bkv                 # fused k/v projection: (L, 2*dim)
    k = kv[:, :dim]
    v = kv[:, dim:]
    attn = _mha(qpre, k, v, vmrow, head_mask, wo, bo)    # (C, dim)
    a = _layer_norm(query + attn, ln1)
    return _layer_norm(a + _ffn(a, wf1, bf1, wf2, bf2), ln2)


def _gate(comp, refs):
    # Linear -> GELU -> (Dropout) -> Linear -> Tanh -> GELU -> (Dropout), eval.
    w1, b1, w2, b2 = [r[...] for r in refs]
    m = jnp.mean(comp, axis=0, keepdims=True)            # (1, dim)
    h = _gelu(_mm(m, w1) + b1)
    return _gelu(jnp.tanh(_mm(h, w2) + b2))              # (1, 1)


# ----------------------------------------------------------------------------
# the single fused kernel (one grid step per batch element)
# ----------------------------------------------------------------------------
def fused_kernel(*refs):
    # input layout (51 inputs + 1 output ref):
    #   0..4  : Fv, Ft, text_mask(1,T), vid_mask(1,L), vid_mask(L,1)
    #   5..6  : head masks for tgva / compressor attention
    #   7..18 : tgva params, 19..30: text compressor, 31..42: direct compressor
    #   43..46: direct gate MLP, 47..50: text gate MLP
    (fv_ref, ft_ref, tmask_ref, vmrow_ref, vmcol_ref,
     hm_tgva_ref, hm_comp_ref) = refs[:7]
    tgva_refs = refs[7:19]
    ctxt_refs = refs[19:31]
    cdir_refs = refs[31:43]
    gd_refs = refs[43:47]
    gt_refs = refs[47:51]
    out_ref = refs[-1]

    fv = fv_ref[...]
    ft = ft_ref[...]
    tmask = tmask_ref[...]
    vmrow = vmrow_ref[...]
    vmcol = vmcol_ref[...]
    hm_tgva = hm_tgva_ref[...]
    hm_comp = hm_comp_ref[...]

    # TextGuidedVideoAttention
    fv_enh = _attn_block_tgva(fv, ft, tmask, vmcol, hm_tgva, tgva_refs)
    # text-enhanced and direct SimpleCompressors
    comp_text = _compress_block(fv_enh, vmrow, hm_comp, ctxt_refs)
    comp_dir = _compress_block(fv, vmrow, hm_comp, cdir_refs)
    # gate MLPs on the compress-dim means
    g_dir = _gate(comp_dir, gd_refs)
    g_txt = _gate(comp_text, gt_refs)
    # gated fuse + non-affine LayerNorm
    fused = g_dir * comp_dir + g_txt * comp_text
    mean = jnp.mean(fused, axis=-1, keepdims=True)
    var = jnp.mean((fused - mean) ** 2, axis=-1, keepdims=True)
    out_ref[...] = ((fused - mean) * jax.lax.rsqrt(var + LN_EPS)).astype(out_ref.dtype)


# ----------------------------------------------------------------------------
# BlockSpec helpers & wrapper
# ----------------------------------------------------------------------------
def _batch_spec(shape):
    rest = tuple(int(d) for d in shape[1:])
    nd = len(shape)

    def imap(b):
        return (b,) + (0,) * (nd - 1)

    return pl.BlockSpec((pl.Squeezed(),) + rest, imap)


def _param_spec(shape):
    full = tuple(int(d) for d in shape)
    nd = len(full)

    def imap(b):
        return (0,) * nd

    return pl.BlockSpec(full, imap)


def _head_mask(lq, width):
    """(NUM_HEADS*lq, width) block-diagonal head selector (host constant)."""
    hd = width // NUM_HEADS
    r = np.arange(NUM_HEADS * lq)[:, None] // lq
    c = np.arange(width)[None, :] // hd
    return jnp.asarray((r == c).astype(np.float32))


def text_guided_compressor_forward(Ft, Fv, vid_mask, text_mask, params):
    B, L, V = Fv.shape
    T = Ft.shape[1]
    C = params['ctxt'][1].shape[0]       # learned-query rows = compress_len
    H = params['tgva'][0].shape[1]       # tgva hidden width

    vm = vid_mask.astype(jnp.float32)
    tm = text_mask.astype(jnp.float32)
    batch_args = [Fv.astype(jnp.float32), Ft.astype(jnp.float32),
                  tm.reshape(B, 1, T), vm.reshape(B, 1, L), vm.reshape(B, L, 1)]
    param_args = ([_head_mask(L, H), _head_mask(C, V)]
                  + params['tgva'] + params['ctxt'] + params['cdir']
                  + params['gd'] + params['gt'])

    in_specs = ([_batch_spec(a.shape) for a in batch_args]
                + [_param_spec(a.shape) for a in param_args])

    feat = pl.pallas_call(
        fused_kernel,
        out_shape=jax.ShapeDtypeStruct((B, C, V), jnp.float32),
        grid=(B,),
        in_specs=in_specs,
        out_specs=_batch_spec((B, C, V)),
        compiler_params=pltpu.CompilerParams(
            dimension_semantics=("parallel",),      # shard batch over TCs (v7x)
            vmem_limit_bytes=32 * 1024 * 1024),
    )(*batch_args, *param_args)

    # second return of SimpleCompressor is the all-True compress mask
    combined_weights = jnp.ones((B, C), dtype=bool)
    return feat, combined_weights


# ----------------------------------------------------------------------------
# deterministic synthetic parameters, pre-packed for the kernel
#   (linear weights stored transposed (in, out), k/v fused, q-scale folded,
#    q_proj(query) precomputed, matmul weights in bf16, LN params packed (2,C))
# ----------------------------------------------------------------------------
def _linear(key, din, dout, scale=0.05):
    kw, kb = jax.random.split(key)
    w = scale * jax.random.normal(kw, (din, dout), jnp.float32)
    b = scale * jax.random.normal(kb, (1, dout), jnp.float32)
    return w, b


def _ln_pack(dim):
    return jnp.concatenate([jnp.ones((1, dim), jnp.float32),
                            jnp.zeros((1, dim), jnp.float32)], axis=0)


def _init_tgva(key, t_dim, v_dim, hidden):
    ks = jax.random.split(key, 6)
    wq, bq = _linear(ks[0], v_dim, hidden)        # v_proj
    wk, bk = _linear(ks[1], t_dim, hidden)        # t_key_proj
    wv, bv = _linear(ks[2], t_dim, hidden)        # t_val_proj
    wo, bo = _linear(ks[3], hidden, v_dim)        # out_proj
    wf1, bf1 = _linear(ks[4], v_dim, 4 * v_dim)
    wf2, bf2 = _linear(ks[5], 4 * v_dim, v_dim)
    scale = 1.0 / math.sqrt(hidden // NUM_HEADS)
    return [(wq * scale).astype(DOT_DTYPE), bq * scale,
            jnp.concatenate([wk, wv], axis=1).astype(DOT_DTYPE),
            jnp.concatenate([bk, bv], axis=1),
            wo.astype(DOT_DTYPE), bo, _ln_pack(v_dim),
            wf1.astype(DOT_DTYPE), bf1, wf2.astype(DOT_DTYPE), bf2,
            _ln_pack(v_dim)]


def _init_compressor(key, dim, compress_len):
    ks = jax.random.split(key, 7)
    query = 0.05 * jax.random.normal(ks[0], (compress_len, dim), jnp.float32)
    wq, bq = _linear(ks[1], dim, dim)
    wk, bk = _linear(ks[2], dim, dim)
    wv, bv = _linear(ks[3], dim, dim)
    wo, bo = _linear(ks[4], dim, dim)
    wf1, bf1 = _linear(ks[5], dim, 4 * dim)
    wf2, bf2 = _linear(ks[6], 4 * dim, dim)
    scale = 1.0 / math.sqrt(dim // NUM_HEADS)
    # q_proj applied to the constant learned query + score scale folded in.
    qpre = ((query @ wq + bq) * scale).astype(DOT_DTYPE)
    return [qpre, query,
            jnp.concatenate([wk, wv], axis=1).astype(DOT_DTYPE),
            jnp.concatenate([bk, bv], axis=1),
            wo.astype(DOT_DTYPE), bo, _ln_pack(dim),
            wf1.astype(DOT_DTYPE), bf1, wf2.astype(DOT_DTYPE), bf2,
            _ln_pack(dim)]


def _init_gate(key, v_dim, hidden):
    k1, k2 = jax.random.split(key)
    w1, b1 = _linear(k1, v_dim, hidden << 1)
    w2, b2 = _linear(k2, hidden << 1, 1)
    return [w1.astype(DOT_DTYPE), b1, w2.astype(DOT_DTYPE), b2]


def init_params(key, t_dim, v_dim, hidden_dim, compress_len):
    ks = jax.random.split(key, 5)
    return dict(
        tgva=_init_tgva(ks[0], t_dim, v_dim, hidden_dim),
        ctxt=_init_compressor(ks[1], v_dim, compress_len),
        cdir=_init_compressor(ks[2], v_dim, compress_len),
        gd=_init_gate(ks[3], v_dim, hidden_dim),
        gt=_init_gate(ks[4], v_dim, hidden_dim),
    )


# ----------------------------------------------------------------------------
if __name__ == "__main__":
    B, L, T = 2, 16, 8
    t_dim, v_dim, hidden_dim, compress_len = 64, 128, 128, 8   # lane-dense dims

    key = jax.random.PRNGKey(0)
    k_ft, k_fv, k_params = jax.random.split(key, 3)

    Ft = jax.random.normal(k_ft, (B, T, t_dim), jnp.float32)
    Fv = jax.random.normal(k_fv, (B, L, v_dim), jnp.float32)
    vid_mask = jnp.arange(L)[None, :] < jnp.array([[L], [L - 4]])    # (B, L) bool
    text_mask = jnp.arange(T)[None, :] < jnp.array([[T], [T - 2]])   # (B, T) bool

    params = init_params(k_params, t_dim, v_dim, hidden_dim, compress_len)

    fwd = jax.jit(text_guided_compressor_forward)
    feat, combined_weights = fwd(Ft, Fv, vid_mask, text_mask, params)
    jax.block_until_ready(feat)
    jax.block_until_ready(combined_weights)

    assert feat.shape == (B, compress_len, v_dim)
    assert combined_weights.shape == (B, compress_len)
    print("KERNEL_OK")
</pallas_src>

<mosaic_0001>
module attributes {stable_mosaic.version = 11 : i64} {
  func.func @fused_kernel(%arg0: i32, %arg1: memref<1x16x128xf32, #tpu.memory_space<vmem>>, %arg2: memref<1x8x64xf32, #tpu.memory_space<vmem>>, %arg3: memref<1x1x8xf32, #tpu.memory_space<vmem>>, %arg4: memref<1x1x16xf32, #tpu.memory_space<vmem>>, %arg5: memref<1x16x1xf32, #tpu.memory_space<vmem>>, %arg6: memref<128x128xf32, #tpu.memory_space<vmem>>, %arg7: memref<64x128xf32, #tpu.memory_space<vmem>>, %arg8: memref<128x128xbf16, #tpu.memory_space<vmem>>, %arg9: memref<1x128xf32, #tpu.memory_space<vmem>>, %arg10: memref<64x256xbf16, #tpu.memory_space<vmem>>, %arg11: memref<1x256xf32, #tpu.memory_space<vmem>>, %arg12: memref<128x128xbf16, #tpu.memory_space<vmem>>, %arg13: memref<1x128xf32, #tpu.memory_space<vmem>>, %arg14: memref<2x128xf32, #tpu.memory_space<vmem>>, %arg15: memref<128x512xbf16, #tpu.memory_space<vmem>>, %arg16: memref<1x512xf32, #tpu.memory_space<vmem>>, %arg17: memref<512x128xbf16, #tpu.memory_space<vmem>>, %arg18: memref<1x128xf32, #tpu.memory_space<vmem>>, %arg19: memref<2x128xf32, #tpu.memory_space<vmem>>, %arg20: memref<8x128xbf16, #tpu.memory_space<vmem>>, %arg21: memref<8x128xf32, #tpu.memory_space<vmem>>, %arg22: memref<128x256xbf16, #tpu.memory_space<vmem>>, %arg23: memref<1x256xf32, #tpu.memory_space<vmem>>, %arg24: memref<128x128xbf16, #tpu.memory_space<vmem>>, %arg25: memref<1x128xf32, #tpu.memory_space<vmem>>, %arg26: memref<2x128xf32, #tpu.memory_space<vmem>>, %arg27: memref<128x512xbf16, #tpu.memory_space<vmem>>, %arg28: memref<1x512xf32, #tpu.memory_space<vmem>>, %arg29: memref<512x128xbf16, #tpu.memory_space<vmem>>, %arg30: memref<1x128xf32, #tpu.memory_space<vmem>>, %arg31: memref<2x128xf32, #tpu.memory_space<vmem>>, %arg32: memref<8x128xbf16, #tpu.memory_space<vmem>>, %arg33: memref<8x128xf32, #tpu.memory_space<vmem>>, %arg34: memref<128x256xbf16, #tpu.memory_space<vmem>>, %arg35: memref<1x256xf32, #tpu.memory_space<vmem>>, %arg36: memref<128x128xbf16, #tpu.memory_space<vmem>>, %arg37: memref<1x128xf32, #tpu.memory_space<vmem>>, %arg38: memref<2x128xf32, #tpu.memory_space<vmem>>, %arg39: memref<128x512xbf16, #tpu.memory_space<vmem>>, %arg40: memref<1x512xf32, #tpu.memory_space<vmem>>, %arg41: memref<512x128xbf16, #tpu.memory_space<vmem>>, %arg42: memref<1x128xf32, #tpu.memory_space<vmem>>, %arg43: memref<2x128xf32, #tpu.memory_space<vmem>>, %arg44: memref<128x256xbf16, #tpu.memory_space<vmem>>, %arg45: memref<1x256xf32, #tpu.memory_space<vmem>>, %arg46: memref<256x1xbf16, #tpu.memory_space<vmem>>, %arg47: memref<1x1xf32, #tpu.memory_space<vmem>>, %arg48: memref<128x256xbf16, #tpu.memory_space<vmem>>, %arg49: memref<1x256xf32, #tpu.memory_space<vmem>>, %arg50: memref<256x1xbf16, #tpu.memory_space<vmem>>, %arg51: memref<1x1xf32, #tpu.memory_space<vmem>>, %arg52: memref<1x8x128xf32, #tpu.memory_space<vmem>>) attributes {dimension_semantics = [#tpu.dimension_semantics<parallel>], iteration_bounds = array<i64: 2>, scalar_prefetch = 0 : i64, scratch_operands = 0 : i64, tpu.core_type = #tpu.core_type<tc>, window_params = [{transform_indices = @transform_0, window_bounds = array<i64: 1, 16, 128>}, {transform_indices = @transform_1, window_bounds = array<i64: 1, 8, 64>}, {transform_indices = @transform_2, window_bounds = array<i64: 1, 1, 8>}, {transform_indices = @transform_3, window_bounds = array<i64: 1, 1, 16>}, {transform_indices = @transform_4, window_bounds = array<i64: 1, 16, 1>}, {pipeline_mode = #tpu.pipeline_mode<synchronous>, transform_indices = @transform_5, window_bounds = array<i64: 128, 128>}, {pipeline_mode = #tpu.pipeline_mode<synchronous>, transform_indices = @transform_6, window_bounds = array<i64: 64, 128>}, {pipeline_mode = #tpu.pipeline_mode<synchronous>, transform_indices = @transform_7, window_bounds = array<i64: 128, 128>}, {pipeline_mode = #tpu.pipeline_mode<synchronous>, transform_indices = @transform_8, window_bounds = array<i64: 1, 128>}, {pipeline_mode = #tpu.pipeline_mode<synchronous>, transform_indices = @transform_9, window_bounds = array<i64: 64, 256>}, {pipeline_mode = #tpu.pipeline_mode<synchronous>, transform_indices = @transform_10, window_bounds = array<i64: 1, 256>}, {pipeline_mode = #tpu.pipeline_mode<synchronous>, transform_indices = @transform_11, window_bounds = array<i64: 128, 128>}, {pipeline_mode = #tpu.pipeline_mode<synchronous>, transform_indices = @transform_12, window_bounds = array<i64: 1, 128>}, {pipeline_mode = #tpu.pipeline_mode<synchronous>, transform_indices = @transform_13, window_bounds = array<i64: 2, 128>}, {pipeline_mode = #tpu.pipeline_mode<synchronous>, transform_indices = @transform_14, window_bounds = array<i64: 128, 512>}, {pipeline_mode = #tpu.pipeline_mode<synchronous>, transform_indices = @transform_15, window_bounds = array<i64: 1, 512>}, {pipeline_mode = #tpu.pipeline_mode<synchronous>, transform_indices = @transform_16, window_bounds = array<i64: 512, 128>}, {pipeline_mode = #tpu.pipeline_mode<synchronous>, transform_indices = @transform_17, window_bounds = array<i64: 1, 128>}, {pipeline_mode = #tpu.pipeline_mode<synchronous>, transform_indices = @transform_18, window_bounds = array<i64: 2, 128>}, {pipeline_mode = #tpu.pipeline_mode<synchronous>, transform_indices = @transform_19, window_bounds = array<i64: 8, 128>}, {pipeline_mode = #tpu.pipeline_mode<synchronous>, transform_indices = @transform_20, window_bounds = array<i64: 8, 128>}, {pipeline_mode = #tpu.pipeline_mode<synchronous>, transform_indices = @transform_21, window_bounds = array<i64: 128, 256>}, {pipeline_mode = #tpu.pipeline_mode<synchronous>, transform_indices = @transform_22, window_bounds = array<i64: 1, 256>}, {pipeline_mode = #tpu.pipeline_mode<synchronous>, transform_indices = @transform_23, window_bounds = array<i64: 128, 128>}, {pipeline_mode = #tpu.pipeline_mode<synchronous>, transform_indices = @transform_24, window_bounds = array<i64: 1, 128>}, {pipeline_mode = #tpu.pipeline_mode<synchronous>, transform_indices = @transform_25, window_bounds = array<i64: 2, 128>}, {pipeline_mode = #tpu.pipeline_mode<synchronous>, transform_indices = @transform_26, window_bounds = array<i64: 128, 512>}, {pipeline_mode = #tpu.pipeline_mode<synchronous>, transform_indices = @transform_27, window_bounds = array<i64: 1, 512>}, {pipeline_mode = #tpu.pipeline_mode<synchronous>, transform_indices = @transform_28, window_bounds = array<i64: 512, 128>}, {pipeline_mode = #tpu.pipeline_mode<synchronous>, transform_indices = @transform_29, window_bounds = array<i64: 1, 128>}, {pipeline_mode = #tpu.pipeline_mode<synchronous>, transform_indices = @transform_30, window_bounds = array<i64: 2, 128>}, {pipeline_mode = #tpu.pipeline_mode<synchronous>, transform_indices = @transform_31, window_bounds = array<i64: 8, 128>}, {pipeline_mode = #tpu.pipeline_mode<synchronous>, transform_indices = @transform_32, window_bounds = array<i64: 8, 128>}, {pipeline_mode = #tpu.pipeline_mode<synchronous>, transform_indices = @transform_33, window_bounds = array<i64: 128, 256>}, {pipeline_mode = #tpu.pipeline_mode<synchronous>, transform_indices = @transform_34, window_bounds = array<i64: 1, 256>}, {pipeline_mode = #tpu.pipeline_mode<synchronous>, transform_indices = @transform_35, window_bounds = array<i64: 128, 128>}, {pipeline_mode = #tpu.pipeline_mode<synchronous>, transform_indices = @transform_36, window_bounds = array<i64: 1, 128>}, {pipeline_mode = #tpu.pipeline_mode<synchronous>, transform_indices = @transform_37, window_bounds = array<i64: 2, 128>}, {pipeline_mode = #tpu.pipeline_mode<synchronous>, transform_indices = @transform_38, window_bounds = array<i64: 128, 512>}, {pipeline_mode = #tpu.pipeline_mode<synchronous>, transform_indices = @transform_39, window_bounds = array<i64: 1, 512>}, {pipeline_mode = #tpu.pipeline_mode<synchronous>, transform_indices = @transform_40, window_bounds = array<i64: 512, 128>}, {pipeline_mode = #tpu.pipeline_mode<synchronous>, transform_indices = @transform_41, window_bounds = array<i64: 1, 128>}, {pipeline_mode = #tpu.pipeline_mode<synchronous>, transform_indices = @transform_42, window_bounds = array<i64: 2, 128>}, {pipeline_mode = #tpu.pipeline_mode<synchronous>, transform_indices = @transform_43, window_bounds = array<i64: 128, 256>}, {pipeline_mode = #tpu.pipeline_mode<synchronous>, transform_indices = @transform_44, window_bounds = array<i64: 1, 256>}, {pipeline_mode = #tpu.pipeline_mode<synchronous>, transform_indices = @transform_45, window_bounds = array<i64: 256, 1>}, {pipeline_mode = #tpu.pipeline_mode<synchronous>, transform_indices = @transform_46, window_bounds = array<i64: 1, 1>}, {pipeline_mode = #tpu.pipeline_mode<synchronous>, transform_indices = @transform_47, window_bounds = array<i64: 128, 256>}, {pipeline_mode = #tpu.pipeline_mode<synchronous>, transform_indices = @transform_48, window_bounds = array<i64: 1, 256>}, {pipeline_mode = #tpu.pipeline_mode<synchronous>, transform_indices = @transform_49, window_bounds = array<i64: 256, 1>}, {pipeline_mode = #tpu.pipeline_mode<synchronous>, transform_indices = @transform_50, window_bounds = array<i64: 1, 1>}, {transform_indices = @transform_51, window_bounds = array<i64: 1, 8, 128>}]} {
    %c0 = arith.constant 0 : index
    %c0_0 = arith.constant 0 : index
    %c0_1 = arith.constant 0 : index
    %0 = vector.load %arg1[%c0, %c0_0, %c0_1] : memref<1x16x128xf32, #tpu.memory_space<vmem>>, vector<1x16x128xf32>
    %1 = vector.shape_cast %0 : vector<1x16x128xf32> to vector<16x128xf32>
    %c0_2 = arith.constant 0 : index
    %c0_3 = arith.constant 0 : index
    %c0_4 = arith.constant 0 : index
    %2 = vector.load %arg2[%c0_2, %c0_3, %c0_4] : memref<1x8x64xf32, #tpu.memory_space<vmem>>, vector<1x8x64xf32>
    %3 = vector.shape_cast %2 : vector<1x8x64xf32> to vector<8x64xf32>
    %c0_5 = arith.constant 0 : index
    %c0_6 = arith.constant 0 : index
    %c0_7 = arith.constant 0 : index
    %4 = vector.load %arg3[%c0_5, %c0_6, %c0_7] : memref<1x1x8xf32, #tpu.memory_space<vmem>>, vector<1x1x8xf32>
    %5 = vector.shape_cast %4 : vector<1x1x8xf32> to vector<1x8xf32>
    %c0_8 = arith.constant 0 : index
    %c0_9 = arith.constant 0 : index
    %c0_10 = arith.constant 0 : index
    %6 = vector.load %arg4[%c0_8, %c0_9, %c0_10] : memref<1x1x16xf32, #tpu.memory_space<vmem>>, vector<1x1x16xf32>
    %7 = vector.shape_cast %6 : vector<1x1x16xf32> to vector<1x16xf32>
    %c0_11 = arith.constant 0 : index
    %c0_12 = arith.constant 0 : index
    %c0_13 = arith.constant 0 : index
    %8 = vector.load %arg5[%c0_11, %c0_12, %c0_13] : memref<1x16x1xf32, #tpu.memory_space<vmem>>, vector<1x16x1xf32>
    %9 = vector.shape_cast %8 : vector<1x16x1xf32> to vector<16x1xf32>
    %c0_14 = arith.constant 0 : index
    %c0_15 = arith.constant 0 : index
    %10 = vector.load %arg6[%c0_14, %c0_15] : memref<128x128xf32, #tpu.memory_space<vmem>>, vector<128x128xf32>
    %c0_16 = arith.constant 0 : index
    %c0_17 = arith.constant 0 : index
    %11 = vector.load %arg7[%c0_16, %c0_17] : memref<64x128xf32, #tpu.memory_space<vmem>>, vector<64x128xf32>
    %c0_18 = arith.constant 0 : index
    %c0_19 = arith.constant 0 : index
    %12 = vector.load %arg8[%c0_18, %c0_19] : memref<128x128xbf16, #tpu.memory_space<vmem>>, vector<128x128xbf16>
    %c0_20 = arith.constant 0 : index
    %c0_21 = arith.constant 0 : index
    %13 = vector.load %arg9[%c0_20, %c0_21] : memref<1x128xf32, #tpu.memory_space<vmem>>, vector<1x128xf32>
    %c0_22 = arith.constant 0 : index
    %c0_23 = arith.constant 0 : index
    %14 = vector.load %arg10[%c0_22, %c0_23] : memref<64x256xbf16, #tpu.memory_space<vmem>>, vector<64x256xbf16>
    %c0_24 = arith.constant 0 : index
    %c0_25 = arith.constant 0 : index
    %15 = vector.load %arg11[%c0_24, %c0_25] : memref<1x256xf32, #tpu.memory_space<vmem>>, vector<1x256xf32>
    %c0_26 = arith.constant 0 : index
    %c0_27 = arith.constant 0 : index
    %16 = vector.load %arg12[%c0_26, %c0_27] : memref<128x128xbf16, #tpu.memory_space<vmem>>, vector<128x128xbf16>
    %c0_28 = arith.constant 0 : index
    %c0_29 = arith.constant 0 : index
    %17 = vector.load %arg13[%c0_28, %c0_29] : memref<1x128xf32, #tpu.memory_space<vmem>>, vector<1x128xf32>
    %c0_30 = arith.constant 0 : index
    %c0_31 = arith.constant 0 : index
    %18 = vector.load %arg14[%c0_30, %c0_31] : memref<2x128xf32, #tpu.memory_space<vmem>>, vector<2x128xf32>
    %c0_32 = arith.constant 0 : index
    %c0_33 = arith.constant 0 : index
    %19 = vector.load %arg15[%c0_32, %c0_33] : memref<128x512xbf16, #tpu.memory_space<vmem>>, vector<128x512xbf16>
    %c0_34 = arith.constant 0 : index
    %c0_35 = arith.constant 0 : index
    %20 = vector.load %arg16[%c0_34, %c0_35] : memref<1x512xf32, #tpu.memory_space<vmem>>, vector<1x512xf32>
    %c0_36 = arith.constant 0 : index
    %c0_37 = arith.constant 0 : index
    %21 = vector.load %arg17[%c0_36, %c0_37] : memref<512x128xbf16, #tpu.memory_space<vmem>>, vector<512x128xbf16>
    %c0_38 = arith.constant 0 : index
    %c0_39 = arith.constant 0 : index
    %22 = vector.load %arg18[%c0_38, %c0_39] : memref<1x128xf32, #tpu.memory_space<vmem>>, vector<1x128xf32>
    %c0_40 = arith.constant 0 : index
    %c0_41 = arith.constant 0 : index
    %23 = vector.load %arg19[%c0_40, %c0_41] : memref<2x128xf32, #tpu.memory_space<vmem>>, vector<2x128xf32>
    %24 = arith.truncf %1 : vector<16x128xf32> to vector<16x128xbf16>
    %cst = arith.constant dense<0.000000e+00> : vector<16x128xf32>
    %25 = tpu.matmul %24, %12, %cst {dimension_numbers = #tpu.dot_dimension_numbers<[1], [0], [0], [1], [0, 0, 1, 1], [], []>} : vector<16x128xbf16>, vector<128x128xbf16>, vector<16x128xf32> -> vector<16x128xf32>
    %26 = vector.broadcast %13 : vector<1x128xf32> to vector<16x128xf32>
    %27 = arith.addf %25, %26 : vector<16x128xf32>
    %28 = arith.truncf %3 : vector<8x64xf32> to vector<8x64xbf16>
    %cst_42 = arith.constant dense<0.000000e+00> : vector<8x256xf32>
    %29 = tpu.matmul %28, %14, %cst_42 {dimension_numbers = #tpu.dot_dimension_numbers<[1], [0], [0], [1], [0, 0, 1, 1], [], []>} : vector<8x64xbf16>, vector<64x256xbf16>, vector<8x256xf32> -> vector<8x256xf32>
    %30 = vector.broadcast %15 : vector<1x256xf32> to vector<8x256xf32>
    %31 = arith.addf %29, %30 : vector<8x256xf32>
    %32 = vector.extract_strided_slice %31 {offsets = [0, 0], sizes = [8, 128], strides = [1, 1]} : vector<8x256xf32> to vector<8x128xf32>
    %33 = vector.extract_strided_slice %31 {offsets = [0, 128], sizes = [8, 128], strides = [1, 1]} : vector<8x256xf32> to vector<8x128xf32>
    %34 = tpu.concatenate %27, %27, %27, %27, %27, %27, %27, %27 in 0 : vector<16x128xf32>, vector<16x128xf32>, vector<16x128xf32>, vector<16x128xf32>, vector<16x128xf32>, vector<16x128xf32>, vector<16x128xf32>, vector<16x128xf32> -> vector<128x128xf32>
    %35 = arith.mulf %34, %10 : vector<128x128xf32>
    %36 = arith.truncf %35 : vector<128x128xf32> to vector<128x128xbf16>
    %37 = arith.truncf %32 : vector<8x128xf32> to vector<8x128xbf16>
    %cst_43 = arith.constant dense<0.000000e+00> : vector<128x8xf32>
    %38 = tpu.matmul %36, %37, %cst_43 {dimension_numbers = #tpu.dot_dimension_numbers<[1], [1], [0], [0], [0, 0, 1, 0], [], []>} : vector<128x128xbf16>, vector<8x128xbf16>, vector<128x8xf32> -> vector<128x8xf32>
    %cst_44 = arith.constant 0.000000e+00 : f32
    %39 = vector.broadcast %cst_44 : f32 to vector<1x8xf32>
    %40 = arith.cmpf ogt, %5, %39 : vector<1x8xf32>
    %cst_45 = arith.constant -1.000000e+09 : f32
    %41 = vector.shape_cast %40 : vector<1x8xi1> to vector<1x8xi1>
    %42 = vector.broadcast %41 : vector<1x8xi1> to vector<128x8xi1>
    %43 = vector.broadcast %cst_45 : f32 to vector<128x8xf32>
    %44 = arith.select %42, %38, %43 : vector<128x8xi1>, vector<128x8xf32>
    %cst_46 = arith.constant dense<0xFF800000> : vector<128xf32>
    %45 = vector.multi_reduction <maximumf>, %44, %cst_46 [1] : vector<128x8xf32> to vector<128xf32>
    %46 = vector.shape_cast %45 : vector<128xf32> to vector<128x1xf32>
    %47 = vector.broadcast %46 : vector<128x1xf32> to vector<128x8xf32>
    %48 = arith.subf %44, %47 : vector<128x8xf32>
    %49 = math.exp %48 : vector<128x8xf32>
    %cst_47 = arith.constant dense<0.000000e+00> : vector<128xf32>
    %50 = vector.multi_reduction <add>, %49, %cst_47 [1] : vector<128x8xf32> to vector<128xf32>
    %51 = vector.shape_cast %50 : vector<128xf32> to vector<128x1xf32>
    %52 = tpu.reciprocal %51 {approx = true} : vector<128x1xf32> -> vector<128x1xf32>
    %53 = vector.broadcast %52 : vector<128x1xf32> to vector<128x8xf32>
    %54 = arith.mulf %49, %53 : vector<128x8xf32>
    %55 = arith.truncf %54 : vector<128x8xf32> to vector<128x8xbf16>
    %56 = arith.truncf %33 : vector<8x128xf32> to vector<8x128xbf16>
    %cst_48 = arith.constant dense<0.000000e+00> : vector<128x128xf32>
    %57 = tpu.matmul %55, %56, %cst_48 {dimension_numbers = #tpu.dot_dimension_numbers<[1], [0], [0], [1], [0, 0, 1, 1], [], []>} : vector<128x8xbf16>, vector<8x128xbf16>, vector<128x128xf32> -> vector<128x128xf32>
    %58 = arith.mulf %57, %10 : vector<128x128xf32>
    %59 = vector.extract_strided_slice %58 {offsets = [0, 0], sizes = [16, 128], strides = [1, 1]} : vector<128x128xf32> to vector<16x128xf32>
    %60 = vector.extract_strided_slice %58 {offsets = [16, 0], sizes = [16, 128], strides = [1, 1]} : vector<128x128xf32> to vector<16x128xf32>
    %61 = arith.addf %59, %60 : vector<16x128xf32>
    %62 = vector.extract_strided_slice %58 {offsets = [32, 0], sizes = [16, 128], strides = [1, 1]} : vector<128x128xf32> to vector<16x128xf32>
    %63 = arith.addf %61, %62 : vector<16x128xf32>
    %64 = vector.extract_strided_slice %58 {offsets = [48, 0], sizes = [16, 128], strides = [1, 1]} : vector<128x128xf32> to vector<16x128xf32>
    %65 = arith.addf %63, %64 : vector<16x128xf32>
    %66 = vector.extract_strided_slice %58 {offsets = [64, 0], sizes = [16, 128], strides = [1, 1]} : vector<128x128xf32> to vector<16x128xf32>
    %67 = arith.addf %65, %66 : vector<16x128xf32>
    %68 = vector.extract_strided_slice %58 {offsets = [80, 0], sizes = [16, 128], strides = [1, 1]} : vector<128x128xf32> to vector<16x128xf32>
    %69 = arith.addf %67, %68 : vector<16x128xf32>
    %70 = vector.extract_strided_slice %58 {offsets = [96, 0], sizes = [16, 128], strides = [1, 1]} : vector<128x128xf32> to vector<16x128xf32>
    %71 = arith.addf %69, %70 : vector<16x128xf32>
    %72 = vector.extract_strided_slice %58 {offsets = [112, 0], sizes = [16, 128], strides = [1, 1]} : vector<128x128xf32> to vector<16x128xf32>
    %73 = arith.addf %71, %72 : vector<16x128xf32>
    %74 = arith.truncf %73 : vector<16x128xf32> to vector<16x128xbf16>
    %cst_49 = arith.constant dense<0.000000e+00> : vector<16x128xf32>
    %75 = tpu.matmul %74, %16, %cst_49 {dimension_numbers = #tpu.dot_dimension_numbers<[1], [0], [0], [1], [0, 0, 1, 1], [], []>} : vector<16x128xbf16>, vector<128x128xbf16>, vector<16x128xf32> -> vector<16x128xf32>
    %76 = vector.broadcast %17 : vector<1x128xf32> to vector<16x128xf32>
    %77 = arith.addf %75, %76 : vector<16x128xf32>
    %78 = arith.addf %1, %77 : vector<16x128xf32>
    %cst_50 = arith.constant dense<0.000000e+00> : vector<16xf32>
    %79 = vector.multi_reduction <add>, %78, %cst_50 [1] : vector<16x128xf32> to vector<16xf32>
    %80 = vector.shape_cast %79 : vector<16xf32> to vector<16x1xf32>
    %cst_51 = arith.constant 1.280000e+02 : f32
    %81 = vector.broadcast %cst_51 : f32 to vector<16x1xf32>
    %82 = arith.divf %80, %81 : vector<16x1xf32>
    %83 = vector.broadcast %82 : vector<16x1xf32> to vector<16x128xf32>
    %84 = arith.subf %78, %83 : vector<16x128xf32>
    %85 = arith.mulf %84, %84 : vector<16x128xf32>
    %cst_52 = arith.constant dense<0.000000e+00> : vector<16xf32>
    %86 = vector.multi_reduction <add>, %85, %cst_52 [1] : vector<16x128xf32> to vector<16xf32>
    %87 = vector.shape_cast %86 : vector<16xf32> to vector<16x1xf32>
    %cst_53 = arith.constant 1.280000e+02 : f32
    %88 = vector.broadcast %cst_53 : f32 to vector<16x1xf32>
    %89 = arith.divf %87, %88 : vector<16x1xf32>
    %90 = vector.broadcast %82 : vector<16x1xf32> to vector<16x128xf32>
    %91 = arith.subf %78, %90 : vector<16x128xf32>
    %cst_54 = arith.constant 9.99999974E-6 : f32
    %92 = vector.broadcast %cst_54 : f32 to vector<16x1xf32>
    %93 = arith.addf %89, %92 : vector<16x1xf32>
    %94 = math.rsqrt %93 : vector<16x1xf32>
    %95 = vector.broadcast %94 : vector<16x1xf32> to vector<16x128xf32>
    %96 = arith.mulf %91, %95 : vector<16x128xf32>
    %97 = vector.extract_strided_slice %18 {offsets = [0, 0], sizes = [1, 128], strides = [1, 1]} : vector<2x128xf32> to vector<1x128xf32>
    %98 = vector.broadcast %97 : vector<1x128xf32> to vector<16x128xf32>
    %99 = arith.mulf %96, %98 : vector<16x128xf32>
    %100 = vector.extract_strided_slice %18 {offsets = [1, 0], sizes = [1, 128], strides = [1, 1]} : vector<2x128xf32> to vector<1x128xf32>
    %101 = vector.broadcast %100 : vector<1x128xf32> to vector<16x128xf32>
    %102 = arith.addf %99, %101 : vector<16x128xf32>
    %103 = arith.truncf %102 : vector<16x128xf32> to vector<16x128xbf16>
    %cst_55 = arith.constant dense<0.000000e+00> : vector<16x512xf32>
    %104 = tpu.matmul %103, %19, %cst_55 {dimension_numbers = #tpu.dot_dimension_numbers<[1], [0], [0], [1], [0, 0, 1, 1], [], []>} : vector<16x128xbf16>, vector<128x512xbf16>, vector<16x512xf32> -> vector<16x512xf32>
    %105 = vector.broadcast %20 : vector<1x512xf32> to vector<16x512xf32>
    %106 = arith.addf %104, %105 : vector<16x512xf32>
    %cst_56 = arith.constant 0.000000e+00 : f32
    %107 = vector.broadcast %cst_56 : f32 to vector<16x512xf32>
    %108 = arith.maximumf %106, %107 : vector<16x512xf32>
    %109 = arith.truncf %108 : vector<16x512xf32> to vector<16x512xbf16>
    %cst_57 = arith.constant dense<0.000000e+00> : vector<16x128xf32>
    %110 = tpu.matmul %109, %21, %cst_57 {dimension_numbers = #tpu.dot_dimension_numbers<[1], [0], [0], [1], [0, 0, 1, 1], [], []>} : vector<16x512xbf16>, vector<512x128xbf16>, vector<16x128xf32> -> vector<16x128xf32>
    %111 = vector.broadcast %22 : vector<1x128xf32> to vector<16x128xf32>
    %112 = arith.addf %110, %111 : vector<16x128xf32>
    %113 = arith.addf %102, %112 : vector<16x128xf32>
    %cst_58 = arith.constant dense<0.000000e+00> : vector<16xf32>
    %114 = vector.multi_reduction <add>, %113, %cst_58 [1] : vector<16x128xf32> to vector<16xf32>
    %115 = vector.shape_cast %114 : vector<16xf32> to vector<16x1xf32>
    %cst_59 = arith.constant 1.280000e+02 : f32
    %116 = vector.broadcast %cst_59 : f32 to vector<16x1xf32>
    %117 = arith.divf %115, %116 : vector<16x1xf32>
    %118 = vector.broadcast %117 : vector<16x1xf32> to vector<16x128xf32>
    %119 = arith.subf %113, %118 : vector<16x128xf32>
    %120 = arith.mulf %119, %119 : vector<16x128xf32>
    %cst_60 = arith.constant dense<0.000000e+00> : vector<16xf32>
    %121 = vector.multi_reduction <add>, %120, %cst_60 [1] : vector<16x128xf32> to vector<16xf32>
    %122 = vector.shape_cast %121 : vector<16xf32> to vector<16x1xf32>
    %cst_61 = arith.constant 1.280000e+02 : f32
    %123 = vector.broadcast %cst_61 : f32 to vector<16x1xf32>
    %124 = arith.divf %122, %123 : vector<16x1xf32>
    %125 = vector.broadcast %117 : vector<16x1xf32> to vector<16x128xf32>
    %126 = arith.subf %113, %125 : vector<16x128xf32>
    %cst_62 = arith.constant 9.99999974E-6 : f32
    %127 = vector.broadcast %cst_62 : f32 to vector<16x1xf32>
    %128 = arith.addf %124, %127 : vector<16x1xf32>
    %129 = math.rsqrt %128 : vector<16x1xf32>
    %130 = vector.broadcast %129 : vector<16x1xf32> to vector<16x128xf32>
    %131 = arith.mulf %126, %130 : vector<16x128xf32>
    %132 = vector.extract_strided_slice %23 {offsets = [0, 0], sizes = [1, 128], strides = [1, 1]} : vector<2x128xf32> to vector<1x128xf32>
    %133 = vector.broadcast %132 : vector<1x128xf32> to vector<16x128xf32>
    %134 = arith.mulf %131, %133 : vector<16x128xf32>
    %135 = vector.extract_strided_slice %23 {offsets = [1, 0], sizes = [1, 128], strides = [1, 1]} : vector<2x128xf32> to vector<1x128xf32>
    %136 = vector.broadcast %135 : vector<1x128xf32> to vector<16x128xf32>
    %137 = arith.addf %134, %136 : vector<16x128xf32>
    %138 = vector.broadcast %9 : vector<16x1xf32> to vector<16x128xf32>
    %139 = arith.mulf %137, %138 : vector<16x128xf32>
    %c0_63 = arith.constant 0 : index
    %c0_64 = arith.constant 0 : index
    %140 = vector.load %arg20[%c0_63, %c0_64] : memref<8x128xbf16, #tpu.memory_space<vmem>>, vector<8x128xbf16>
    %c0_65 = arith.constant 0 : index
    %c0_66 = arith.constant 0 : index
    %141 = vector.load %arg21[%c0_65, %c0_66] : memref<8x128xf32, #tpu.memory_space<vmem>>, vector<8x128xf32>
    %c0_67 = arith.constant 0 : index
    %c0_68 = arith.constant 0 : index
    %142 = vector.load %arg22[%c0_67, %c0_68] : memref<128x256xbf16, #tpu.memory_space<vmem>>, vector<128x256xbf16>
    %c0_69 = arith.constant 0 : index
    %c0_70 = arith.constant 0 : index
    %143 = vector.load %arg23[%c0_69, %c0_70] : memref<1x256xf32, #tpu.memory_space<vmem>>, vector<1x256xf32>
    %c0_71 = arith.constant 0 : index
    %c0_72 = arith.constant 0 : index
    %144 = vector.load %arg24[%c0_71, %c0_72] : memref<128x128xbf16, #tpu.memory_space<vmem>>, vector<128x128xbf16>
    %c0_73 = arith.constant 0 : index
    %c0_74 = arith.constant 0 : index
    %145 = vector.load %arg25[%c0_73, %c0_74] : memref<1x128xf32, #tpu.memory_space<vmem>>, vector<1x128xf32>
    %c0_75 = arith.constant 0 : index
    %c0_76 = arith.constant 0 : index
    %146 = vector.load %arg26[%c0_75, %c0_76] : memref<2x128xf32, #tpu.memory_space<vmem>>, vector<2x128xf32>
    %c0_77 = arith.constant 0 : index
    %c0_78 = arith.constant 0 : index
    %147 = vector.load %arg27[%c0_77, %c0_78] : memref<128x512xbf16, #tpu.memory_space<vmem>>, vector<128x512xbf16>
    %c0_79 = arith.constant 0 : index
    %c0_80 = arith.constant 0 : index
    %148 = vector.load %arg28[%c0_79, %c0_80] : memref<1x512xf32, #tpu.memory_space<vmem>>, vector<1x512xf32>
    %c0_81 = arith.constant 0 : index
    %c0_82 = arith.constant 0 : index
    %149 = vector.load %arg29[%c0_81, %c0_82] : memref<512x128xbf16, #tpu.memory_space<vmem>>, vector<512x128xbf16>
    %c0_83 = arith.constant 0 : index
    %c0_84 = arith.constant 0 : index
    %150 = vector.load %arg30[%c0_83, %c0_84] : memref<1x128xf32, #tpu.memory_space<vmem>>, vector<1x128xf32>
    %c0_85 = arith.constant 0 : index
    %c0_86 = arith.constant 0 : index
    %151 = vector.load %arg31[%c0_85, %c0_86] : memref<2x128xf32, #tpu.memory_space<vmem>>, vector<2x128xf32>
    %152 = arith.truncf %139 : vector<16x128xf32> to vector<16x128xbf16>
    %cst_87 = arith.constant dense<0.000000e+00> : vector<16x256xf32>
    %153 = tpu.matmul %152, %142, %cst_87 {dimension_numbers = #tpu.dot_dimension_numbers<[1], [0], [0], [1], [0, 0, 1, 1], [], []>} : vector<16x128xbf16>, vector<128x256xbf16>, vector<16x256xf32> -> vector<16x256xf32>
    %154 = vector.broadcast %143 : vector<1x256xf32> to vector<16x256xf32>
    %155 = arith.addf %153, %154 : vector<16x256xf32>
    %156 = vector.extract_strided_slice %155 {offsets = [0, 0], sizes = [16, 128], strides = [1, 1]} : vector<16x256xf32> to vector<16x128xf32>
    %157 = vector.extract_strided_slice %155 {offsets = [0, 128], sizes = [16, 128], strides = [1, 1]} : vector<16x256xf32> to vector<16x128xf32>
    %158 = arith.extf %140 : vector<8x128xbf16> to vector<8x128xf32>
    %159 = tpu.concatenate %158, %158, %158, %158, %158, %158, %158, %158 in 0 : vector<8x128xf32>, vector<8x128xf32>, vector<8x128xf32>, vector<8x128xf32>, vector<8x128xf32>, vector<8x128xf32>, vector<8x128xf32>, vector<8x128xf32> -> vector<64x128xf32>
    %160 = arith.mulf %159, %11 : vector<64x128xf32>
    %161 = arith.truncf %160 : vector<64x128xf32> to vector<64x128xbf16>
    %162 = arith.truncf %156 : vector<16x128xf32> to vector<16x128xbf16>
    %cst_88 = arith.constant dense<0.000000e+00> : vector<64x16xf32>
    %163 = tpu.matmul %161, %162, %cst_88 {dimension_numbers = #tpu.dot_dimension_numbers<[1], [1], [0], [0], [0, 0, 1, 0], [], []>} : vector<64x128xbf16>, vector<16x128xbf16>, vector<64x16xf32> -> vector<64x16xf32>
    %cst_89 = arith.constant 0.000000e+00 : f32
    %164 = vector.broadcast %cst_89 : f32 to vector<1x16xf32>
    %165 = arith.cmpf ogt, %7, %164 : vector<1x16xf32>
    %cst_90 = arith.constant -1.000000e+09 : f32
    %166 = vector.shape_cast %165 : vector<1x16xi1> to vector<1x16xi1>
    %167 = vector.broadcast %166 : vector<1x16xi1> to vector<64x16xi1>
    %168 = vector.broadcast %cst_90 : f32 to vector<64x16xf32>
    %169 = arith.select %167, %163, %168 : vector<64x16xi1>, vector<64x16xf32>
    %cst_91 = arith.constant dense<0xFF800000> : vector<64xf32>
    %170 = vector.multi_reduction <maximumf>, %169, %cst_91 [1] : vector<64x16xf32> to vector<64xf32>
    %171 = vector.shape_cast %170 : vector<64xf32> to vector<64x1xf32>
    %172 = vector.broadcast %171 : vector<64x1xf32> to vector<64x16xf32>
    %173 = arith.subf %169, %172 : vector<64x16xf32>
    %174 = math.exp %173 : vector<64x16xf32>
    %cst_92 = arith.constant dense<0.000000e+00> : vector<64xf32>
    %175 = vector.multi_reduction <add>, %174, %cst_92 [1] : vector<64x16xf32> to vector<64xf32>
    %176 = vector.shape_cast %175 : vector<64xf32> to vector<64x1xf32>
    %177 = tpu.reciprocal %176 {approx = true} : vector<64x1xf32> -> vector<64x1xf32>
    %178 = vector.broadcast %177 : vector<64x1xf32> to vector<64x16xf32>
    %179 = arith.mulf %174, %178 : vector<64x16xf32>
    %180 = arith.truncf %179 : vector<64x16xf32> to vector<64x16xbf16>
    %181 = arith.truncf %157 : vector<16x128xf32> to vector<16x128xbf16>
    %cst_93 = arith.constant dense<0.000000e+00> : vector<64x128xf32>
    %182 = tpu.matmul %180, %181, %cst_93 {dimension_numbers = #tpu.dot_dimension_numbers<[1], [0], [0], [1], [0, 0, 1, 1], [], []>} : vector<64x16xbf16>, vector<16x128xbf16>, vector<64x128xf32> -> vector<64x128xf32>
    %183 = arith.mulf %182, %11 : vector<64x128xf32>
    %184 = vector.extract_strided_slice %183 {offsets = [0, 0], sizes = [8, 128], strides = [1, 1]} : vector<64x128xf32> to vector<8x128xf32>
    %185 = vector.extract_strided_slice %183 {offsets = [8, 0], sizes = [8, 128], strides = [1, 1]} : vector<64x128xf32> to vector<8x128xf32>
    %186 = arith.addf %184, %185 : vector<8x128xf32>
    %187 = vector.extract_strided_slice %183 {offsets = [16, 0], sizes = [8, 128], strides = [1, 1]} : vector<64x128xf32> to vector<8x128xf32>
    %188 = arith.addf %186, %187 : vector<8x128xf32>
    %189 = vector.extract_strided_slice %183 {offsets = [24, 0], sizes = [8, 128], strides = [1, 1]} : vector<64x128xf32> to vector<8x128xf32>
    %190 = arith.addf %188, %189 : vector<8x128xf32>
    %191 = vector.extract_strided_slice %183 {offsets = [32, 0], sizes = [8, 128], strides = [1, 1]} : vector<64x128xf32> to vector<8x128xf32>
    %192 = arith.addf %190, %191 : vector<8x128xf32>
    %193 = vector.extract_strided_slice %183 {offsets = [40, 0], sizes = [8, 128], strides = [1, 1]} : vector<64x128xf32> to vector<8x128xf32>
    %194 = arith.addf %192, %193 : vector<8x128xf32>
    %195 = vector.extract_strided_slice %183 {offsets = [48, 0], sizes = [8, 128], strides = [1, 1]} : vector<64x128xf32> to vector<8x128xf32>
    %196 = arith.addf %194, %195 : vector<8x128xf32>
    %197 = vector.extract_strided_slice %183 {offsets = [56, 0], sizes = [8, 128], strides = [1, 1]} : vector<64x128xf32> to vector<8x128xf32>
    %198 = arith.addf %196, %197 : vector<8x128xf32>
    %199 = arith.truncf %198 : vector<8x128xf32> to vector<8x128xbf16>
    %cst_94 = arith.constant dense<0.000000e+00> : vector<8x128xf32>
    %200 = tpu.matmul %199, %144, %cst_94 {dimension_numbers = #tpu.dot_dimension_numbers<[1], [0], [0], [1], [0, 0, 1, 1], [], []>} : vector<8x128xbf16>, vector<128x128xbf16>, vector<8x128xf32> -> vector<8x128xf32>
    %201 = vector.broadcast %145 : vector<1x128xf32> to vector<8x128xf32>
    %202 = arith.addf %200, %201 : vector<8x128xf32>
    %203 = arith.addf %141, %202 : vector<8x128xf32>
    %cst_95 = arith.constant dense<0.000000e+00> : vector<8xf32>
    %204 = vector.multi_reduction <add>, %203, %cst_95 [1] : vector<8x128xf32> to vector<8xf32>
    %205 = vector.shape_cast %204 : vector<8xf32> to vector<8x1xf32>
    %cst_96 = arith.constant 1.280000e+02 : f32
    %206 = vector.broadcast %cst_96 : f32 to vector<8x1xf32>
    %207 = arith.divf %205, %206 : vector<8x1xf32>
    %208 = vector.broadcast %207 : vector<8x1xf32> to vector<8x128xf32>
    %209 = arith.subf %203, %208 : vector<8x128xf32>
    %210 = arith.mulf %209, %209 : vector<8x128xf32>
    %cst_97 = arith.constant dense<0.000000e+00> : vector<8xf32>
    %211 = vector.multi_reduction <add>, %210, %cst_97 [1] : vector<8x128xf32> to vector<8xf32>
    %212 = vector.shape_cast %211 : vector<8xf32> to vector<8x1xf32>
    %cst_98 = arith.constant 1.280000e+02 : f32
    %213 = vector.broadcast %cst_98 : f32 to vector<8x1xf32>
    %214 = arith.divf %212, %213 : vector<8x1xf32>
    %215 = vector.broadcast %207 : vector<8x1xf32> to vector<8x128xf32>
    %216 = arith.subf %203, %215 : vector<8x128xf32>
    %cst_99 = arith.constant 9.99999974E-6 : f32
    %217 = vector.broadcast %cst_99 : f32 to vector<8x1xf32>
    %218 = arith.addf %214, %217 : vector<8x1xf32>
    %219 = math.rsqrt %218 : vector<8x1xf32>
    %220 = vector.broadcast %219 : vector<8x1xf32> to vector<8x128xf32>
    %221 = arith.mulf %216, %220 : vector<8x128xf32>
    %222 = vector.extract_strided_slice %146 {offsets = [0, 0], sizes = [1, 128], strides = [1, 1]} : vector<2x128xf32> to vector<1x128xf32>
    %223 = vector.broadcast %222 : vector<1x128xf32> to vector<8x128xf32>
    %224 = arith.mulf %221, %223 : vector<8x128xf32>
    %225 = vector.extract_strided_slice %146 {offsets = [1, 0], sizes = [1, 128], strides = [1, 1]} : vector<2x128xf32> to vector<1x128xf32>
    %226 = vector.broadcast %225 : vector<1x128xf32> to vector<8x128xf32>
    %227 = arith.addf %224, %226 : vector<8x128xf32>
    %228 = arith.truncf %227 : vector<8x128xf32> to vector<8x128xbf16>
    %cst_100 = arith.constant dense<0.000000e+00> : vector<8x512xf32>
    %229 = tpu.matmul %228, %147, %cst_100 {dimension_numbers = #tpu.dot_dimension_numbers<[1], [0], [0], [1], [0, 0, 1, 1], [], []>} : vector<8x128xbf16>, vector<128x512xbf16>, vector<8x512xf32> -> vector<8x512xf32>
    %230 = vector.broadcast %148 : vector<1x512xf32> to vector<8x512xf32>
    %231 = arith.addf %229, %230 : vector<8x512xf32>
    %cst_101 = arith.constant 0.000000e+00 : f32
    %232 = vector.broadcast %cst_101 : f32 to vector<8x512xf32>
    %233 = arith.maximumf %231, %232 : vector<8x512xf32>
    %234 = arith.truncf %233 : vector<8x512xf32> to vector<8x512xbf16>
    %cst_102 = arith.constant dense<0.000000e+00> : vector<8x128xf32>
    %235 = tpu.matmul %234, %149, %cst_102 {dimension_numbers = #tpu.dot_dimension_numbers<[1], [0], [0], [1], [0, 0, 1, 1], [], []>} : vector<8x512xbf16>, vector<512x128xbf16>, vector<8x128xf32> -> vector<8x128xf32>
    %236 = vector.broadcast %150 : vector<1x128xf32> to vector<8x128xf32>
    %237 = arith.addf %235, %236 : vector<8x128xf32>
    %238 = arith.addf %227, %237 : vector<8x128xf32>
    %cst_103 = arith.constant dense<0.000000e+00> : vector<8xf32>
    %239 = vector.multi_reduction <add>, %238, %cst_103 [1] : vector<8x128xf32> to vector<8xf32>
    %240 = vector.shape_cast %239 : vector<8xf32> to vector<8x1xf32>
    %cst_104 = arith.constant 1.280000e+02 : f32
    %241 = vector.broadcast %cst_104 : f32 to vector<8x1xf32>
    %242 = arith.divf %240, %241 : vector<8x1xf32>
    %243 = vector.broadcast %242 : vector<8x1xf32> to vector<8x128xf32>
    %244 = arith.subf %238, %243 : vector<8x128xf32>
    %245 = arith.mulf %244, %244 : vector<8x128xf32>
    %cst_105 = arith.constant dense<0.000000e+00> : vector<8xf32>
    %246 = vector.multi_reduction <add>, %245, %cst_105 [1] : vector<8x128xf32> to vector<8xf32>
    %247 = vector.shape_cast %246 : vector<8xf32> to vector<8x1xf32>
    %cst_106 = arith.constant 1.280000e+02 : f32
    %248 = vector.broadcast %cst_106 : f32 to vector<8x1xf32>
    %249 = arith.divf %247, %248 : vector<8x1xf32>
    %250 = vector.broadcast %242 : vector<8x1xf32> to vector<8x128xf32>
    %251 = arith.subf %238, %250 : vector<8x128xf32>
    %cst_107 = arith.constant 9.99999974E-6 : f32
    %252 = vector.broadcast %cst_107 : f32 to vector<8x1xf32>
    %253 = arith.addf %249, %252 : vector<8x1xf32>
    %254 = math.rsqrt %253 : vector<8x1xf32>
    %255 = vector.broadcast %254 : vector<8x1xf32> to vector<8x128xf32>
    %256 = arith.mulf %251, %255 : vector<8x128xf32>
    %257 = vector.extract_strided_slice %151 {offsets = [0, 0], sizes = [1, 128], strides = [1, 1]} : vector<2x128xf32> to vector<1x128xf32>
    %258 = vector.broadcast %257 : vector<1x128xf32> to vector<8x128xf32>
    %259 = arith.mulf %256, %258 : vector<8x128xf32>
    %260 = vector.extract_strided_slice %151 {offsets = [1, 0], sizes = [1, 128], strides = [1, 1]} : vector<2x128xf32> to vector<1x128xf32>
    %261 = vector.broadcast %260 : vector<1x128xf32> to vector<8x128xf32>
    %262 = arith.addf %259, %261 : vector<8x128xf32>
    %c0_108 = arith.constant 0 : index
    %c0_109 = arith.constant 0 : index
    %263 = vector.load %arg32[%c0_108, %c0_109] : memref<8x128xbf16, #tpu.memory_space<vmem>>, vector<8x128xbf16>
    %c0_110 = arith.constant 0 : index
    %c0_111 = arith.constant 0 : index
    %264 = vector.load %arg33[%c0_110, %c0_111] : memref<8x128xf32, #tpu.memory_space<vmem>>, vector<8x128xf32>
    %c0_112 = arith.constant 0 : index
    %c0_113 = arith.constant 0 : index
    %265 = vector.load %arg34[%c0_112, %c0_113] : memref<128x256xbf16, #tpu.memory_space<vmem>>, vector<128x256xbf16>
    %c0_114 = arith.constant 0 : index
    %c0_115 = arith.constant 0 : index
    %266 = vector.load %arg35[%c0_114, %c0_115] : memref<1x256xf32, #tpu.memory_space<vmem>>, vector<1x256xf32>
    %c0_116 = arith.constant 0 : index
    %c0_117 = arith.constant 0 : index
    %267 = vector.load %arg36[%c0_116, %c0_117] : memref<128x128xbf16, #tpu.memory_space<vmem>>, vector<128x128xbf16>
    %c0_118 = arith.constant 0 : index
    %c0_119 = arith.constant 0 : index
    %268 = vector.load %arg37[%c0_118, %c0_119] : memref<1x128xf32, #tpu.memory_space<vmem>>, vector<1x128xf32>
    %c0_120 = arith.constant 0 : index
    %c0_121 = arith.constant 0 : index
    %269 = vector.load %arg38[%c0_120, %c0_121] : memref<2x128xf32, #tpu.memory_space<vmem>>, vector<2x128xf32>
    %c0_122 = arith.constant 0 : index
    %c0_123 = arith.constant 0 : index
    %270 = vector.load %arg39[%c0_122, %c0_123] : memref<128x512xbf16, #tpu.memory_space<vmem>>, vector<128x512xbf16>
    %c0_124 = arith.constant 0 : index
    %c0_125 = arith.constant 0 : index
    %271 = vector.load %arg40[%c0_124, %c0_125] : memref<1x512xf32, #tpu.memory_space<vmem>>, vector<1x512xf32>
    %c0_126 = arith.constant 0 : index
    %c0_127 = arith.constant 0 : index
    %272 = vector.load %arg41[%c0_126, %c0_127] : memref<512x128xbf16, #tpu.memory_space<vmem>>, vector<512x128xbf16>
    %c0_128 = arith.constant 0 : index
    %c0_129 = arith.constant 0 : index
    %273 = vector.load %arg42[%c0_128, %c0_129] : memref<1x128xf32, #tpu.memory_space<vmem>>, vector<1x128xf32>
    %c0_130 = arith.constant 0 : index
    %c0_131 = arith.constant 0 : index
    %274 = vector.load %arg43[%c0_130, %c0_131] : memref<2x128xf32, #tpu.memory_space<vmem>>, vector<2x128xf32>
    %275 = arith.truncf %1 : vector<16x128xf32> to vector<16x128xbf16>
    %cst_132 = arith.constant dense<0.000000e+00> : vector<16x256xf32>
    %276 = tpu.matmul %275, %265, %cst_132 {dimension_numbers = #tpu.dot_dimension_numbers<[1], [0], [0], [1], [0, 0, 1, 1], [], []>} : vector<16x128xbf16>, vector<128x256xbf16>, vector<16x256xf32> -> vector<16x256xf32>
    %277 = vector.broadcast %266 : vector<1x256xf32> to vector<16x256xf32>
    %278 = arith.addf %276, %277 : vector<16x256xf32>
    %279 = vector.extract_strided_slice %278 {offsets = [0, 0], sizes = [16, 128], strides = [1, 1]} : vector<16x256xf32> to vector<16x128xf32>
    %280 = vector.extract_strided_slice %278 {offsets = [0, 128], sizes = [16, 128], strides = [1, 1]} : vector<16x256xf32> to vector<16x128xf32>
    %281 = arith.extf %263 : vector<8x128xbf16> to vector<8x128xf32>
    %282 = tpu.concatenate %281, %281, %281, %281, %281, %281, %281, %281 in 0 : vector<8x128xf32>, vector<8x128xf32>, vector<8x128xf32>, vector<8x128xf32>, vector<8x128xf32>, vector<8x128xf32>, vector<8x128xf32>, vector<8x128xf32> -> vector<64x128xf32>
    %283 = arith.mulf %282, %11 : vector<64x128xf32>
    %284 = arith.truncf %283 : vector<64x128xf32> to vector<64x128xbf16>
    %285 = arith.truncf %279 : vector<16x128xf32> to vector<16x128xbf16>
    %cst_133 = arith.constant dense<0.000000e+00> : vector<64x16xf32>
    %286 = tpu.matmul %284, %285, %cst_133 {dimension_numbers = #tpu.dot_dimension_numbers<[1], [1], [0], [0], [0, 0, 1, 0], [], []>} : vector<64x128xbf16>, vector<16x128xbf16>, vector<64x16xf32> -> vector<64x16xf32>
    %cst_134 = arith.constant 0.000000e+00 : f32
    %287 = vector.broadcast %cst_134 : f32 to vector<1x16xf32>
    %288 = arith.cmpf ogt, %7, %287 : vector<1x16xf32>
    %cst_135 = arith.constant -1.000000e+09 : f32
    %289 = vector.shape_cast %288 : vector<1x16xi1> to vector<1x16xi1>
    %290 = vector.broadcast %289 : vector<1x16xi1> to vector<64x16xi1>
    %291 = vector.broadcast %cst_135 : f32 to vector<64x16xf32>
    %292 = arith.select %290, %286, %291 : vector<64x16xi1>, vector<64x16xf32>
    %cst_136 = arith.constant dense<0xFF800000> : vector<64xf32>
    %293 = vector.multi_reduction <maximumf>, %292, %cst_136 [1] : vector<64x16xf32> to vector<64xf32>
    %294 = vector.shape_cast %293 : vector<64xf32> to vector<64x1xf32>
    %295 = vector.broadcast %294 : vector<64x1xf32> to vector<64x16xf32>
    %296 = arith.subf %292, %295 : vector<64x16xf32>
    %297 = math.exp %296 : vector<64x16xf32>
    %cst_137 = arith.constant dense<0.000000e+00> : vector<64xf32>
    %298 = vector.multi_reduction <add>, %297, %cst_137 [1] : vector<64x16xf32> to vector<64xf32>
    %299 = vector.shape_cast %298 : vector<64xf32> to vector<64x1xf32>
    %300 = tpu.reciprocal %299 {approx = true} : vector<64x1xf32> -> vector<64x1xf32>
    %301 = vector.broadcast %300 : vector<64x1xf32> to vector<64x16xf32>
    %302 = arith.mulf %297, %301 : vector<64x16xf32>
    %303 = arith.truncf %302 : vector<64x16xf32> to vector<64x16xbf16>
    %304 = arith.truncf %280 : vector<16x128xf32> to vector<16x128xbf16>
    %cst_138 = arith.constant dense<0.000000e+00> : vector<64x128xf32>
    %305 = tpu.matmul %303, %304, %cst_138 {dimension_numbers = #tpu.dot_dimension_numbers<[1], [0], [0], [1], [0, 0, 1, 1], [], []>} : vector<64x16xbf16>, vector<16x128xbf16>, vector<64x128xf32> -> vector<64x128xf32>
    %306 = arith.mulf %305, %11 : vector<64x128xf32>
    %307 = vector.extract_strided_slice %306 {offsets = [0, 0], sizes = [8, 128], strides = [1, 1]} : vector<64x128xf32> to vector<8x128xf32>
    %308 = vector.extract_strided_slice %306 {offsets = [8, 0], sizes = [8, 128], strides = [1, 1]} : vector<64x128xf32> to vector<8x128xf32>
    %309 = arith.addf %307, %308 : vector<8x128xf32>
    %310 = vector.extract_strided_slice %306 {offsets = [16, 0], sizes = [8, 128], strides = [1, 1]} : vector<64x128xf32> to vector<8x128xf32>
    %311 = arith.addf %309, %310 : vector<8x128xf32>
    %312 = vector.extract_strided_slice %306 {offsets = [24, 0], sizes = [8, 128], strides = [1, 1]} : vector<64x128xf32> to vector<8x128xf32>
    %313 = arith.addf %311, %312 : vector<8x128xf32>
    %314 = vector.extract_strided_slice %306 {offsets = [32, 0], sizes = [8, 128], strides = [1, 1]} : vector<64x128xf32> to vector<8x128xf32>
    %315 = arith.addf %313, %314 : vector<8x128xf32>
    %316 = vector.extract_strided_slice %306 {offsets = [40, 0], sizes = [8, 128], strides = [1, 1]} : vector<64x128xf32> to vector<8x128xf32>
    %317 = arith.addf %315, %316 : vector<8x128xf32>
    %318 = vector.extract_strided_slice %306 {offsets = [48, 0], sizes = [8, 128], strides = [1, 1]} : vector<64x128xf32> to vector<8x128xf32>
    %319 = arith.addf %317, %318 : vector<8x128xf32>
    %320 = vector.extract_strided_slice %306 {offsets = [56, 0], sizes = [8, 128], strides = [1, 1]} : vector<64x128xf32> to vector<8x128xf32>
    %321 = arith.addf %319, %320 : vector<8x128xf32>
    %322 = arith.truncf %321 : vector<8x128xf32> to vector<8x128xbf16>
    %cst_139 = arith.constant dense<0.000000e+00> : vector<8x128xf32>
    %323 = tpu.matmul %322, %267, %cst_139 {dimension_numbers = #tpu.dot_dimension_numbers<[1], [0], [0], [1], [0, 0, 1, 1], [], []>} : vector<8x128xbf16>, vector<128x128xbf16>, vector<8x128xf32> -> vector<8x128xf32>
    %324 = vector.broadcast %268 : vector<1x128xf32> to vector<8x128xf32>
    %325 = arith.addf %323, %324 : vector<8x128xf32>
    %326 = arith.addf %264, %325 : vector<8x128xf32>
    %cst_140 = arith.constant dense<0.000000e+00> : vector<8xf32>
    %327 = vector.multi_reduction <add>, %326, %cst_140 [1] : vector<8x128xf32> to vector<8xf32>
    %328 = vector.shape_cast %327 : vector<8xf32> to vector<8x1xf32>
    %cst_141 = arith.constant 1.280000e+02 : f32
    %329 = vector.broadcast %cst_141 : f32 to vector<8x1xf32>
    %330 = arith.divf %328, %329 : vector<8x1xf32>
    %331 = vector.broadcast %330 : vector<8x1xf32> to vector<8x128xf32>
    %332 = arith.subf %326, %331 : vector<8x128xf32>
    %333 = arith.mulf %332, %332 : vector<8x128xf32>
    %cst_142 = arith.constant dense<0.000000e+00> : vector<8xf32>
    %334 = vector.multi_reduction <add>, %333, %cst_142 [1] : vector<8x128xf32> to vector<8xf32>
    %335 = vector.shape_cast %334 : vector<8xf32> to vector<8x1xf32>
    %cst_143 = arith.constant 1.280000e+02 : f32
    %336 = vector.broadcast %cst_143 : f32 to vector<8x1xf32>
    %337 = arith.divf %335, %336 : vector<8x1xf32>
    %338 = vector.broadcast %330 : vector<8x1xf32> to vector<8x128xf32>
    %339 = arith.subf %326, %338 : vector<8x128xf32>
    %cst_144 = arith.constant 9.99999974E-6 : f32
    %340 = vector.broadcast %cst_144 : f32 to vector<8x1xf32>
    %341 = arith.addf %337, %340 : vector<8x1xf32>
    %342 = math.rsqrt %341 : vector<8x1xf32>
    %343 = vector.broadcast %342 : vector<8x1xf32> to vector<8x128xf32>
    %344 = arith.mulf %339, %343 : vector<8x128xf32>
    %345 = vector.extract_strided_slice %269 {offsets = [0, 0], sizes = [1, 128], strides = [1, 1]} : vector<2x128xf32> to vector<1x128xf32>
    %346 = vector.broadcast %345 : vector<1x128xf32> to vector<8x128xf32>
    %347 = arith.mulf %344, %346 : vector<8x128xf32>
    %348 = vector.extract_strided_slice %269 {offsets = [1, 0], sizes = [1, 128], strides = [1, 1]} : vector<2x128xf32> to vector<1x128xf32>
    %349 = vector.broadcast %348 : vector<1x128xf32> to vector<8x128xf32>
    %350 = arith.addf %347, %349 : vector<8x128xf32>
    %351 = arith.truncf %350 : vector<8x128xf32> to vector<8x128xbf16>
    %cst_145 = arith.constant dense<0.000000e+00> : vector<8x512xf32>
    %352 = tpu.matmul %351, %270, %cst_145 {dimension_numbers = #tpu.dot_dimension_numbers<[1], [0], [0], [1], [0, 0, 1, 1], [], []>} : vector<8x128xbf16>, vector<128x512xbf16>, vector<8x512xf32> -> vector<8x512xf32>
    %353 = vector.broadcast %271 : vector<1x512xf32> to vector<8x512xf32>
    %354 = arith.addf %352, %353 : vector<8x512xf32>
    %cst_146 = arith.constant 0.000000e+00 : f32
    %355 = vector.broadcast %cst_146 : f32 to vector<8x512xf32>
    %356 = arith.maximumf %354, %355 : vector<8x512xf32>
    %357 = arith.truncf %356 : vector<8x512xf32> to vector<8x512xbf16>
    %cst_147 = arith.constant dense<0.000000e+00> : vector<8x128xf32>
    %358 = tpu.matmul %357, %272, %cst_147 {dimension_numbers = #tpu.dot_dimension_numbers<[1], [0], [0], [1], [0, 0, 1, 1], [], []>} : vector<8x512xbf16>, vector<512x128xbf16>, vector<8x128xf32> -> vector<8x128xf32>
    %359 = vector.broadcast %273 : vector<1x128xf32> to vector<8x128xf32>
    %360 = arith.addf %358, %359 : vector<8x128xf32>
    %361 = arith.addf %350, %360 : vector<8x128xf32>
    %cst_148 = arith.constant dense<0.000000e+00> : vector<8xf32>
    %362 = vector.multi_reduction <add>, %361, %cst_148 [1] : vector<8x128xf32> to vector<8xf32>
    %363 = vector.shape_cast %362 : vector<8xf32> to vector<8x1xf32>
    %cst_149 = arith.constant 1.280000e+02 : f32
    %364 = vector.broadcast %cst_149 : f32 to vector<8x1xf32>
    %365 = arith.divf %363, %364 : vector<8x1xf32>
    %366 = vector.broadcast %365 : vector<8x1xf32> to vector<8x128xf32>
    %367 = arith.subf %361, %366 : vector<8x128xf32>
    %368 = arith.mulf %367, %367 : vector<8x128xf32>
    %cst_150 = arith.constant dense<0.000000e+00> : vector<8xf32>
    %369 = vector.multi_reduction <add>, %368, %cst_150 [1] : vector<8x128xf32> to vector<8xf32>
    %370 = vector.shape_cast %369 : vector<8xf32> to vector<8x1xf32>
    %cst_151 = arith.constant 1.280000e+02 : f32
    %371 = vector.broadcast %cst_151 : f32 to vector<8x1xf32>
    %372 = arith.divf %370, %371 : vector<8x1xf32>
    %373 = vector.broadcast %365 : vector<8x1xf32> to vector<8x128xf32>
    %374 = arith.subf %361, %373 : vector<8x128xf32>
    %cst_152 = arith.constant 9.99999974E-6 : f32
    %375 = vector.broadcast %cst_152 : f32 to vector<8x1xf32>
    %376 = arith.addf %372, %375 : vector<8x1xf32>
    %377 = math.rsqrt %376 : vector<8x1xf32>
    %378 = vector.broadcast %377 : vector<8x1xf32> to vector<8x128xf32>
    %379 = arith.mulf %374, %378 : vector<8x128xf32>
    %380 = vector.extract_strided_slice %274 {offsets = [0, 0], sizes = [1, 128], strides = [1, 1]} : vector<2x128xf32> to vector<1x128xf32>
    %381 = vector.broadcast %380 : vector<1x128xf32> to vector<8x128xf32>
    %382 = arith.mulf %379, %381 : vector<8x128xf32>
    %383 = vector.extract_strided_slice %274 {offsets = [1, 0], sizes = [1, 128], strides = [1, 1]} : vector<2x128xf32> to vector<1x128xf32>
    %384 = vector.broadcast %383 : vector<1x128xf32> to vector<8x128xf32>
    %385 = arith.addf %382, %384 : vector<8x128xf32>
    %c0_153 = arith.constant 0 : index
    %c0_154 = arith.constant 0 : index
    %386 = vector.load %arg44[%c0_153, %c0_154] : memref<128x256xbf16, #tpu.memory_space<vmem>>, vector<128x256xbf16>
    %c0_155 = arith.constant 0 : index
    %c0_156 = arith.constant 0 : index
    %387 = vector.load %arg45[%c0_155, %c0_156] : memref<1x256xf32, #tpu.memory_space<vmem>>, vector<1x256xf32>
    %c0_157 = arith.constant 0 : index
    %c0_158 = arith.constant 0 : index
    %388 = vector.load %arg46[%c0_157, %c0_158] : memref<256x1xbf16, #tpu.memory_space<vmem>>, vector<256x1xbf16>
    %c0_159 = arith.constant 0 : index
    %c0_160 = arith.constant 0 : index
    %389 = vector.load %arg47[%c0_159, %c0_160] : memref<1x1xf32, #tpu.memory_space<vmem>>, vector<1x1xf32>
    %cst_161 = arith.constant dense<0.000000e+00> : vector<128xf32>
    %390 = vector.multi_reduction <add>, %385, %cst_161 [0] : vector<8x128xf32> to vector<128xf32>
    %391 = vector.shape_cast %390 : vector<128xf32> to vector<1x128xf32>
    %cst_162 = arith.constant 8.000000e+00 : f32
    %392 = vector.broadcast %cst_162 : f32 to vector<1x128xf32>
    %393 = arith.divf %391, %392 : vector<1x128xf32>
    %394 = arith.truncf %393 : vector<1x128xf32> to vector<1x128xbf16>
    %cst_163 = arith.constant dense<0.000000e+00> : vector<1x256xf32>
    %395 = tpu.matmul %394, %386, %cst_163 {dimension_numbers = #tpu.dot_dimension_numbers<[1], [0], [0], [1], [0, 0, 1, 1], [], []>} : vector<1x128xbf16>, vector<128x256xbf16>, vector<1x256xf32> -> vector<1x256xf32>
    %396 = arith.addf %395, %387 : vector<1x256xf32>
    %cst_164 = arith.constant 5.000000e-01 : f32
    %397 = vector.broadcast %cst_164 : f32 to vector<1x256xf32>
    %398 = arith.mulf %397, %396 : vector<1x256xf32>
    %cst_165 = arith.constant 0.707106769 : f32
    %399 = vector.broadcast %cst_165 : f32 to vector<1x256xf32>
    %400 = arith.mulf %396, %399 : vector<1x256xf32>
    %cst_166 = arith.constant 0.000000e+00 : f32
    %401 = vector.broadcast %cst_166 : f32 to vector<1x256xf32>
    %402 = arith.cmpf oge, %400, %401 : vector<1x256xf32>
    %cst_167 = arith.constant 1.000000e+00 : f32
    %cst_168 = arith.constant -1.000000e+00 : f32
    %403 = vector.broadcast %cst_167 : f32 to vector<1x256xf32>
    %404 = vector.broadcast %cst_168 : f32 to vector<1x256xf32>
    %405 = arith.select %402, %403, %404 : vector<1x256xi1>, vector<1x256xf32>
    %406 = math.absf %400 : vector<1x256xf32>
    %cst_169 = arith.constant 0.327591091 : f32
    %407 = vector.broadcast %cst_169 : f32 to vector<1x256xf32>
    %408 = arith.mulf %407, %406 : vector<1x256xf32>
    %cst_170 = arith.constant 1.000000e+00 : f32
    %409 = vector.broadcast %cst_170 : f32 to vector<1x256xf32>
    %410 = arith.addf %409, %408 : vector<1x256xf32>
    %cst_171 = arith.constant 1.000000e+00 : f32
    %411 = vector.broadcast %cst_171 : f32 to vector<1x256xf32>
    %412 = arith.divf %411, %410 : vector<1x256xf32>
    %cst_172 = arith.constant 1.06140542 : f32
    %413 = vector.broadcast %cst_172 : f32 to vector<1x256xf32>
    %414 = arith.mulf %413, %412 : vector<1x256xf32>
    %cst_173 = arith.constant -1.45315206 : f32
    %415 = vector.broadcast %cst_173 : f32 to vector<1x256xf32>
    %416 = arith.addf %414, %415 : vector<1x256xf32>
    %417 = arith.mulf %416, %412 : vector<1x256xf32>
    %cst_174 = arith.constant 1.42141378 : f32
    %418 = vector.broadcast %cst_174 : f32 to vector<1x256xf32>
    %419 = arith.addf %417, %418 : vector<1x256xf32>
    %420 = arith.mulf %419, %412 : vector<1x256xf32>
    %cst_175 = arith.constant -0.284496725 : f32
    %421 = vector.broadcast %cst_175 : f32 to vector<1x256xf32>
    %422 = arith.addf %420, %421 : vector<1x256xf32>
    %423 = arith.mulf %422, %412 : vector<1x256xf32>
    %cst_176 = arith.constant 0.254829586 : f32
    %424 = vector.broadcast %cst_176 : f32 to vector<1x256xf32>
    %425 = arith.addf %423, %424 : vector<1x256xf32>
    %426 = arith.mulf %425, %412 : vector<1x256xf32>
    %cst_177 = arith.constant 0.000000e+00 : f32
    %427 = vector.broadcast %cst_177 : f32 to vector<1x256xf32>
    %428 = arith.subf %427, %406 : vector<1x256xf32>
    %429 = arith.mulf %428, %406 : vector<1x256xf32>
    %430 = math.exp %429 : vector<1x256xf32>
    %431 = arith.mulf %426, %430 : vector<1x256xf32>
    %cst_178 = arith.constant 1.000000e+00 : f32
    %432 = vector.broadcast %cst_178 : f32 to vector<1x256xf32>
    %433 = arith.subf %432, %431 : vector<1x256xf32>
    %434 = arith.mulf %405, %433 : vector<1x256xf32>
    %cst_179 = arith.constant 1.000000e+00 : f32
    %435 = vector.broadcast %cst_179 : f32 to vector<1x256xf32>
    %436 = arith.addf %435, %434 : vector<1x256xf32>
    %437 = arith.mulf %398, %436 : vector<1x256xf32>
    %438 = arith.truncf %437 : vector<1x256xf32> to vector<1x256xbf16>
    %cst_180 = arith.constant dense<0.000000e+00> : vector<1x1xf32>
    %439 = tpu.matmul %438, %388, %cst_180 {dimension_numbers = #tpu.dot_dimension_numbers<[1], [0], [0], [1], [0, 0, 1, 1], [], []>} : vector<1x256xbf16>, vector<256x1xbf16>, vector<1x1xf32> -> vector<1x1xf32>
    %440 = arith.addf %439, %389 : vector<1x1xf32>
    %441 = math.tanh %440 : vector<1x1xf32>
    %cst_181 = arith.constant 5.000000e-01 : f32
    %442 = vector.broadcast %cst_181 : f32 to vector<1x1xf32>
    %443 = arith.mulf %442, %441 : vector<1x1xf32>
    %cst_182 = arith.constant 0.707106769 : f32
    %444 = vector.broadcast %cst_182 : f32 to vector<1x1xf32>
    %445 = arith.mulf %441, %444 : vector<1x1xf32>
    %cst_183 = arith.constant 0.000000e+00 : f32
    %446 = vector.broadcast %cst_183 : f32 to vector<1x1xf32>
    %447 = arith.cmpf oge, %445, %446 : vector<1x1xf32>
    %cst_184 = arith.constant 1.000000e+00 : f32
    %cst_185 = arith.constant -1.000000e+00 : f32
    %448 = vector.broadcast %cst_184 : f32 to vector<1x1xf32>
    %449 = vector.broadcast %cst_185 : f32 to vector<1x1xf32>
    %450 = arith.select %447, %448, %449 : vector<1x1xi1>, vector<1x1xf32>
    %451 = math.absf %445 : vector<1x1xf32>
    %cst_186 = arith.constant 0.327591091 : f32
    %452 = vector.broadcast %cst_186 : f32 to vector<1x1xf32>
    %453 = arith.mulf %452, %451 : vector<1x1xf32>
    %cst_187 = arith.constant 1.000000e+00 : f32
    %454 = vector.broadcast %cst_187 : f32 to vector<1x1xf32>
    %455 = arith.addf %454, %453 : vector<1x1xf32>
    %cst_188 = arith.constant 1.000000e+00 : f32
    %456 = vector.broadcast %cst_188 : f32 to vector<1x1xf32>
    %457 = arith.divf %456, %455 : vector<1x1xf32>
    %cst_189 = arith.constant 1.06140542 : f32
    %458 = vector.broadcast %cst_189 : f32 to vector<1x1xf32>
    %459 = arith.mulf %458, %457 : vector<1x1xf32>
    %cst_190 = arith.constant -1.45315206 : f32
    %460 = vector.broadcast %cst_190 : f32 to vector<1x1xf32>
    %461 = arith.addf %459, %460 : vector<1x1xf32>
    %462 = arith.mulf %461, %457 : vector<1x1xf32>
    %cst_191 = arith.constant 1.42141378 : f32
    %463 = vector.broadcast %cst_191 : f32 to vector<1x1xf32>
    %464 = arith.addf %462, %463 : vector<1x1xf32>
    %465 = arith.mulf %464, %457 : vector<1x1xf32>
    %cst_192 = arith.constant -0.284496725 : f32
    %466 = vector.broadcast %cst_192 : f32 to vector<1x1xf32>
    %467 = arith.addf %465, %466 : vector<1x1xf32>
    %468 = arith.mulf %467, %457 : vector<1x1xf32>
    %cst_193 = arith.constant 0.254829586 : f32
    %469 = vector.broadcast %cst_193 : f32 to vector<1x1xf32>
    %470 = arith.addf %468, %469 : vector<1x1xf32>
    %471 = arith.mulf %470, %457 : vector<1x1xf32>
    %cst_194 = arith.constant 0.000000e+00 : f32
    %472 = vector.broadcast %cst_194 : f32 to vector<1x1xf32>
    %473 = arith.subf %472, %451 : vector<1x1xf32>
    %474 = arith.mulf %473, %451 : vector<1x1xf32>
    %475 = math.exp %474 : vector<1x1xf32>
    %476 = arith.mulf %471, %475 : vector<1x1xf32>
    %cst_195 = arith.constant 1.000000e+00 : f32
    %477 = vector.broadcast %cst_195 : f32 to vector<1x1xf32>
    %478 = arith.subf %477, %476 : vector<1x1xf32>
    %479 = arith.mulf %450, %478 : vector<1x1xf32>
    %cst_196 = arith.constant 1.000000e+00 : f32
    %480 = vector.broadcast %cst_196 : f32 to vector<1x1xf32>
    %481 = arith.addf %480, %479 : vector<1x1xf32>
    %482 = arith.mulf %443, %481 : vector<1x1xf32>
    %c0_197 = arith.constant 0 : index
    %c0_198 = arith.constant 0 : index
    %483 = vector.load %arg48[%c0_197, %c0_198] : memref<128x256xbf16, #tpu.memory_space<vmem>>, vector<128x256xbf16>
    %c0_199 = arith.constant 0 : index
    %c0_200 = arith.constant 0 : index
    %484 = vector.load %arg49[%c0_199, %c0_200] : memref<1x256xf32, #tpu.memory_space<vmem>>, vector<1x256xf32>
    %c0_201 = arith.constant 0 : index
    %c0_202 = arith.constant 0 : index
    %485 = vector.load %arg50[%c0_201, %c0_202] : memref<256x1xbf16, #tpu.memory_space<vmem>>, vector<256x1xbf16>
    %c0_203 = arith.constant 0 : index
    %c0_204 = arith.constant 0 : index
    %486 = vector.load %arg51[%c0_203, %c0_204] : memref<1x1xf32, #tpu.memory_space<vmem>>, vector<1x1xf32>
    %cst_205 = arith.constant dense<0.000000e+00> : vector<128xf32>
    %487 = vector.multi_reduction <add>, %262, %cst_205 [0] : vector<8x128xf32> to vector<128xf32>
    %488 = vector.shape_cast %487 : vector<128xf32> to vector<1x128xf32>
    %cst_206 = arith.constant 8.000000e+00 : f32
    %489 = vector.broadcast %cst_206 : f32 to vector<1x128xf32>
    %490 = arith.divf %488, %489 : vector<1x128xf32>
    %491 = arith.truncf %490 : vector<1x128xf32> to vector<1x128xbf16>
    %cst_207 = arith.constant dense<0.000000e+00> : vector<1x256xf32>
    %492 = tpu.matmul %491, %483, %cst_207 {dimension_numbers = #tpu.dot_dimension_numbers<[1], [0], [0], [1], [0, 0, 1, 1], [], []>} : vector<1x128xbf16>, vector<128x256xbf16>, vector<1x256xf32> -> vector<1x256xf32>
    %493 = arith.addf %492, %484 : vector<1x256xf32>
    %cst_208 = arith.constant 5.000000e-01 : f32
    %494 = vector.broadcast %cst_208 : f32 to vector<1x256xf32>
    %495 = arith.mulf %494, %493 : vector<1x256xf32>
    %cst_209 = arith.constant 0.707106769 : f32
    %496 = vector.broadcast %cst_209 : f32 to vector<1x256xf32>
    %497 = arith.mulf %493, %496 : vector<1x256xf32>
    %cst_210 = arith.constant 0.000000e+00 : f32
    %498 = vector.broadcast %cst_210 : f32 to vector<1x256xf32>
    %499 = arith.cmpf oge, %497, %498 : vector<1x256xf32>
    %cst_211 = arith.constant 1.000000e+00 : f32
    %cst_212 = arith.constant -1.000000e+00 : f32
    %500 = vector.broadcast %cst_211 : f32 to vector<1x256xf32>
    %501 = vector.broadcast %cst_212 : f32 to vector<1x256xf32>
    %502 = arith.select %499, %500, %501 : vector<1x256xi1>, vector<1x256xf32>
    %503 = math.absf %497 : vector<1x256xf32>
    %cst_213 = arith.constant 0.327591091 : f32
    %504 = vector.broadcast %cst_213 : f32 to vector<1x256xf32>
    %505 = arith.mulf %504, %503 : vector<1x256xf32>
    %cst_214 = arith.constant 1.000000e+00 : f32
    %506 = vector.broadcast %cst_214 : f32 to vector<1x256xf32>
    %507 = arith.addf %506, %505 : vector<1x256xf32>
    %cst_215 = arith.constant 1.000000e+00 : f32
    %508 = vector.broadcast %cst_215 : f32 to vector<1x256xf32>
    %509 = arith.divf %508, %507 : vector<1x256xf32>
    %cst_216 = arith.constant 1.06140542 : f32
    %510 = vector.broadcast %cst_216 : f32 to vector<1x256xf32>
    %511 = arith.mulf %510, %509 : vector<1x256xf32>
    %cst_217 = arith.constant -1.45315206 : f32
    %512 = vector.broadcast %cst_217 : f32 to vector<1x256xf32>
    %513 = arith.addf %511, %512 : vector<1x256xf32>
    %514 = arith.mulf %513, %509 : vector<1x256xf32>
    %cst_218 = arith.constant 1.42141378 : f32
    %515 = vector.broadcast %cst_218 : f32 to vector<1x256xf32>
    %516 = arith.addf %514, %515 : vector<1x256xf32>
    %517 = arith.mulf %516, %509 : vector<1x256xf32>
    %cst_219 = arith.constant -0.284496725 : f32
    %518 = vector.broadcast %cst_219 : f32 to vector<1x256xf32>
    %519 = arith.addf %517, %518 : vector<1x256xf32>
    %520 = arith.mulf %519, %509 : vector<1x256xf32>
    %cst_220 = arith.constant 0.254829586 : f32
    %521 = vector.broadcast %cst_220 : f32 to vector<1x256xf32>
    %522 = arith.addf %520, %521 : vector<1x256xf32>
    %523 = arith.mulf %522, %509 : vector<1x256xf32>
    %cst_221 = arith.constant 0.000000e+00 : f32
    %524 = vector.broadcast %cst_221 : f32 to vector<1x256xf32>
    %525 = arith.subf %524, %503 : vector<1x256xf32>
    %526 = arith.mulf %525, %503 : vector<1x256xf32>
    %527 = math.exp %526 : vector<1x256xf32>
    %528 = arith.mulf %523, %527 : vector<1x256xf32>
    %cst_222 = arith.constant 1.000000e+00 : f32
    %529 = vector.broadcast %cst_222 : f32 to vector<1x256xf32>
    %530 = arith.subf %529, %528 : vector<1x256xf32>
    %531 = arith.mulf %502, %530 : vector<1x256xf32>
    %cst_223 = arith.constant 1.000000e+00 : f32
    %532 = vector.broadcast %cst_223 : f32 to vector<1x256xf32>
    %533 = arith.addf %532, %531 : vector<1x256xf32>
    %534 = arith.mulf %495, %533 : vector<1x256xf32>
    %535 = arith.truncf %534 : vector<1x256xf32> to vector<1x256xbf16>
    %cst_224 = arith.constant dense<0.000000e+00> : vector<1x1xf32>
    %536 = tpu.matmul %535, %485, %cst_224 {dimension_numbers = #tpu.dot_dimension_numbers<[1], [0], [0], [1], [0, 0, 1, 1], [], []>} : vector<1x256xbf16>, vector<256x1xbf16>, vector<1x1xf32> -> vector<1x1xf32>
    %537 = arith.addf %536, %486 : vector<1x1xf32>
    %538 = math.tanh %537 : vector<1x1xf32>
    %cst_225 = arith.constant 5.000000e-01 : f32
    %539 = vector.broadcast %cst_225 : f32 to vector<1x1xf32>
    %540 = arith.mulf %539, %538 : vector<1x1xf32>
    %cst_226 = arith.constant 0.707106769 : f32
    %541 = vector.broadcast %cst_226 : f32 to vector<1x1xf32>
    %542 = arith.mulf %538, %541 : vector<1x1xf32>
    %cst_227 = arith.constant 0.000000e+00 : f32
    %543 = vector.broadcast %cst_227 : f32 to vector<1x1xf32>
    %544 = arith.cmpf oge, %542, %543 : vector<1x1xf32>
    %cst_228 = arith.constant 1.000000e+00 : f32
    %cst_229 = arith.constant -1.000000e+00 : f32
    %545 = vector.broadcast %cst_228 : f32 to vector<1x1xf32>
    %546 = vector.broadcast %cst_229 : f32 to vector<1x1xf32>
    %547 = arith.select %544, %545, %546 : vector<1x1xi1>, vector<1x1xf32>
    %548 = math.absf %542 : vector<1x1xf32>
    %cst_230 = arith.constant 0.327591091 : f32
    %549 = vector.broadcast %cst_230 : f32 to vector<1x1xf32>
    %550 = arith.mulf %549, %548 : vector<1x1xf32>
    %cst_231 = arith.constant 1.000000e+00 : f32
    %551 = vector.broadcast %cst_231 : f32 to vector<1x1xf32>
    %552 = arith.addf %551, %550 : vector<1x1xf32>
    %cst_232 = arith.constant 1.000000e+00 : f32
    %553 = vector.broadcast %cst_232 : f32 to vector<1x1xf32>
    %554 = arith.divf %553, %552 : vector<1x1xf32>
    %cst_233 = arith.constant 1.06140542 : f32
    %555 = vector.broadcast %cst_233 : f32 to vector<1x1xf32>
    %556 = arith.mulf %555, %554 : vector<1x1xf32>
    %cst_234 = arith.constant -1.45315206 : f32
    %557 = vector.broadcast %cst_234 : f32 to vector<1x1xf32>
    %558 = arith.addf %556, %557 : vector<1x1xf32>
    %559 = arith.mulf %558, %554 : vector<1x1xf32>
    %cst_235 = arith.constant 1.42141378 : f32
    %560 = vector.broadcast %cst_235 : f32 to vector<1x1xf32>
    %561 = arith.addf %559, %560 : vector<1x1xf32>
    %562 = arith.mulf %561, %554 : vector<1x1xf32>
    %cst_236 = arith.constant -0.284496725 : f32
    %563 = vector.broadcast %cst_236 : f32 to vector<1x1xf32>
    %564 = arith.addf %562, %563 : vector<1x1xf32>
    %565 = arith.mulf %564, %554 : vector<1x1xf32>
    %cst_237 = arith.constant 0.254829586 : f32
    %566 = vector.broadcast %cst_237 : f32 to vector<1x1xf32>
    %567 = arith.addf %565, %566 : vector<1x1xf32>
    %568 = arith.mulf %567, %554 : vector<1x1xf32>
    %cst_238 = arith.constant 0.000000e+00 : f32
    %569 = vector.broadcast %cst_238 : f32 to vector<1x1xf32>
    %570 = arith.subf %569, %548 : vector<1x1xf32>
    %571 = arith.mulf %570, %548 : vector<1x1xf32>
    %572 = math.exp %571 : vector<1x1xf32>
    %573 = arith.mulf %568, %572 : vector<1x1xf32>
    %cst_239 = arith.constant 1.000000e+00 : f32
    %574 = vector.broadcast %cst_239 : f32 to vector<1x1xf32>
    %575 = arith.subf %574, %573 : vector<1x1xf32>
    %576 = arith.mulf %547, %575 : vector<1x1xf32>
    %cst_240 = arith.constant 1.000000e+00 : f32
    %577 = vector.broadcast %cst_240 : f32 to vector<1x1xf32>
    %578 = arith.addf %577, %576 : vector<1x1xf32>
    %579 = arith.mulf %540, %578 : vector<1x1xf32>
    %580 = vector.broadcast %482 : vector<1x1xf32> to vector<8x128xf32>
    %581 = arith.mulf %580, %385 : vector<8x128xf32>
    %582 = vector.broadcast %579 : vector<1x1xf32> to vector<8x128xf32>
    %583 = arith.mulf %582, %262 : vector<8x128xf32>
    %584 = arith.addf %581, %583 : vector<8x128xf32>
    %cst_241 = arith.constant dense<0.000000e+00> : vector<8xf32>
    %585 = vector.multi_reduction <add>, %584, %cst_241 [1] : vector<8x128xf32> to vector<8xf32>
    %586 = vector.shape_cast %585 : vector<8xf32> to vector<8x1xf32>
    %cst_242 = arith.constant 1.280000e+02 : f32
    %587 = vector.broadcast %cst_242 : f32 to vector<8x1xf32>
    %588 = arith.divf %586, %587 : vector<8x1xf32>
    %589 = vector.broadcast %588 : vector<8x1xf32> to vector<8x128xf32>
    %590 = arith.subf %584, %589 : vector<8x128xf32>
    %591 = arith.mulf %590, %590 : vector<8x128xf32>
    %cst_243 = arith.constant dense<0.000000e+00> : vector<8xf32>
    %592 = vector.multi_reduction <add>, %591, %cst_243 [1] : vector<8x128xf32> to vector<8xf32>
    %593 = vector.shape_cast %592 : vector<8xf32> to vector<8x1xf32>
    %cst_244 = arith.constant 1.280000e+02 : f32
    %594 = vector.broadcast %cst_244 : f32 to vector<8x1xf32>
    %595 = arith.divf %593, %594 : vector<8x1xf32>
    %596 = vector.broadcast %588 : vector<8x1xf32> to vector<8x128xf32>
    %597 = arith.subf %584, %596 : vector<8x128xf32>
    %cst_245 = arith.constant 9.99999974E-6 : f32
    %598 = vector.broadcast %cst_245 : f32 to vector<8x1xf32>
    %599 = arith.addf %595, %598 : vector<8x1xf32>
    %600 = math.rsqrt %599 : vector<8x1xf32>
    %601 = vector.broadcast %600 : vector<8x1xf32> to vector<8x128xf32>
    %602 = arith.mulf %597, %601 : vector<8x128xf32>
    %c0_246 = arith.constant 0 : index
    %c0_247 = arith.constant 0 : index
    %c0_248 = arith.constant 0 : index
    %603 = vector.load %arg52[%c0_246, %c0_247, %c0_248] : memref<1x8x128xf32, #tpu.memory_space<vmem>>, vector<1x8x128xf32>
    %604 = vector.shape_cast %603 : vector<1x8x128xf32> to vector<8x128xf32>
    %605 = vector.shape_cast %602 : vector<8x128xf32> to vector<1x8x128xf32>
    tpu.vector_store %arg52[%c0_246, %c0_247, %c0_248], %605 {strides = array<i32>} : memref<1x8x128xf32, #tpu.memory_space<vmem>>, vector<1x8x128xf32>,
    return
  }
  func.func @transform_0(%arg0: i32) -> (i32, i32, i32) {
    %c0_i32 = arith.constant 0 : i32
    %c0_i32_0 = arith.constant 0 : i32
    %c0_i32_1 = arith.constant 0 : i32
    return %arg0, %c0_i32, %c0_i32_0 : i32, i32, i32
  }
  func.func @transform_1(%arg0: i32) -> (i32, i32, i32) {
    %c0_i32 = arith.constant 0 : i32
    %c0_i32_0 = arith.constant 0 : i32
    %c0_i32_1 = arith.constant 0 : i32
    return %arg0, %c0_i32, %c0_i32_0 : i32, i32, i32
  }
  func.func @transform_2(%arg0: i32) -> (i32, i32, i32) {
    %c0_i32 = arith.constant 0 : i32
    %c0_i32_0 = arith.constant 0 : i32
    %c0_i32_1 = arith.constant 0 : i32
    return %arg0, %c0_i32, %c0_i32_0 : i32, i32, i32
  }
  func.func @transform_3(%arg0: i32) -> (i32, i32, i32) {
    %c0_i32 = arith.constant 0 : i32
    %c0_i32_0 = arith.constant 0 : i32
    %c0_i32_1 = arith.constant 0 : i32
    return %arg0, %c0_i32, %c0_i32_0 : i32, i32, i32
  }
  func.func @transform_4(%arg0: i32) -> (i32, i32, i32) {
    %c0_i32 = arith.constant 0 : i32
    %c0_i32_0 = arith.constant 0 : i32
    %c0_i32_1 = arith.constant 0 : i32
    return %arg0, %c0_i32, %c0_i32_0 : i32, i32, i32
  }
  func.func @transform_5(%arg0: i32) -> (i32, i32) {
    %c0_i32 = arith.constant 0 : i32
    %c0_i32_0 = arith.constant 0 : i32
    %c0_i32_1 = arith.constant 0 : i32
    return %c0_i32, %c0_i32_0 : i32, i32
  }
  func.func @transform_6(%arg0: i32) -> (i32, i32) {
    %c0_i32 = arith.constant 0 : i32
    %c0_i32_0 = arith.constant 0 : i32
    %c0_i32_1 = arith.constant 0 : i32
    return %c0_i32, %c0_i32_0 : i32, i32
  }
  func.func @transform_7(%arg0: i32) -> (i32, i32) {
    %c0_i32 = arith.constant 0 : i32
    %c0_i32_0 = arith.constant 0 : i32
    %c0_i32_1 = arith.constant 0 : i32
    return %c0_i32, %c0_i32_0 : i32, i32
  }
  func.func @transform_8(%arg0: i32) -> (i32, i32) {
    %c0_i32 = arith.constant 0 : i32
    %c0_i32_0 = arith.constant 0 : i32
    %c0_i32_1 = arith.constant 0 : i32
    return %c0_i32, %c0_i32_0 : i32, i32
  }
  func.func @transform_9(%arg0: i32) -> (i32, i32) {
    %c0_i32 = arith.constant 0 : i32
    %c0_i32_0 = arith.constant 0 : i32
    %c0_i32_1 = arith.constant 0 : i32
    return %c0_i32, %c0_i32_0 : i32, i32
  }
  func.func @transform_10(%arg0: i32) -> (i32, i32) {
    %c0_i32 = arith.constant 0 : i32
    %c0_i32_0 = arith.constant 0 : i32
    %c0_i32_1 = arith.constant 0 : i32
    return %c0_i32, %c0_i32_0 : i32, i32
  }
  func.func @transform_11(%arg0: i32) -> (i32, i32) {
    %c0_i32 = arith.constant 0 : i32
    %c0_i32_0 = arith.constant 0 : i32
    %c0_i32_1 = arith.constant 0 : i32
    return %c0_i32, %c0_i32_0 : i32, i32
  }
  func.func @transform_12(%arg0: i32) -> (i32, i32) {
    %c0_i32 = arith.constant 0 : i32
    %c0_i32_0 = arith.constant 0 : i32
    %c0_i32_1 = arith.constant 0 : i32
    return %c0_i32, %c0_i32_0 : i32, i32
  }
  func.func @transform_13(%arg0: i32) -> (i32, i32) {
    %c0_i32 = arith.constant 0 : i32
    %c0_i32_0 = arith.constant 0 : i32
    %c0_i32_1 = arith.constant 0 : i32
    return %c0_i32, %c0_i32_0 : i32, i32
  }
  func.func @transform_14(%arg0: i32) -> (i32, i32) {
    %c0_i32 = arith.constant 0 : i32
    %c0_i32_0 = arith.constant 0 : i32
    %c0_i32_1 = arith.constant 0 : i32
    return %c0_i32, %c0_i32_0 : i32, i32
  }
  func.func @transform_15(%arg0: i32) -> (i32, i32) {
    %c0_i32 = arith.constant 0 : i32
    %c0_i32_0 = arith.constant 0 : i32
    %c0_i32_1 = arith.constant 0 : i32
    return %c0_i32, %c0_i32_0 : i32, i32
  }
  func.func @transform_16(%arg0: i32) -> (i32, i32) {
    %c0_i32 = arith.constant 0 : i32
    %c0_i32_0 = arith.constant 0 : i32
    %c0_i32_1 = arith.constant 0 : i32
    return %c0_i32, %c0_i32_0 : i32, i32
  }
  func.func @transform_17(%arg0: i32) -> (i32, i32) {
    %c0_i32 = arith.constant 0 : i32
    %c0_i32_0 = arith.constant 0 : i32
    %c0_i32_1 = arith.constant 0 : i32
    return %c0_i32, %c0_i32_0 : i32, i32
  }
  func.func @transform_18(%arg0: i32) -> (i32, i32) {
    %c0_i32 = arith.constant 0 : i32
    %c0_i32_0 = arith.constant 0 : i32
    %c0_i32_1 = arith.constant 0 : i32
    return %c0_i32, %c0_i32_0 : i32, i32
  }
  func.func @transform_19(%arg0: i32) -> (i32, i32) {
    %c0_i32 = arith.constant 0 : i32
    %c0_i32_0 = arith.constant 0 : i32
    %c0_i32_1 = arith.constant 0 : i32
    return %c0_i32, %c0_i32_0 : i32, i32
  }
  func.func @transform_20(%arg0: i32) -> (i32, i32) {
    %c0_i32 = arith.constant 0 : i32
    %c0_i32_0 = arith.constant 0 : i32
    %c0_i32_1 = arith.constant 0 : i32
    return %c0_i32, %c0_i32_0 : i32, i32
  }
  func.func @transform_21(%arg0: i32) -> (i32, i32) {
    %c0_i32 = arith.constant 0 : i32
    %c0_i32_0 = arith.constant 0 : i32
    %c0_i32_1 = arith.constant 0 : i32
    return %c0_i32, %c0_i32_0 : i32, i32
  }
  func.func @transform_22(%arg0: i32) -> (i32, i32) {
    %c0_i32 = arith.constant 0 : i32
    %c0_i32_0 = arith.constant 0 : i32
    %c0_i32_1 = arith.constant 0 : i32
    return %c0_i32, %c0_i32_0 : i32, i32
  }
  func.func @transform_23(%arg0: i32) -> (i32, i32) {
    %c0_i32 = arith.constant 0 : i32
    %c0_i32_0 = arith.constant 0 : i32
    %c0_i32_1 = arith.constant 0 : i32
    return %c0_i32, %c0_i32_0 : i32, i32
  }
  func.func @transform_24(%arg0: i32) -> (i32, i32) {
    %c0_i32 = arith.constant 0 : i32
    %c0_i32_0 = arith.constant 0 : i32
    %c0_i32_1 = arith.constant 0 : i32
    return %c0_i32, %c0_i32_0 : i32, i32
  }
  func.func @transform_25(%arg0: i32) -> (i32, i32) {
    %c0_i32 = arith.constant 0 : i32
    %c0_i32_0 = arith.constant 0 : i32
    %c0_i32_1 = arith.constant 0 : i32
    return %c0_i32, %c0_i32_0 : i32, i32
  }
  func.func @transform_26(%arg0: i32) -> (i32, i32) {
    %c0_i32 = arith.constant 0 : i32
    %c0_i32_0 = arith.constant 0 : i32
    %c0_i32_1 = arith.constant 0 : i32
    return %c0_i32, %c0_i32_0 : i32, i32
  }
  func.func @transform_27(%arg0: i32) -> (i32, i32) {
    %c0_i32 = arith.constant 0 : i32
    %c0_i32_0 = arith.constant 0 : i32
    %c0_i32_1 = arith.constant 0 : i32
    return %c0_i32, %c0_i32_0 : i32, i32
  }
  func.func @transform_28(%arg0: i32) -> (i32, i32) {
    %c0_i32 = arith.constant 0 : i32
    %c0_i32_0 = arith.constant 0 : i32
    %c0_i32_1 = arith.constant 0 : i32
    return %c0_i32, %c0_i32_0 : i32, i32
  }
  func.func @transform_29(%arg0: i32) -> (i32, i32) {
    %c0_i32 = arith.constant 0 : i32
    %c0_i32_0 = arith.constant 0 : i32
    %c0_i32_1 = arith.constant 0 : i32
    return %c0_i32, %c0_i32_0 : i32, i32
  }
  func.func @transform_30(%arg0: i32) -> (i32, i32) {
    %c0_i32 = arith.constant 0 : i32
    %c0_i32_0 = arith.constant 0 : i32
    %c0_i32_1 = arith.constant 0 : i32
    return %c0_i32, %c0_i32_0 : i32, i32
  }
  func.func @transform_31(%arg0: i32) -> (i32, i32) {
    %c0_i32 = arith.constant 0 : i32
    %c0_i32_0 = arith.constant 0 : i32
    %c0_i32_1 = arith.constant 0 : i32
    return %c0_i32, %c0_i32_0 : i32, i32
  }
  func.func @transform_32(%arg0: i32) -> (i32, i32) {
    %c0_i32 = arith.constant 0 : i32
    %c0_i32_0 = arith.constant 0 : i32
    %c0_i32_1 = arith.constant 0 : i32
    return %c0_i32, %c0_i32_0 : i32, i32
  }
  func.func @transform_33(%arg0: i32) -> (i32, i32) {
    %c0_i32 = arith.constant 0 : i32
    %c0_i32_0 = arith.constant 0 : i32
    %c0_i32_1 = arith.constant 0 : i32
    return %c0_i32, %c0_i32_0 : i32, i32
  }
  func.func @transform_34(%arg0: i32) -> (i32, i32) {
    %c0_i32 = arith.constant 0 : i32
    %c0_i32_0 = arith.constant 0 : i32
    %c0_i32_1 = arith.constant 0 : i32
    return %c0_i32, %c0_i32_0 : i32, i32
  }
  func.func @transform_35(%arg0: i32) -> (i32, i32) {
    %c0_i32 = arith.constant 0 : i32
    %c0_i32_0 = arith.constant 0 : i32
    %c0_i32_1 = arith.constant 0 : i32
    return %c0_i32, %c0_i32_0 : i32, i32
  }
  func.func @transform_36(%arg0: i32) -> (i32, i32) {
    %c0_i32 = arith.constant 0 : i32
    %c0_i32_0 = arith.constant 0 : i32
    %c0_i32_1 = arith.constant 0 : i32
    return %c0_i32, %c0_i32_0 : i32, i32
  }
  func.func @transform_37(%arg0: i32) -> (i32, i32) {
    %c0_i32 = arith.constant 0 : i32
    %c0_i32_0 = arith.constant 0 : i32
    %c0_i32_1 = arith.constant 0 : i32
    return %c0_i32, %c0_i32_0 : i32, i32
  }
  func.func @transform_38(%arg0: i32) -> (i32, i32) {
    %c0_i32 = arith.constant 0 : i32
    %c0_i32_0 = arith.constant 0 : i32
    %c0_i32_1 = arith.constant 0 : i32
    return %c0_i32, %c0_i32_0 : i32, i32
  }
  func.func @transform_39(%arg0: i32) -> (i32, i32) {
    %c0_i32 = arith.constant 0 : i32
    %c0_i32_0 = arith.constant 0 : i32
    %c0_i32_1 = arith.constant 0 : i32
    return %c0_i32, %c0_i32_0 : i32, i32
  }
  func.func @transform_40(%arg0: i32) -> (i32, i32) {
    %c0_i32 = arith.constant 0 : i32
    %c0_i32_0 = arith.constant 0 : i32
    %c0_i32_1 = arith.constant 0 : i32
    return %c0_i32, %c0_i32_0 : i32, i32
  }
  func.func @transform_41(%arg0: i32) -> (i32, i32) {
    %c0_i32 = arith.constant 0 : i32
    %c0_i32_0 = arith.constant 0 : i32
    %c0_i32_1 = arith.constant 0 : i32
    return %c0_i32, %c0_i32_0 : i32, i32
  }
  func.func @transform_42(%arg0: i32) -> (i32, i32) {
    %c0_i32 = arith.constant 0 : i32
    %c0_i32_0 = arith.constant 0 : i32
    %c0_i32_1 = arith.constant 0 : i32
    return %c0_i32, %c0_i32_0 : i32, i32
  }
  func.func @transform_43(%arg0: i32) -> (i32, i32) {
    %c0_i32 = arith.constant 0 : i32
    %c0_i32_0 = arith.constant 0 : i32
    %c0_i32_1 = arith.constant 0 : i32
    return %c0_i32, %c0_i32_0 : i32, i32
  }
  func.func @transform_44(%arg0: i32) -> (i32, i32) {
    %c0_i32 = arith.constant 0 : i32
    %c0_i32_0 = arith.constant 0 : i32
    %c0_i32_1 = arith.constant 0 : i32
    return %c0_i32, %c0_i32_0 : i32, i32
  }
  func.func @transform_45(%arg0: i32) -> (i32, i32) {
    %c0_i32 = arith.constant 0 : i32
    %c0_i32_0 = arith.constant 0 : i32
    %c0_i32_1 = arith.constant 0 : i32
    return %c0_i32, %c0_i32_0 : i32, i32
  }
  func.func @transform_46(%arg0: i32) -> (i32, i32) {
    %c0_i32 = arith.constant 0 : i32
    %c0_i32_0 = arith.constant 0 : i32
    %c0_i32_1 = arith.constant 0 : i32
    return %c0_i32, %c0_i32_0 : i32, i32
  }
  func.func @transform_47(%arg0: i32) -> (i32, i32) {
    %c0_i32 = arith.constant 0 : i32
    %c0_i32_0 = arith.constant 0 : i32
    %c0_i32_1 = arith.constant 0 : i32
    return %c0_i32, %c0_i32_0 : i32, i32
  }
  func.func @transform_48(%arg0: i32) -> (i32, i32) {
    %c0_i32 = arith.constant 0 : i32
    %c0_i32_0 = arith.constant 0 : i32
    %c0_i32_1 = arith.constant 0 : i32
    return %c0_i32, %c0_i32_0 : i32, i32
  }
  func.func @transform_49(%arg0: i32) -> (i32, i32) {
    %c0_i32 = arith.constant 0 : i32
    %c0_i32_0 = arith.constant 0 : i32
    %c0_i32_1 = arith.constant 0 : i32
    return %c0_i32, %c0_i32_0 : i32, i32
  }
  func.func @transform_50(%arg0: i32) -> (i32, i32) {
    %c0_i32 = arith.constant 0 : i32
    %c0_i32_0 = arith.constant 0 : i32
    %c0_i32_1 = arith.constant 0 : i32
    return %c0_i32, %c0_i32_0 : i32, i32
  }
  func.func @transform_51(%arg0: i32) -> (i32, i32, i32) {
    %c0_i32 = arith.constant 0 : i32
    %c0_i32_0 = arith.constant 0 : i32
    %c0_i32_1 = arith.constant 0 : i32
    return %arg0, %c0_i32, %c0_i32_0 : i32, i32, i32
  }
}

</mosaic_0001>

<bundles_post_ra>
// kernel: text_guided_compressor_forward.1
= control target key start
LH: loop header
LB: loop body
LE: loop exit
PB: predicated region body
PF: predicated region fallthrough
CT: control target
= control target key end

     0   :  { %s10659_s6 = smov 1   ;;  %s10660_s10 = smov 2   ;;  %s12207_s0 = inlined_call_operand.smem [shape: u32[52], index: -1, kind: input, shape index: {}] }
   0x1   :  { %s10773_s5 = sld [smem:[%s12207_s0]]   ;;  %s10661_s14 = smov 3  }
   0x2   :  { %s10778_s9 = sld [smem:[%s12207_s0 + %s10659_s6]]   ;;  %s10662_s18 = smov 4  }
   0x3   :  { %s10783_s13 = sld [smem:[%s12207_s0 + %s10660_s10]]   ;;  %s10663_s22 = smov 5  }
   0x4   :  { %s10788_s17 = sld [smem:[%s12207_s0 + %s10661_s14]]   ;;  %s10664_s26 = smov 6  }
   0x5   :  { %s10793_s21 = sld [smem:[%s12207_s0 + %s10662_s18]]   ;;  %s10665_s30 = smov 7  }
   0x6   :  { %s10798_s25 = sld [smem:[%s12207_s0 + %s10663_s22]]   ;;  %s10666_s4 = smov 8  }
   0x7   :  { %12234 = sst [smem:[#allocation94_spill]] %s10773_s5  ;;  %s10667_s10 = smov 9  }
   0x8   :  { %12235 = sst [smem:[#allocation95_spill]] %s10778_s9  ;;  %s10668_s15 = smov 10  }
   0x9   :  { %12236 = sst [smem:[#allocation96_spill]] %s10783_s13  ;;  %s10669_s20 = smov 11  }
   0xa   :  { %12237 = sst [smem:[#allocation97_spill]] %s10788_s17  ;;  %s10671_s1 = smov 13  }
   0xb   :  { %12238 = sst [smem:[#allocation98_spill]] %s10793_s21  ;;  %s10672_s7 = smov 14  }
   0xc   :  { %12239 = sst [smem:[#allocation99_spill]] %s10798_s25  ;;  %s10674_s22 = smov 16  }
   0xd   :  { %s10803_s29 = sld [smem:[%s12207_s0 + %s10664_s26]]   ;;  %s10670_s26 = smov 12  }
   0xe   :  { %s10808_s3 = sld [smem:[%s12207_s0 + %s10665_s30]]   ;;  %s10675_s28 = smov 17  }
   0xf   :  { %s10813_s8 = sld [smem:[%s12207_s0 + %s10666_s4]]   ;;  %s10705_s16 = smov 47  }
  0x10   :  { %s10818_s14 = sld [smem:[%s12207_s0 + %s10667_s10]]   ;;  %s10706_s23 = smov 48  }
  0x11   :  { %s10823_s19 = sld [smem:[%s12207_s0 + %s10668_s15]]   ;;  %s10673_s15 = smov 15  }
  0x12   :  { %s10828_s24 = sld [smem:[%s12207_s0 + %s10669_s20]]   ;;  %s10708_s10 = smov 51  }
  0x13   :  { %12240 = sst [smem:[#allocation100_spill]] %s10803_s29 }
  0x14   :  { %12241 = sst [smem:[#allocation101_spill]] %s10808_s3 }
  0x15   :  { %12242 = sst [smem:[#allocation102_spill]] %s10813_s8 }
  0x16   :  { %12243 = sst [smem:[#allocation103_spill]] %s10818_s14 }
  0x17   :  { %12244 = sst [smem:[#allocation104_spill]] %s10823_s19 }
  0x18   :  { %s10833_s30 = sld [smem:[%s12207_s0 + %s10670_s26]]  }
  0x19   :  { %s10838_s6 = sld [smem:[%s12207_s0 + %s10671_s1]]   ;;  %s10707_s1 = smov 49  }
  0x1a   :  { %s10843_s12 = sld [smem:[%s12207_s0 + %s10672_s7]]   ;;  %s10676_s7 = smov 18  }
  0x1b   :  { %s10848_s20 = sld [smem:[%s12207_s0 + %s10673_s15]]   ;;  %s10677_s15 = smov 19  }
  0x1c   :  { %s10853_s27 = sld [smem:[%s12207_s0 + %s10674_s22]]   ;;  %s10678_s22 = smov 20  }
  0x1d   :  { %s10858_s4 = sld [smem:[%s12207_s0 + %s10675_s28]]   ;;  %s10679_s28 = smov 21  }
  0x1e   :  { %12245 = sst [smem:[#allocation105_spill]] %s10833_s30 }
  0x1f   :  { %12246 = sst [smem:[#allocation106_spill]] %s10838_s6 }
  0x20   :  { %12247 = sst [smem:[#allocation107_spill]] %s10843_s12 }
  0x21   :  { %12248 = sst [smem:[#allocation108_spill]] %s10848_s20 }
  0x22   :  { %s10863_s17 = sld [smem:[%s12207_s0 + %s10676_s7]]   ;;  %s10680_s7 = smov 22  }
  0x23   :  { %12249 = sst [smem:[#allocation109_spill]] %s10858_s4 }
  0x24   :  { %s10868_s21 = sld [smem:[%s12207_s0 + %s10677_s15]]   ;;  %s10681_s15 = smov 23  }
  0x25   :  { %s10873_s12 = sld [smem:[%s12207_s0 + %s10678_s22]]   ;;  %s10682_s22 = smov 24  }
  0x26   :  { %s10878_s13 = sld [smem:[%s12207_s0 + %s10679_s28]]   ;;  %s10683_s28 = smov 25  }
  0x27   :  { %s10883_s25 = sld [smem:[%s12207_s0 + %s10680_s7]]   ;;  %s10684_s7 = smov 26  }
  0x28   :  { %12250 = sst [smem:[#allocation110_spill]] %s10863_s17 }
  0x29   :  { %s10888_s9 = sld [smem:[%s12207_s0 + %s10681_s15]]   ;;  %s10685_s15 = smov 27  }
  0x2a   :  { %12251 = sst [smem:[#allocation111_spill]] %s10868_s21 }
  0x2b   :  { %12252 = sst [smem:[#allocation112_spill]] %s10873_s12 }
  0x2c   :  { %12253 = sst [smem:[#allocation113_spill]] %s10878_s13 }
  0x2d   :  { %s10893_s5 = sld [smem:[%s12207_s0 + %s10682_s22]]   ;;  %s10686_s22 = smov 28  }
  0x2e   :  { %s10898_s13 = sld [smem:[%s12207_s0 + %s10683_s28]]   ;;  %s10687_s28 = smov 29  }
  0x2f   :  { %12254 = sst [smem:[#allocation114_spill]] %s10888_s9 }
  0x30   :  { %s10903_s21 = sld [smem:[%s12207_s0 + %s10684_s7]]   ;;  %s10688_s7 = smov 30  }
  0x31   :  { %s10908_s9 = sld [smem:[%s12207_s0 + %s10685_s15]]   ;;  %s10689_s15 = smov 31  }
  0x32   :  { %s10913_s4 = sld [smem:[%s12207_s0 + %s10686_s22]]   ;;  %s10690_s22 = smov 32  }
  0x33   :  { %12255 = sst [smem:[#allocation115_spill]] %s10893_s5 }
  0x34   :  { %12256 = sst [smem:[#allocation116_spill]] %s10898_s13 }
  0x35   :  { %s10918_s13 = sld [smem:[%s12207_s0 + %s10687_s28]]   ;;  %s10691_s28 = smov 33  }
  0x36   :  { %s10923_s20 = sld [smem:[%s12207_s0 + %s10688_s7]]   ;;  %s10692_s7 = smov 34  }
  0x37   :  { %12257 = sst [smem:[#allocation117_spill]] %s10908_s9 }
  0x38   :  { %12258 = sst [smem:[#allocation118_spill]] %s10913_s4 }
  0x39   :  { %s10928_s9 = sld [smem:[%s12207_s0 + %s10689_s15]]   ;;  %s10693_s15 = smov 35  }
  0x3a   :  { %s10933_s30 = sld [smem:[%s12207_s0 + %s10690_s22]]   ;;  %s10694_s22 = smov 36  }
  0x3b   :  { %12259 = sst [smem:[#allocation119_spill]] %s10918_s13 }
  0x3c   :  { %s10938_s13 = sld [smem:[%s12207_s0 + %s10691_s28]]   ;;  %s10695_s28 = smov 37  }
  0x3d   :  { %s10943_s19 = sld [smem:[%s12207_s0 + %s10692_s7]]   ;;  %s10696_s7 = smov 38  }
  0x3e   :  { %s10953_s8 = sld [smem:[%s12207_s0 + %s10694_s22]]   ;;  %s10698_s22 = smov 40  }
  0x3f   :  { %12260 = sst [smem:[#allocation120_spill]] %s10928_s9 }
  0x40   :  { %s10948_s9 = sld [smem:[%s12207_s0 + %s10693_s15]]   ;;  %s10697_s15 = smov 39  }
  0x41   :  { %s10963_s29 = sld [smem:[%s12207_s0 + %s10696_s7]]   ;;  %s10700_s7 = smov 42  }
  0x42   :  { %12261 = sst [smem:[#allocation121_spill]] %s10938_s13 }
  0x43   :  { %12262 = sst [smem:[#allocation122_spill]] %s10943_s19 }
  0x44   :  { %12264 = sst [smem:[#allocation124_spill]] %s10953_s8 }
  0x45   :  { %s10958_s13 = sld [smem:[%s12207_s0 + %s10695_s28]]   ;;  %s10699_s28 = smov 41  }
  0x46   :  { %12263 = sst [smem:[#allocation123_spill]] %s10948_s9 }
  0x47   :  { %12266 = sst [smem:[#allocation126_spill]] %s10963_s29 }
  0x48   :  { %s10968_s9 = sld [smem:[%s12207_s0 + %s10697_s15]]   ;;  %s10701_s15 = smov 43  }
  0x49   :  { %s10973_s8 = sld [smem:[%s12207_s0 + %s10698_s22]]   ;;  %s10702_s22 = smov 44  }
  0x4a   :  { %s10983_s29 = sld [smem:[%s12207_s0 + %s10700_s7]]   ;;  %s10704_s7 = smov 46  }
  0x4b   :  { %12265 = sst [smem:[#allocation125_spill]] %s10958_s13 }
  0x4c   :  { %s10978_s13 = sld [smem:[%s12207_s0 + %s10699_s28]]   ;;  %s10703_s28 = smov 45  }
  0x4d   :  { %s11021_s19 = sld [smem:[%s12207_s0 + %s10708_s10]]  }
  0x4e   :  { %12267 = sst [smem:[#allocation127_spill]] %s10968_s9 }
  0x4f   :  { %12268 = sst [smem:[#allocation128_spill]] %s10973_s8 }
  0x50   :  { %12270 = sst [smem:[#allocation130_spill]] %s10983_s29 }
  0x51   :  { %s10988_s9 = sld [smem:[%s12207_s0 + %s10701_s15]]  }
  0x52   :  { %12269 = sst [smem:[#allocation129_spill]] %s10978_s13 }
  0x53   :  { %s10993_s8 = sld [smem:[%s12207_s0 + %s10702_s22]]  }
  0x54   :  { %s10998_s13 = sld [smem:[%s12207_s0 + %s10703_s28]]  }
  0x55   :  { %s7627_s29 = sld [smem:[%s12207_s0 + %s10704_s7]]  }
  0x56   :  { %12276 = sst [smem:[#allocation136_spill]] %s11021_s19 }
  0x57   :  { %12271 = sst [smem:[#allocation131_spill]] %s10988_s9 }
  0x58   :  { %s11006_s9 = sld [smem:[%s12207_s0 + %s10705_s16]]   ;;  %s10709_s16 = smov 50  }
  0x59   :  { %12272 = sst [smem:[#allocation132_spill]] %s10993_s8 }
  0x5a   :  { %12273 = sst [smem:[#allocation133_spill]] %s10998_s13 }
  0x5b   :  { %s11011_s8 = sld [smem:[%s12207_s0 + %s10706_s23]]   ;;  %v108_v0 = vstv %s7627_s29 }
  0x5c   :  { %s11016_s13 = sld [smem:[%s12207_s0 + %s10707_s1]]   ;;  %109 = vst [vmem:[#allocation2] sm:$0x1] %v108_v0 }
  0x5e   :  { %12274 = sst [smem:[#allocation134_spill]] %s11006_s9 }
  0x5f   :  { %s7631_s9 = sld [smem:[%s12207_s0 + %s10709_s16]]  }
  0x61   :  { %12275 = sst [smem:[#allocation135_spill]] %s11011_s8 }
  0x65   :  { %v110_v1 = vstv %s7631_s9 }
  0x66   :  { %111 = vst [vmem:[#allocation3] sm:$0x1] %v110_v1 }
  0x67   :  { %112 = vsyncpa [#allocation5], 0 }
  0x68   :  { %114 = vsyncpa [#allocation5 + $0x1], 0 }
  0x69   :  { %115 = vsyncpa [#allocation8], 0 }
  0x6a   :  { %117 = vsyncpa [#allocation8 + $0x1], 0 }
  0x6b   :  { %118 = vsyncpa [#allocation11], 0 }
  0x6c   :  { %119 = vsyncpa [#allocation14], 0 }
  0x6d   :  { %120 = vsyncpa [#allocation17], 0 }
  0x6e   :  { %121 = vsyncpa [#allocation20], 0 }
  0x6f   :  { %122 = vsyncpa [#allocation23], 0 }
  0x70   :  { %123 = vsyncpa [#allocation26], 0 }
  0x71   :  { %124 = vsyncpa [#allocation29], 0 }
  0x72   :  { %125 = vsyncpa [#allocation32], 0 }
  0x73   :  { %126 = vsyncpa [#allocation35], 0 }
  0x74   :  { %127 = vsyncpa [#allocation38], 0 }
  0x75   :  { %128 = vsyncpa [#allocation41], 0 }
  0x76   :  { %129 = vsyncpa [#allocation44], 0 }
  0x77   :  { %130 = vsyncpa [#allocation47], 0 }
  0x78   :  { %131 = vsyncpa [#allocation50], 0 }
  0x79   :  { %132 = vsyncpa [#allocation53], 0 }
  0x7a   :  { %133 = vsyncpa [#allocation56], 0 }
  0x7b   :  { %134 = vsyncpa [#allocation59], 0 }
  0x7c   :  { %135 = vsyncpa [#allocation62], 0 }
  0x7d   :  { %136 = vsyncpa [#allocation65], 0 }
  0x7e   :  { %137 = vsyncpa [#allocation68], 0 }
  0x7f   :  { %138 = vsyncpa [#allocation6], 0 }
  0x80   :  { %140 = vsyncpa [#allocation6 + $0x1], 0  ;;  %s11026_s0 = smov 0   ;;  %s11028_s9 = smov 0  }
  0x81   :  { %s11030_s29 = smov 0   ;;  %s11032_s23 = smov 0  }
  0x82 LB: > { %12277 = sst [smem:[#allocation137_spill]] %s10645_s0  ;;  %s11047_s22 = sadd.s32 4294967295, %s10657_s23   ;;  %s10657_s23 = sphi %s11032_s23, %s12390_s23   ;;  %s10653_s29 = sphi %s11030_s29, %s12394_s29   ;;  %s10649_s9 = sphi %s11028_s9, %s12393_s9   ;;  %s10645_s0 = sphi %s11026_s0, %s12392_s0  }
  0x83   : > { %s7634_s26 = sadd.s32 4294967294, %s10657_s23   ;;  %s11051_s1 = sadd.s32 1, %s10657_s23  }
  0x84   : > { %12278 = sst [smem:[#allocation138_spill]] %s11051_s1  ;;  %s153_s28 = sadd.s32 1, %s10653_s29 }
  0x85   : > { %s150_s2 = ssub.s32 %s10657_s23, %s11051_s1  ;;  %p160_p0 = scmp.ne.s32.totalorder %s10653_s29, %s10649_s9 }
  0x86   : > { %p151_p1 = scmp.eq.s32.totalorder %s150_s2, 0  ;;  %p161_p2 = scmp.eq.s32.totalorder %s10657_s23, 0 }
  0x87   : > { %p166_p3 = scmp.ne.s32.totalorder %s10649_s9, %s10645_s0  ;;  %p12233_p4 = scmp.eq.s32.totalorder %s11047_s22, 0 }
  0x88   : > { %s11063_s10 = scalar_select %p151_p1, %s10653_s29, %s153_s28  }
  0x89   : > { %p11065_p5 = por %p161_p2, %p160_p0  ;;  %p11071_p6 = por %p12233_p4, %p166_p3 }
  0x8a   : > { %12279 = sst [smem:[#allocation139_spill]] %s11063_s10  ;;  %p1260_p7 = scmp.eq.s32.totalorder %s11047_s22, 1 }
  0x8b   : > { %s12280_s7 = scalar_select %p11065_p5, 1, 0 }
  0x8c   : > { %s12281_s11 = scalar_select %p11071_p6, 1, 0 }
  0x8d   : > { %p1266_p8 = scmp.eq.s32.totalorder %s7634_s26, 1  ;;  %p7635_p9 = scmp.ge.s32.totalorder %s10657_s23, 1 }
  0x8e   : > { %p1273_p10 = scmp.lt.s32.totalorder %s10657_s23, 3  ;;  %p11078_p11 = por %p1260_p7, %p160_p0 }
  0x8f   : > { %p11082_p12 = por %p1266_p8, %p166_p3 }
  0x90   : > { %s12282_s16 = scalar_select %p11078_p11, 1, 0 }
  0x91   : > { %s12284_s15 = scalar_select %p11082_p12, 1, 0 }
  0x92   : > { %12283 = sst [smem:[#allocation140_spill]] %s12282_s16  ;;  %p11086_p13 = pnand %p7635_p9, %p1273_p10 }
  0x93   : > { %12285 = sst [smem:[#allocation141_spill]] %s12284_s15  ;;  %s10710_s28 = smov (!%p11086_p13), [#allocation10]  }
  0x94   : > { %s12286_s18 = scalar_select %p11086_p13, 1, 0 }
  0x95   : > { %1277 = sbr.rel (%p11086_p13) target bundleno = 614 (0x266), region = 12  ;;  %s1301_s26 = sshll.u32 (!%p11086_p13), %s10710_s28, 4  ;;  %s1302_s26 = int_to_ptr.vmem [resolvable:$true] %s1301_s26 }
  0x96   : > { %s9499_s2 = scalar_lea.vmem (!%p11086_p13), %s1302_s26, 1024  ;;  %p9506_p3 = scmp.lt.s32.totalorder (!%p11086_p13), %s1302_s26, %s1302_s26 }
  0x97   : > { %p9500_p0 = scmp.ne.s32.totalorder (!%p11086_p13), %s1302_s26, %s9499_s2  ;;  %p9507_p7 = scmp.lt.s32.totalorder (!%p11086_p13), %s9499_s2, %s9499_s2 }
  0x99   : > { %p9501_p1 = pnand (!%p11086_p13), %p9500_p0, %p12233_p4  ;;  %p9508_p8 = por (!%p11086_p13), %p9507_p7, %p9506_p3 }
  0x9b   : > { %p9502_p2 = pneg %p9501_p1 }
  0x9d   : > { %p9509_p12 = pnand %p9508_p8, %p9502_p2 }
  0x9f   : > { %9512 = shalt.err (!%p9509_p12)
}
  0xa0   : > { %s12227_s10 = smov 64   ;;  %s12287_s3 = sld [smem:[#allocation101_spill]] }
  0xa1   : > { %s12231_s1 = smov 4   ;;  %s10713_s28 = smov [#allocation13]  }
  0xa2   : > { %s1325_s15 = sshll.u32 %s10713_s28, 4  ;;  %s10714_s0 = smov [#allocation16]   ;;  %s1326_s15 = int_to_ptr.vmem [resolvable:$true] %s1325_s15 }
  0xa3   : > { %s1349_s16 = sshll.u32 %s10714_s0, 4  ;;  %s9523_s19 = scalar_lea.vmem %s1326_s15, 1024  ;;  %s1350_s16 = int_to_ptr.vmem [resolvable:$true] %s1349_s16 }
  0xa4   : > { %p9524_p9 = scmp.ne.s32.totalorder %s1326_s15, %s9523_s19  ;;  %p9530_p0 = scmp.lt.s32.totalorder %s1326_s15, %s1326_s15 }
  0xa5   : > { %p9531_p1 = scmp.lt.s32.totalorder %s9523_s19, %s9523_s19 }
  0xa6   : > { %8500 = dma.hbm_to_vmem [thread:$0]  (%p12233_p4), %s12287_s3, 1024, %s1302_s26, [#allocation11], %s12227_s10, %s12227_s10, %s12231_s1  }
  0xa7   : > { %p9525_p10 = pnand %p9524_p9, %p12233_p4  ;;  %p9532_p2 = por %p9531_p1, %p9530_p0 }
  0xa9   : > { %p9526_p12 = pneg %p9525_p10 }
  0xab   : > { %p9533_p3 = pnand %p9532_p2, %p9526_p12 }
  0xad   : > { %9536 = shalt.err (!%p9533_p3)
}
  0xae   : > { %s12220_s2 = smov 128   ;;  %s12288_s14 = sld [smem:[#allocation103_spill]] }
  0xaf   : > { %s12222_s26 = smov 8   ;;  %s9547_s0 = scalar_lea.vmem %s1350_s16, 1024 }
  0xb0   : > { %p9548_p7 = scmp.ne.s32.totalorder %s1350_s16, %s9547_s0  ;;  %p9554_p10 = scmp.lt.s32.totalorder %s1350_s16, %s1350_s16 }
  0xb1   : > { %p9555_p0 = scmp.lt.s32.totalorder %s9547_s0, %s9547_s0 }
  0xb2   : > { %p9549_p8 = pnand %p9548_p7, %p12233_p4 }
  0xb3   : > { %p9556_p12 = por %p9555_p0, %p9554_p10 }
  0xb4   : > { %8504 = dma.hbm_to_vmem [thread:$0]  (%p12233_p4), %s12288_s14, 1024, %s1326_s15, [#allocation14], %s12220_s2, %s12220_s2, %s12222_s26  }
  0xb5   : > { %p9550_p9 = pneg %p9549_p8 }
  0xb7   : > { %p9557_p1 = pnand %p9556_p12, %p9550_p9 }
  0xb9   : > { %9560 = shalt.err (!%p9557_p1)
}
  0xba   : > { %8508 = dma.hbm_to_vmem [thread:$0]  (%p12233_p4), %s10828_s24, 1024, %s1350_s16, [#allocation17], %s12227_s10, %s12227_s10, %s12231_s1  }
  0xbb   : > { %s10717_s19 = smov [#allocation19]   ;;  %s10718_s28 = smov [#allocation22]  }
  0xbc   : > { %s1374_s15 = sshll.u32 %s10717_s19, 4  ;;  %s1398_s2 = sshll.u32 %s10718_s28, 4  ;;  %s1375_s15 = int_to_ptr.vmem [resolvable:$true] %s1374_s15  ;;  %s1399_s2 = int_to_ptr.vmem [resolvable:$true] %s1398_s2 }
  0xbd   : > { %s9571_s26 = scalar_lea.vmem %s1375_s15, 32  ;;  %p9578_p8 = scmp.lt.s32.totalorder %s1375_s15, %s1375_s15 }
  0xbe   : > { %p9572_p2 = scmp.ne.s32.totalorder %s1375_s15, %s9571_s26  ;;  %p9579_p9 = scmp.lt.s32.totalorder %s9571_s26, %s9571_s26 }
  0xc0   : > { %p9573_p3 = pnand %p9572_p2, %p12233_p4  ;;  %p9580_p10 = por %p9579_p9, %p9578_p8 }
  0xc2   : > { %p9574_p7 = pneg %p9573_p3 }
  0xc4   : > { %p9581_p0 = pnand %p9580_p10, %p9574_p7 }
  0xc6   : > { %9584 = shalt.err (!%p9581_p0)
}
  0xc7   : > { %s12289_s6 = sld [smem:[#allocation106_spill]]  ;;  %s9595_s16 = scalar_lea.vmem %s1399_s2, 4096 }
  0xc8   : > { %p9596_p12 = scmp.ne.s32.totalorder %s1399_s2, %s9595_s16  ;;  %p9602_p6 = scmp.lt.s32.totalorder %s1399_s2, %s1399_s2 }
  0xc9   : > { %p9603_p13 = scmp.lt.s32.totalorder %s9595_s16, %s9595_s16 }
  0xca   : > { %p9597_p1 = pnand %p9596_p12, %p12233_p4 }
  0xcb   : > { %p9604_p2 = por %p9603_p13, %p9602_p6 }
  0xcc   : > { %p9598_p11 = pneg %p9597_p1 }
  0xcd   : > { %8512 = dma.hbm_to_vmem [thread:$0]  (%p12233_p4), %s12289_s6, 32, %s1375_s15, [#allocation20]  }
  0xce   : > { %p9605_p3 = pnand %p9604_p2, %p9598_p11 }
  0xd0   : > { %9608 = shalt.err (!%p9605_p3)
}
  0xd1   : > { %8516 = dma.hbm_to_vmem [thread:$0]  (%p12233_p4), %s10853_s27, 4096, %s1399_s2, [#allocation23], %s12227_s10, %s12227_s10, %s12231_s1  }
  0xd2   : > { %s10719_s26 = smov [#allocation25]   ;;  %s10720_s19 = smov [#allocation28]  }
  0xd3   : > { %s1423_s0 = sshll.u32 %s10719_s26, 4  ;;  %s1445_s15 = sshll.u32 %s10720_s19, 4  ;;  %s1424_s0 = int_to_ptr.vmem [resolvable:$true] %s1423_s0  ;;  %s1446_s15 = int_to_ptr.vmem [resolvable:$true] %s1445_s15 }
  0xd4   : > { %s9619_s28 = scalar_lea.vmem %s1424_s0, 32  ;;  %p9626_p11 = scmp.lt.s32.totalorder %s1424_s0, %s1424_s0 }
  0xd5   : > { %p9620_p7 = scmp.ne.s32.totalorder %s1424_s0, %s9619_s28  ;;  %p9627_p13 = scmp.lt.s32.totalorder %s9619_s28, %s9619_s28 }
  0xd7   : > { %p9621_p8 = pnand %p9620_p7, %p12233_p4  ;;  %p9628_p9 = por %p9627_p13, %p9626_p11 }
  0xd9   : > { %p9622_p6 = pneg %p9621_p8 }
  0xdb   : > { %p9629_p10 = pnand %p9628_p9, %p9622_p6 }
  0xdd   : > { %9632 = shalt.err (!%p9629_p10)
}
  0xde   : > { %s12290_s17 = sld [smem:[#allocation110_spill]]  ;;  %s9643_s2 = scalar_lea.vmem %s1446_s15, 128 }
  0xdf   : > { %p9644_p0 = scmp.ne.s32.totalorder %s1446_s15, %s9643_s2  ;;  %p9650_p2 = scmp.lt.s32.totalorder %s1446_s15, %s1446_s15 }
  0xe0   : > { %p9651_p3 = scmp.lt.s32.totalorder %s9643_s2, %s9643_s2 }
  0xe1   : > { %p9645_p12 = pnand %p9644_p0, %p12233_p4 }
  0xe2   : > { %p9652_p7 = por %p9651_p3, %p9650_p2 }
  0xe3   : > { %p9646_p1 = pneg %p9645_p12 }
  0xe4   : > { %8520 = dma.hbm_to_vmem [thread:$0]  (%p12233_p4), %s12290_s17, 32, %s1424_s0, [#allocation26]  }
  0xe5   : > { %p9653_p8 = pnand %p9652_p7, %p9646_p1 }
  0xe7   : > { %9656 = shalt.err (!%p9653_p8)
}
  0xe8   : > { %s12291_s12 = sld [smem:[#allocation112_spill]]  ;;  %s10721_s16 = smov [#allocation31]  }
  0xe9   : > { %s1469_s26 = sshll.u32 %s10721_s16, 4  ;;  %s10722_s0 = smov [#allocation34]   ;;  %s1470_s26 = int_to_ptr.vmem [resolvable:$true] %s1469_s26 }
  0xea   : > { %s1493_s19 = sshll.u32 %s10722_s0, 4  ;;  %s9667_s28 = scalar_lea.vmem %s1470_s26, 32  ;;  %s1494_s19 = int_to_ptr.vmem [resolvable:$true] %s1493_s19 }
  0xeb   : > { %p9668_p6 = scmp.ne.s32.totalorder %s1470_s26, %s9667_s28  ;;  %p9674_p9 = scmp.lt.s32.totalorder %s1470_s26, %s1470_s26 }
  0xec   : > { %p9675_p10 = scmp.lt.s32.totalorder %s9667_s28, %s9667_s28 }
  0xed   : > { %p9669_p11 = pnand %p9668_p6, %p12233_p4 }
  0xee   : > { %8524 = dma.hbm_to_vmem [thread:$0]  (%p12233_p4), %s12291_s12, 128, %s1446_s15, [#allocation29]  }
  0xef   : > { %p9670_p13 = pneg %p9669_p11  ;;  %p9676_p0 = por %p9675_p10, %p9674_p9 }
  0xf1   : > { %p9677_p12 = pnand %p9676_p0, %p9670_p13 }
  0xf3   : > { %9680 = shalt.err (!%p9677_p12)
}
  0xf4   : > { %8528 = dma.hbm_to_vmem [thread:$0]  (%p12233_p4), %s10883_s25, 32, %s1470_s26, [#allocation32]  }
  0xf5   : > { %s9691_s15 = scalar_lea.vmem %s1494_s19, 16  ;;  %s9697_s2 = scalar_lea.vmem %s1494_s19, 32 }
  0xf6   : > { %p9692_p1 = scmp.ne.s32.totalorder %s1494_s19, %s9691_s15  ;;  %p9698_p7 = scmp.lt.s32.totalorder %s1494_s19, %s1494_s19 }
  0xf7   : > { %p9699_p8 = scmp.lt.s32.totalorder %s9697_s2, %s9691_s15 }
  0xf8   : > { %p9693_p2 = pnand %p9692_p1, %p12233_p4 }
  0xf9   : > { %p9700_p6 = por %p9699_p8, %p9698_p7 }
  0xfa   : > { %p9694_p3 = pneg %p9693_p2 }
  0xfc   : > { %p9701_p11 = pnand %p9700_p6, %p9694_p3 }
  0xfe   : > { %9704 = shalt.err (!%p9701_p11)
}
  0xff   : > { %s12292_s5 = sld [smem:[#allocation115_spill]]  ;;  %s10723_s16 = smov [#allocation37]  }
 0x100   : > { %s1514_s0 = sshll.u32 %s10723_s16, 4  ;;  %s1515_s0 = int_to_ptr.vmem [resolvable:$true] %s1514_s0 }
 0x101   : > { %s9715_s26 = scalar_lea.vmem %s1515_s0, 4096  ;;  %p9722_p0 = scmp.lt.s32.totalorder %s1515_s0, %s1515_s0 }
 0x102   : > { %p9716_p13 = scmp.ne.s32.totalorder %s1515_s0, %s9715_s26  ;;  %p9723_p12 = scmp.lt.s32.totalorder %s9715_s26, %s9715_s26 }
 0x104   : > { %p9717_p9 = pnand %p9716_p13, %p12233_p4  ;;  %p9724_p1 = por %p9723_p12, %p9722_p0 }
 0x105   : > { %8532 = dma.hbm_to_vmem [thread:$0]  (%p12233_p4), %s12292_s5, 16, %s1494_s19, [#allocation35]  }
 0x106   : > { %p9718_p10 = pneg %p9717_p9 }
 0x108   : > { %p9725_p2 = pnand %p9724_p1, %p9718_p10 }
 0x10a   : > { %9728 = shalt.err (!%p9725_p2)
}
 0x10b   : > { %s12229_s28 = smov 256   ;;  %s12230_s15 = smov 16  }
 0x10c   : > { %8536 = dma.hbm_to_vmem [thread:$0]  (%p12233_p4), %s10903_s21, 4096, %s1515_s0, [#allocation38], %s12229_s28, %s12229_s28, %s12230_s15  }
 0x10d   : > { %s10726_s19 = smov [#allocation40]   ;;  %s10727_s16 = smov [#allocation43]  }
 0x10e   : > { %s1538_s2 = sshll.u32 %s10726_s19, 4  ;;  %s1563_s10 = sshll.u32 %s10727_s16, 4  ;;  %s1539_s2 = int_to_ptr.vmem [resolvable:$true] %s1538_s2  ;;  %s1564_s10 = int_to_ptr.vmem [resolvable:$true] %s1563_s10 }
 0x10f   : > { %s9739_s26 = scalar_lea.vmem %s1539_s2, 4096  ;;  %p9746_p6 = scmp.lt.s32.totalorder %s1539_s2, %s1539_s2 }
 0x110   : > { %p9740_p3 = scmp.ne.s32.totalorder %s1539_s2, %s9739_s26  ;;  %p9747_p11 = scmp.lt.s32.totalorder %s9739_s26, %s9739_s26 }
 0x112   : > { %p9741_p7 = pnand %p9740_p3, %p12233_p4  ;;  %p9748_p13 = por %p9747_p11, %p9746_p6 }
 0x114   : > { %p9742_p8 = pneg %p9741_p7 }
 0x116   : > { %p9749_p9 = pnand %p9748_p13, %p9742_p8 }
 0x118   : > { %9752 = shalt.err (!%p9749_p9)
}
 0x119   : > { %s12293_s0 = smov 64   ;;  %s12294_s4 = sld [smem:[#allocation118_spill]] }
 0x11a   : > { %s9763_s19 = scalar_lea.vmem %s1564_s10, 32  ;;  %p9770_p1 = scmp.lt.s32.totalorder %s1564_s10, %s1564_s10 }
 0x11b   : > { %p9764_p10 = scmp.ne.s32.totalorder %s1564_s10, %s9763_s19  ;;  %p9771_p2 = scmp.lt.s32.totalorder %s9763_s19, %s9763_s19 }
 0x11d   : > { %p9765_p0 = pnand %p9764_p10, %p12233_p4  ;;  %p9772_p3 = por %p9771_p2, %p9770_p1 }
 0x11f   : > { %8540 = dma.hbm_to_vmem [thread:$0]  (%p12233_p4), %s12294_s4, 4096, %s1539_s2, [#allocation41], %s12293_s0, %s12293_s0, %s12231_s1  }
 0x120   : > { %p9766_p12 = pneg %p9765_p0 }
 0x122   : > { %p9773_p7 = pnand %p9772_p3, %p9766_p12 }
 0x124   : > { %9776 = shalt.err (!%p9773_p7)
}
 0x125   : > { %8544 = dma.hbm_to_vmem [thread:$0]  (%p12233_p4), %s10923_s20, 32, %s1564_s10, [#allocation44]  }
 0x126   : > { %s10728_s16 = smov [#allocation46]   ;;  %s10729_s28 = smov [#allocation49]  }
 0x127   : > { %s1585_s26 = sshll.u32 %s10728_s16, 4  ;;  %s1609_s15 = sshll.u32 %s10729_s28, 4  ;;  %s1586_s26 = int_to_ptr.vmem [resolvable:$true] %s1585_s26  ;;  %s1610_s15 = int_to_ptr.vmem [resolvable:$true] %s1609_s15 }
 0x128   : > { %s9787_s2 = scalar_lea.vmem %s1586_s26, 128  ;;  %p9794_p13 = scmp.lt.s32.totalorder %s1586_s26, %s1586_s26 }
 0x129   : > { %p9788_p8 = scmp.ne.s32.totalorder %s1586_s26, %s9787_s2  ;;  %p9795_p9 = scmp.lt.s32.totalorder %s9787_s2, %s9787_s2 }
 0x12b   : > { %p9789_p6 = pnand %p9788_p8, %p12233_p4  ;;  %p9796_p10 = por %p9795_p9, %p9794_p13 }
 0x12d   : > { %p9790_p11 = pneg %p9789_p6 }
 0x12f   : > { %p9797_p0 = pnand %p9796_p10, %p9790_p11 }
 0x131   : > { %9800 = shalt.err (!%p9797_p0)
}
 0x132   : > { %8548 = dma.hbm_to_vmem [thread:$0]  (%p12233_p4), %s10933_s30, 128, %s1586_s26, [#allocation47]  }
 0x133   : > { %s9811_s10 = scalar_lea.vmem %s1610_s15, 32  ;;  %p9818_p3 = scmp.lt.s32.totalorder %s1610_s15, %s1610_s15 }
 0x134   : > { %p9812_p12 = scmp.ne.s32.totalorder %s1610_s15, %s9811_s10  ;;  %p9819_p7 = scmp.lt.s32.totalorder %s9811_s10, %s9811_s10 }
 0x136   : > { %p9813_p1 = pnand %p9812_p12, %p12233_p4  ;;  %p9820_p5 = por %p9819_p7, %p9818_p3 }
 0x138   : > { %p9814_p2 = pneg %p9813_p1 }
 0x13a   : > { %p9821_p8 = pnand %p9820_p5, %p9814_p2 }
 0x13c   : > { %9824 = shalt.err (!%p9821_p8)
}
 0x13d   : > { %s12295_s28 = sld [smem:[#allocation122_spill]]  ;;  %s10730_s19 = smov [#allocation52]  }
 0x13e   : > { %s1633_s16 = sshll.u32 %s10730_s19, 4  ;;  %s10731_s2 = smov [#allocation55]   ;;  %s1634_s16 = int_to_ptr.vmem [resolvable:$true] %s1633_s16 }
 0x13f   : > { %s1654_s1 = sshll.u32 %s10731_s2, 4  ;;  %s9835_s26 = scalar_lea.vmem %s1634_s16, 16  ;;  %s1655_s1 = int_to_ptr.vmem [resolvable:$true] %s1654_s1 }
 0x140   : > { %p9836_p6 = scmp.ne.s32.totalorder %s1634_s16, %s9835_s26  ;;  %s9841_s10 = scalar_lea.vmem %s1634_s16, 32 }
 0x141   : > { %p9842_p9 = scmp.lt.s32.totalorder %s1634_s16, %s1634_s16  ;;  %p9843_p5 = scmp.lt.s32.totalorder %s9841_s10, %s9835_s26 }
 0x142   : > { %p9837_p11 = pnand %p9836_p6, %p12233_p4 }
 0x143   : > { %8552 = dma.hbm_to_vmem [thread:$0]  (%p12233_p4), %s12295_s28, 32, %s1610_s15, [#allocation50]  }
 0x144   : > { %p9838_p13 = pneg %p9837_p11  ;;  %p9844_p10 = por %p9843_p5, %p9842_p9 }
 0x146   : > { %p9845_p0 = pnand %p9844_p10, %p9838_p13 }
 0x148   : > { %9848 = shalt.err (!%p9845_p0)
}
 0x149   : > { %s12296_s15 = sld [smem:[#allocation124_spill]]  ;;  %s9859_s28 = scalar_lea.vmem %s1655_s1, 4096 }
 0x14a   : > { %p9860_p12 = scmp.ne.s32.totalorder %s1655_s1, %s9859_s28  ;;  %p9866_p3 = scmp.lt.s32.totalorder %s1655_s1, %s1655_s1 }
 0x14b   : > { %p9867_p7 = scmp.lt.s32.totalorder %s9859_s28, %s9859_s28 }
 0x14c   : > { %p9861_p1 = pnand %p9860_p12, %p12233_p4 }
 0x14d   : > { %p9868_p8 = por %p9867_p7, %p9866_p3 }
 0x14e   : > { %p9862_p2 = pneg %p9861_p1 }
 0x14f   : > { %8556 = dma.hbm_to_vmem [thread:$0]  (%p12233_p4), %s12296_s15, 16, %s1634_s16, [#allocation53]  }
 0x150   : > { %p9869_p6 = pnand %p9868_p8, %p9862_p2 }
 0x152   : > { %9872 = shalt.err (!%p9869_p6)
}
 0x153   : > { %s12297_s19 = smov 16   ;;  %s12298_s2 = smov 256  }
 0x154   : > { %s12299_s26 = sld [smem:[#allocation126_spill]]  ;;  %s10732_s10 = smov [#allocation58]  }
 0x155   : > { %s1678_s16 = sshll.u32 %s10732_s10, 4  ;;  %s10733_s15 = smov [#allocation61]   ;;  %s1679_s16 = int_to_ptr.vmem [resolvable:$true] %s1678_s16 }
 0x156   : > { %s1703_s3 = sshll.u32 %s10733_s15, 4  ;;  %s9883_s4 = scalar_lea.vmem %s1679_s16, 4096  ;;  %s1704_s3 = int_to_ptr.vmem [resolvable:$true] %s1703_s3 }
 0x157   : > { %p9884_p11 = scmp.ne.s32.totalorder %s1679_s16, %s9883_s4  ;;  %p9890_p5 = scmp.lt.s32.totalorder %s1679_s16, %s1679_s16 }
 0x158   : > { %p9891_p10 = scmp.lt.s32.totalorder %s9883_s4, %s9883_s4 }
 0x159   : > { %p9885_p13 = pnand %p9884_p11, %p12233_p4 }
 0x15a   : > { %8560 = dma.hbm_to_vmem [thread:$0]  (%p12233_p4), %s12299_s26, 4096, %s1655_s1, [#allocation56], %s12298_s2, %s12298_s2, %s12297_s19  }
 0x15b   : > { %p9886_p9 = pneg %p9885_p13  ;;  %p9892_p0 = por %p9891_p10, %p9890_p5 }
 0x15d   : > { %p9893_p12 = pnand %p9892_p0, %p9886_p9 }
 0x15f   : > { %9896 = shalt.err (!%p9893_p12)
}
 0x160   : > { %s12300_s28 = smov 4   ;;  %s12301_s1 = sld [smem:[#allocation128_spill]] }
 0x161   : > { %s9907_s19 = scalar_lea.vmem %s1704_s3, 32  ;;  %p9914_p7 = scmp.lt.s32.totalorder %s1704_s3, %s1704_s3 }
 0x162   : > { %p9908_p1 = scmp.ne.s32.totalorder %s1704_s3, %s9907_s19  ;;  %p9915_p8 = scmp.lt.s32.totalorder %s9907_s19, %s9907_s19 }
 0x164   : > { %p9909_p2 = pnand %p9908_p1, %p12233_p4  ;;  %p9916_p6 = por %p9915_p8, %p9914_p7 }
 0x166   : > { %8564 = dma.hbm_to_vmem [thread:$0]  (%p12233_p4), %s12301_s1, 4096, %s1679_s16, [#allocation59], %s12293_s0, %s12293_s0, %s12300_s28  }
 0x167   : > { %p9910_p3 = pneg %p9909_p2 }
 0x169   : > { %p9917_p11 = pnand %p9916_p6, %p9910_p3 }
 0x16b   : > { %9920 = shalt.err (!%p9917_p11)
}
 0x16c   : > { %s12302_s4 = sld [smem:[#allocation130_spill]]  ;;  %s10734_s2 = smov [#allocation64]  }
 0x16d   : > { %s1727_s26 = sshll.u32 %s10734_s2, 4  ;;  %s10735_s10 = smov [#allocation9]   ;;  %s1728_s26 = int_to_ptr.vmem [resolvable:$true] %s1727_s26 }
 0x16e   : > { %s1288_s16 = sshll.u32 %s10735_s10, 4  ;;  %s9931_s15 = scalar_lea.vmem %s1728_s26, 32  ;;  %s1289_s16 = int_to_ptr.vmem [resolvable:$true] %s1288_s16 }
 0x16f   : > { %p9932_p13 = scmp.ne.s32.totalorder %s1728_s26, %s9931_s15  ;;  %p9938_p10 = scmp.lt.s32.totalorder %s1728_s26, %s1728_s26 }
 0x170   : > { %p9939_p0 = scmp.lt.s32.totalorder %s9931_s15, %s9931_s15 }
 0x171   : > { %p9933_p9 = pnand %p9932_p13, %p12233_p4 }
 0x172   : > { %8568 = dma.hbm_to_vmem [thread:$0]  (%p12233_p4), %s12302_s4, 32, %s1704_s3, [#allocation62]  }
 0x173   : > { %p9934_p5 = pneg %p9933_p9  ;;  %p9940_p12 = por %p9939_p0, %p9938_p10 }
 0x175   : > { %p9941_p1 = pnand %p9940_p12, %p9934_p5 }
 0x177   : > { %9944 = shalt.err (!%p9941_p1)
}
 0x178   : > { %s12303_s1 = sld [smem:[#allocation132_spill]]  ;;  %s9955_s3 = scalar_lea.vmem %s1289_s16, 1024 }
 0x179   : > { %p9956_p2 = scmp.ne.s32.totalorder %s1289_s16, %s9955_s3  ;;  %p9962_p8 = scmp.lt.s32.totalorder %s1289_s16, %s1289_s16 }
 0x17a   : > { %p9963_p6 = scmp.lt.s32.totalorder %s9955_s3, %s9955_s3 }
 0x17b   : > { %p9957_p3 = pnand %p9956_p2, %p12233_p4 }
 0x17c   : > { %p9964_p11 = por %p9963_p6, %p9962_p8 }
 0x17d   : > { %p9958_p7 = pneg %p9957_p3 }
 0x17e   : > { %8572 = dma.hbm_to_vmem [thread:$0]  (%p12233_p4), %s12303_s1, 32, %s1728_s26, [#allocation65]  }
 0x17f   : > { %p9965_p13 = pnand %p9964_p11, %p9958_p7 }
 0x181   : > { %9968 = shalt.err (!%p9965_p13)
}
 0x182   : > { %s12304_s19 = smov 8   ;;  %s12305_s4 = smov 128  }
 0x183   : > { %s12306_s2 = sld [smem:[#allocation100_spill]]  ;;  %s10736_s26 = smov [#allocation12]  }
 0x184   : > { %s1315_s10 = sshll.u32 %s10736_s26, 4  ;;  %s10737_s15 = smov [#allocation15]   ;;  %s1316_s10 = int_to_ptr.vmem [resolvable:$true] %s1315_s10 }
 0x185   : > { %s1339_s1 = sshll.u32 %s10737_s15, 4  ;;  %s9979_s5 = scalar_lea.vmem %s1316_s10, 16  ;;  %s1340_s1 = int_to_ptr.vmem [resolvable:$true] %s1339_s1 }
 0x186   : > { %p9980_p9 = scmp.ne.s32.totalorder %s1316_s10, %s9979_s5  ;;  %s9985_s3 = scalar_lea.vmem %s1316_s10, 32 }
 0x187   : > { %p9986_p0 = scmp.lt.s32.totalorder %s1316_s10, %s1316_s10  ;;  %p9987_p12 = scmp.lt.s32.totalorder %s9985_s3, %s9979_s5 }
 0x188   : > { %p9981_p5 = pnand %p9980_p9, %p12233_p4 }
 0x189   : > { %8498 = dma.hbm_to_vmem [thread:$0]  (%p12233_p4), %s12306_s2, 1024, %s1289_s16, [#allocation8], %s12305_s4, %s12305_s4, %s12304_s19  }
 0x18a   : > { %p9982_p10 = pneg %p9981_p5  ;;  %p9988_p1 = por %p9987_p12, %p9986_p0 }
 0x18c   : > { %p9989_p2 = pnand %p9988_p1, %p9982_p10 }
 0x18e   : > { %9992 = shalt.err (!%p9989_p2)
}
 0x18f   : > { %s12307_s6 = sld [smem:[#allocation102_spill]]  ;;  %s10003_s16 = scalar_lea.vmem %s1340_s1, 32 }
 0x190   : > { %p10004_p3 = scmp.ne.s32.totalorder %s1340_s1, %s10003_s16  ;;  %p10010_p6 = scmp.lt.s32.totalorder %s1340_s1, %s1340_s1 }
 0x191   : > { %p10011_p11 = scmp.lt.s32.totalorder %s10003_s16, %s10003_s16 }
 0x192   : > { %p10005_p7 = pnand %p10004_p3, %p12233_p4 }
 0x193   : > { %p10012_p13 = por %p10011_p11, %p10010_p6 }
 0x194   : > { %p10006_p8 = pneg %p10005_p7 }
 0x195   : > { %8502 = dma.hbm_to_vmem [thread:$0]  (%p12233_p4), %s12307_s6, 16, %s1316_s10, [#allocation11]  }
 0x196   : > { %p10013_p9 = pnand %p10012_p13, %p10006_p8 }
 0x198   : > { %10016 = shalt.err (!%p10013_p9)
}
 0x199   : > { %s12308_s5 = sld [smem:[#allocation104_spill]]  ;;  %s10738_s2 = smov [#allocation18]  }
 0x19a   : > { %s1363_s26 = sshll.u32 %s10738_s2, 4  ;;  %s10739_s6 = smov [#allocation21]   ;;  %s1364_s26 = int_to_ptr.vmem [resolvable:$true] %s1363_s26 }
 0x19b   : > { %s1388_s10 = sshll.u32 %s10739_s6, 4  ;;  %s10027_s15 = scalar_lea.vmem %s1364_s26, 16  ;;  %s1389_s10 = int_to_ptr.vmem [resolvable:$true] %s1388_s10 }
 0x19c   : > { %p10028_p5 = scmp.ne.s32.totalorder %s1364_s26, %s10027_s15  ;;  %s10033_s3 = scalar_lea.vmem %s1364_s26, 32 }
 0x19d   : > { %p10034_p12 = scmp.lt.s32.totalorder %s1364_s26, %s1364_s26  ;;  %p10035_p1 = scmp.lt.s32.totalorder %s10033_s3, %s10027_s15 }
 0x19e   : > { %p10029_p10 = pnand %p10028_p5, %p12233_p4 }
 0x19f   : > { %8506 = dma.hbm_to_vmem [thread:$0]  (%p12233_p4), %s12308_s5, 32, %s1340_s1, [#allocation14]  }
 0x1a0   : > { %p10030_p0 = pneg %p10029_p10  ;;  %p10036_p2 = por %p10035_p1, %p10034_p12 }
 0x1a2   : > { %p10037_p3 = pnand %p10036_p2, %p10030_p0 }
 0x1a4   : > { %10040 = shalt.err (!%p10037_p3)
}
 0x1a5   : > { %s12309_s16 = sld [smem:[#allocation105_spill]]  ;;  %s10051_s1 = scalar_lea.vmem %s1389_s10, 64 }
 0x1a6   : > { %p10052_p7 = scmp.ne.s32.totalorder %s1389_s10, %s10051_s1  ;;  %p10058_p11 = scmp.lt.s32.totalorder %s1389_s10, %s1389_s10 }
 0x1a7   : > { %p10059_p13 = scmp.lt.s32.totalorder %s10051_s1, %s10051_s1 }
 0x1a8   : > { %p10053_p8 = pnand %p10052_p7, %p12233_p4 }
 0x1a9   : > { %p10060_p9 = por %p10059_p13, %p10058_p11 }
 0x1aa   : > { %p10054_p6 = pneg %p10053_p8 }
 0x1ab   : > { %8510 = dma.hbm_to_vmem [thread:$0]  (%p12233_p4), %s12309_s16, 16, %s1364_s26, [#allocation17]  }
 0x1ac   : > { %p10061_p5 = pnand %p10060_p9, %p10054_p6 }
 0x1ae   : > { %10064 = shalt.err (!%p10061_p5)
}
 0x1af   : > { %s12310_s5 = sld [smem:[#allocation108_spill]]  ;;  %s10740_s2 = smov [#allocation24]  }
 0x1b0   : > { %s1412_s6 = sshll.u32 %s10740_s2, 4  ;;  %s10741_s26 = smov [#allocation27]   ;;  %s1413_s6 = int_to_ptr.vmem [resolvable:$true] %s1412_s6 }
 0x1b1   : > { %s1434_s15 = sshll.u32 %s10741_s26, 4  ;;  %s10075_s3 = scalar_lea.vmem %s1413_s6, 16  ;;  %s1435_s15 = int_to_ptr.vmem [resolvable:$true] %s1434_s15 }
 0x1b2   : > { %p10076_p10 = scmp.ne.s32.totalorder %s1413_s6, %s10075_s3  ;;  %s10081_s16 = scalar_lea.vmem %s1413_s6, 32 }
 0x1b3   : > { %p10082_p1 = scmp.lt.s32.totalorder %s1413_s6, %s1413_s6  ;;  %p10083_p2 = scmp.lt.s32.totalorder %s10081_s16, %s10075_s3 }
 0x1b4   : > { %p10077_p0 = pnand %p10076_p10, %p12233_p4 }
 0x1b5   : > { %8514 = dma.hbm_to_vmem [thread:$0]  (%p12233_p4), %s12310_s5, 64, %s1389_s10, [#allocation20]  }
 0x1b6   : > { %p10078_p12 = pneg %p10077_p0  ;;  %p10084_p3 = por %p10083_p2, %p10082_p1 }
 0x1b8   : > { %p10085_p7 = pnand %p10084_p3, %p10078_p12 }
 0x1ba   : > { %10088 = shalt.err (!%p10085_p7)
}
 0x1bb   : > { %s12311_s1 = sld [smem:[#allocation109_spill]]  ;;  %s10099_s10 = scalar_lea.vmem %s1435_s15, 64 }
 0x1bc   : > { %p10100_p8 = scmp.ne.s32.totalorder %s1435_s15, %s10099_s10  ;;  %p10106_p13 = scmp.lt.s32.totalorder %s1435_s15, %s1435_s15 }
 0x1bd   : > { %p10107_p9 = scmp.lt.s32.totalorder %s10099_s10, %s10099_s10 }
 0x1be   : > { %p10101_p6 = pnand %p10100_p8, %p12233_p4 }
 0x1bf   : > { %p10108_p5 = por %p10107_p9, %p10106_p13 }
 0x1c0   : > { %p10102_p11 = pneg %p10101_p6 }
 0x1c1   : > { %8518 = dma.hbm_to_vmem [thread:$0]  (%p12233_p4), %s12311_s1, 16, %s1413_s6, [#allocation23]  }
 0x1c2   : > { %p10109_p10 = pnand %p10108_p5, %p10102_p11 }
 0x1c4   : > { %10112 = shalt.err (!%p10109_p10)
}
 0x1c5   : > { %s12312_s5 = sld [smem:[#allocation111_spill]]  ;;  %s10742_s2 = smov [#allocation30]  }
 0x1c6   : > { %s1455_s26 = sshll.u32 %s10742_s2, 4  ;;  %s10743_s6 = smov [#allocation33]   ;;  %s1456_s26 = int_to_ptr.vmem [resolvable:$true] %s1455_s26 }
 0x1c7   : > { %s1479_s3 = sshll.u32 %s10743_s6, 4  ;;  %s10123_s16 = scalar_lea.vmem %s1456_s26, 2048  ;;  %s1480_s3 = int_to_ptr.vmem [resolvable:$true] %s1479_s3 }
 0x1c8   : > { %p10124_p0 = scmp.ne.s32.totalorder %s1456_s26, %s10123_s16  ;;  %p10130_p2 = scmp.lt.s32.totalorder %s1456_s26, %s1456_s26 }
 0x1c9   : > { %p10131_p3 = scmp.lt.s32.totalorder %s10123_s16, %s10123_s16 }
 0x1ca   : > { %p10125_p12 = pnand %p10124_p0, %p12233_p4 }
 0x1cb   : > { %8522 = dma.hbm_to_vmem [thread:$0]  (%p12233_p4), %s12312_s5, 64, %s1435_s15, [#allocation26]  }
 0x1cc   : > { %p10126_p1 = pneg %p10125_p12  ;;  %p10132_p7 = por %p10131_p3, %p10130_p2 }
 0x1ce   : > { %p10133_p8 = pnand %p10132_p7, %p10126_p1 }
 0x1d0   : > { %10136 = shalt.err (!%p10133_p8)
}
 0x1d1   : > { %s12313_s15 = sld [smem:[#allocation113_spill]]  ;;  %s10147_s1 = scalar_lea.vmem %s1480_s3, 1024 }
 0x1d2   : > { %p10148_p6 = scmp.ne.s32.totalorder %s1480_s3, %s10147_s1  ;;  %p10154_p9 = scmp.lt.s32.totalorder %s1480_s3, %s1480_s3 }
 0x1d3   : > { %p10155_p5 = scmp.lt.s32.totalorder %s10147_s1, %s10147_s1 }
 0x1d4   : > { %p10149_p11 = pnand %p10148_p6, %p12233_p4 }
 0x1d5   : > { %p10156_p10 = por %p10155_p5, %p10154_p9 }
 0x1d6   : > { %p10150_p13 = pneg %p10149_p11 }
 0x1d7   : > { %8526 = dma.hbm_to_vmem [thread:$0]  (%p12233_p4), %s12313_s15, 2048, %s1456_s26, [#allocation29], %s12305_s4, %s12305_s4, %s12304_s19  }
 0x1d8   : > { %p10157_p0 = pnand %p10156_p10, %p10150_p13 }
 0x1da   : > { %10160 = shalt.err (!%p10157_p0)
}
 0x1db   : > { %s12314_s10 = sld [smem:[#allocation114_spill]]  ;;  %s10744_s5 = smov [#allocation36]  }
 0x1dc   : > { %s1504_s2 = sshll.u32 %s10744_s5, 4  ;;  %s10745_s26 = smov [#allocation39]   ;;  %s1505_s2 = int_to_ptr.vmem [resolvable:$true] %s1504_s2 }
 0x1dd   : > { %s1528_s6 = sshll.u32 %s10745_s26, 4  ;;  %s10171_s16 = scalar_lea.vmem %s1505_s2, 32  ;;  %s1529_s6 = int_to_ptr.vmem [resolvable:$true] %s1528_s6 }
 0x1de   : > { %p10172_p12 = scmp.ne.s32.totalorder %s1505_s2, %s10171_s16  ;;  %p10178_p3 = scmp.lt.s32.totalorder %s1505_s2, %s1505_s2 }
 0x1df   : > { %p10179_p7 = scmp.lt.s32.totalorder %s10171_s16, %s10171_s16 }
 0x1e0   : > { %p10173_p1 = pnand %p10172_p12, %p12233_p4 }
 0x1e1   : > { %8530 = dma.hbm_to_vmem [thread:$0]  (%p12233_p4), %s12314_s10, 1024, %s1480_s3, [#allocation32], %s12293_s0, %s12293_s0, %s12300_s28  }
 0x1e2   : > { %p10174_p2 = pneg %p10173_p1  ;;  %p10180_p8 = por %p10179_p7, %p10178_p3 }
 0x1e4   : > { %p10181_p6 = pnand %p10180_p8, %p10174_p2 }
 0x1e6   : > { %10184 = shalt.err (!%p10181_p6)
}
 0x1e7   : > { %s12315_s15 = sld [smem:[#allocation116_spill]]  ;;  %s10195_s3 = scalar_lea.vmem %s1529_s6, 64 }
 0x1e8   : > { %p10196_p11 = scmp.ne.s32.totalorder %s1529_s6, %s10195_s3  ;;  %p10202_p5 = scmp.lt.s32.totalorder %s1529_s6, %s1529_s6 }
 0x1e9   : > { %p10203_p10 = scmp.lt.s32.totalorder %s10195_s3, %s10195_s3 }
 0x1ea   : > { %p10197_p13 = pnand %p10196_p11, %p12233_p4 }
 0x1eb   : > { %p10204_p0 = por %p10203_p10, %p10202_p5 }
 0x1ec   : > { %p10198_p9 = pneg %p10197_p13 }
 0x1ed   : > { %8534 = dma.hbm_to_vmem [thread:$0]  (%p12233_p4), %s12315_s15, 32, %s1505_s2, [#allocation35]  }
 0x1ee   : > { %p10205_p12 = pnand %p10204_p0, %p10198_p9 }
 0x1f0   : > { %10208 = shalt.err (!%p10205_p12)
}
 0x1f1   : > { %s12316_s1 = sld [smem:[#allocation117_spill]]  ;;  %s10746_s10 = smov [#allocation42]  }
 0x1f2   : > { %s1552_s5 = sshll.u32 %s10746_s10, 4  ;;  %s10747_s2 = smov [#allocation45]   ;;  %s1553_s5 = int_to_ptr.vmem [resolvable:$true] %s1552_s5 }
 0x1f3   : > { %s1574_s26 = sshll.u32 %s10747_s2, 4  ;;  %s10219_s16 = scalar_lea.vmem %s1553_s5, 16  ;;  %s1575_s26 = int_to_ptr.vmem [resolvable:$true] %s1574_s26 }
 0x1f4   : > { %p10220_p1 = scmp.ne.s32.totalorder %s1553_s5, %s10219_s16  ;;  %s10225_s15 = scalar_lea.vmem %s1553_s5, 32 }
 0x1f5   : > { %p10226_p7 = scmp.lt.s32.totalorder %s1553_s5, %s1553_s5  ;;  %p10227_p8 = scmp.lt.s32.totalorder %s10225_s15, %s10219_s16 }
 0x1f6   : > { %p10221_p2 = pnand %p10220_p1, %p12233_p4 }
 0x1f7   : > { %8538 = dma.hbm_to_vmem [thread:$0]  (%p12233_p4), %s12316_s1, 64, %s1529_s6, [#allocation38]  }
 0x1f8   : > { %p10222_p3 = pneg %p10221_p2  ;;  %p10228_p6 = por %p10227_p8, %p10226_p7 }
 0x1fa   : > { %p10229_p11 = pnand %p10228_p6, %p10222_p3 }
 0x1fc   : > { %10232 = shalt.err (!%p10229_p11)
}
 0x1fd   : > { %s12317_s3 = sld [smem:[#allocation119_spill]]  ;;  %s10243_s6 = scalar_lea.vmem %s1575_s26, 64 }
 0x1fe   : > { %p10244_p13 = scmp.ne.s32.totalorder %s1575_s26, %s10243_s6  ;;  %p10250_p10 = scmp.lt.s32.totalorder %s1575_s26, %s1575_s26 }
 0x1ff   : > { %p10251_p0 = scmp.lt.s32.totalorder %s10243_s6, %s10243_s6 }
 0x200   : > { %p10245_p9 = pnand %p10244_p13, %p12233_p4 }
 0x201   : > { %p10252_p12 = por %p10251_p0, %p10250_p10 }
 0x202   : > { %p10246_p5 = pneg %p10245_p9 }
 0x203   : > { %8542 = dma.hbm_to_vmem [thread:$0]  (%p12233_p4), %s12317_s3, 16, %s1553_s5, [#allocation41]  }
 0x204   : > { %p10253_p1 = pnand %p10252_p12, %p10246_p5 }
 0x206   : > { %10256 = shalt.err (!%p10253_p1)
}
 0x207   : > { %s12318_s1 = sld [smem:[#allocation120_spill]]  ;;  %s10748_s10 = smov [#allocation48]  }
 0x208   : > { %s1595_s2 = sshll.u32 %s10748_s10, 4  ;;  %s10749_s5 = smov [#allocation51]   ;;  %s1596_s2 = int_to_ptr.vmem [resolvable:$true] %s1595_s2 }
 0x209   : > { %s1619_s16 = sshll.u32 %s10749_s5, 4  ;;  %s10267_s15 = scalar_lea.vmem %s1596_s2, 2048  ;;  %s1620_s16 = int_to_ptr.vmem [resolvable:$true] %s1619_s16 }
 0x20a   : > { %p10268_p2 = scmp.ne.s32.totalorder %s1596_s2, %s10267_s15  ;;  %p10274_p8 = scmp.lt.s32.totalorder %s1596_s2, %s1596_s2 }
 0x20b   : > { %p10275_p6 = scmp.lt.s32.totalorder %s10267_s15, %s10267_s15 }
 0x20c   : > { %p10269_p3 = pnand %p10268_p2, %p12233_p4 }
 0x20d   : > { %8546 = dma.hbm_to_vmem [thread:$0]  (%p12233_p4), %s12318_s1, 64, %s1575_s26, [#allocation44]  }
 0x20e   : > { %p10270_p7 = pneg %p10269_p3  ;;  %p10276_p11 = por %p10275_p6, %p10274_p8 }
 0x210   : > { %p10277_p13 = pnand %p10276_p11, %p10270_p7 }
 0x212   : > { %10280 = shalt.err (!%p10277_p13)
}
 0x213   : > { %s12319_s26 = sld [smem:[#allocation121_spill]]  ;;  %s10291_s3 = scalar_lea.vmem %s1620_s16, 1024 }
 0x214   : > { %p10292_p9 = scmp.ne.s32.totalorder %s1620_s16, %s10291_s3  ;;  %p10298_p0 = scmp.lt.s32.totalorder %s1620_s16, %s1620_s16 }
 0x215   : > { %p10299_p12 = scmp.lt.s32.totalorder %s10291_s3, %s10291_s3 }
 0x216   : > { %p10293_p5 = pnand %p10292_p9, %p12233_p4 }
 0x217   : > { %p10300_p1 = por %p10299_p12, %p10298_p0 }
 0x218   : > { %p10294_p10 = pneg %p10293_p5 }
 0x219   : > { %8550 = dma.hbm_to_vmem [thread:$0]  (%p12233_p4), %s12319_s26, 2048, %s1596_s2, [#allocation47], %s12305_s4, %s12305_s4, %s12304_s19  }
 0x21a   : > { %p10301_p2 = pnand %p10300_p1, %p10294_p10 }
 0x21c   : > { %10304 = shalt.err (!%p10301_p2)
}
 0x21d   : > { %s12320_s6 = sld [smem:[#allocation123_spill]]  ;;  %s10750_s1 = smov [#allocation54]  }
 0x21e   : > { %s1644_s10 = sshll.u32 %s10750_s1, 4  ;;  %s10751_s2 = smov [#allocation57]   ;;  %s1645_s10 = int_to_ptr.vmem [resolvable:$true] %s1644_s10 }
 0x21f   : > { %s1668_s5 = sshll.u32 %s10751_s2, 4  ;;  %s10315_s15 = scalar_lea.vmem %s1645_s10, 32  ;;  %s1669_s5 = int_to_ptr.vmem [resolvable:$true] %s1668_s5 }
 0x220   : > { %p10316_p3 = scmp.ne.s32.totalorder %s1645_s10, %s10315_s15  ;;  %p10322_p6 = scmp.lt.s32.totalorder %s1645_s10, %s1645_s10 }
 0x221   : > { %p10323_p11 = scmp.lt.s32.totalorder %s10315_s15, %s10315_s15 }
 0x222   : > { %p10317_p7 = pnand %p10316_p3, %p12233_p4 }
 0x223   : > { %8554 = dma.hbm_to_vmem [thread:$0]  (%p12233_p4), %s12320_s6, 1024, %s1620_s16, [#allocation50], %s12293_s0, %s12293_s0, %s12300_s28  }
 0x224   : > { %p10318_p8 = pneg %p10317_p7  ;;  %p10324_p13 = por %p10323_p11, %p10322_p6 }
 0x226   : > { %p10325_p9 = pnand %p10324_p13, %p10318_p8 }
 0x228   : > { %10328 = shalt.err (!%p10325_p9)
}
 0x229   : > { %s12321_s26 = sld [smem:[#allocation125_spill]]  ;;  %s10339_s0 = scalar_lea.vmem %s1669_s5, 64 }
 0x22a   : > { %p10340_p5 = scmp.ne.s32.totalorder %s1669_s5, %s10339_s0  ;;  %p10346_p12 = scmp.lt.s32.totalorder %s1669_s5, %s1669_s5 }
 0x22b   : > { %p10347_p1 = scmp.lt.s32.totalorder %s10339_s0, %s10339_s0 }
 0x22c   : > { %p10341_p10 = pnand %p10340_p5, %p12233_p4 }
 0x22d   : > { %p10348_p2 = por %p10347_p1, %p10346_p12 }
 0x22e   : > { %p10342_p0 = pneg %p10341_p10 }
 0x22f   : > { %8558 = dma.hbm_to_vmem [thread:$0]  (%p12233_p4), %s12321_s26, 32, %s1645_s10, [#allocation53]  }
 0x230   : > { %p10349_p3 = pnand %p10348_p2, %p10342_p0 }
 0x232   : > { %10352 = shalt.err (!%p10349_p3)
}
 0x233   : > { %s12322_s28 = sld [smem:[#allocation127_spill]]  ;;  %s10752_s16 = smov [#allocation60]  }
 0x234   : > { %s1692_s3 = sshll.u32 %s10752_s16, 4  ;;  %s10753_s6 = smov [#allocation63]   ;;  %s1693_s3 = int_to_ptr.vmem [resolvable:$true] %s1692_s3 }
 0x235   : > { %s1713_s1 = sshll.u32 %s10753_s6, 4  ;;  %s10363_s10 = scalar_lea.vmem %s1693_s3, 16  ;;  %s1714_s1 = int_to_ptr.vmem [resolvable:$true] %s1713_s1 }
 0x236   : > { %p10364_p7 = scmp.ne.s32.totalorder %s1693_s3, %s10363_s10  ;;  %s10369_s2 = scalar_lea.vmem %s1693_s3, 32 }
 0x237   : > { %p10370_p11 = scmp.lt.s32.totalorder %s1693_s3, %s1693_s3  ;;  %p10371_p13 = scmp.lt.s32.totalorder %s10369_s2, %s10363_s10 }
 0x238   : > { %p10365_p8 = pnand %p10364_p7, %p12233_p4 }
 0x239   : > { %8562 = dma.hbm_to_vmem [thread:$0]  (%p12233_p4), %s12322_s28, 64, %s1669_s5, [#allocation56]  }
 0x23a   : > { %p10366_p6 = pneg %p10365_p8  ;;  %p10372_p9 = por %p10371_p13, %p10370_p11 }
 0x23c   : > { %p10373_p5 = pnand %p10372_p9, %p10366_p6 }
 0x23e   : > { %10376 = shalt.err (!%p10373_p5)
}
 0x23f   : > { %s12323_s15 = sld [smem:[#allocation129_spill]]  ;;  %s10387_s5 = scalar_lea.vmem %s1714_s1, 2048 }
 0x240   : > { %p10388_p10 = scmp.ne.s32.totalorder %s1714_s1, %s10387_s5  ;;  %p10394_p1 = scmp.lt.s32.totalorder %s1714_s1, %s1714_s1 }
 0x241   : > { %p10395_p2 = scmp.lt.s32.totalorder %s10387_s5, %s10387_s5 }
 0x242   : > { %p10389_p0 = pnand %p10388_p10, %p12233_p4 }
 0x243   : > { %p10396_p3 = por %p10395_p2, %p10394_p1 }
 0x244   : > { %p10390_p12 = pneg %p10389_p0 }
 0x245   : > { %8566 = dma.hbm_to_vmem [thread:$0]  (%p12233_p4), %s12323_s15, 16, %s1693_s3, [#allocation59]  }
 0x246   : > { %p10397_p7 = pnand %p10396_p3, %p10390_p12 }
 0x248   : > { %10400 = shalt.err (!%p10397_p7)
}
 0x249   : > { %s12324_s26 = sld [smem:[#allocation131_spill]]  ;;  %s10754_s0 = smov [#allocation66]  }
 0x24a   : > { %s1743_s28 = sshll.u32 %s10754_s0, 4  ;;  %s10755_s16 = smov [#allocation67]   ;;  %s1744_s28 = int_to_ptr.vmem [resolvable:$true] %s1743_s28 }
 0x24b   : > { %s1757_s3 = sshll.u32 %s10755_s16, 4  ;;  %s10411_s6 = scalar_lea.vmem %s1744_s28, 2048  ;;  %s1758_s3 = int_to_ptr.vmem [resolvable:$true] %s1757_s3 }
 0x24c   : > { %p10412_p8 = scmp.ne.s32.totalorder %s1744_s28, %s10411_s6  ;;  %p10418_p13 = scmp.lt.s32.totalorder %s1744_s28, %s1744_s28 }
 0x24d   : > { %p10419_p9 = scmp.lt.s32.totalorder %s10411_s6, %s10411_s6 }
 0x24e   : > { %p10413_p6 = pnand %p10412_p8, %p12233_p4 }
 0x24f   : > { %8570 = dma.hbm_to_vmem [thread:$0]  (%p12233_p4), %s12324_s26, 2048, %s1714_s1, [#allocation62], %s12305_s4, %s12305_s4, %s12304_s19  }
 0x250   : > { %p10414_p11 = pneg %p10413_p6  ;;  %p10420_p5 = por %p10419_p9, %p10418_p13 }
 0x252   : > { %p10421_p10 = pnand %p10420_p5, %p10414_p11 }
 0x254   : > { %10424 = shalt.err (!%p10421_p10)
}
 0x255   : > { %s12325_s1 = sld [smem:[#allocation134_spill]]  ;;  %s10435_s10 = scalar_lea.vmem %s1758_s3, 32 }
 0x256   : > { %p10436_p0 = scmp.ne.s32.totalorder %s1758_s3, %s10435_s10  ;;  %p10442_p2 = scmp.lt.s32.totalorder %s1758_s3, %s1758_s3 }
 0x257   : > { %p10443_p3 = scmp.lt.s32.totalorder %s10435_s10, %s10435_s10 }
 0x258   : > { %p10437_p12 = pnand %p10436_p0, %p12233_p4 }
 0x259   : > { %p10444_p7 = por %p10443_p3, %p10442_p2 }
 0x25a   : > { %p10438_p1 = pneg %p10437_p12 }
 0x25b   : > { %8574 = dma.hbm_to_vmem [thread:$0]  (%p12233_p4), %s12325_s1, 2048, %s1744_s28, [#allocation65], %s12305_s4, %s12305_s4, %s12304_s19  }
 0x25c   : > { %p10445_p8 = pnand %p10444_p7, %p10438_p1 }
 0x25e   : > { %10448 = shalt.err (!%p10445_p8)
}
 0x25f   : > { %s12326_s8 = sld [smem:[#allocation135_spill]] }
 0x265   : > { %8576 = dma.hbm_to_vmem [thread:$0]  (%p12233_p4), %s12326_s8, 32, %s1758_s3, [#allocation68]  }
 0x266 PF: > { %s12327_s19 = sld [smem:[#allocation94_spill]]  ;;  %p8714_p11 = scmp.lt.s32.totalorder %s10657_s23, 2 }
 0x267   : > { %s11340_s4 = sand.u32 1, %s10653_s29   ;;  %s8084_s2 = sshll.u32 %s10657_s23, 8 }
 0x268   : > { %s7677_s15 = sshll.u32 %s11340_s4, 4  ;;  %p12328_p13 = scmp.ne.s32.totalorder %s12280_s7, 0 }
 0x269   : > { %s1778_s26 = scalar_lea.vmem [#allocation4], %s7677_s15  ;;  %s1775_s16 = scalar_lea.sflag [#allocation5], %s11340_s4 }
 0x26a   : > { %s1785_s0 = sshll.u32 %s1778_s26, 4  ;;  %p11349_p9 = pnand %p8714_p11, %p12328_p13  ;;  %s11353_s0 = int_to_ptr.vmem [resolvable:$true] %s1785_s0 }
 0x26c   : > { %s11345_s5 = scalar_lea.hbm %s12327_s19, %s8084_s2  ;;  %p10451_p10 = pneg %p11349_p9 }
 0x26d   : > { %s10449_s3 = scalar_lea.hbm %s11345_s5, 256  ;;  %s10454_s6 = scalar_lea.hbm %s12327_s19, 512 }
 0x26e   : > { %p10450_p5 = scmp.ne.s32.totalorder %s11345_s5, %s10449_s3  ;;  %p10455_p1 = scmp.lt.s32.totalorder %s11345_s5, %s12327_s19 }
 0x26f   : > { %p10456_p2 = scmp.lt.s32.totalorder %s10454_s6, %s10449_s3 }
 0x270   : > { %p10452_p0 = pnand %p10451_p10, %p10450_p5 }
 0x271   : > { %p10457_p3 = por %p10456_p2, %p10455_p1 }
 0x272   : > { %p10453_p12 = pneg %p10452_p0 }
 0x274   : > { %p10458_p7 = pnand %p10457_p3, %p10453_p12 }
 0x276   : > { %10461 = shalt.err (!%p10458_p7)
}
 0x277   : > { %s10462_s7 = scalar_lea.vmem %s11353_s0, 256  ;;  %s10756_s1 = smov [#allocation4]  }
 0x278   : > { %p10463_p8 = scmp.ne.s32.totalorder %s11353_s0, %s10462_s7  ;;  %s10467_s10 = sshll.u32 %s10756_s1, 4  ;;  %s10468_s10 = int_to_ptr.vmem [resolvable:$false] %s10467_s10 }
 0x279   : > { %s10469_s2 = scalar_lea.vmem %s10468_s10, 512  ;;  %p10470_p5 = scmp.lt.s32.totalorder %s11353_s0, %s10468_s10 }
 0x27a   : > { %p10465_p11 = pnand %p10463_p8, %p10451_p10  ;;  %p10471_p0 = scmp.lt.s32.totalorder %s10469_s2, %s10462_s7 }
 0x27c   : > { %p10466_p13 = pneg %p10465_p11  ;;  %p10472_p6 = por %p10471_p0, %p10470_p5 }
 0x27e   : > { %p10473_p1 = pnand %p10472_p6, %p10466_p13 }
 0x280   : > { %10476 = shalt.err (!%p10473_p1)
}
 0x281   : > { %s10757_s15 = smov 128   ;;  %s12330_s26 = sld [smem:[#allocation95_spill]] }
 0x282   : > { %s10758_s3 = smov 8   ;;  %s1795_s6 = sand.u32 1, %s10657_s23  }
 0x283   : > { %8666 = dma.hbm_to_vmem [thread:$0]  (!%p11349_p9), %s11345_s5, 256, %s11353_s0, %s1775_s16, %s10757_s15, %s10757_s15, %s10758_s3  }
 0x284   : > { %s7680_s7 = sshll.u32 %s11340_s4, 3  ;;  %s7681_s1 = sshll.u32 %s10657_s23, 7 }
 0x285   : > { %s1799_s10 = scalar_lea.vmem [#allocation7], %s7680_s7  ;;  %s1796_s12 = scalar_lea.sflag [#allocation8], %s1795_s6 }
 0x286   : > { %s1806_s2 = sshll.u32 %s1799_s10, 4  ;;  %s1807_s2 = int_to_ptr.vmem [resolvable:$true] %s1806_s2 }
 0x287   : > { %s1804_s8 = scalar_lea.hbm %s12330_s26, %s7681_s1  ;;  %s10482_s17 = scalar_lea.hbm %s12330_s26, 256 }
 0x288   : > { %s10477_s14 = scalar_lea.hbm %s1804_s8, 128  ;;  %p10483_p3 = scmp.lt.s32.totalorder %s1804_s8, %s12330_s26 }
 0x289   : > { %p10478_p6 = scmp.ne.s32.totalorder %s1804_s8, %s10477_s14  ;;  %p10484_p7 = scmp.lt.s32.totalorder %s10482_s17, %s10477_s14 }
 0x28b   : > { %p10480_p12 = pnand %p10478_p6, %p10451_p10  ;;  %p10485_p8 = por %p10484_p7, %p10483_p3 }
 0x28d   : > { %p10481_p2 = pneg %p10480_p12 }
 0x28f   : > { %p10486_p11 = pnand %p10485_p8, %p10481_p2 }
 0x291   : > { %10489 = shalt.err (!%p10486_p11)
}
 0x292   : > { %s10490_s5 = scalar_lea.vmem %s1807_s2, 128  ;;  %s10759_s4 = smov [#allocation7]  }
 0x293   : > { %p10491_p13 = scmp.ne.s32.totalorder %s1807_s2, %s10490_s5  ;;  %s10495_s0 = sshll.u32 %s10759_s4, 4  ;;  %s10496_s0 = int_to_ptr.vmem [resolvable:$false] %s10495_s0 }
 0x294   : > { %s10497_s16 = scalar_lea.vmem %s10496_s0, 256  ;;  %p10498_p1 = scmp.lt.s32.totalorder %s1807_s2, %s10496_s0 }
 0x295   : > { %p10493_p5 = pnand %p10491_p13, %p10451_p10  ;;  %p10499_p6 = scmp.lt.s32.totalorder %s10497_s16, %s10490_s5 }
 0x297   : > { %p10494_p0 = pneg %p10493_p5  ;;  %p10500_p12 = por %p10499_p6, %p10498_p1 }
 0x299   : > { %p10501_p4 = pnand %p10500_p12, %p10494_p0 }
 0x29b   : > { %10504 = shalt.err (!%p10501_p4)
}
 0x29c   : > { %8669 = dma.hbm_to_vmem [thread:$0]  (!%p11349_p9), %s1804_s8, 128, %s1807_s2, %s1796_s12  }
 0x29d   : > { %p12331_p2 = scmp.ne.s32.totalorder %s12286_s18, 0 }
 0x29e   : > { %s11395_s17 = sand.u32 (!%p12331_p2), 1, %s10649_s9   ;;  %p12332_p10 = scmp.ne.s32.totalorder (!%p12331_p2), %s12281_s11, 0 }
 0x29f   : > { %1835 = sbr.rel (%p12331_p2) target bundleno = 7746 (0x1e42), region = 224  ;;  %s7683_s14 = sshll.u32 (!%p12331_p2), %s11395_s17, 4 }
 0x2a0   : > { %s1838_s15 = scalar_lea.sflag (!%p12331_p2), [#allocation5], %s11395_s17  ;;  %s11399_s3 = scalar_lea.vmem (!%p12331_p2), [#allocation4], %s7683_s14 }
 0x2a4   : > { %10548 = dma.done.wait (%p12332_p10), %s1838_s15, 256  }
 0x2a5   : > { %10550 = vsyncadd (%p12332_p10), %s1838_s15, 4294967040  ;;  %s1846_s8 = sand.u32 1, %s11047_s22   ;;  %s7684_s12 = sshll.u32 %s11395_s17, 3 }
 0x2a6   : > { %s1847_s18 = scalar_lea.sflag [#allocation8], %s1846_s8  ;;  %s11409_s28 = scalar_lea.vmem [#allocation7], %s7684_s12 }
 0x2a7   : > { %10552 = dma.done.wait (%p12332_p10), %s1847_s18, 128  }
 0x2a8   : > { %10554 = vsyncadd (%p12332_p10), %s1847_s18, 4294967168  ;;  %p12333_p4 = scmp.eq.s32.totalorder %s11047_s22, 0 }
 0x2aa   : > { %10556 = dma.done.wait (%p12333_p4), [#allocation8], 1024   ;;  %p12334_p9 = pmov %p12333_p4 }
 0x2ab   : > { %p12335_p3 = pmov %p12333_p4 }
 0x2ac   : > { %10558 = vsyncadd (%p12334_p9), [#allocation8], 4294966272 }
 0x2ad   : > { %10560 = dma.done.wait (%p12335_p3), [#allocation11], 1040   ;;  %p12336_p7 = pmov %p12335_p3 }
 0x2ae   : > { %p12337_p8 = pmov %p12335_p3 }
 0x2af   : > { %10562 = vsyncadd (%p12336_p7), [#allocation11], 4294966256 }
 0x2b0   : > { %10564 = dma.done.wait (%p12337_p8), [#allocation14], 1056   ;;  %p12338_p11 = pmov %p12335_p3 }
 0x2b1   : > { %p12339_p13 = pmov %p12335_p3 }
 0x2b2   : > { %10566 = vsyncadd (%p12338_p11), [#allocation14], 4294966240 }
 0x2b3   : > { %10568 = dma.done.wait (%p12339_p13), [#allocation17], 1040   ;;  %p12340_p5 = pmov %p12335_p3 }
 0x2b4   : > { %p12341_p0 = pmov %p12335_p3 }
 0x2b5   : > { %10570 = vsyncadd (%p12340_p5), [#allocation17], 4294966256 }
 0x2b6   : > { %10572 = dma.done.wait (%p12341_p0), [#allocation20], 96   ;;  %p12342_p1 = pmov %p12341_p0 }
 0x2b7   : > { %p12343_p6 = pmov %p12341_p0 }
 0x2b8   : > { %10574 = vsyncadd (%p12342_p1), [#allocation20], 4294967200 }
 0x2b9   : > { %10576 = dma.done.wait (%p12343_p6), [#allocation23], 4112   ;;  %p12344_p12 = pmov %p12341_p0 }
 0x2ba   : > { %p12345_p2 = pmov %p12341_p0 }
 0x2bb   : > { %10578 = vsyncadd (%p12344_p12), [#allocation23], 4294963184 }
 0x2bc   : > { %10580 = dma.done.wait (%p12345_p2), [#allocation26], 96   ;;  %p12346_p10 = pmov %p12341_p0 }
 0x2bd   : > { %p12347_p4 = pmov %p12341_p0 }
 0x2be   : > { %10582 = vsyncadd (%p12346_p10), [#allocation26], 4294967200 }
 0x2bf   : > { %10584 = dma.done.wait (%p12347_p4), [#allocation29], 2176   ;;  %p12348_p9 = pmov %p12341_p0 }
 0x2c0   : > { %p12349_p3 = pmov %p12341_p0 }
 0x2c1   : > { %10586 = vsyncadd (%p12348_p9), [#allocation29], 4294965120 }
 0x2c2   : > { %10588 = dma.done.wait (%p12349_p3), [#allocation32], 1056   ;;  %p12350_p7 = pmov %p12341_p0 }
 0x2c3   : > { %p12351_p8 = pmov %p12341_p0 }
 0x2c4   : > { %10590 = vsyncadd (%p12350_p7), [#allocation32], 4294966240 }
 0x2c5   : > { %10592 = dma.done.wait (%p12351_p8), [#allocation35], 48   ;;  %p12352_p11 = pmov %p12341_p0 }
 0x2c6   : > { %p12353_p13 = pmov %p12341_p0 }
 0x2c7   : > { %10594 = vsyncadd (%p12352_p11), [#allocation35], 4294967248 }
 0x2c8   : > { %10596 = dma.done.wait (%p12353_p13), [#allocation38], 4160   ;;  %p12354_p5 = pmov %p12341_p0 }
 0x2ca   : > { %10598 = vsyncadd (%p12354_p5), [#allocation38], 4294963136 }
 0x2cb   : > { %10600 = dma.done.wait (%p12341_p0), [#allocation41], 4112   ;;  %p12355_p1 = pmov %p12341_p0 }
 0x2cc   : > { %p12356_p6 = pmov %p12341_p0 }
 0x2cd   : > { %10602 = vsyncadd (%p12355_p1), [#allocation41], 4294963184 }
 0x2ce   : > { %10604 = dma.done.wait (%p12356_p6), [#allocation44], 96   ;;  %p12357_p12 = pmov %p12341_p0 }
 0x2cf   : > { %p12358_p2 = pmov %p12341_p0 }
 0x2d0   : > { %10606 = vsyncadd (%p12357_p12), [#allocation44], 4294967200 }
 0x2d1   : > { %10608 = dma.done.wait (%p12358_p2), [#allocation47], 2176   ;;  %p12359_p10 = pmov %p12341_p0 }
 0x2d2   : > { %p12360_p4 = pmov %p12341_p0 }
 0x2d3   : > { %10610 = vsyncadd (%p12359_p10), [#allocation47], 4294965120 }
 0x2d4   : > { %10612 = dma.done.wait (%p12360_p4), [#allocation50], 1056   ;;  %p12361_p9 = pmov %p12341_p0 }
 0x2d5   : > { %p12362_p3 = pmov %p12341_p0 }
 0x2d6   : > { %10614 = vsyncadd (%p12361_p9), [#allocation50], 4294966240 }
 0x2d7   : > { %10616 = dma.done.wait (%p12362_p3), [#allocation53], 48   ;;  %p12363_p7 = pmov %p12341_p0 }
 0x2d8   : > { %p12364_p8 = pmov %p12341_p0 }
 0x2d9   : > { %10618 = vsyncadd (%p12363_p7), [#allocation53], 4294967248 }
 0x2da   : > { %10620 = dma.done.wait (%p12364_p8), [#allocation56], 4160   ;;  %p12365_p11 = pmov %p12341_p0 }
 0x2db   : > { %p12366_p13 = pmov %p12341_p0 }
 0x2dc   : > { %10622 = vsyncadd (%p12365_p11), [#allocation56], 4294963136 }
 0x2dd   : > { %10624 = dma.done.wait (%p12366_p13), [#allocation59], 4112   ;;  %p12367_p5 = pmov %p12341_p0 }
 0x2df   : > { %10626 = vsyncadd (%p12367_p5), [#allocation59], 4294963184 }
 0x2e0   : > { %10628 = dma.done.wait (%p12341_p0), [#allocation62], 2080   ;;  %p12368_p1 = pmov %p12341_p0 }
 0x2e1   : > { %p12369_p6 = pmov %p12341_p0 }
 0x2e2   : > { %10630 = vsyncadd (%p12368_p1), [#allocation62], 4294965216 }
 0x2e3   : > { %10632 = dma.done.wait (%p12369_p6), [#allocation65], 2080   ;;  %p12370_p12 = pmov %p12341_p0 }
 0x2e4   : > { %p12371_p2 = pmov %p12341_p0 }
 0x2e5   : > { %10634 = vsyncadd (%p12370_p12), [#allocation65], 4294965216 }
 0x2e6   : > { %10636 = dma.done.wait (%p12371_p2), [#allocation68], 32   ;;  %p12372_p10 = pmov %p12341_p0 }
 0x2e7   : > { %v10760_v2 = vmov 0.0   ;;  %v10761_v3 = vmov 0   ;;  %vm10762_vm0 = vmmov 0   ;;  %v8893_v4 = vld [vmem:[#allocation10 + $0x38] sm:$0xff]   ;;  %v8894_v5 = vld [vmem:[#allocation10 + $0x30] sm:$0xff]   ;;  %v8895_v8 = vld [vmem:[#allocation10 + $0x28] sm:$0xff]   ;;  %v2429_v25 = vlaneseq }
 0x2e8   : > { %10638 = vsyncadd (%p12372_p10), [#allocation68], 4294967264  ;;  %8336 = vmatprep.subr.bf16.mxu0 %v10760_v2  ;;  %2515 = vmatprep.mubr.bf16.mxu1 %v10761_v3  ;;  %v8896_v6 = vld [vmem:[#allocation13 + $0x34] ss:$8 sps:$4 sm:$0xff]   ;;  %v8898_v7 = vld [vmem:[#allocation13 + $0x30] ss:$8 sps:$4 sm:$0xff]  }
 0x2e9   : > { %8352 = vmatprep.mubr.msk.bf16.mxu0 %vm10762_vm0, %v10760_v2  ;;  %8891 = vset.pattern.permute.xlu0 %v10761_v3  ;;  %v8900_v9 = vld [vmem:[#allocation13 + $0x24] ss:$8 sps:$4 sm:$0xff]   ;;  %v8902_v10 = vld [vmem:[#allocation13 + $0x20] ss:$8 sps:$4 sm:$0xff]   ;;  %v8904_v11 = vld [vmem:[#allocation13 + $0x14] ss:$8 sps:$4 sm:$0xff]  }
 0x2ea   : > { %8892 = vset.pattern.permute.xlu1 %v10761_v3  ;;  %8337 = vmatpush3.bf16.msra.mxu0 %v8893_v4  ;;  %v8899_v12 = vld [vmem:[#allocation10 + $0x20] sm:$0xff]   ;;  %v8906_v13 = vld [vmem:[#allocation13 + $0x10] ss:$8 sps:$4 sm:$0xff]   ;;  %vm2479_vm1 = vcmask 523264   ;;  %v8911_v20 = vld [vmem:[#allocation10 + $0x8] sm:$0xff]   ;;  %v11518_v26 = vshrl.u32 %v2429_v25, 7 }
 0x2eb   : > { %8338 = vmatprep.subr.bf16.mxu0 %v10760_v2  ;;  %2491 = vmatprep.subr.bf16.mxu1 %v8896_v6  ;;  %v8908_v14 = vld [vmem:[#allocation13 + $0x4] ss:$8 sps:$4 sm:$0xff]   ;;  %v8903_v15 = vld [vmem:[#allocation10 + $0x18] sm:$0xff]   ;;  %v8910_v16 = vld [vmem:[#allocation13] ss:$8 sps:$4 sm:$0xff]   ;;  %s12373_s11 = sld [smem:[#allocation99_spill]] }
 0x2ec   : > { %2492 = vmatpush1.bf16.msra.mxu1 %v8898_v7  ;;  %v2159_v17 = vld [vmem:[%s11409_s28] sm:$0xff]  ;;  %v8912_v21 = vld [vmem:[#allocation10] sm:$0xff]   ;;  %v2158_v23 = vld [vmem:[%s11399_s3 + $0x8] sm:$0xff]  ;;  %v11521_v27 = vsub.s32 0, %v11518_v26  ;;  %v11524_v29 = vsub.s32 1, %v11518_v26  ;;  %vm2879_vm2 = vcmask 1043456  }
 0x2ed   : > { %2493 = vmatprep.subr.bf16.mxu1 %v8900_v9  ;;  %v8907_v18 = vld [vmem:[#allocation10 + $0x10] sm:$0xff]   ;;  %v2427_v19 = vpack.c.bf16 %v2159_v17, %v2159_v17  ;;  %v2213_v28 = vld [vmem:[#allocation15] sm:$0x3]  ;;  %v7728_v41 = vld [vmem:[#allocation12] ss:$0 sm:$0xff]  ;;  %s12374_s6 = sld [smem:[#allocation96_spill]] }
 0x2ee   : > { %8339 = vmatpush3.bf16.msra.mxu0 %v8894_v5  ;;  %v2157_v22 = vld [vmem:[%s11399_s3] sm:$0xff]  ;;  %v2432_v30 = vrot.slane %v2213_v28, %v11521_v27  ;;  %v2436_v31 = vrot.slane %v2213_v28, %v11524_v29  ;;  %p2145_p4 = scmp.lt.s32.totalorder %s11047_s22, 1  ;;  %vm2669_vm5 = vcmask 64512   ;;  %s12377_s10 = sld [smem:[#allocation107_spill]]  ;;  %vm4116_vm8 = vcmask 130048  }
 0x2ef   : > { %8340 = vmatprep.subr.bf16.mxu0 %v10760_v2  ;;  %v11515_v24 = vpack.c.bf16 %v2158_v23, %v2157_v22  ;;  %s12378_s2 = sld [smem:[#allocation98_spill]]  ;;  %s8081_s28 = sshll.u32 %s11047_s22, 7 }
 0x2f0   : > { %2494 = vmatpush1.bf16.msra.mxu1 %v8902_v10  ;;  %s11597_s7 = scalar_select %p2145_p4, %s11047_s22, 1 }
 0x2f1   : > { %2495 = vmatprep.subr.bf16.mxu1 %v8904_v11  ;;  %v11530_v45 = vld [vmem:[%s12373_s11] sm:$0xff]  ;;  %v11533_v46 = vld [vmem:[%s12373_s11 + $0x10] sm:$0xff]  ;;  %v11536_v48 = vld [vmem:[%s12373_s11 + $0x8] sm:$0xff]  ;;  %s12379_s0 = sld [smem:[#allocation97_spill]] }
 0x2f2   : > { %8341 = vmatpush3.bf16.msra.mxu0 %v8895_v8  ;;  %v11539_v49 = vld [vmem:[%s12373_s11 + $0x18] sm:$0xff]  ;;  %v11542_v50 = vld [vmem:[%s12373_s11 + $0x28] sm:$0xff]  ;;  %v11546_v54 = vld [vmem:[%s12373_s11 + $0x20] sm:$0xff]  ;;  %s8085_s5 = sshll.u32 %s11597_s7, 4  ;;  %s12382_s14 = sld [smem:[#allocation133_spill]] }
 0x2f3   : > { %8342 = vmatprep.subr.bf16.mxu0 %v10760_v2  ;;  %v11554_v63 = vld [vmem:[%s12373_s11 + $0x38] sm:$0xff]  ;;  %v11557_v0 = vld [vmem:[%s12373_s11 + $0x48] sm:$0xff]  ;;  %v11560_v1 = vld [vmem:[%s12373_s11 + $0x30] sm:$0xff]  ;;  %s2147_s1 = scalar_lea.vmem %s12374_s6, %s11597_s7  ;;  %s12383_s8 = sld [smem:[#allocation136_spill]] }
 0x2f4   : > { %2496 = vmatpush1.bf16.msra.mxu1 %v8906_v13  ;;  %v11564_v5 = vld [vmem:[%s12373_s11 + $0x40] sm:$0xff]  ;;  %v11570_v11 = vld [vmem:[%s12373_s11 + $0x58] sm:$0xff]  ;;  %v11576_v13 = vld [vmem:[%s12373_s11 + $0x50] sm:$0xff]  ;;  %s12384_s18 = sld [smem:[#allocation140_spill]]  ;;  %s2144_s6 = scalar_lea.vmem [#allocation69], %s7684_s12 }
 0x2f5   : > { %2497 = vmatprep.subr.bf16.mxu1 %v8908_v14  ;;  %v11589_v22 = vld [vmem:[%s12373_s11 + $0x70] sm:$0xff]  ;;  %s2155_s4 = scalar_lea.vmem %s12378_s2, %s8085_s5  ;;  %s7067_s2 = scalar_lea.sflag [#allocation6], %s11395_s17 }
 0x2f6   : > { %8343 = vmatpush3.bf16.msra.mxu0 %v8899_v12  ;;  %v11573_v12 = vld [vmem:[%s12373_s11 + $0x68] sm:$0xff] }
 0x2f7   : > { %8344 = vmatprep.subr.bf16.mxu0 %v10760_v2  ;;  %s2150_s16 = scalar_lea.vmem %s12379_s0, %s11597_s7  ;;  %s7080_s7 = sshll.u32 %s2144_s6, 4  ;;  %s7081_s7 = int_to_ptr.vmem [resolvable:$true] %s7080_s7 }
 0x2f8   : > { %2498 = vmatpush1.bf16.msra.mxu1 %v8910_v16  ;;  %s10505_s5 = scalar_lea.vmem %s7081_s7, 128 }
 0x2f9   : > { %p10506_p9 = scmp.ne.s32.totalorder %s7081_s7, %s10505_s5 }
 0x2fa   : > { %8345 = vmatpush3.bf16.msra.mxu0 %v8903_v15  ;;  %v11580_v15 = vld [vmem:[%s12373_s11 + $0x60] sm:$0xff]  ;;  %p12385_p3 = scmp.ne.s32.totalorder %s12384_s18, 0 }
 0x2fb   : > { %8346 = vmatprep.subr.bf16.mxu0 %v10760_v2  ;;  %7745 = vmatmul.mubr.msk.bf16.vlgmr.msra.gmra.mxu1 %vm2479_vm1, %v2427_v19 }
 0x2fc   : > { %p10507_p7 = pnand %p10506_p9, %p12385_p3 }
 0x2fe   : > { %8347 = vmatpush3.bf16.msra.mxu0 %v8907_v18  ;;  %p10508_p8 = pneg %p10507_p7 }
 0x2ff   : > { %8348 = vmatprep.subr.bf16.mxu0 %v10760_v2 }
 0x302   : > { %8349 = vmatpush3.bf16.msra.mxu0 %v8911_v20 }
 0x303   : > { %8350 = vmatprep.subr.bf16.mxu0 %v10760_v2 }
 0x306   : > { %8351 = vmatpush3.bf16.msra.mxu0 %v8912_v21  ;;  %v11586_v21 = vld [vmem:[%s12373_s11 + $0x78] sm:$0xff] }
 0x309   : > { %8353 = vmatmul.mubr.bf16.vlgmr.msra.gmra.mxu0 %v11515_v24 }
 0x3bb   : > { %v2517_v32 = vpop.f32.mrf.mxu1 }
 0x3bc   : > { %v2518_v33 = vadd.f32 %v2517_v32, %v2432_v30  ;;  %v2160_v30 = vld [vmem:[%s2147_s1] sm:$0x1]  ;;  %s7078_s1 = scalar_lea.hbm %s12383_s8, %s8081_s28 }
 0x3bd   : > { %v2519_v34 = vpop.f32.mrf.mxu1  ;;  %vm2646_vm3 = vcmp.gt.f32.partialorder %v2160_v30, 0.0 }
 0x3be   : > { %v2548_v35 = vpack.c.bf16 %v2518_v33, %v2518_v33  ;;  %v2520_v36 = vadd.f32 %v2519_v34, %v2436_v31  ;;  %v2647_v31 = vsel %vm2646_vm3, 1, %v10761_v3 }
 0x3bf   : > { %v2521_v37 = vpop.f32.mrf.mxu1  ;;  %v2651_v32 = vrot.slane %v2647_v31, %v11521_v27 }
 0x3c0   : > { %v2854_v38 = vpack.c.bf16 %v2520_v36, %v2520_v36  ;;  %8356 = vmatprep.subr.bf16.mxu1 %v2548_v35 }
 0x3c1   : > { %v2522_v39 = vpop.f32.mrf.mxu1  ;;  %8357 = vmatpush3.bf16.xpose.msra.mxu1 %v2548_v35  ;;  %vm11603_vm4 = vcmp.eq.s32.totalorder %v2651_v32, 1 }
 0x3c2   : > { %v2881_v40 = vsel %vm2879_vm2, %v2854_v38, 0  ;;  %8492 = vmatprep.subr.msk.bf16.mxu0 %vm2879_vm2, %v2854_v38  ;;  %8392 = vmatprep.subr.bf16.mxu1 %v10760_v2 }
 0x3c3   : > { %8375 = vmatpush3.bf16.msra.mxu0 %v2881_v40 }
 0x3c9   : > { %v2420_v42 = vpop.f32.mrf.mxu0 }
 0x3ca   : > { %v2421_v43 = vadd.f32 %v7728_v41, %v2420_v42 }
 0x3cb   : > { %v8354_v44 = vpop.f32.mrf.mxu0 }
 0x3cc   : > { %v2524_v53 = vmul.f32 %v2421_v43, %v11530_v45  ;;  %v2526_v56 = vmul.f32 %v2421_v43, %v11533_v46  ;;  %v2528_v61 = vmul.f32 %v2421_v43, %v11546_v54  ;;  %v2530_v7 = vmul.f32 %v2421_v43, %v11560_v1 }
 0x3cd   : > { %v2423_v47 = vpop.f32.mrf.mxu0  ;;  %v2532_v8 = vmul.f32 %v2421_v43, %v11564_v5  ;;  %v2534_v17 = vmul.f32 %v2421_v43, %v11576_v13  ;;  %v2536_v18 = vmul.f32 %v2421_v43, %v11580_v15  ;;  %v2538_v25 = vmul.f32 %v2421_v43, %v11589_v22 }
 0x3ce   : > { %v2424_v51 = vadd.f32 %v7728_v41, %v2423_v47 }
 0x3cf   : > { %v8355_v52 = vpop.f32.mrf.mxu0 }
 0x3d0   : > { %v2525_v55 = vmul.f32 %v2424_v51, %v11536_v48  ;;  %v2527_v57 = vmul.f32 %v2424_v51, %v11539_v49  ;;  %v2529_v58 = vmul.f32 %v2424_v51, %v11542_v50  ;;  %v2531_v4 = vmul.f32 %v2424_v51, %v11554_v63 }
 0x3d1   : > { %v2533_v6 = vmul.f32 %v2424_v51, %v11557_v0  ;;  %v2535_v14 = vmul.f32 %v2424_v51, %v11570_v11  ;;  %v2537_v16 = vmul.f32 %v2424_v51, %v11573_v12  ;;  %v2539_v23 = vmul.f32 %v2424_v51, %v11586_v21 }
 0x3d2   : > { %v2540_v59 = vpack.c.bf16 %v2525_v55, %v2524_v53  ;;  %v2541_v60 = vpack.c.bf16 %v2527_v57, %v2526_v56  ;;  %v2542_v62 = vpack.c.bf16 %v2529_v58, %v2528_v61  ;;  %v2543_v9 = vpack.c.bf16 %v2531_v4, %v2530_v7 }
 0x3d3   : > { %v2544_v10 = vpack.c.bf16 %v2533_v6, %v2532_v8  ;;  %v2545_v19 = vpack.c.bf16 %v2535_v14, %v2534_v17  ;;  %v2546_v20 = vpack.c.bf16 %v2537_v16, %v2536_v18  ;;  %v2547_v28 = vpack.c.bf16 %v2539_v23, %v2538_v25 }
 0x3d4   : > { %8358 = vmatprep.mubr.bf16.mxu1 %v2540_v59 }
 0x3d5   : > { %8359 = vmatmul.mubr.bf16.vlgmr.msra.gmra.mxu1 %v2541_v60 }
 0x3d6   : > { %8362 = vmatprep.mubr.bf16.mxu1 %v2542_v62 }
 0x3dd   : > { %8363 = vmatmul.mubr.bf16.gmra.mxu1 %v2543_v9 }
 0x3de   : > { %8366 = vmatprep.mubr.bf16.mxu1 %v2544_v10 }
 0x3e5   : > { %8367 = vmatmul.mubr.bf16.gmra.mxu1 %v2545_v19 }
 0x3e6   : > { %8370 = vmatprep.mubr.bf16.mxu1 %v2546_v20 }
 0x3ed   : > { %8371 = vmatmul.mubr.bf16.gmra.mxu1 %v2547_v28 }
 0x3ee   : > { %8408 = vmatprep.mubr.msk.bf16.mxu1 %vm10762_vm0, %v10760_v2 }
 0x495   : > { %v8360_v34 = vpop.f32.mrf.mxu1 }
 0x496   : > { %v11609_v35 = vsel %vm11603_vm4, %v8360_v34, -1e+09 }
 0x497   : > { %v2583_v36 = vpop.f32.mrf.mxu1  ;;  %v2676_v37 = vsel %vm2669_vm5, %v11609_v35, -inf }
 0x498   : > { %v11615_v38 = vsel %vm11603_vm4, %v2583_v36, -1e+09  ;;  %2677 = vmax.xlane.f32.xlu1 %v2676_v37 }
 0x499   : > { %v8361_v39 = vpop.f32.mrf.mxu1  ;;  %v2670_v40 = vsel %vm2669_vm5, %v11615_v38, -inf }
 0x49a   : > { %v11621_v41 = vsel %vm11603_vm4, %v8361_v39, -1e+09  ;;  %2671 = vmax.xlane.f32.xlu0 %v2670_v40 }
 0x49b   : > { %v2586_v42 = vpop.f32.mrf.mxu1  ;;  %v2679_v43 = vsel %vm2669_vm5, %v11621_v41, -inf }
 0x49c   : > { %v11627_v44 = vsel %vm11603_vm4, %v2586_v42, -1e+09  ;;  %2680 = vmax.xlane.f32.xlu1 %v2679_v43 }
 0x49d   : > { %v8364_v47 = vpop.f32.mrf.mxu1  ;;  %v2673_v51 = vsel %vm2669_vm5, %v11627_v44, -inf }
 0x49e   : > { %2674 = vmax.xlane.f32.xlu0 %v2673_v51  ;;  %v11639_v57 = vsel %vm11603_vm4, %v8364_v47, -1e+09 }
 0x49f   : > { %v2599_v52 = vpop.f32.mrf.mxu1  ;;  %v2688_v61 = vsel %vm2669_vm5, %v11639_v57, -inf }
 0x4a0   : > { %v11633_v53 = vsel %vm11603_vm4, %v2599_v52, -1e+09 }
 0x4a1   : > { %v8365_v55 = vpop.f32.mrf.mxu1  ;;  %v2682_v56 = vsel %vm2669_vm5, %v11633_v53, -inf }
 0x4a2   : > { %2683 = vmax.xlane.f32.xlu0 %v2682_v56  ;;  %v11651_v4 = vsel %vm11603_vm4, %v8365_v55, -1e+09 }
 0x4a3   : > { %v2602_v58 = vpop.f32.mrf.mxu1  ;;  %v2691_v9 = vsel %vm2669_vm5, %v11651_v4, -inf }
 0x4a4   : > { %v11643_v59 = vsel %vm11603_vm4, %v2602_v58, -1e+09 }
 0x4a5   : > { %v8368_v60 = vpop.f32.mrf.mxu1  ;;  %v2685_v62 = vsel %vm2669_vm5, %v11643_v59, -inf }
 0x4a6   : > { %2689 = vmax.xlane.f32.xlu0 %v2688_v61  ;;  %2686 = vmax.xlane.f32.xlu1 %v2685_v62  ;;  %v11663_v14 = vsel %vm11603_vm4, %v8368_v60, -1e+09 }
 0x4a7   : > { %v2615_v6 = vpop.f32.mrf.mxu1  ;;  %v2700_v19 = vsel %vm2669_vm5, %v11663_v14, -inf }
 0x4a8   : > { %v11655_v7 = vsel %vm11603_vm4, %v2615_v6, -1e+09 }
 0x4a9   : > { %v8369_v8 = vpop.f32.mrf.mxu1  ;;  %v2694_v10 = vsel %vm2669_vm5, %v11655_v7, -inf }
 0x4aa   : > { %2692 = vmax.xlane.f32.xlu1 %v2691_v9  ;;  %2695 = vmax.xlane.f32.xlu0 %v2694_v10  ;;  %v11675_v23 = vsel %vm11603_vm4, %v8369_v8, -1e+09 }
 0x4ab   : > { %v2618_v16 = vpop.f32.mrf.mxu1  ;;  %v2703_v31 = vsel %vm2669_vm5, %v11675_v23, -inf }
 0x4ac   : > { %v11667_v17 = vsel %vm11603_vm4, %v2618_v16, -1e+09 }
 0x4ad   : > { %v8372_v18 = vpop.f32.mrf.mxu1  ;;  %v2697_v20 = vsel %vm2669_vm5, %v11667_v17, -inf }
 0x4ae   : > { %2701 = vmax.xlane.f32.xlu0 %v2700_v19  ;;  %2698 = vmax.xlane.f32.xlu1 %v2697_v20  ;;  %v11687_v34 = vsel %vm11603_vm4, %v8372_v18, -1e+09 }
 0x4af   : > { %v2631_v25 = vpop.f32.mrf.mxu1  ;;  %v2712_v39 = vsel %vm2669_vm5, %v11687_v34, -inf }
 0x4b0   : > { %v11679_v28 = vsel %vm11603_vm4, %v2631_v25, -1e+09 }
 0x4b1   : > { %v8373_v30 = vpop.f32.mrf.mxu1  ;;  %v2706_v32 = vsel %vm2669_vm5, %v11679_v28, -inf }
 0x4b2   : > { %2704 = vmax.xlane.f32.xlu1 %v2703_v31  ;;  %2707 = vmax.xlane.f32.xlu0 %v2706_v32  ;;  %v11699_v42 = vsel %vm11603_vm4, %v8373_v30, -1e+09 }
 0x4b3   : > { %v2634_v36 = vpop.f32.mrf.mxu1  ;;  %v2715_v43 = vsel %vm2669_vm5, %v11699_v42, -inf }
 0x4b4   : > { %v11691_v37 = vsel %vm11603_vm4, %v2634_v36, -1e+09 }
 0x4b5   : > { %v2709_v40 = vsel %vm2669_vm5, %v11691_v37, -inf }
 0x4b6   : > { %2713 = vmax.xlane.f32.xlu0 %v2712_v39  ;;  %2710 = vmax.xlane.f32.xlu1 %v2709_v40 }
 0x4ba   : > { %2716 = vmax.xlane.f32.xlu1 %v2715_v43 }
 0x521   : > { %v2678_v47 = vpop.xlane.xlu1 %2677 }
 0x522   : > { %v2720_v51 = vsub.f32 %v11609_v35, %v2678_v47 }
 0x523   : > { %v2672_v52 = vpop.xlane.xlu0 %2671 }
 0x524   : > { %v2718_v55 = vsub.f32 %v11615_v38, %v2672_v52  ;;  %v2738_v58 = vmul.f32 1.442695, %v2720_v51 }
 0x525   : > { %v2681_v56 = vpop.xlane.xlu1 %2680 }
 0x526   : > { %v2734_v60 = vmul.f32 1.442695, %v2718_v55  ;;  %v2721_v61 = vsub.f32 %v11621_v41, %v2681_v56 }
 0x527   : > { %v2675_v33 = vpop.xlane.xlu0 %2674 }
 0x528   : > { %9305 = vpow2.f32 %v2734_v60  ;;  %v2719_v62 = vsub.f32 %v11627_v44, %v2675_v33  ;;  %v2740_v6 = vmul.f32 1.442695, %v2721_v61 }
 0x529   : > { %9307 = vpow2.f32 %v2738_v58 }
 0x52a   : > { %v2736_v8 = vmul.f32 1.442695, %v2719_v62 }
 0x52b   : > { %v2684_v9 = vpop.xlane.xlu0 %2683 }
 0x52c   : > { %9309 = vpow2.f32 %v2736_v8  ;;  %v2722_v10 = vsub.f32 %v11633_v53, %v2684_v9 }
 0x52d   : > { %9311 = vpow2.f32 %v2740_v6 }
 0x52e   : > { %v2742_v35 = vmul.f32 1.442695, %v2722_v10 }
 0x52f   : > { %v2690_v16 = vpop.xlane.xlu0 %2689  ;;  %v2687_v38 = vpop.xlane.xlu1 %2686 }
 0x530   : > { %9313 = vpow2.f32 %v2742_v35  ;;  %v2724_v18 = vsub.f32 %v11639_v57, %v2690_v16  ;;  %v2723_v41 = vsub.f32 %v11643_v59, %v2687_v38 }
 0x532   : > { %v2746_v19 = vmul.f32 1.442695, %v2724_v18  ;;  %v2744_v20 = vmul.f32 1.442695, %v2723_v41 }
 0x533   : > { %v2693_v25 = vpop.xlane.xlu1 %2692  ;;  %v2696_v44 = vpop.xlane.xlu0 %2695 }
 0x534   : > { %9315 = vpow2.f32 %v2746_v19  ;;  %v2725_v30 = vsub.f32 %v11651_v4, %v2693_v25  ;;  %v2726_v31 = vsub.f32 %v11655_v7, %v2696_v44 }
 0x535   : > { %v11712_v32 = vpop.eup %9305  ;;  %9317 = vpow2.f32 %v2744_v20 }
 0x536   : > { %v2748_v53 = vmul.f32 1.442695, %v2725_v30  ;;  %v2750_v36 = vmul.f32 1.442695, %v2726_v31  ;;  %v2766_v39 = vsel %vm2669_vm5, %v11712_v32, 0.0  ;;  %v11716_v57 = vpop.eup %9307 }
 0x537   : > { %v2702_v59 = vpop.xlane.xlu0 %2701  ;;  %v2699_v40 = vpop.xlane.xlu1 %2698  ;;  %2767 = vadd.xlane.f32.xlu0 %v2766_v39  ;;  %v2772_v52 = vsel %vm2669_vm5, %v11716_v57, 0.0 }
 0x538   : > { %9319 = vpow2.f32 %v2748_v53  ;;  %v2728_v43 = vsub.f32 %v11663_v14, %v2702_v59  ;;  %v2727_v4 = vsub.f32 %v11667_v17, %v2699_v40 }
 0x539   : > { %v11720_v47 = vpop.eup %9309  ;;  %9321 = vpow2.f32 %v2750_v36 }
 0x53a   : > { %v2754_v7 = vmul.f32 1.442695, %v2728_v43  ;;  %v2752_v51 = vmul.f32 1.442695, %v2727_v4  ;;  %v2769_v55 = vsel %vm2669_vm5, %v11720_v47, 0.0  ;;  %v11726_v56 = vpop.eup %9311 }
 0x53b   : > { %v2705_v58 = vpop.xlane.xlu1 %2704  ;;  %2773 = vadd.xlane.f32.xlu0 %v2772_v52  ;;  %v2708_v60 = vpop.xlane.xlu0 %2707  ;;  %2770 = vadd.xlane.f32.xlu1 %v2769_v55  ;;  %v2775_v8 = vsel %vm2669_vm5, %v11726_v56, 0.0 }
 0x53c   : > { %9323 = vpow2.f32 %v2754_v7  ;;  %v2729_v14 = vsub.f32 %v11675_v23, %v2705_v58  ;;  %v2730_v17 = vsub.f32 %v11679_v28, %v2708_v60 }
 0x53d   : > { %v11730_v61 = vpop.eup %9313  ;;  %9325 = vpow2.f32 %v2752_v51 }
 0x53e   : > { %v2756_v33 = vmul.f32 1.442695, %v2729_v14  ;;  %v2758_v62 = vmul.f32 1.442695, %v2730_v17  ;;  %v2778_v6 = vsel %vm2669_vm5, %v11730_v61, 0.0 }
 0x53f   : > { %2779 = vadd.xlane.f32.xlu0 %v2778_v6  ;;  %v2714_v9 = vpop.xlane.xlu0 %2713  ;;  %2776 = vadd.xlane.f32.xlu1 %v2775_v8  ;;  %v2711_v10 = vpop.xlane.xlu1 %2710 }
 0x540   : > { %9327 = vpow2.f32 %v2756_v33  ;;  %v2732_v23 = vsub.f32 %v11687_v34, %v2714_v9  ;;  %v2731_v28 = vsub.f32 %v11691_v37, %v2711_v10 }
 0x541   : > { %v11738_v35 = vpop.eup %9315  ;;  %9329 = vpow2.f32 %v2758_v62 }
 0x542   : > { %v11740_v16 = vpop.eup %9317  ;;  %v2762_v38 = vmul.f32 1.442695, %v2732_v23  ;;  %v2760_v18 = vmul.f32 1.442695, %v2731_v28  ;;  %v2784_v41 = vsel %vm2669_vm5, %v11738_v35, 0.0 }
 0x543   : > { %2785 = vadd.xlane.f32.xlu0 %v2784_v41  ;;  %v2781_v19 = vsel %vm2669_vm5, %v11740_v16, 0.0  ;;  %v2717_v20 = vpop.xlane.xlu1 %2716 }
 0x544   : > { %9331 = vpow2.f32 %v2762_v38  ;;  %2782 = vadd.xlane.f32.xlu1 %v2781_v19  ;;  %v2733_v34 = vsub.f32 %v11699_v42, %v2717_v20 }
 0x545   : > { %v11747_v37 = vpop.eup %9319  ;;  %9333 = vpow2.f32 %v2760_v18 }
 0x546   : > { %v11749_v25 = vpop.eup %9321  ;;  %v2764_v44 = vmul.f32 1.442695, %v2733_v34  ;;  %v2787_v30 = vsel %vm2669_vm5, %v11747_v37, 0.0 }
 0x547   : > { %v2790_v31 = vsel %vm2669_vm5, %v11749_v25, 0.0 }
 0x548   : > { %9335 = vpow2.f32 %v2764_v44  ;;  %2791 = vadd.xlane.f32.xlu0 %v2790_v31  ;;  %2788 = vadd.xlane.f32.xlu1 %v2787_v30 }
 0x549   : > { %v11755_v53 = vpop.eup %9323 }
 0x54a   : > { %v11757_v36 = vpop.eup %9325  ;;  %v2796_v42 = vsel %vm2669_vm5, %v11755_v53, 0.0 }
 0x54b   : > { %v2793_v39 = vsel %vm2669_vm5, %v11757_v36, 0.0 }
 0x54c   : > { %2797 = vadd.xlane.f32.xlu0 %v2796_v42  ;;  %2794 = vadd.xlane.f32.xlu1 %v2793_v39 }
 0x54d   : > { %v11763_v59 = vpop.eup %9327 }
 0x54e   : > { %v11765_v40 = vpop.eup %9329  ;;  %v2799_v43 = vsel %vm2669_vm5, %v11763_v59, 0.0 }
 0x54f   : > { %v2802_v4 = vsel %vm2669_vm5, %v11765_v40, 0.0 }
 0x550   : > { %2803 = vadd.xlane.f32.xlu0 %v2802_v4  ;;  %2800 = vadd.xlane.f32.xlu1 %v2799_v43 }
 0x551   : > { %v11771_v7 = vpop.eup %9331 }
 0x552   : > { %v11773_v51 = vpop.eup %9333  ;;  %v2808_v52 = vsel %vm2669_vm5, %v11771_v7, 0.0 }
 0x553   : > { %v2805_v55 = vsel %vm2669_vm5, %v11773_v51, 0.0 }
 0x554   : > { %2809 = vadd.xlane.f32.xlu0 %v2808_v52  ;;  %2806 = vadd.xlane.f32.xlu1 %v2805_v55 }
 0x555   : > { %v11779_v58 = vpop.eup %9335 }
 0x556   : > { %v2811_v60 = vsel %vm2669_vm5, %v11779_v58, 0.0 }
 0x558   : > { %2812 = vadd.xlane.f32.xlu1 %v2811_v60 }
 0x5c0   : > { %v2768_v14 = vpop.xlane.xlu0 %2767 }
 0x5c1   : > { %9337 = vrcp.f32 %v2768_v14 }
 0x5c4   : > { %v2774_v17 = vpop.xlane.xlu0 %2773  ;;  %v2771_v33 = vpop.xlane.xlu1 %2770 }
 0x5c5   : > { %9339 = vrcp.f32 %v2771_v33 }
 0x5c6   : > { %9341 = vrcp.f32 %v2774_v17 }
 0x5c8   : > { %v2780_v62 = vpop.xlane.xlu0 %2779  ;;  %v2777_v6 = vpop.xlane.xlu1 %2776 }
 0x5c9   : > { %9343 = vrcp.f32 %v2777_v6 }
 0x5ca   : > { %9345 = vrcp.f32 %v2780_v62 }
 0x5cc   : > { %v2786_v8 = vpop.xlane.xlu0 %2785 }
 0x5cd   : > { %v2783_v9 = vpop.xlane.xlu1 %2782 }
 0x5ce   : > { %9347 = vrcp.f32 %v2783_v9  ;;  %v9338_v10 = vpop.eup %9337 }
 0x5cf   : > { %9349 = vrcp.f32 %v2786_v8  ;;  %v2830_v18 = vmul.f32 %v9338_v10, %v11712_v32 }
 0x5d1   : > { %v2792_v23 = vpop.xlane.xlu0 %2791  ;;  %v2789_v28 = vpop.xlane.xlu1 %2788 }
 0x5d2   : > { %v9340_v38 = vpop.eup %9339  ;;  %9351 = vrcp.f32 %v2789_v28 }
 0x5d3   : > { %v2831_v41 = vmul.f32 %v9340_v38, %v11720_v47  ;;  %v9342_v19 = vpop.eup %9341  ;;  %9353 = vrcp.f32 %v2792_v23 }
 0x5d4   : > { %v2832_v31 = vmul.f32 %v9342_v19, %v11716_v57 }
 0x5d5   : > { %v2798_v20 = vpop.xlane.xlu0 %2797  ;;  %v2795_v34 = vpop.xlane.xlu1 %2794  ;;  %v2846_v44 = vpack.c.bf16 %v2831_v41, %v2830_v18 }
 0x5d6   : > { %v9344_v30 = vpop.eup %9343  ;;  %9355 = vrcp.f32 %v2795_v34 }
 0x5d7   : > { %8376 = vmatprep.mubr.msk.bf16.mxu0 %vm2669_vm5, %v2846_v44  ;;  %v2833_v42 = vmul.f32 %v9344_v30, %v11726_v56  ;;  %v9346_v39 = vpop.eup %9345  ;;  %9357 = vrcp.f32 %v2798_v20 }
 0x5d8   : > { %v2834_v47 = vmul.f32 %v9346_v39, %v11730_v61  ;;  %v8919_v39 = vld [vmem:[#allocation16 + $0x8] sm:$0xff]  }
 0x5d9   : > { %v2804_v43 = vpop.xlane.xlu0 %2803  ;;  %v2801_v4 = vpop.xlane.xlu1 %2800  ;;  %v2847_v32 = vpack.c.bf16 %v2833_v42, %v2832_v31  ;;  %v8918_v42 = vld [vmem:[#allocation16 + $0x10] sm:$0xff]  }
 0x5da   : > { %9359 = vrcp.f32 %v2801_v4 }
 0x5db   : > { %v9348_v52 = vpop.eup %9347  ;;  %8377 = vmatmul.mubr.msk.bf16.vlgmr.msra.gmra.mxu0 %vm2669_vm5, %v2847_v32  ;;  %9361 = vrcp.f32 %v2804_v43  ;;  %v8920_v43 = vld [vmem:[#allocation16] sm:$0xff]  }
 0x5dc   : > { %v2835_v55 = vmul.f32 %v9348_v52, %v11740_v16  ;;  %v9350_v17 = vpop.eup %9349 }
 0x5dd   : > { %v2810_v60 = vpop.xlane.xlu0 %2809  ;;  %v2807_v14 = vpop.xlane.xlu1 %2806  ;;  %v2836_v62 = vmul.f32 %v9350_v17, %v11738_v35 }
 0x5de   : > { %v2848_v57 = vpack.c.bf16 %v2835_v55, %v2834_v47  ;;  %9363 = vrcp.f32 %v2807_v14 }
 0x5df   : > { %v9352_v56 = vpop.eup %9351  ;;  %9365 = vrcp.f32 %v2810_v60 }
 0x5e0   : > { %8380 = vmatprep.mubr.msk.bf16.mxu0 %vm2669_vm5, %v2848_v57  ;;  %v2837_v6 = vmul.f32 %v9352_v56, %v11747_v37  ;;  %v9354_v8 = vpop.eup %9353 }
 0x5e1   : > { %v2813_v33 = vpop.xlane.xlu1 %2812  ;;  %v2838_v16 = vmul.f32 %v9354_v8, %v11749_v25 }
 0x5e2   : > { %9367 = vrcp.f32 %v2813_v33  ;;  %v2849_v61 = vpack.c.bf16 %v2837_v6, %v2836_v62 }
 0x5e3   : > { %v9356_v9 = vpop.eup %9355 }
 0x5e4   : > { %8381 = vmatmul.mubr.msk.bf16.gmra.mxu0 %vm2669_vm5, %v2849_v61  ;;  %v2839_v10 = vmul.f32 %v9356_v9, %v11757_v36  ;;  %v9358_v23 = vpop.eup %9357 }
 0x5e5   : > { %v2840_v18 = vmul.f32 %v9358_v23, %v11755_v53 }
 0x5e6   : > { %v2850_v28 = vpack.c.bf16 %v2839_v10, %v2838_v16 }
 0x5e7   : > { %v9360_v38 = vpop.eup %9359 }
 0x5e8   : > { %8384 = vmatprep.mubr.msk.bf16.mxu0 %vm2669_vm5, %v2850_v28  ;;  %v2841_v35 = vmul.f32 %v9360_v38, %v11763_v59  ;;  %v9362_v37 = vpop.eup %9361  ;;  %v8913_v59 = vld [vmem:[#allocation16 + $0x38] sm:$0xff]  }
 0x5e9   : > { %v2842_v34 = vmul.f32 %v9362_v37, %v11765_v40  ;;  %8393 = vmatpush3.bf16.msra.mxu1 %v8913_v59  ;;  %v8914_v40 = vld [vmem:[#allocation16 + $0x30] sm:$0xff]  }
 0x5ea   : > { %v2851_v41 = vpack.c.bf16 %v2841_v35, %v2840_v18  ;;  %8394 = vmatprep.subr.bf16.mxu1 %v10760_v2 }
 0x5eb   : > { %v9364_v19 = vpop.eup %9363 }
 0x5ec   : > { %v9366_v20 = vpop.eup %9365  ;;  %8385 = vmatmul.mubr.msk.bf16.gmra.mxu0 %vm2669_vm5, %v2851_v41  ;;  %v2843_v25 = vmul.f32 %v9364_v19, %v11773_v51  ;;  %v8915_v51 = vld [vmem:[#allocation16 + $0x28] sm:$0xff]  }
 0x5ed   : > { %v2844_v30 = vmul.f32 %v9366_v20, %v11771_v7  ;;  %8395 = vmatpush3.bf16.msra.mxu1 %v8914_v40  ;;  %v8916_v7 = vld [vmem:[#allocation16 + $0x20] sm:$0xff]  }
 0x5ee   : > { %v2852_v44 = vpack.c.bf16 %v2843_v25, %v2842_v34  ;;  %8396 = vmatprep.subr.bf16.mxu1 %v10760_v2 }
 0x5ef   : > { %v9368_v36 = vpop.eup %9367 }
 0x5f0   : > { %v2845_v31 = vmul.f32 %v9368_v36, %v11779_v58  ;;  %8388 = vmatprep.mubr.msk.bf16.mxu0 %vm2669_vm5, %v2852_v44  ;;  %v8917_v58 = vld [vmem:[#allocation16 + $0x18] sm:$0xff]  }
 0x5f1   : > { %8397 = vmatpush3.bf16.msra.mxu1 %v8915_v51 }
 0x5f2   : > { %v2853_v53 = vpack.c.bf16 %v2845_v31, %v2844_v30  ;;  %8398 = vmatprep.subr.bf16.mxu1 %v10760_v2 }
 0x5f4   : > { %8389 = vmatmul.mubr.msk.bf16.gmra.mxu0 %vm2669_vm5, %v2853_v53 }
 0x5f5   : > { %3357 = vmatprep.mubr.bf16.mxu0 %v10761_v3  ;;  %8399 = vmatpush3.bf16.msra.mxu1 %v8916_v7  ;;  %v9479_v7 = vld [vmem:[%s11399_s3] sm:$0xff] }
 0x5f6   : > { %8400 = vmatprep.subr.bf16.mxu1 %v10760_v2 }
 0x5f9   : > { %8401 = vmatpush3.bf16.msra.mxu1 %v8917_v58 }
 0x5fa   : > { %8402 = vmatprep.subr.bf16.mxu1 %v10760_v2 }
 0x5fd   : > { %8403 = vmatpush3.bf16.msra.mxu1 %v8918_v42 }
 0x5fe   : > { %8404 = vmatprep.subr.bf16.mxu1 %v10760_v2 }
 0x601   : > { %8405 = vmatpush3.bf16.msra.mxu1 %v8919_v39  ;;  %v9480_v39 = vld [vmem:[%s11399_s3 + $0x8] sm:$0xff] }
 0x602   : > { %8406 = vmatprep.subr.bf16.mxu1 %v10760_v2 }
 0x605   : > { %8407 = vmatpush3.bf16.msra.mxu1 %v8920_v43 }
 0x69b   : > { %v8378_v4 = vpop.f32.mrf.mxu0 }
 0x69c   : > { %v2982_v56 = vmul.f32 %v8378_v4, %v11533_v46  ;;  %v8921_v4 = vld [vmem:[%s12377_s10 + $0xe0] ss:$16 sps:$4 sm:$0xff]  }
 0x69d   : > { %v2917_v32 = vpop.f32.mrf.mxu0 }
 0x69e   : > { %v2980_v17 = vmul.f32 %v2917_v32, %v11530_v45  ;;  %v8923_v32 = vld [vmem:[%s12377_s10 + $0xe4] ss:$16 sps:$4 sm:$0xff]  }
 0x69f   : > { %v8379_v52 = vpop.f32.mrf.mxu0  ;;  %3325 = vmatprep.subr.bf16.mxu0 %v8923_v32  ;;  %v8971_v32 = vld [vmem:[#allocation22 + $0x38] sm:$0xff]  }
 0x6a0   : > { %v2996_v8 = vadd.f32 %v2982_v56, %v2980_v17  ;;  %v2983_v61 = vmul.f32 %v8379_v52, %v11539_v49  ;;  %v8924_v52 = vld [vmem:[%s12377_s10 + $0xe8] ss:$16 sps:$4 sm:$0xff]   ;;  %3326 = vmatpush1.bf16.msra.mxu0 %v8921_v4 }
 0x6a1   : > { %v2920_v47 = vpop.f32.mrf.mxu0 }
 0x6a2   : > { %v2981_v33 = vmul.f32 %v2920_v47, %v11536_v48  ;;  %v8926_v47 = vld [vmem:[%s12377_s10 + $0xec] ss:$16 sps:$4 sm:$0xff]  }
 0x6a3   : > { %3368 = vmatprep.subr.bf16.mxu1 %v8926_v47 }
 0x6a4   : > { %v8382_v55 = vpop.f32.mrf.mxu0  ;;  %v2997_v10 = vadd.f32 %v2983_v61, %v2981_v33  ;;  %v8927_v61 = vld [vmem:[%s12377_s10 + $0xc0] ss:$16 sps:$4 sm:$0xff]  }
 0x6a5   : > { %v2986_v38 = vmul.f32 %v8382_v55, %v11560_v1 }
 0x6a6   : > { %v2933_v60 = vpop.f32.mrf.mxu0 }
 0x6a7   : > { %v2984_v62 = vmul.f32 %v2933_v60, %v11546_v54 }
 0x6a8   : > { %v8383_v14 = vpop.f32.mrf.mxu0 }
 0x6a9   : > { %v2998_v23 = vadd.f32 %v2996_v8, %v2984_v62  ;;  %v2987_v48 = vmul.f32 %v8383_v14, %v11554_v63  ;;  %v8932_v8 = vld [vmem:[%s12377_s10 + $0xcc] ss:$16 sps:$4 sm:$0xff]  }
 0x6aa   : > { %v2936_v57 = vpop.f32.mrf.mxu0 }
 0x6ab   : > { %v2985_v9 = vmul.f32 %v2936_v57, %v11542_v50  ;;  %v3000_v35 = vadd.f32 %v2998_v23, %v2986_v38  ;;  %v8933_v23 = vld [vmem:[%s12377_s10 + $0xa0] ss:$16 sps:$4 sm:$0xff]   ;;  %v8941_v38 = vld [vmem:[%s12377_s10 + $0x84] ss:$16 sps:$4 sm:$0xff]  }
 0x6ac   : > { %v8386_v6 = vpop.f32.mrf.mxu0 }
 0x6ad   : > { %v2999_v45 = vadd.f32 %v2997_v10, %v2985_v9  ;;  %v2990_v50 = vmul.f32 %v8386_v6, %v11576_v13  ;;  %v8929_v6 = vld [vmem:[%s12377_s10 + $0xc4] ss:$16 sps:$4 sm:$0xff]   ;;  %v8930_v9 = vld [vmem:[%s12377_s10 + $0xc8] ss:$16 sps:$4 sm:$0xff]   ;;  %v8938_v10 = vld [vmem:[%s12377_s10 + $0xac] ss:$16 sps:$4 sm:$0xff]  }
 0x6ae   : > { %v2949_v16 = vpop.f32.mrf.mxu0  ;;  %3327 = vmatprep.subr.bf16.mxu0 %v8929_v6  ;;  %v8981_v6 = vld [vmem:[#allocation22 + $0x60] sm:$0xff]  }
 0x6af   : > { %v2988_v18 = vmul.f32 %v2949_v16, %v11564_v5  ;;  %v3001_v49 = vadd.f32 %v2999_v45, %v2987_v48  ;;  %3328 = vmatpush1.bf16.msra.mxu0 %v8927_v61  ;;  %v8935_v16 = vld [vmem:[%s12377_s10 + $0xa4] ss:$16 sps:$4 sm:$0xff]   ;;  %v8944_v45 = vld [vmem:[%s12377_s10 + $0x8c] ss:$16 sps:$4 sm:$0xff]  }
 0x6b0   : > { %v8387_v28 = vpop.f32.mrf.mxu0  ;;  %3329 = vmatprep.subr.bf16.mxu0 %v8935_v16  ;;  %v8947_v48 = vld [vmem:[%s12377_s10 + $0x64] ss:$16 sps:$4 sm:$0xff]  }
 0x6b1   : > { %v3002_v41 = vadd.f32 %v3000_v35, %v2988_v18  ;;  %v2991_v1 = vmul.f32 %v8387_v28, %v11570_v11  ;;  %v7754_v11 = vld [vmem:[#allocation18] ss:$0 sm:$0xff]  ;;  %v8936_v28 = vld [vmem:[%s12377_s10 + $0xa8] ss:$16 sps:$4 sm:$0xff]   ;;  %v8939_v18 = vld [vmem:[%s12377_s10 + $0x80] ss:$16 sps:$4 sm:$0xff]  }
 0x6b2   : > { %v2952_v46 = vpop.f32.mrf.mxu0  ;;  %v8950_v35 = vld [vmem:[%s12377_s10 + $0x6c] ss:$16 sps:$4 sm:$0xff]  }
 0x6b3   : > { %v2989_v54 = vmul.f32 %v2952_v46, %v11557_v0  ;;  %v3004_v36 = vadd.f32 %v3002_v41, %v2990_v50  ;;  %3330 = vmatpush1.bf16.msra.mxu0 %v8933_v23  ;;  %v8942_v46 = vld [vmem:[%s12377_s10 + $0x88] ss:$16 sps:$4 sm:$0xff]   ;;  %v8953_v41 = vld [vmem:[%s12377_s10 + $0x44] ss:$16 sps:$4 sm:$0xff]  }
 0x6b4   : > { %v8390_v37 = vpop.f32.mrf.mxu0  ;;  %3331 = vmatprep.subr.bf16.mxu0 %v8941_v38  ;;  %v8954_v50 = vld [vmem:[%s12377_s10 + $0x48] ss:$16 sps:$4 sm:$0xff]   ;;  %v8983_v61 = vld [vmem:[#allocation22 + $0x20] sm:$0xff]   ;;  %v8989_v38 = vld [vmem:[#allocation22 + $0x50] sm:$0xff]  }
 0x6b5   : > { %v3003_v20 = vadd.f32 %v3001_v49, %v2989_v54  ;;  %v2994_v0 = vmul.f32 %v8390_v37, %v11589_v22  ;;  %v8945_v54 = vld [vmem:[%s12377_s10 + $0x60] ss:$16 sps:$4 sm:$0xff]   ;;  %v8948_v37 = vld [vmem:[%s12377_s10 + $0x68] ss:$16 sps:$4 sm:$0xff]   ;;  %v8956_v49 = vld [vmem:[%s12377_s10 + $0x4c] ss:$16 sps:$4 sm:$0xff]  }
 0x6b6   : > { %v2965_v19 = vpop.f32.mrf.mxu0  ;;  %v8985_v16 = vld [vmem:[#allocation22 + $0x58] sm:$0xff]  }
 0x6b7   : > { %v2992_v34 = vmul.f32 %v2965_v19, %v11580_v15  ;;  %v3005_v30 = vadd.f32 %v3003_v20, %v2991_v1  ;;  %3332 = vmatpush1.bf16.msra.mxu0 %v8939_v18  ;;  %v8951_v19 = vld [vmem:[%s12377_s10 + $0x40] ss:$16 sps:$4 sm:$0xff]   ;;  %v8959_v20 = vld [vmem:[%s12377_s10 + $0x24] ss:$16 sps:$4 sm:$0xff]   ;;  %v8960_v1 = vld [vmem:[%s12377_s10 + $0x28] ss:$16 sps:$4 sm:$0xff]  }
 0x6b8   : > { %v8391_v25 = vpop.f32.mrf.mxu0  ;;  %3333 = vmatprep.subr.bf16.mxu0 %v8947_v48  ;;  %v8987_v23 = vld [vmem:[#allocation22 + $0x18] sm:$0xff]   ;;  %v8991_v18 = vld [vmem:[#allocation22 + $0x10] sm:$0xff]   ;;  %v8993_v48 = vld [vmem:[#allocation22 + $0x48] sm:$0xff]  }
 0x6b9   : > { %v3006_v44 = vadd.f32 %v3004_v36, %v2992_v34  ;;  %v2995_v31 = vmul.f32 %v8391_v25, %v11586_v21  ;;  %v8962_v34 = vld [vmem:[%s12377_s10 + $0x2c] ss:$16 sps:$4 sm:$0xff]   ;;  %v8957_v25 = vld [vmem:[%s12377_s10 + $0x20] ss:$16 sps:$4 sm:$0xff]   ;;  %v8965_v36 = vld [vmem:[%s12377_s10 + $0x4] ss:$16 sps:$4 sm:$0xff]  }
 0x6ba   : > { %v2968_v5 = vpop.f32.mrf.mxu0 }
 0x6bb   : > { %v2993_v63 = vmul.f32 %v2968_v5, %v11573_v12  ;;  %v3008_v13 = vadd.f32 %v3006_v44, %v2994_v0  ;;  %3334 = vmatpush1.bf16.msra.mxu0 %v8945_v54  ;;  %v8963_v5 = vld [vmem:[%s12377_s10] ss:$16 sps:$4 sm:$0xff]   ;;  %v8966_v44 = vld [vmem:[%s12377_s10 + $0x8] ss:$16 sps:$4 sm:$0xff]  }
 0x6bc   : > { %3335 = vmatprep.subr.bf16.mxu0 %v8953_v41  ;;  %v8970_v0 = vld [vmem:[#allocation22 + $0xf8] sm:$0xff]   ;;  %v8995_v54 = vld [vmem:[#allocation22 + $0x8] sm:$0xff]   ;;  %v8997_v41 = vld [vmem:[#allocation22 + $0x40] sm:$0xff]  }
 0x6bd   : > { %v3007_v53 = vadd.f32 %v3005_v30, %v2993_v63  ;;  %v8968_v63 = vld [vmem:[%s12377_s10 + $0xc] ss:$16 sps:$4 sm:$0xff]  }
 0x6be   : > { %v8969_v30 = vld [vmem:[#allocation22 + $0x78] sm:$0xff]  }
 0x6bf   : > { %v3009_v59 = vadd.f32 %v3007_v53, %v2995_v31  ;;  %3336 = vmatpush1.bf16.msra.mxu0 %v8951_v19  ;;  %v8999_v19 = vld [vmem:[#allocation22] sm:$0xff]  }
 0x6c0   : > { %3337 = vmatprep.subr.bf16.mxu0 %v8959_v20  ;;  %v11885_v20 = vsub.s32 3, %v11518_v26 }
 0x6c1   : > { %v3010_v40 = vpack.c.bf16 %v3009_v59, %v3008_v13 }
 0x6c3   : > { %8409 = vmatmul.mubr.bf16.vlgmr.msra.gmra.mxu1 %v3010_v40  ;;  %3338 = vmatpush1.bf16.msra.mxu0 %v8957_v25  ;;  %v2264_v25 = vld [vmem:[#allocation21] sm:$0xf] }
 0x6c4   : > { %3400 = vmatprep.mubr.bf16.mxu1 %v10761_v3  ;;  %3369 = vmatpush1.bf16.msra.mxu1 %v8924_v52  ;;  %v8972_v52 = vld [vmem:[#allocation22 + $0xb8] sm:$0xff]  }
 0x6c5   : > { %3370 = vmatprep.subr.bf16.mxu1 %v8932_v8  ;;  %3339 = vmatprep.subr.bf16.mxu0 %v8965_v36  ;;  %v8982_v8 = vld [vmem:[#allocation22 + $0xe0] sm:$0xff]  }
 0x6c7   : > { %3340 = vmatpush1.bf16.msra.mxu0 %v8963_v5  ;;  %v3152_v5 = vrot.slane %v2264_v25, %v11524_v29 }
 0x6c8   : > { %3371 = vmatpush1.bf16.msra.mxu1 %v8930_v9  ;;  %8122 = vmatprep.subr.bf16.mxu0 %v8969_v30  ;;  %v8984_v9 = vld [vmem:[#allocation22 + $0xa0] sm:$0xff]  }
 0x6c9   : > { %3372 = vmatprep.subr.bf16.mxu1 %v8938_v10  ;;  %v8986_v10 = vld [vmem:[#allocation22 + $0xd8] sm:$0xff]  }
 0x6cc   : > { %3373 = vmatpush1.bf16.msra.mxu1 %v8936_v28  ;;  %v8988_v28 = vld [vmem:[#allocation22 + $0x98] sm:$0xff]  }
 0x6cd   : > { %3374 = vmatprep.subr.bf16.mxu1 %v8944_v45  ;;  %v8990_v45 = vld [vmem:[#allocation22 + $0xd0] sm:$0xff]  }
 0x6d0   : > { %3375 = vmatpush1.bf16.msra.mxu1 %v8942_v46  ;;  %v8992_v46 = vld [vmem:[#allocation22 + $0x90] sm:$0xff]  }
 0x6d1   : > { %3376 = vmatprep.subr.bf16.mxu1 %v8950_v35  ;;  %v8994_v35 = vld [vmem:[#allocation22 + $0xc8] sm:$0xff]  }
 0x6d4   : > { %3377 = vmatpush1.bf16.msra.mxu1 %v8948_v37  ;;  %v8996_v37 = vld [vmem:[#allocation22 + $0x88] sm:$0xff]  }
 0x6d5   : > { %3378 = vmatprep.subr.bf16.mxu1 %v8956_v49  ;;  %v8998_v49 = vld [vmem:[#allocation22 + $0xc0] sm:$0xff]  }
 0x6d8   : > { %3379 = vmatpush1.bf16.msra.mxu1 %v8954_v50  ;;  %v9000_v50 = vld [vmem:[#allocation22 + $0x80] sm:$0xff]  }
 0x6d9   : > { %3380 = vmatprep.subr.bf16.mxu1 %v8962_v34  ;;  %v11888_v34 = vsub.s32 2, %v11518_v26 }
 0x6db   : > { %v3156_v30 = vrot.slane %v2264_v25, %v11888_v34 }
 0x6dc   : > { %3381 = vmatpush1.bf16.msra.mxu1 %v8960_v1 }
 0x6dd   : > { %3382 = vmatprep.subr.bf16.mxu1 %v8968_v63  ;;  %v3148_v63 = vrot.slane %v2264_v25, %v11521_v27 }
 0x6e0   : > { %3383 = vmatpush1.bf16.msra.mxu1 %v8966_v44  ;;  %v3160_v44 = vrot.slane %v2264_v25, %v11885_v20 }
 0x6e1   : > { %8144 = vmatprep.subr.bf16.mxu1 %v8970_v0 }
 0x783   : > { %v3099_v15 = vpop.f32.mrf.mxu1 }
 0x784   : > { %v3100_v12 = vadd.f32 %v7754_v11, %v3099_v15  ;;  %v2231_v15 = vld [vmem:[#allocation19] sm:$0x3] }
 0x785   : > { %v8410_v51 = vpop.f32.mrf.mxu1 }
 0x786   : > { %v3106_v22 = vadd.f32 %v9479_v7, %v3100_v12  ;;  %v3134_v7 = vrot.slane %v2231_v15, %v11521_v27 }
 0x787   : > { %v3102_v58 = vpop.f32.mrf.mxu1 }
 0x788   : > { %v3103_v21 = vadd.f32 %v7754_v11, %v3102_v58  ;;  %3108 = vadd.xlane.f32.xlu0 %v3106_v22 }
 0x789   : > { %v8411_v42 = vpop.f32.mrf.mxu1 }
 0x78a   : > { %v3107_v43 = vadd.f32 %v9480_v39, %v3103_v21  ;;  %v3140_v42 = vrot.slane %v2231_v15, %v11524_v29 }
 0x78c   : > { %3110 = vadd.xlane.f32.xlu1 %v3107_v43 }
 0x811   : > { %v3109_v55 = vpop.xlane.xlu0 %3108 }
 0x812   : > { %v3113_v60 = vmul.f32 0.0078125, %v3109_v55  ;;  %v8973_v55 = vld [vmem:[#allocation22 + $0x70] sm:$0xff]  }
 0x814   : > { %v11838_v14 = vsub.f32 %v3106_v22, %v3113_v60  ;;  %v8974_v60 = vld [vmem:[#allocation22 + $0xf0] sm:$0xff]  }
 0x815   : > { %v3111_v17 = vpop.xlane.xlu1 %3110 }
 0x816   : > { %v3114_v57 = vmul.f32 0.0078125, %v3111_v17  ;;  %v3117_v56 = vmul.f32 %v11838_v14, %v11838_v14  ;;  %v8976_v17 = vld [vmem:[#allocation22 + $0xb0] sm:$0xff]  }
 0x818   : > { %v11842_v33 = vsub.f32 %v3107_v43, %v3114_v57  ;;  %3119 = vadd.xlane.f32.xlu0 %v3117_v56  ;;  %v8977_v57 = vld [vmem:[#allocation22 + $0x68] sm:$0xff]  }
 0x819   : > { %v8978_v56 = vld [vmem:[#allocation22 + $0xe8] sm:$0xff]  }
 0x81a   : > { %v3118_v62 = vmul.f32 %v11842_v33, %v11842_v33 }
 0x81c   : > { %3121 = vadd.xlane.f32.xlu1 %v3118_v62  ;;  %v8980_v62 = vld [vmem:[#allocation22 + $0xa8] sm:$0xff]  }
 0x8a1   : > { %v3120_v31 = vpop.xlane.xlu0 %3119 }
 0x8a2   : > { %v3123_v53 = vmul.f32 0.0078125, %v3120_v31 }
 0x8a4   : > { %v3125_v13 = vadd.f32 1e-05, %v3123_v53 }
 0x8a5   : > { %v3122_v59 = vpop.xlane.xlu1 %3121 }
 0x8a6   : > { %9369 = vrsqrt.f32 %v3125_v13  ;;  %v3124_v40 = vmul.f32 0.0078125, %v3122_v59 }
 0x8a8   : > { %v3126_v11 = vadd.f32 1e-05, %v3124_v40 }
 0x8aa   : > { %9371 = vrsqrt.f32 %v3126_v11 }
 0x8b3   : > { %v9370_v12 = vpop.eup %9369 }
 0x8b4   : > { %v3129_v51 = vmul.f32 %v9370_v12, %v11838_v14  ;;  %v8975_v14 = vld [vmem:[#allocation22 + $0x30] sm:$0xff]  }
 0x8b6   : > { %v3135_v21 = vmul.f32 %v3134_v7, %v3129_v51 }
 0x8b7   : > { %v9372_v22 = vpop.eup %9371 }
 0x8b8   : > { %v3130_v58 = vmul.f32 %v9372_v22, %v11842_v33  ;;  %v11878_v43 = vadd.f32 %v3140_v42, %v3135_v21  ;;  %v8979_v33 = vld [vmem:[#allocation22 + $0x28] sm:$0xff]  }
 0x8ba   : > { %v3136_v39 = vmul.f32 %v3134_v7, %v3130_v58 }
 0x8bc   : > { %v11880_v4 = vadd.f32 %v3140_v42, %v3136_v39 }
 0x8be   : > { %v3143_v47 = vpack.c.bf16 %v11880_v4, %v11878_v43 }
 0x8c0   : > { %3358 = vmatmul.mubr.bf16.vlgmr.msra.gmra.mxu0 %v3143_v47  ;;  %3401 = vmatmul.mubr.bf16.vlgmr.msra.gmra.mxu1 %v3143_v47 }
 0x8c1   : > { %8123 = vmatpush3.bf16.msra.mxu0 %v8971_v32  ;;  %8145 = vmatpush3.bf16.msra.mxu1 %v8972_v52 }
 0x8c2   : > { %8124 = vmatprep.subr.bf16.mxu0 %v8973_v55  ;;  %8146 = vmatprep.subr.bf16.mxu1 %v8974_v60 }
 0x8c5   : > { %8125 = vmatpush3.bf16.msra.mxu0 %v8975_v14  ;;  %8147 = vmatpush3.bf16.msra.mxu1 %v8976_v17 }
 0x8c6   : > { %8126 = vmatprep.subr.bf16.mxu0 %v8977_v57  ;;  %8148 = vmatprep.subr.bf16.mxu1 %v8978_v56 }
 0x8c9   : > { %8127 = vmatpush3.bf16.msra.mxu0 %v8979_v33  ;;  %8149 = vmatpush3.bf16.msra.mxu1 %v8980_v62 }
 0x8ca   : > { %8128 = vmatprep.subr.bf16.mxu0 %v8981_v6  ;;  %8150 = vmatprep.subr.bf16.mxu1 %v8982_v8  ;;  %v7795_v6 = vld [vmem:[#allocation24] ss:$0 sm:$0xff] }
 0x8cd   : > { %8129 = vmatpush3.bf16.msra.mxu0 %v8983_v61  ;;  %8151 = vmatpush3.bf16.msra.mxu1 %v8984_v9 }
 0x8ce   : > { %8130 = vmatprep.subr.bf16.mxu0 %v8985_v16  ;;  %8152 = vmatprep.subr.bf16.mxu1 %v8986_v10 }
 0x8d1   : > { %8131 = vmatpush3.bf16.msra.mxu0 %v8987_v23  ;;  %8153 = vmatpush3.bf16.msra.mxu1 %v8988_v28 }
 0x8d2   : > { %8132 = vmatprep.subr.bf16.mxu0 %v8989_v38  ;;  %8154 = vmatprep.subr.bf16.mxu1 %v8990_v45 }
 0x8d5   : > { %8133 = vmatpush3.bf16.msra.mxu0 %v8991_v18  ;;  %8155 = vmatpush3.bf16.msra.mxu1 %v8992_v46 }
 0x8d6   : > { %8134 = vmatprep.subr.bf16.mxu0 %v8993_v48  ;;  %8156 = vmatprep.subr.bf16.mxu1 %v8994_v35 }
 0x8d9   : > { %8135 = vmatpush3.bf16.msra.mxu0 %v8995_v54  ;;  %8157 = vmatpush3.bf16.msra.mxu1 %v8996_v37 }
 0x8da   : > { %8136 = vmatprep.subr.bf16.mxu0 %v8997_v41  ;;  %8158 = vmatprep.subr.bf16.mxu1 %v8998_v49 }
 0x8dd   : > { %8137 = vmatpush3.bf16.msra.mxu0 %v8999_v19  ;;  %8159 = vmatpush3.bf16.msra.mxu1 %v9000_v50 }
 0x980   : > { %v3359_v1 = vpop.f32.mrf.mxu0  ;;  %v3402_v36 = vpop.f32.mrf.mxu1 }
 0x981   : > { %v3360_v15 = vadd.f32 %v3359_v1, %v3148_v63  ;;  %v3403_v12 = vadd.f32 %v3402_v36, %v3156_v30 }
 0x982   : > { %v3361_v0 = vpop.f32.mrf.mxu0  ;;  %v3404_v31 = vpop.f32.mrf.mxu1 }
 0x983   : > { %v3362_v59 = vadd.f32 %v3361_v0, %v3152_v5  ;;  %v3405_v40 = vadd.f32 %v3404_v31, %v3160_v44  ;;  %v3411_v55 = vmax.f32 %v3360_v15, 0.0  ;;  %v3413_v60 = vmax.f32 %v3403_v12, 0.0  ;;  %v9009_v0 = vld [vmem:[#allocation30 + $0x54] ss:$8 sps:$4 sm:$0xff]   ;;  %v9007_v31 = vld [vmem:[#allocation30 + $0x50] ss:$8 sps:$4 sm:$0xff]  }
 0x984   : > { %v3363_v53 = vpop.f32.mrf.mxu0  ;;  %v3406_v13 = vpop.f32.mrf.mxu1  ;;  %v9018_v15 = vld [vmem:[#allocation30 + $0x24] ss:$8 sps:$4 sm:$0xff]   ;;  %v9016_v12 = vld [vmem:[#allocation30 + $0x20] ss:$8 sps:$4 sm:$0xff]  }
 0x985   : > { %v3364_v11 = vadd.f32 %v3363_v53, %v3148_v63  ;;  %v3407_v26 = vadd.f32 %v3406_v13, %v3156_v30  ;;  %v3412_v39 = vmax.f32 %v3362_v59, 0.0  ;;  %v3414_v32 = vmax.f32 %v3405_v40, 0.0  ;;  %v9003_v63 = vld [vmem:[#allocation30 + $0x74] ss:$8 sps:$4 sm:$0xff]   ;;  %v9001_v30 = vld [vmem:[#allocation30 + $0x70] ss:$8 sps:$4 sm:$0xff]  }
 0x986   : > { %v3365_v51 = vpop.f32.mrf.mxu0  ;;  %v3408_v7 = vpop.f32.mrf.mxu1  ;;  %3979 = vmatprep.subr.bf16.mxu0 %v9003_v63  ;;  %v2163_v53 = vld [vmem:[%s2155_s4 + $0x8] sm:$0xff]  ;;  %v9012_v13 = vld [vmem:[#allocation30 + $0x44] ss:$8 sps:$4 sm:$0xff]   ;;  %v2162_v59 = vld [vmem:[%s2155_s4] sm:$0xff]  ;;  %s10764_s4 = smov [#allocation69]  }
 0x987   : > { %v3366_v22 = vadd.f32 %v3365_v51, %v3152_v5  ;;  %v3409_v58 = vadd.f32 %v3408_v7, %v3160_v44  ;;  %v3415_v21 = vmax.f32 %v3364_v11, 0.0  ;;  %v3417_v42 = vmax.f32 %v3407_v26, 0.0  ;;  %v9010_v40 = vld [vmem:[#allocation30 + $0x40] ss:$8 sps:$4 sm:$0xff]   ;;  %v9015_v11 = vld [vmem:[#allocation30 + $0x34] ss:$8 sps:$4 sm:$0xff]  }
 0x988   : > { %v9013_v26 = vld [vmem:[#allocation30 + $0x30] ss:$8 sps:$4 sm:$0xff]   ;;  %v9021_v51 = vld [vmem:[#allocation30 + $0x14] ss:$8 sps:$4 sm:$0xff]   ;;  %s10509_s0 = sshll.u32 %s10764_s4, 4  ;;  %s10510_s0 = int_to_ptr.vmem [resolvable:$false] %s10509_s0 }
 0x989   : > { %v3416_v52 = vmax.f32 %v3366_v22, 0.0  ;;  %v3418_v47 = vmax.f32 %v3409_v58, 0.0  ;;  %v3419_v57 = vpack.c.bf16 %v3415_v21, %v3411_v55  ;;  %v3421_v56 = vpack.c.bf16 %v3417_v42, %v3413_v60  ;;  %v9019_v7 = vld [vmem:[#allocation30 + $0x10] ss:$8 sps:$4 sm:$0xff]   ;;  %v9024_v22 = vld [vmem:[#allocation30 + $0x4] ss:$8 sps:$4 sm:$0xff]   ;;  %p10512_p11 = scmp.lt.s32.totalorder %s7081_s7, %s10510_s0 }
 0x98a   : > { %v9022_v58 = vld [vmem:[#allocation30] ss:$8 sps:$4 sm:$0xff]   ;;  %v2330_v55 = vld [vmem:[#allocation25] sm:$0x3] }
 0x98b   : > { %v3420_v14 = vpack.c.bf16 %v3416_v52, %v3412_v39  ;;  %v3422_v17 = vpack.c.bf16 %v3418_v47, %v3414_v32  ;;  %v3730_v60 = vrot.slane %v2330_v55, %v11521_v27  ;;  %v11911_v63 = vld [vmem:[#allocation9 + $0x18] sm:$0xff] }
 0x98d   : > { %3653 = vmatprep.mubr.bf16.mxu0 %v3420_v14  ;;  %3694 = vmatprep.mubr.bf16.mxu1 %v3422_v17 }
 0x98e   : > { %3654 = vmatmul.mubr.bf16.vlgmr.msra.gmra.mxu0 %v3419_v57  ;;  %3695 = vmatmul.mubr.bf16.vlgmr.msra.gmra.mxu1 %v3421_v56  ;;  %v3736_v56 = vrot.slane %v2330_v55, %v11524_v29 }
 0x98f   : > { %4011 = vmatprep.mubr.bf16.mxu0 %v10761_v3  ;;  %3980 = vmatpush1.bf16.msra.mxu0 %v9001_v30 }
 0xa4e   : > { %v8138_v33 = vpop.f32.mrf.mxu0  ;;  %v8160_v62 = vpop.f32.mrf.mxu1 }
 0xa50   : > { %v8139_v8 = vpop.f32.mrf.mxu0  ;;  %v8161_v61 = vpop.f32.mrf.mxu1 }
 0xa51   : > { %v8140_v9 = vadd.f32 %v8139_v8, %v8138_v33  ;;  %v8162_v28 = vadd.f32 %v8161_v61, %v8160_v62 }
 0xa52   : > { %v8141_v16 = vpop.f32.mrf.mxu0  ;;  %v8163_v10 = vpop.f32.mrf.mxu1 }
 0xa53   : > { %v3656_v23 = vadd.f32 %v8140_v9, %v7795_v6 }
 0xa54   : > { %v8142_v38 = vpop.f32.mrf.mxu0  ;;  %v8164_v45 = vpop.f32.mrf.mxu1 }
 0xa55   : > { %v3697_v18 = vadd.f32 %v8162_v28, %v3656_v23  ;;  %v8143_v46 = vadd.f32 %v8142_v38, %v8141_v16  ;;  %v8165_v35 = vadd.f32 %v8164_v45, %v8163_v10  ;;  %v3751_v38 = vld [vmem:[#allocation27] sm:$0xf] }
 0xa56   : > { %v4022_v45 = vunpack.c.l.bf16 %v3751_v38 }
 0xa57   : > { %v3659_v48 = vadd.f32 %v8143_v46, %v7795_v6  ;;  %v3703_v54 = vadd.f32 %v3697_v18, %v11878_v43  ;;  %v9006_v43 = vld [vmem:[#allocation30 + $0x64] ss:$8 sps:$4 sm:$0xff]  }
 0xa58   : > { %3981 = vmatprep.subr.bf16.mxu0 %v9006_v43  ;;  %v11901_v18 = vld [vmem:[#allocation9] sm:$0xff]  ;;  %v11903_v46 = vld [vmem:[#allocation9 + $0x8] sm:$0xff] }
 0xa59   : > { %v3700_v37 = vadd.f32 %v8165_v35, %v3659_v48  ;;  %3705 = vadd.xlane.f32.xlu0 %v3703_v54  ;;  %v4023_v48 = vmul.f32 %v4022_v45, %v11901_v18  ;;  %v4024_v35 = vmul.f32 %v4022_v45, %v11903_v46 }
 0xa5b   : > { %v3704_v41 = vadd.f32 %v3700_v37, %v11880_v4  ;;  %v9004_v4 = vld [vmem:[#allocation30 + $0x60] ss:$8 sps:$4 sm:$0xff]  }
 0xa5c   : > { %3982 = vmatpush1.bf16.msra.mxu0 %v9004_v4  ;;  %v3769_v37 = vld [vmem:[#allocation31] sm:$0x3] }
 0xa5d   : > { %3707 = vadd.xlane.f32.xlu1 %v3704_v41  ;;  %3983 = vmatprep.subr.bf16.mxu0 %v9009_v0  ;;  %v11913_v0 = vld [vmem:[#allocation9 + $0x20] sm:$0xff] }
 0xa60   : > { %3984 = vmatpush1.bf16.msra.mxu0 %v9007_v31  ;;  %v11915_v31 = vld [vmem:[#allocation9 + $0x28] sm:$0xff] }
 0xa61   : > { %3985 = vmatprep.subr.bf16.mxu0 %v9012_v13 }
 0xa64   : > { %3986 = vmatpush1.bf16.msra.mxu0 %v9010_v40  ;;  %v4027_v40 = vmul.f32 %v4022_v45, %v11913_v0 }
 0xa65   : > { %3987 = vmatprep.subr.bf16.mxu0 %v9015_v11  ;;  %v4028_v11 = vmul.f32 %v4022_v45, %v11915_v31 }
 0xa68   : > { %3988 = vmatpush1.bf16.msra.mxu0 %v9013_v26 }
 0xa69   : > { %3989 = vmatprep.subr.bf16.mxu0 %v9018_v15  ;;  %v4033_v15 = vpack.c.bf16 %v4028_v11, %v4027_v40 }
 0xa6c   : > { %3990 = vmatpush1.bf16.msra.mxu0 %v9016_v12  ;;  %v11922_v12 = vld [vmem:[#allocation9 + $0x30] sm:$0xff] }
 0xa6d   : > { %3991 = vmatprep.subr.bf16.mxu0 %v9021_v51  ;;  %v11924_v51 = vld [vmem:[#allocation9 + $0x38] sm:$0xff] }
 0xa70   : > { %3992 = vmatpush1.bf16.msra.mxu0 %v9019_v7  ;;  %v4029_v7 = vmul.f32 %v4022_v45, %v11922_v12 }
 0xa71   : > { %3993 = vmatprep.subr.bf16.mxu0 %v9024_v22  ;;  %v4030_v22 = vmul.f32 %v4022_v45, %v11924_v51 }
 0xa74   : > { %3994 = vmatpush1.bf16.msra.mxu0 %v9022_v58  ;;  %v4034_v58 = vpack.c.bf16 %v4030_v22, %v4029_v7 }
 0xae2   : > { %v3706_v49 = vpop.xlane.xlu0 %3705 }
 0xae3   : > { %v3709_v19 = vmul.f32 0.0078125, %v3706_v49  ;;  %v3892_v49 = vrot.slane %v3769_v37, %v11521_v27 }
 0xae5   : > { %v3711_v50 = vsub.f32 %v3703_v54, %v3709_v19  ;;  %v4031_v54 = vpack.c.bf16 %v4024_v35, %v4023_v48 }
 0xae6   : > { %v3708_v25 = vpop.xlane.xlu1 %3707 }
 0xae7   : > { %v3710_v1 = vmul.f32 0.0078125, %v3708_v25  ;;  %v3713_v36 = vmul.f32 %v3711_v50, %v3711_v50  ;;  %8414 = vmatprep.mubr.bf16.mxu1 %v4031_v54 }
 0xae9   : > { %v3712_v5 = vsub.f32 %v3704_v41, %v3710_v1  ;;  %3715 = vadd.xlane.f32.xlu0 %v3713_v36 }
 0xaeb   : > { %v3714_v44 = vmul.f32 %v3712_v5, %v3712_v5 }
 0xaed   : > { %3717 = vadd.xlane.f32.xlu1 %v3714_v44  ;;  %v11909_v44 = vld [vmem:[#allocation9 + $0x10] sm:$0xff] }
 0xaee   : > { %v4025_v13 = vmul.f32 %v4022_v45, %v11909_v44 }
 0xafe   : > { %3746 = vperm.xlu1 %8892, %v2163_v53  }
 0xaff   : > { %3741 = vperm.xlu0 %8891, %v2162_v59   ;;  %v4026_v59 = vmul.f32 %v4022_v45, %v11911_v63 }
 0xb01   : > { %v4032_v26 = vpack.c.bf16 %v4026_v59, %v4025_v13 }
 0xb72   : > { %v3716_v21 = vpop.xlane.xlu0 %3715 }
 0xb73   : > { %v3719_v42 = vmul.f32 0.0078125, %v3716_v21  ;;  %v2161_v21 = vld [vmem:[%s2150_s16] sm:$0x1]  ;;  %s10511_s16 = scalar_lea.vmem %s10510_s0, 256 }
 0xb74   : > { %vm4101_vm6 = vcmp.gt.f32.partialorder %v2161_v21, 0.0  ;;  %p10513_p13 = scmp.lt.s32.totalorder %s10511_s16, %s10505_s5 }
 0xb75   : > { %v3721_v39 = vadd.f32 1e-05, %v3719_v42  ;;  %v4102_v42 = vsel %vm4101_vm6, 1, %v10761_v3 }
 0xb76   : > { %v3718_v32 = vpop.xlane.xlu1 %3717  ;;  %p10514_p5 = por %p10513_p13, %p10512_p11 }
 0xb77   : > { %9373 = vrsqrt.f32 %v3721_v39  ;;  %v3720_v52 = vmul.f32 0.0078125, %v3718_v32  ;;  %v4106_v39 = vrot.slane %v4102_v42, %v11521_v27 }
 0xb78   : > { %p10515_p0 = pnand %p10514_p5, %p10508_p8 }
 0xb79   : > { %v3722_v47 = vadd.f32 1e-05, %v3720_v52  ;;  %vm11934_vm7 = vcmp.eq.s32.totalorder %v4106_v39, 1 }
 0xb7a   : > { %v3742_v61 = vpop.permute.xlu0 %3741  ;;  %v3747_v9 = vpop.permute.xlu1 %3746 }
 0xb7b   : > { %9375 = vrsqrt.f32 %v3722_v47 }
 0xb84   : > { %v9374_v14 = vpop.eup %9373 }
 0xb85   : > { %v3725_v17 = vmul.f32 %v9374_v14, %v3711_v50  ;;  %v3896_v50 = vrot.slane %v3769_v37, %v11524_v29 }
 0xb87   : > { %v3731_v57 = vmul.f32 %v3730_v60, %v3725_v17 }
 0xb88   : > { %v9376_v33 = vpop.eup %9375 }
 0xb89   : > { %v3726_v62 = vmul.f32 %v9376_v33, %v3712_v5  ;;  %v3737_v6 = vadd.f32 %v3736_v56, %v3731_v57 }
 0xb8b   : > { %v3732_v8 = vmul.f32 %v3730_v60, %v3726_v62  ;;  %v3749_v10 = vmul.f32 %v3742_v61, %v3737_v6 }
 0xb8d   : > { %v3738_v16 = vadd.f32 %v3736_v56, %v3732_v8 }
 0xb8f   : > { %v3750_v23 = vmul.f32 %v3747_v9, %v3738_v16 }
 0xb91   : > { %v3887_v28 = vpack.c.bf16 %v3750_v23, %v3749_v10 }
 0xb93   : > { %4012 = vmatmul.mubr.bf16.vlgmr.msra.gmra.mxu0 %v3887_v28 }
 0xc53   : > { %v4013_v41 = vpop.f32.mrf.mxu0 }
 0xc54   : > { %v4014_v1 = vadd.f32 %v4013_v41, %v3892_v49 }
 0xc55   : > { %v4015_v19 = vpop.f32.mrf.mxu0 }
 0xc56   : > { %v4016_v30 = vadd.f32 %v4015_v19, %v3896_v50 }
 0xc57   : > { %v4017_v25 = vpop.f32.mrf.mxu0 }
 0xc58   : > { %v4018_v36 = vadd.f32 %v4017_v25, %v3892_v49 }
 0xc59   : > { %v4019_v5 = vpop.f32.mrf.mxu0 }
 0xc5a   : > { %v4035_v43 = vpack.c.bf16 %v4018_v36, %v4014_v1  ;;  %v4020_v4 = vadd.f32 %v4019_v5, %v3896_v50 }
 0xc5c   : > { %v4209_v53 = vpack.c.bf16 %v4020_v4, %v4016_v30  ;;  %8412 = vmatprep.subr.bf16.mxu1 %v4035_v43 }
 0xc5d   : > { %8413 = vmatpush3.bf16.xpose.msra.mxu1 %v4035_v43 }
 0xc5e   : > { %8422 = vmatprep.subr.bf16.mxu0 %v4209_v53  ;;  %8432 = vmatprep.subr.bf16.mxu1 %v10760_v2 }
 0xc5f   : > { %8423 = vmatpush3.bf16.msra.mxu0 %v4209_v53 }
 0xc64   : > { %8415 = vmatmul.mubr.bf16.vlgmr.msra.gmra.mxu1 %v4032_v26 }
 0xc65   : > { %8418 = vmatprep.mubr.bf16.mxu1 %v4033_v15 }
 0xc6c   : > { %8419 = vmatmul.mubr.bf16.gmra.mxu1 %v4034_v58 }
 0xc6d   : > { %8448 = vmatprep.mubr.msk.bf16.mxu1 %vm10762_vm0, %v10760_v2 }
 0xd24   : > { %v8416_v32 = vpop.f32.mrf.mxu1 }
 0xd25   : > { %v4110_v17 = vsel %vm11934_vm7, %v8416_v32, -1e+09 }
 0xd26   : > { %v4070_v47 = vpop.f32.mrf.mxu1  ;;  %v4123_v62 = vsel %vm4116_vm8, %v4110_v17, -inf }
 0xd27   : > { %v4108_v55 = vsel %vm11934_vm7, %v4070_v47, -1e+09 }
 0xd28   : > { %v8417_v60 = vpop.f32.mrf.mxu1  ;;  %v4117_v14 = vsel %vm4116_vm8, %v4108_v55, -inf }
 0xd29   : > { %4118 = vmax.xlane.f32.xlu1 %v4117_v14  ;;  %v4111_v8 = vsel %vm11934_vm7, %v8417_v60, -1e+09 }
 0xd2a   : > { %v4073_v57 = vpop.f32.mrf.mxu1  ;;  %v4126_v16 = vsel %vm4116_vm8, %v4111_v8, -inf }
 0xd2b   : > { %v4109_v56 = vsel %vm11934_vm7, %v4073_v57, -1e+09 }
 0xd2c   : > { %v8420_v33 = vpop.f32.mrf.mxu1  ;;  %v4120_v6 = vsel %vm4116_vm8, %v4109_v56, -inf }
 0xd2d   : > { %4124 = vmax.xlane.f32.xlu1 %v4123_v62  ;;  %4121 = vmax.xlane.f32.xlu0 %v4120_v6  ;;  %v4114_v9 = vsel %vm11934_vm7, %v8420_v33, -1e+09 }
 0xd2e   : > { %v4086_v61 = vpop.f32.mrf.mxu1  ;;  %v4135_v23 = vsel %vm4116_vm8, %v4114_v9, -inf }
 0xd2f   : > { %v4112_v28 = vsel %vm11934_vm7, %v4086_v61, -1e+09 }
 0xd30   : > { %v8421_v10 = vpop.f32.mrf.mxu1  ;;  %v4129_v45 = vsel %vm4116_vm8, %v4112_v28, -inf }
 0xd31   : > { %4127 = vmax.xlane.f32.xlu1 %v4126_v16  ;;  %v4115_v54 = vsel %vm11934_vm7, %v8421_v10, -1e+09 }
 0xd32   : > { %v4089_v38 = vpop.f32.mrf.mxu1  ;;  %v4138_v37 = vsel %vm4116_vm8, %v4115_v54, -inf }
 0xd33   : > { %v4113_v48 = vsel %vm11934_vm7, %v4089_v38, -1e+09 }
 0xd34   : > { %v4132_v35 = vsel %vm4116_vm8, %v4113_v48, -inf }
 0xd35   : > { %4136 = vmax.xlane.f32.xlu1 %v4135_v23 }
 0xd39   : > { %4130 = vmax.xlane.f32.xlu1 %v4129_v45 }
 0xd3d   : > { %4133 = vmax.xlane.f32.xlu1 %v4132_v35 }
 0xd41   : > { %4139 = vmax.xlane.f32.xlu1 %v4138_v37 }
 0xdb2   : > { %v4119_v41 = vpop.xlane.xlu1 %4118 }
 0xdb3   : > { %v4141_v49 = vsub.f32 %v4108_v55, %v4119_v41 }
 0xdb5   : > { %v4149_v19 = vmul.f32 1.442695, %v4141_v49 }
 0xdb6   : > { %v4125_v50 = vpop.xlane.xlu1 %4124  ;;  %v4122_v25 = vpop.xlane.xlu0 %4121 }
 0xdb7   : > { %9377 = vpow2.f32 %v4149_v19  ;;  %v4143_v1 = vsub.f32 %v4110_v17, %v4125_v50  ;;  %v4142_v36 = vsub.f32 %v4109_v56, %v4122_v25 }
 0xdb9   : > { %v4153_v5 = vmul.f32 1.442695, %v4143_v1  ;;  %v4151_v30 = vmul.f32 1.442695, %v4142_v36 }
 0xdba   : > { %v4128_v43 = vpop.xlane.xlu1 %4127 }
 0xdbb   : > { %9379 = vpow2.f32 %v4153_v5  ;;  %v4144_v4 = vsub.f32 %v4111_v8, %v4128_v43 }
 0xdbc   : > { %9381 = vpow2.f32 %v4151_v30 }
 0xdbd   : > { %v4155_v53 = vmul.f32 1.442695, %v4144_v4 }
 0xdbe   : > { %v4137_v13 = vpop.xlane.xlu1 %4136 }
 0xdbf   : > { %9383 = vpow2.f32 %v4155_v53  ;;  %v4147_v59 = vsub.f32 %v4114_v9, %v4137_v13 }
 0xdc1   : > { %v4161_v15 = vmul.f32 1.442695, %v4147_v59 }
 0xdc2   : > { %v4131_v40 = vpop.xlane.xlu1 %4130 }
 0xdc3   : > { %v4145_v11 = vsub.f32 %v4112_v28, %v4131_v40 }
 0xdc4   : > { %v9378_v26 = vpop.eup %9377 }
 0xdc5   : > { %v4157_v7 = vmul.f32 1.442695, %v4145_v11  ;;  %v4165_v22 = vsel %vm4116_vm8, %v9378_v26, 0.0 }
 0xdc6   : > { %4166 = vadd.xlane.f32.xlu0 %v4165_v22  ;;  %v4134_v58 = vpop.xlane.xlu1 %4133 }
 0xdc7   : > { %9385 = vpow2.f32 %v4157_v7  ;;  %v4146_v21 = vsub.f32 %v4113_v48, %v4134_v58  ;;  %v9025_v58 = vld [vmem:[#allocation33 + $0x38] sm:$0xff]  }
 0xdc8   : > { %v9380_v42 = vpop.eup %9379  ;;  %9387 = vpow2.f32 %v4161_v15  ;;  %8433 = vmatpush3.bf16.msra.mxu1 %v9025_v58 }
 0xdc9   : > { %v9382_v39 = vpop.eup %9381  ;;  %v4159_v32 = vmul.f32 1.442695, %v4146_v21  ;;  %v4171_v47 = vsel %vm4116_vm8, %v9380_v42, 0.0  ;;  %8434 = vmatprep.subr.bf16.mxu1 %v10760_v2  ;;  %v9026_v21 = vld [vmem:[#allocation33 + $0x30] sm:$0xff]  }
 0xdca   : > { %4172 = vadd.xlane.f32.xlu0 %v4171_v47  ;;  %v4168_v55 = vsel %vm4116_vm8, %v9382_v39, 0.0  ;;  %v4140_v60 = vpop.xlane.xlu1 %4139  ;;  %v9030_v47 = vld [vmem:[#allocation33 + $0x10] sm:$0xff]  }
 0xdcb   : > { %9389 = vpow2.f32 %v4159_v32  ;;  %4169 = vadd.xlane.f32.xlu1 %v4168_v55  ;;  %v4148_v14 = vsub.f32 %v4115_v54, %v4140_v60  ;;  %v9029_v32 = vld [vmem:[#allocation33 + $0x18] sm:$0xff]   ;;  %v9031_v55 = vld [vmem:[#allocation33 + $0x8] sm:$0xff]   ;;  %v9032_v60 = vld [vmem:[#allocation33] sm:$0xff]  }
 0xdcc   : > { %v9384_v17 = vpop.eup %9383  ;;  %8435 = vmatpush3.bf16.msra.mxu1 %v9026_v21 }
 0xdcd   : > { %v4163_v57 = vmul.f32 1.442695, %v4148_v14  ;;  %v4174_v56 = vsel %vm4116_vm8, %v9384_v17, 0.0  ;;  %8436 = vmatprep.subr.bf16.mxu1 %v10760_v2 }
 0xdcf   : > { %9391 = vpow2.f32 %v4163_v57  ;;  %4175 = vadd.xlane.f32.xlu1 %v4174_v56 }
 0xdd4   : > { %v9386_v33 = vpop.eup %9385 }
 0xdd5   : > { %v4177_v62 = vsel %vm4116_vm8, %v9386_v33, 0.0  ;;  %v9388_v6 = vpop.eup %9387 }
 0xdd6   : > { %4178 = vadd.xlane.f32.xlu0 %v4177_v62  ;;  %v4183_v61 = vsel %vm4116_vm8, %v9388_v6, 0.0 }
 0xdd8   : > { %v9390_v8 = vpop.eup %9389 }
 0xdd9   : > { %v4180_v9 = vsel %vm4116_vm8, %v9390_v8, 0.0 }
 0xdda   : > { %4184 = vadd.xlane.f32.xlu0 %v4183_v61  ;;  %4181 = vadd.xlane.f32.xlu1 %v4180_v9 }
 0xddc   : > { %v9392_v16 = vpop.eup %9391 }
 0xddd   : > { %v4186_v10 = vsel %vm4116_vm8, %v9392_v16, 0.0 }
 0xdde   : > { %4187 = vadd.xlane.f32.xlu1 %v4186_v10 }
 0xe4f   : > { %v4167_v23 = vpop.xlane.xlu0 %4166 }
 0xe50   : > { %9393 = vrcp.f32 %v4167_v23 }
 0xe53   : > { %v4173_v28 = vpop.xlane.xlu0 %4172 }
 0xe54   : > { %v4170_v38 = vpop.xlane.xlu1 %4169 }
 0xe55   : > { %9395 = vrcp.f32 %v4170_v38 }
 0xe56   : > { %9397 = vrcp.f32 %v4173_v28 }
 0xe58   : > { %v4176_v45 = vpop.xlane.xlu1 %4175 }
 0xe59   : > { %9399 = vrcp.f32 %v4176_v45 }
 0xe5d   : > { %v9394_v35 = vpop.eup %9393 }
 0xe5e   : > { %v4197_v49 = vmul.f32 %v9394_v35, %v9378_v26 }
 0xe5f   : > { %v4179_v48 = vpop.xlane.xlu0 %4178 }
 0xe60   : > { %9401 = vrcp.f32 %v4179_v48 }
 0xe62   : > { %v9396_v54 = vpop.eup %9395 }
 0xe63   : > { %v4185_v37 = vpop.xlane.xlu0 %4184  ;;  %v4182_v41 = vpop.xlane.xlu1 %4181  ;;  %v4198_v19 = vmul.f32 %v9396_v54, %v9382_v39  ;;  %v9028_v39 = vld [vmem:[#allocation33 + $0x20] sm:$0xff]  }
 0xe64   : > { %v9398_v50 = vpop.eup %9397  ;;  %9403 = vrcp.f32 %v4182_v41 }
 0xe65   : > { %v4205_v25 = vpack.c.bf16 %v4198_v19, %v4197_v49  ;;  %9405 = vrcp.f32 %v4185_v37  ;;  %v4199_v5 = vmul.f32 %v9398_v50, %v9380_v42  ;;  %v9027_v42 = vld [vmem:[#allocation33 + $0x28] sm:$0xff]  }
 0xe66   : > { %v9400_v1 = vpop.eup %9399  ;;  %8437 = vmatpush3.bf16.msra.mxu1 %v9027_v42 }
 0xe67   : > { %8424 = vmatprep.mubr.msk.bf16.mxu0 %vm4116_vm8, %v4205_v25  ;;  %v4188_v36 = vpop.xlane.xlu1 %4187  ;;  %v4200_v30 = vmul.f32 %v9400_v1, %v9384_v17  ;;  %8438 = vmatprep.subr.bf16.mxu1 %v10760_v2  ;;  %v7848_v25 = vld [vmem:[#allocation34] ss:$0 sm:$0xff] }
 0xe68   : > { %9407 = vrcp.f32 %v4188_v36  ;;  %v3752_v36 = vld [vmem:[#allocation28] sm:$0xff] }
 0xe69   : > { %v4206_v43 = vpack.c.bf16 %v4200_v30, %v4199_v5 }
 0xe6a   : > { %8439 = vmatpush3.bf16.msra.mxu1 %v9028_v39 }
 0xe6b   : > { %8425 = vmatmul.mubr.msk.bf16.vlgmr.msra.gmra.mxu0 %vm4116_vm8, %v4206_v43  ;;  %8440 = vmatprep.subr.bf16.mxu1 %v10760_v2 }
 0xe6d   : > { %v9402_v4 = vpop.eup %9401 }
 0xe6e   : > { %v4201_v59 = vmul.f32 %v9402_v4, %v9386_v33  ;;  %8441 = vmatpush3.bf16.msra.mxu1 %v9029_v32  ;;  %v9047_v32 = vld [vmem:[#allocation37 + $0xa4] ss:$16 sps:$4 sm:$0xff]  }
 0xe6f   : > { %8442 = vmatprep.subr.bf16.mxu1 %v10760_v2 }
 0xe71   : > { %v9404_v53 = vpop.eup %9403 }
 0xe72   : > { %v9406_v13 = vpop.eup %9405  ;;  %v4202_v40 = vmul.f32 %v9404_v53, %v9390_v8  ;;  %8443 = vmatpush3.bf16.msra.mxu1 %v9030_v47  ;;  %v9050_v47 = vld [vmem:[#allocation37 + $0xac] ss:$16 sps:$4 sm:$0xff]  }
 0xe73   : > { %v4203_v15 = vmul.f32 %v9406_v13, %v9388_v6  ;;  %8444 = vmatprep.subr.bf16.mxu1 %v10760_v2  ;;  %v9033_v13 = vld [vmem:[#allocation37 + $0xe0] ss:$16 sps:$4 sm:$0xff]  }
 0xe74   : > { %v4207_v26 = vpack.c.bf16 %v4202_v40, %v4201_v59  ;;  %v9035_v59 = vld [vmem:[#allocation37 + $0xe4] ss:$16 sps:$4 sm:$0xff]   ;;  %v9036_v40 = vld [vmem:[#allocation37 + $0xe8] ss:$16 sps:$4 sm:$0xff]  }
 0xe75   : > { %v9408_v11 = vpop.eup %9407  ;;  %4601 = vmatprep.subr.bf16.mxu0 %v9035_v59  ;;  %v9084_v59 = vld [vmem:[#allocation40 + $0xb8] sm:$0xff]  }
 0xe76   : > { %v4204_v7 = vmul.f32 %v9408_v11, %v9392_v16  ;;  %8428 = vmatprep.mubr.msk.bf16.mxu0 %vm4116_vm8, %v4207_v26  ;;  %8445 = vmatpush3.bf16.msra.mxu1 %v9031_v55  ;;  %v9038_v11 = vld [vmem:[#allocation37 + $0xec] ss:$16 sps:$4 sm:$0xff]   ;;  %v9041_v26 = vld [vmem:[#allocation37 + $0xc4] ss:$16 sps:$4 sm:$0xff]   ;;  %v9045_v55 = vld [vmem:[#allocation37 + $0xa0] ss:$16 sps:$4 sm:$0xff]  }
 0xe77   : > { %8446 = vmatprep.subr.bf16.mxu1 %v10760_v2  ;;  %4602 = vmatpush1.bf16.msra.mxu0 %v9033_v13  ;;  %v9082_v13 = vld [vmem:[#allocation40 + $0x38] sm:$0xff]  }
 0xe78   : > { %v4208_v22 = vpack.c.bf16 %v4204_v7, %v4203_v15  ;;  %v9044_v15 = vld [vmem:[#allocation37 + $0xcc] ss:$16 sps:$4 sm:$0xff]   ;;  %v9039_v7 = vld [vmem:[#allocation37 + $0xc0] ss:$16 sps:$4 sm:$0xff]   ;;  %4603 = vmatprep.subr.bf16.mxu0 %v9041_v26  ;;  %v9087_v26 = vld [vmem:[#allocation40 + $0xf0] sm:$0xff]  }
 0xe7a   : > { %8429 = vmatmul.mubr.msk.bf16.gmra.mxu0 %vm4116_vm8, %v4208_v22  ;;  %8447 = vmatpush3.bf16.msra.mxu1 %v9032_v60  ;;  %v9042_v22 = vld [vmem:[#allocation37 + $0xc8] ss:$16 sps:$4 sm:$0xff]  }
 0xe7b   : > { %4633 = vmatprep.mubr.bf16.mxu0 %v10761_v3  ;;  %4642 = vmatprep.subr.bf16.mxu1 %v9038_v11  ;;  %v9048_v60 = vld [vmem:[#allocation37 + $0xa8] ss:$16 sps:$4 sm:$0xff]  }
 0xe7c   : > { %4604 = vmatpush1.bf16.msra.mxu0 %v9039_v7  ;;  %v9085_v11 = vld [vmem:[#allocation40 + $0x70] sm:$0xff]  }
 0xe7d   : > { %4605 = vmatprep.subr.bf16.mxu0 %v9047_v32  ;;  %v9088_v7 = vld [vmem:[#allocation40 + $0xb0] sm:$0xff]   ;;  %v9095_v32 = vld [vmem:[#allocation40 + $0xe0] sm:$0xff]  }
 0xe80   : > { %4606 = vmatpush1.bf16.msra.mxu0 %v9045_v55  ;;  %v9096_v55 = vld [vmem:[#allocation40 + $0xa0] sm:$0xff]  }
 0xf2b   : > { %v8426_v14 = vpop.f32.mrf.mxu0 }
 0xf2c   : > { %v4289_v8 = vmul.f32 %v8426_v14, %v11909_v44  ;;  %v9053_v14 = vld [vmem:[#allocation37 + $0x84] ss:$16 sps:$4 sm:$0xff]  }
 0xf2d   : > { %v4256_v17 = vpop.f32.mrf.mxu0  ;;  %4607 = vmatprep.subr.bf16.mxu0 %v9053_v14  ;;  %v9099_v14 = vld [vmem:[#allocation40 + $0xd8] sm:$0xff]  }
 0xf2e   : > { %v4287_v62 = vmul.f32 %v4256_v17, %v11901_v18  ;;  %v9056_v17 = vld [vmem:[#allocation37 + $0x8c] ss:$16 sps:$4 sm:$0xff]  }
 0xf2f   : > { %v8427_v57 = vpop.f32.mrf.mxu0 }
 0xf30   : > { %v4290_v10 = vmul.f32 %v8427_v57, %v11911_v63  ;;  %v9051_v57 = vld [vmem:[#allocation37 + $0x80] ss:$16 sps:$4 sm:$0xff]  }
 0xf31   : > { %v4259_v56 = vpop.f32.mrf.mxu0  ;;  %4608 = vmatpush1.bf16.msra.mxu0 %v9051_v57  ;;  %v9100_v57 = vld [vmem:[#allocation40 + $0x98] sm:$0xff]  }
 0xf32   : > { %v4288_v33 = vmul.f32 %v4259_v56, %v11903_v46  ;;  %v9054_v56 = vld [vmem:[#allocation37 + $0x88] ss:$16 sps:$4 sm:$0xff]  }
 0xf34   : > { %v4295_v6 = vadd.f32 %v4288_v33, %v4287_v62  ;;  %v9059_v33 = vld [vmem:[#allocation37 + $0x64] ss:$16 sps:$4 sm:$0xff]   ;;  %v9062_v62 = vld [vmem:[#allocation37 + $0x6c] ss:$16 sps:$4 sm:$0xff]  }
 0xf35   : > { %4609 = vmatprep.subr.bf16.mxu0 %v9059_v33  ;;  %v9103_v33 = vld [vmem:[#allocation40 + $0xd0] sm:$0xff]  }
 0xf36   : > { %v4296_v9 = vadd.f32 %v4295_v6, %v4289_v8  ;;  %v9057_v6 = vld [vmem:[#allocation37 + $0x60] ss:$16 sps:$4 sm:$0xff]   ;;  %v9060_v8 = vld [vmem:[#allocation37 + $0x68] ss:$16 sps:$4 sm:$0xff]  }
 0xf37   : > { %4610 = vmatpush1.bf16.msra.mxu0 %v9057_v6  ;;  %v9104_v6 = vld [vmem:[#allocation40 + $0x90] sm:$0xff]  }
 0xf38   : > { %v4297_v38 = vadd.f32 %v4296_v9, %v4290_v10  ;;  %v9068_v9 = vld [vmem:[#allocation37 + $0x4c] ss:$16 sps:$4 sm:$0xff]   ;;  %v9066_v10 = vld [vmem:[#allocation37 + $0x48] ss:$16 sps:$4 sm:$0xff]  }
 0xf3a   : > { %v8430_v61 = vpop.f32.mrf.mxu0 }
 0xf3b   : > { %v4293_v54 = vmul.f32 %v8430_v61, %v11922_v12  ;;  %v9065_v61 = vld [vmem:[#allocation37 + $0x44] ss:$16 sps:$4 sm:$0xff]  }
 0xf3c   : > { %v4272_v16 = vpop.f32.mrf.mxu0  ;;  %4611 = vmatprep.subr.bf16.mxu0 %v9065_v61  ;;  %v9106_v61 = vld [vmem:[#allocation40 + $0x8] sm:$0xff]  }
 0xf3d   : > { %v4291_v23 = vmul.f32 %v4272_v16, %v11913_v0  ;;  %v9063_v16 = vld [vmem:[#allocation37 + $0x40] ss:$16 sps:$4 sm:$0xff]  }
 0xf3e   : > { %v8431_v28 = vpop.f32.mrf.mxu0  ;;  %4612 = vmatpush1.bf16.msra.mxu0 %v9063_v16  ;;  %v9108_v16 = vld [vmem:[#allocation40 + $0x88] sm:$0xff]  }
 0xf3f   : > { %v4298_v48 = vadd.f32 %v4297_v38, %v4291_v23  ;;  %v4294_v41 = vmul.f32 %v8431_v28, %v11924_v51  ;;  %v9071_v23 = vld [vmem:[#allocation37 + $0x24] ss:$16 sps:$4 sm:$0xff]   ;;  %v9074_v28 = vld [vmem:[#allocation37 + $0x2c] ss:$16 sps:$4 sm:$0xff]   ;;  %v9069_v38 = vld [vmem:[#allocation37 + $0x20] ss:$16 sps:$4 sm:$0xff]  }
 0xf40   : > { %v4275_v45 = vpop.f32.mrf.mxu0  ;;  %4613 = vmatprep.subr.bf16.mxu0 %v9071_v23  ;;  %v9110_v23 = vld [vmem:[#allocation40] sm:$0xff]  }
 0xf41   : > { %v4292_v35 = vmul.f32 %v4275_v45, %v11915_v31  ;;  %v9072_v45 = vld [vmem:[#allocation37 + $0x28] ss:$16 sps:$4 sm:$0xff]  }
 0xf42   : > { %4614 = vmatpush1.bf16.msra.mxu0 %v9069_v38  ;;  %v9112_v38 = vld [vmem:[#allocation40 + $0x80] sm:$0xff]  }
 0xf43   : > { %v4299_v37 = vadd.f32 %v4298_v48, %v4292_v35  ;;  %v9077_v48 = vld [vmem:[#allocation37 + $0x4] ss:$16 sps:$4 sm:$0xff]   ;;  %v9080_v35 = vld [vmem:[#allocation37 + $0xc] ss:$16 sps:$4 sm:$0xff]  }
 0xf44   : > { %4615 = vmatprep.subr.bf16.mxu0 %v9077_v48  ;;  %v3820_v48 = vld [vmem:[#allocation39] sm:$0xf] }
 0xf45   : > { %v4300_v49 = vadd.f32 %v4299_v37, %v4293_v54  ;;  %v9075_v54 = vld [vmem:[#allocation37] ss:$16 sps:$4 sm:$0xff]   ;;  %v9078_v37 = vld [vmem:[#allocation37 + $0x8] ss:$16 sps:$4 sm:$0xff]  }
 0xf46   : > { %4616 = vmatpush1.bf16.msra.mxu0 %v9075_v54  ;;  %v4432_v54 = vrot.slane %v3820_v48, %v11888_v34 }
 0xf47   : > { %v4301_v19 = vadd.f32 %v4300_v49, %v4294_v41  ;;  %v9081_v41 = vld [vmem:[#allocation40 + $0x78] sm:$0xff]  }
 0xf48   : > { %v9083_v49 = vld [vmem:[#allocation40 + $0xf8] sm:$0xff]   ;;  %8185 = vmatprep.subr.bf16.mxu0 %v9081_v41  ;;  %v4436_v41 = vrot.slane %v3820_v48, %v11885_v20 }
 0xf49   : > { %v4302_v50 = vpack.c.bf16 %v4301_v19, %v4301_v19 }
 0xf4b   : > { %8449 = vmatmul.mubr.bf16.vlgmr.msra.gmra.mxu1 %v4302_v50 }
 0xf4c   : > { %4674 = vmatprep.mubr.bf16.mxu1 %v10761_v3  ;;  %4643 = vmatpush1.bf16.msra.mxu1 %v9036_v40 }
 0xf4d   : > { %4644 = vmatprep.subr.bf16.mxu1 %v9044_v15  ;;  %v9086_v15 = vld [vmem:[#allocation40 + $0x30] sm:$0xff]  }
 0xf50   : > { %4645 = vmatpush1.bf16.msra.mxu1 %v9042_v22  ;;  %v9089_v22 = vld [vmem:[#allocation40 + $0x68] sm:$0xff]  }
 0xf51   : > { %4646 = vmatprep.subr.bf16.mxu1 %v9050_v47  ;;  %v9094_v47 = vld [vmem:[#allocation40 + $0x20] sm:$0xff]  }
 0xf54   : > { %4647 = vmatpush1.bf16.msra.mxu1 %v9048_v60  ;;  %v9097_v60 = vld [vmem:[#allocation40 + $0x58] sm:$0xff]  }
 0xf55   : > { %4648 = vmatprep.subr.bf16.mxu1 %v9056_v17  ;;  %v9098_v17 = vld [vmem:[#allocation40 + $0x18] sm:$0xff]  }
 0xf58   : > { %4649 = vmatpush1.bf16.msra.mxu1 %v9054_v56  ;;  %v9101_v56 = vld [vmem:[#allocation40 + $0x50] sm:$0xff]  }
 0xf59   : > { %4650 = vmatprep.subr.bf16.mxu1 %v9062_v62  ;;  %v9102_v62 = vld [vmem:[#allocation40 + $0x10] sm:$0xff]  }
 0xf5c   : > { %4651 = vmatpush1.bf16.msra.mxu1 %v9060_v8  ;;  %v9105_v8 = vld [vmem:[#allocation40 + $0x48] sm:$0xff]  }
 0xf5d   : > { %4652 = vmatprep.subr.bf16.mxu1 %v9068_v9  ;;  %v9107_v9 = vld [vmem:[#allocation40 + $0xc8] sm:$0xff]  }
 0xf60   : > { %4653 = vmatpush1.bf16.msra.mxu1 %v9066_v10  ;;  %v9109_v10 = vld [vmem:[#allocation40 + $0x40] sm:$0xff]  }
 0xf61   : > { %4654 = vmatprep.subr.bf16.mxu1 %v9074_v28  ;;  %v9111_v28 = vld [vmem:[#allocation40 + $0xc0] sm:$0xff]  }
 0xf64   : > { %4655 = vmatpush1.bf16.msra.mxu1 %v9072_v45  ;;  %v9115_v45 = vld [vmem:[#allocation48 + $0x74] ss:$8 sps:$4 sm:$0xff]  }
 0xf65   : > { %4656 = vmatprep.subr.bf16.mxu1 %v9080_v35  ;;  %v4424_v35 = vrot.slane %v3820_v48, %v11521_v27 }
 0xf68   : > { %4657 = vmatpush1.bf16.msra.mxu1 %v9078_v37  ;;  %v4428_v37 = vrot.slane %v3820_v48, %v11524_v29  ;;  %v7889_v48 = vld [vmem:[#allocation42] ss:$0 sm:$0xff] }
 0xf69   : > { %8207 = vmatprep.subr.bf16.mxu1 %v9083_v49 }
0x100b   : > { %v4391_v1 = vpop.f32.mrf.mxu1 }
0x100c   : > { %v4392_v5 = vadd.f32 %v7848_v25, %v4391_v1  ;;  %v3787_v1 = vld [vmem:[#allocation36] sm:$0x3] }
0x100d   : > { %v8450_v30 = vpop.f32.mrf.mxu1 }
0x100e   : > { %v4397_v43 = vadd.f32 %v4392_v5, %v3752_v36  ;;  %v4412_v36 = vrot.slane %v3787_v1, %v11521_v27 }
0x100f   : > { %v4394_v4 = vpop.f32.mrf.mxu1 }
0x1010   : > { %4398 = vadd.xlane.f32.xlu0 %v4397_v43 }
0x1011   : > { %v8451_v53 = vpop.f32.mrf.mxu1 }
0x1099   : > { %v4399_v58 = vpop.xlane.xlu0 %4398 }
0x109a   : > { %v4400_v21 = vmul.f32 0.0078125, %v4399_v58  ;;  %v9091_v58 = vld [vmem:[#allocation40 + $0xe8] sm:$0xff]  }
0x109c   : > { %v4401_v42 = vsub.f32 %v4397_v43, %v4400_v21  ;;  %v4417_v43 = vrot.slane %v3787_v1, %v11524_v29  ;;  %v9090_v21 = vld [vmem:[#allocation40 + $0x28] sm:$0xff]  }
0x109e   : > { %v4402_v39 = vmul.f32 %v4401_v42, %v4401_v42 }
0x10a0   : > { %4403 = vadd.xlane.f32.xlu1 %v4402_v39  ;;  %v9093_v39 = vld [vmem:[#allocation40 + $0x60] sm:$0xff]  }
0x1129   : > { %v4404_v19 = vpop.xlane.xlu1 %4403 }
0x112a   : > { %v4405_v50 = vmul.f32 0.0078125, %v4404_v19 }
0x112c   : > { %v4406_v25 = vadd.f32 1e-05, %v4405_v50 }
0x112e   : > { %9409 = vrsqrt.f32 %v4406_v25 }
0x113b   : > { %v9410_v5 = vpop.eup %9409 }
0x113c   : > { %v4408_v30 = vmul.f32 %v9410_v5, %v4401_v42  ;;  %v9092_v42 = vld [vmem:[#allocation40 + $0xa8] sm:$0xff]  }
0x113e   : > { %v4413_v4 = vmul.f32 %v4412_v36, %v4408_v30 }
0x1140   : > { %v11993_v53 = vadd.f32 %v4417_v43, %v4413_v4 }
0x1142   : > { %v4419_v40 = vpack.c.bf16 %v11993_v53, %v11993_v53 }
0x1144   : > { %4634 = vmatmul.mubr.bf16.vlgmr.msra.gmra.mxu0 %v4419_v40  ;;  %4675 = vmatmul.mubr.bf16.vlgmr.msra.gmra.mxu1 %v4419_v40 }
0x1145   : > { %8186 = vmatpush3.bf16.msra.mxu0 %v9082_v13  ;;  %8208 = vmatpush3.bf16.msra.mxu1 %v9084_v59 }
0x1146   : > { %8187 = vmatprep.subr.bf16.mxu0 %v9085_v11  ;;  %8209 = vmatprep.subr.bf16.mxu1 %v9087_v26 }
0x1149   : > { %8188 = vmatpush3.bf16.msra.mxu0 %v9086_v15  ;;  %8210 = vmatpush3.bf16.msra.mxu1 %v9088_v7 }
0x114a   : > { %8189 = vmatprep.subr.bf16.mxu0 %v9089_v22  ;;  %8211 = vmatprep.subr.bf16.mxu1 %v9091_v58  ;;  %v9113_v58 = vld [vmem:[#allocation48 + $0x70] ss:$8 sps:$4 sm:$0xff]  }
0x114d   : > { %8190 = vmatpush3.bf16.msra.mxu0 %v9090_v21  ;;  %8212 = vmatpush3.bf16.msra.mxu1 %v9092_v42 }
0x114e   : > { %8191 = vmatprep.subr.bf16.mxu0 %v9093_v39  ;;  %8213 = vmatprep.subr.bf16.mxu1 %v9095_v32  ;;  %v9118_v39 = vld [vmem:[#allocation48 + $0x64] ss:$8 sps:$4 sm:$0xff]   ;;  %v9116_v32 = vld [vmem:[#allocation48 + $0x60] ss:$8 sps:$4 sm:$0xff]  }
0x1151   : > { %8192 = vmatpush3.bf16.msra.mxu0 %v9094_v47  ;;  %8214 = vmatpush3.bf16.msra.mxu1 %v9096_v55  ;;  %v9121_v47 = vld [vmem:[#allocation48 + $0x54] ss:$8 sps:$4 sm:$0xff]   ;;  %v9119_v55 = vld [vmem:[#allocation48 + $0x50] ss:$8 sps:$4 sm:$0xff]  }
0x1152   : > { %8193 = vmatprep.subr.bf16.mxu0 %v9097_v60  ;;  %8215 = vmatprep.subr.bf16.mxu1 %v9099_v14  ;;  %v9124_v60 = vld [vmem:[#allocation48 + $0x44] ss:$8 sps:$4 sm:$0xff]   ;;  %v9122_v14 = vld [vmem:[#allocation48 + $0x40] ss:$8 sps:$4 sm:$0xff]  }
0x1155   : > { %8194 = vmatpush3.bf16.msra.mxu0 %v9098_v17  ;;  %8216 = vmatpush3.bf16.msra.mxu1 %v9100_v57  ;;  %v9127_v17 = vld [vmem:[#allocation48 + $0x34] ss:$8 sps:$4 sm:$0xff]   ;;  %v9125_v57 = vld [vmem:[#allocation48 + $0x30] ss:$8 sps:$4 sm:$0xff]  }
0x1156   : > { %8195 = vmatprep.subr.bf16.mxu0 %v9101_v56  ;;  %8217 = vmatprep.subr.bf16.mxu1 %v9103_v33  ;;  %v9130_v56 = vld [vmem:[#allocation48 + $0x24] ss:$8 sps:$4 sm:$0xff]   ;;  %v9128_v33 = vld [vmem:[#allocation48 + $0x20] ss:$8 sps:$4 sm:$0xff]  }
0x1159   : > { %8196 = vmatpush3.bf16.msra.mxu0 %v9102_v62  ;;  %8218 = vmatpush3.bf16.msra.mxu1 %v9104_v6  ;;  %v9133_v62 = vld [vmem:[#allocation48 + $0x14] ss:$8 sps:$4 sm:$0xff]   ;;  %v9131_v6 = vld [vmem:[#allocation48 + $0x10] ss:$8 sps:$4 sm:$0xff]  }
0x115a   : > { %8197 = vmatprep.subr.bf16.mxu0 %v9105_v8  ;;  %8219 = vmatprep.subr.bf16.mxu1 %v9107_v9  ;;  %v9136_v8 = vld [vmem:[#allocation48 + $0x4] ss:$8 sps:$4 sm:$0xff]   ;;  %v4991_v9 = vld [vmem:[#allocation45] sm:$0xf] }
0x115d   : > { %8198 = vmatpush3.bf16.msra.mxu0 %v9106_v61  ;;  %8220 = vmatpush3.bf16.msra.mxu1 %v9108_v16  ;;  %v9134_v61 = vld [vmem:[#allocation48] ss:$8 sps:$4 sm:$0xff]   ;;  %v5261_v16 = vunpack.c.l.bf16 %v4991_v9 }
0x115e   : > { %8199 = vmatprep.subr.bf16.mxu0 %v9109_v10  ;;  %8221 = vmatprep.subr.bf16.mxu1 %v9111_v28 }
0x115f   : > { %v5262_v10 = vmul.f32 %v5261_v16, %v11901_v18 }
0x1161   : > { %8200 = vmatpush3.bf16.msra.mxu0 %v9110_v23  ;;  %8222 = vmatpush3.bf16.msra.mxu1 %v9112_v38  ;;  %v5263_v23 = vmul.f32 %v5261_v16, %v11903_v46 }
0x1162   : > { %5218 = vmatprep.subr.bf16.mxu0 %v9115_v45 }
0x1163   : > { %v5270_v28 = vpack.c.bf16 %v5263_v23, %v5262_v10 }
0x1204   : > { %v4635_v49 = vpop.f32.mrf.mxu0  ;;  %v4676_v19 = vpop.f32.mrf.mxu1 }
0x1205   : > { %v4636_v50 = vadd.f32 %v4635_v49, %v4424_v35  ;;  %v4677_v25 = vadd.f32 %v4676_v19, %v4432_v54 }
0x1206   : > { %v4637_v1 = vpop.f32.mrf.mxu0  ;;  %v4678_v36 = vpop.f32.mrf.mxu1 }
0x1207   : > { %v4638_v5 = vadd.f32 %v4637_v1, %v4428_v37  ;;  %v4679_v30 = vadd.f32 %v4678_v36, %v4436_v41  ;;  %v4683_v43 = vmax.f32 %v4636_v50, 0.0  ;;  %v4685_v4 = vmax.f32 %v4677_v25, 0.0  ;;  %v5009_v36 = vld [vmem:[#allocation49] sm:$0x3] }
0x1208   : > { %v4639_v13 = vpop.f32.mrf.mxu0  ;;  %v4680_v59 = vpop.f32.mrf.mxu1  ;;  %v5131_v46 = vrot.slane %v5009_v36, %v11521_v27 }
0x1209   : > { %v4684_v40 = vmax.f32 %v4638_v5, 0.0  ;;  %v4686_v11 = vmax.f32 %v4679_v30, 0.0  ;;  %v4687_v21 = vpack.c.bf16 %v4683_v43, %v4683_v43  ;;  %v4689_v42 = vpack.c.bf16 %v4685_v4, %v4685_v4 }
0x120a   : > { %v4640_v26 = vpop.f32.mrf.mxu0  ;;  %v4681_v15 = vpop.f32.mrf.mxu1  ;;  %v5135_v30 = vrot.slane %v5009_v36, %v11524_v29 }
0x120b   : > { %v4688_v7 = vpack.c.bf16 %v4684_v40, %v4684_v40  ;;  %v4690_v22 = vpack.c.bf16 %v4686_v11, %v4686_v11 }
0x120d   : > { %4921 = vmatprep.mubr.bf16.mxu0 %v4688_v7  ;;  %4961 = vmatprep.mubr.bf16.mxu1 %v4690_v22  ;;  %v5264_v7 = vmul.f32 %v5261_v16, %v11909_v44  ;;  %v5265_v22 = vmul.f32 %v5261_v16, %v11911_v63 }
0x120e   : > { %4922 = vmatmul.mubr.bf16.vlgmr.msra.gmra.mxu0 %v4687_v21  ;;  %4962 = vmatmul.mubr.bf16.vlgmr.msra.gmra.mxu1 %v4689_v42  ;;  %v5267_v21 = vmul.f32 %v5261_v16, %v11915_v31 }
0x120f   : > { %5219 = vmatpush1.bf16.msra.mxu0 %v9113_v58  ;;  %5250 = vmatprep.mubr.bf16.mxu0 %v10761_v3  ;;  %v5266_v58 = vmul.f32 %v5261_v16, %v11913_v0  ;;  %v5271_v42 = vpack.c.bf16 %v5265_v22, %v5264_v7 }
0x1210   : > { %5220 = vmatprep.subr.bf16.mxu0 %v9118_v39  ;;  %8454 = vmatprep.mubr.bf16.mxu1 %v5270_v28 }
0x1211   : > { %v5272_v39 = vpack.c.bf16 %v5267_v21, %v5266_v58 }
0x1213   : > { %5221 = vmatpush1.bf16.msra.mxu0 %v9116_v32  ;;  %v5268_v32 = vmul.f32 %v5261_v16, %v11922_v12 }
0x1214   : > { %5222 = vmatprep.subr.bf16.mxu0 %v9121_v47  ;;  %v5269_v47 = vmul.f32 %v5261_v16, %v11924_v51 }
0x1216   : > { %v5273_v44 = vpack.c.bf16 %v5269_v47, %v5268_v32 }
0x1217   : > { %5223 = vmatpush1.bf16.msra.mxu0 %v9119_v55 }
0x1218   : > { %5224 = vmatprep.subr.bf16.mxu0 %v9124_v60 }
0x121b   : > { %5225 = vmatpush1.bf16.msra.mxu0 %v9122_v14 }
0x121c   : > { %5226 = vmatprep.subr.bf16.mxu0 %v9127_v17 }
0x121f   : > { %5227 = vmatpush1.bf16.msra.mxu0 %v9125_v57 }
0x1220   : > { %5228 = vmatprep.subr.bf16.mxu0 %v9130_v56 }
0x1223   : > { %5229 = vmatpush1.bf16.msra.mxu0 %v9128_v33 }
0x1224   : > { %5230 = vmatprep.subr.bf16.mxu0 %v9133_v62 }
0x1227   : > { %5231 = vmatpush1.bf16.msra.mxu0 %v9131_v6 }
0x1228   : > { %5232 = vmatprep.subr.bf16.mxu0 %v9136_v8 }
0x122b   : > { %5233 = vmatpush1.bf16.msra.mxu0 %v9134_v61 }
0x122e   : > { %5251 = vmatmul.mubr.bf16.vlgmr.msra.gmra.mxu0 %v11515_v24 }
0x12ce   : > { %v8201_v38 = vpop.f32.mrf.mxu0  ;;  %v8223_v45 = vpop.f32.mrf.mxu1 }
0x12d0   : > { %v8202_v35 = vpop.f32.mrf.mxu0  ;;  %v8224_v54 = vpop.f32.mrf.mxu1 }
0x12d1   : > { %v8203_v37 = vadd.f32 %v8202_v35, %v8201_v38  ;;  %v8225_v41 = vadd.f32 %v8224_v54, %v8223_v45 }
0x12d2   : > { %v8204_v49 = vpop.f32.mrf.mxu0  ;;  %v8226_v19 = vpop.f32.mrf.mxu1 }
0x12d3   : > { %v4924_v50 = vadd.f32 %v8203_v37, %v7889_v48 }
0x12d4   : > { %v8205_v25 = vpop.f32.mrf.mxu0  ;;  %v8227_v24 = vpop.f32.mrf.mxu1 }
0x12d5   : > { %v12005_v1 = vadd.f32 %v8225_v41, %v4924_v50 }
0x12ee   : > { %v5252_v18 = vpop.f32.mrf.mxu0 }
0x12ef   : > { %v5253_v4 = vadd.f32 %v5252_v18, %v5131_v46 }
0x12f0   : > { %v5254_v5 = vpop.f32.mrf.mxu0 }
0x12f1   : > { %v5255_v40 = vadd.f32 %v5254_v5, %v5135_v30 }
0x12f2   : > { %v5256_v43 = vpop.f32.mrf.mxu0 }
0x12f3   : > { %v5257_v13 = vadd.f32 %v5256_v43, %v5131_v46 }
0x12f4   : > { %v5258_v59 = vpop.f32.mrf.mxu0 }
0x12f5   : > { %v5274_v11 = vpack.c.bf16 %v5257_v13, %v5253_v4  ;;  %v5259_v26 = vadd.f32 %v5258_v59, %v5135_v30 }
0x12f7   : > { %v5440_v15 = vpack.c.bf16 %v5259_v26, %v5255_v40  ;;  %8452 = vmatprep.subr.bf16.mxu1 %v5274_v11 }
0x12f8   : > { %8453 = vmatpush3.bf16.xpose.msra.mxu1 %v5274_v11 }
0x12f9   : > { %8462 = vmatprep.subr.bf16.mxu0 %v5440_v15  ;;  %8472 = vmatprep.subr.bf16.mxu1 %v10760_v2 }
0x12fa   : > { %8463 = vmatpush3.bf16.msra.mxu0 %v5440_v15 }
0x12ff   : > { %8455 = vmatmul.mubr.bf16.vlgmr.msra.gmra.mxu1 %v5271_v42 }
0x1300   : > { %8458 = vmatprep.mubr.bf16.mxu1 %v5272_v39 }
0x1307   : > { %8459 = vmatmul.mubr.bf16.gmra.mxu1 %v5273_v44 }
0x1308   : > { %8488 = vmatprep.mubr.msk.bf16.mxu1 %vm10762_vm0, %v10760_v2 }
0x13bf   : > { %v8456_v63 = vpop.f32.mrf.mxu1 }
0x13c0   : > { %v5342_v14 = vsel %vm11934_vm7, %v8456_v63, -1e+09 }
0x13c1   : > { %v5309_v0 = vpop.f32.mrf.mxu1  ;;  %v5354_v57 = vsel %vm4116_vm8, %v5342_v14, -inf }
0x13c2   : > { %v5340_v31 = vsel %vm11934_vm7, %v5309_v0, -1e+09 }
0x13c3   : > { %v8457_v55 = vpop.f32.mrf.mxu1  ;;  %v5348_v60 = vsel %vm4116_vm8, %v5340_v31, -inf }
0x13c4   : > { %5349 = vmax.xlane.f32.xlu0 %v5348_v60  ;;  %v5343_v33 = vsel %vm11934_vm7, %v8457_v55, -1e+09 }
0x13c5   : > { %v5312_v12 = vpop.f32.mrf.mxu1  ;;  %v5357_v61 = vsel %vm4116_vm8, %v5343_v33, -inf }
0x13c6   : > { %v5341_v51 = vsel %vm11934_vm7, %v5312_v12, -1e+09 }
0x13c7   : > { %v8460_v17 = vpop.f32.mrf.mxu1  ;;  %v5351_v56 = vsel %vm4116_vm8, %v5341_v51, -inf }
0x13c8   : > { %5355 = vmax.xlane.f32.xlu0 %v5354_v57  ;;  %5352 = vmax.xlane.f32.xlu1 %v5351_v56  ;;  %v5346_v16 = vsel %vm11934_vm7, %v8460_v17, -1e+09  ;;  %v9137_v17 = vld [vmem:[#allocation51 + $0x38] sm:$0xff]   ;;  %v9138_v57 = vld [vmem:[#allocation51 + $0x30] sm:$0xff]  }
0x13c9   : > { %v5325_v62 = vpop.f32.mrf.mxu1  ;;  %v5366_v28 = vsel %vm4116_vm8, %v5346_v16, -inf  ;;  %8473 = vmatpush3.bf16.msra.mxu1 %v9137_v17 }
0x13ca   : > { %v5344_v6 = vsel %vm11934_vm7, %v5325_v62, -1e+09  ;;  %8474 = vmatprep.subr.bf16.mxu1 %v10760_v2 }
0x13cb   : > { %v8461_v8 = vpop.f32.mrf.mxu1  ;;  %v5360_v9 = vsel %vm4116_vm8, %v5344_v6, -inf }
0x13cc   : > { %5358 = vmax.xlane.f32.xlu1 %v5357_v61  ;;  %5361 = vmax.xlane.f32.xlu0 %v5360_v9  ;;  %v5347_v45 = vsel %vm11934_vm7, %v8461_v8, -1e+09 }
0x13cd   : > { %v5328_v10 = vpop.f32.mrf.mxu1  ;;  %v5369_v48 = vsel %vm4116_vm8, %v5347_v45, -inf  ;;  %8475 = vmatpush3.bf16.msra.mxu1 %v9138_v57  ;;  %v9486_v57 = vld [vmem:[#allocation9 + $0x28] sm:$0xff] }
0x13ce   : > { %v5345_v23 = vsel %vm11934_vm7, %v5328_v10, -1e+09  ;;  %8476 = vmatprep.subr.bf16.mxu1 %v10760_v2 }
0x13cf   : > { %v5363_v38 = vsel %vm4116_vm8, %v5345_v23, -inf }
0x13d0   : > { %5367 = vmax.xlane.f32.xlu0 %v5366_v28  ;;  %5364 = vmax.xlane.f32.xlu1 %v5363_v38 }
0x13d4   : > { %5370 = vmax.xlane.f32.xlu1 %v5369_v48 }
0x144d   : > { %v5350_v35 = vpop.xlane.xlu0 %5349 }
0x144e   : > { %v5372_v54 = vsub.f32 %v5340_v31, %v5350_v35 }
0x1450   : > { %v5380_v37 = vmul.f32 1.442695, %v5372_v54 }
0x1451   : > { %v5356_v41 = vpop.xlane.xlu0 %5355  ;;  %v5353_v49 = vpop.xlane.xlu1 %5352 }
0x1452   : > { %9411 = vpow2.f32 %v5380_v37  ;;  %v5374_v19 = vsub.f32 %v5342_v14, %v5356_v41  ;;  %v5373_v50 = vsub.f32 %v5341_v51, %v5353_v49 }
0x1454   : > { %v5384_v25 = vmul.f32 1.442695, %v5374_v19  ;;  %v5382_v24 = vmul.f32 1.442695, %v5373_v50 }
0x1455   : > { %v5359_v36 = vpop.xlane.xlu1 %5358  ;;  %v5362_v18 = vpop.xlane.xlu0 %5361 }
0x1456   : > { %9413 = vpow2.f32 %v5384_v25  ;;  %v5375_v52 = vsub.f32 %v5343_v33, %v5359_v36  ;;  %v5376_v46 = vsub.f32 %v5344_v6, %v5362_v18 }
0x1457   : > { %9415 = vpow2.f32 %v5382_v24 }
0x1458   : > { %v5386_v5 = vmul.f32 1.442695, %v5375_v52  ;;  %v5388_v30 = vmul.f32 1.442695, %v5376_v46 }
0x1459   : > { %v5368_v43 = vpop.xlane.xlu0 %5367  ;;  %v5365_v4 = vpop.xlane.xlu1 %5364 }
0x145a   : > { %9417 = vpow2.f32 %v5386_v5  ;;  %v5378_v13 = vsub.f32 %v5346_v16, %v5368_v43  ;;  %v5377_v59 = vsub.f32 %v5345_v23, %v5365_v4  ;;  %v9140_v43 = vld [vmem:[#allocation51 + $0x20] sm:$0xff]   ;;  %v9141_v4 = vld [vmem:[#allocation51 + $0x18] sm:$0xff]  }
0x145b   : > { %9419 = vpow2.f32 %v5388_v30  ;;  %v9139_v30 = vld [vmem:[#allocation51 + $0x28] sm:$0xff]  }
0x145c   : > { %v5392_v40 = vmul.f32 1.442695, %v5378_v13  ;;  %v5390_v11 = vmul.f32 1.442695, %v5377_v59  ;;  %8477 = vmatpush3.bf16.msra.mxu1 %v9139_v30  ;;  %v9142_v13 = vld [vmem:[#allocation51 + $0x10] sm:$0xff]   ;;  %v9143_v59 = vld [vmem:[#allocation51 + $0x8] sm:$0xff]  }
0x145d   : > { %v5371_v26 = vpop.xlane.xlu1 %5370  ;;  %8478 = vmatprep.subr.bf16.mxu1 %v10760_v2 }
0x145e   : > { %9421 = vpow2.f32 %v5392_v40  ;;  %v5379_v15 = vsub.f32 %v5347_v45, %v5371_v26  ;;  %v9144_v40 = vld [vmem:[#allocation51] sm:$0xff]  }
0x145f   : > { %v9412_v7 = vpop.eup %9411  ;;  %9423 = vpow2.f32 %v5390_v11 }
0x1460   : > { %v5394_v22 = vmul.f32 1.442695, %v5379_v15  ;;  %v5396_v58 = vsel %vm4116_vm8, %v9412_v7, 0.0  ;;  %8479 = vmatpush3.bf16.msra.mxu1 %v9140_v43  ;;  %v4969_v43 = vadd.f32 %v12005_v1, %v11993_v53  ;;  %v9169_v53 = vld [vmem:[#allocation55 + $0x60] ss:$16 sps:$4 sm:$0xff]  }
0x1461   : > { %5397 = vadd.xlane.f32.xlu0 %v5396_v58  ;;  %8480 = vmatprep.subr.bf16.mxu1 %v10760_v2  ;;  %v9172_v1 = vld [vmem:[#allocation55 + $0x68] ss:$16 sps:$4 sm:$0xff]  }
0x1462   : > { %9425 = vpow2.f32 %v5394_v22  ;;  %v9481_v22 = vld [vmem:[#allocation9] sm:$0xff] }
0x1463   : > { %v9414_v21 = vpop.eup %9413 }
0x1464   : > { %v9416_v42 = vpop.eup %9415  ;;  %v5402_v39 = vsel %vm4116_vm8, %v9414_v21, 0.0  ;;  %8481 = vmatpush3.bf16.msra.mxu1 %v9141_v4  ;;  %v9159_v4 = vld [vmem:[#allocation55 + $0xa4] ss:$16 sps:$4 sm:$0xff]  }
0x1465   : > { %5403 = vadd.xlane.f32.xlu0 %v5402_v39  ;;  %v5399_v32 = vsel %vm4116_vm8, %v9416_v42, 0.0  ;;  %8482 = vmatprep.subr.bf16.mxu1 %v10760_v2 }
0x1466   : > { %5400 = vadd.xlane.f32.xlu1 %v5399_v32  ;;  %v9483_v32 = vld [vmem:[#allocation9 + $0x10] sm:$0xff] }
0x1467   : > { %v9418_v47 = vpop.eup %9417 }
0x1468   : > { %v9420_v44 = vpop.eup %9419  ;;  %v5405_v63 = vsel %vm4116_vm8, %v9418_v47, 0.0  ;;  %8483 = vmatpush3.bf16.msra.mxu1 %v9142_v13  ;;  %v9162_v13 = vld [vmem:[#allocation55 + $0xac] ss:$16 sps:$4 sm:$0xff]  }
0x1469   : > { %v5408_v0 = vsel %vm4116_vm8, %v9420_v44, 0.0  ;;  %8484 = vmatprep.subr.bf16.mxu1 %v10760_v2 }
0x146a   : > { %5409 = vadd.xlane.f32.xlu0 %v5408_v0  ;;  %5406 = vadd.xlane.f32.xlu1 %v5405_v63  ;;  %v9484_v0 = vld [vmem:[#allocation9 + $0x18] sm:$0xff] }
0x146b   : > { %v9422_v31 = vpop.eup %9421 }
0x146c   : > { %v9424_v55 = vpop.eup %9423  ;;  %v5414_v60 = vsel %vm4116_vm8, %v9422_v31, 0.0  ;;  %8485 = vmatpush3.bf16.msra.mxu1 %v9143_v59  ;;  %v9157_v59 = vld [vmem:[#allocation55 + $0xa0] ss:$16 sps:$4 sm:$0xff]  }
0x146d   : > { %v5411_v14 = vsel %vm4116_vm8, %v9424_v55, 0.0  ;;  %8486 = vmatprep.subr.bf16.mxu1 %v10760_v2  ;;  %v9485_v2 = vld [vmem:[#allocation9 + $0x20] sm:$0xff] }
0x146e   : > { %5415 = vadd.xlane.f32.xlu0 %v5414_v60  ;;  %5412 = vadd.xlane.f32.xlu1 %v5411_v14 }
0x146f   : > { %v9426_v12 = vpop.eup %9425 }
0x1470   : > { %v5417_v51 = vsel %vm4116_vm8, %v9426_v12, 0.0  ;;  %8487 = vmatpush3.bf16.msra.mxu1 %v9144_v40  ;;  %v9160_v40 = vld [vmem:[#allocation55 + $0xa8] ss:$16 sps:$4 sm:$0xff]  }
0x1472   : > { %5418 = vadd.xlane.f32.xlu1 %v5417_v51 }
0x14ea   : > { %v5398_v56 = vpop.xlane.xlu0 %5397 }
0x14eb   : > { %9427 = vrcp.f32 %v5398_v56 }
0x14ee   : > { %v5404_v33 = vpop.xlane.xlu0 %5403 }
0x14ef   : > { %v5401_v62 = vpop.xlane.xlu1 %5400 }
0x14f0   : > { %9429 = vrcp.f32 %v5401_v62 }
0x14f1   : > { %9431 = vrcp.f32 %v5404_v33  ;;  %v9487_v33 = vld [vmem:[#allocation9 + $0x30] sm:$0xff] }
0x14f3   : > { %v5410_v6 = vpop.xlane.xlu0 %5409  ;;  %v5407_v8 = vpop.xlane.xlu1 %5406 }
0x14f4   : > { %9433 = vrcp.f32 %v5407_v8  ;;  %v9488_v8 = vld [vmem:[#allocation9 + $0x38] sm:$0xff] }
0x14f5   : > { %9435 = vrcp.f32 %v5410_v6 }
0x14f7   : > { %v5416_v61 = vpop.xlane.xlu0 %5415  ;;  %v5413_v9 = vpop.xlane.xlu1 %5412 }
0x14f8   : > { %9437 = vrcp.f32 %v5413_v9  ;;  %v9428_v16 = vpop.eup %9427 }
0x14f9   : > { %9439 = vrcp.f32 %v5416_v61  ;;  %v5428_v28 = vmul.f32 %v9428_v16, %v9412_v7 }
0x14fb   : > { %v5419_v10 = vpop.xlane.xlu1 %5418 }
0x14fc   : > { %9441 = vrcp.f32 %v5419_v10 }
0x14fd   : > { %v9430_v23 = vpop.eup %9429 }
0x14fe   : > { %v5429_v38 = vmul.f32 %v9430_v23, %v9416_v42  ;;  %v9432_v45 = vpop.eup %9431  ;;  %v7942_v23 = vld [vmem:[#allocation52] ss:$0 sm:$0xff] }
0x14ff   : > { %v5430_v54 = vmul.f32 %v9432_v45, %v9414_v21  ;;  %v9482_v21 = vld [vmem:[#allocation9 + $0x8] sm:$0xff] }
0x1500   : > { %v5436_v48 = vpack.c.bf16 %v5429_v38, %v5428_v28  ;;  %v4992_v38 = vld [vmem:[#allocation46] sm:$0xff] }
0x1501   : > { %v9434_v35 = vpop.eup %9433 }
0x1502   : > { %8464 = vmatprep.mubr.msk.bf16.mxu0 %vm4116_vm8, %v5436_v48  ;;  %v5431_v37 = vmul.f32 %v9434_v35, %v9418_v47  ;;  %v9436_v41 = vpop.eup %9435 }
0x1503   : > { %v5432_v25 = vmul.f32 %v9436_v41, %v9420_v44  ;;  %v9145_v41 = vld [vmem:[#allocation55 + $0xe0] ss:$16 sps:$4 sm:$0xff]  }
0x1504   : > { %v5437_v49 = vpack.c.bf16 %v5431_v37, %v5430_v54 }
0x1505   : > { %v9438_v19 = vpop.eup %9437 }
0x1506   : > { %v9440_v50 = vpop.eup %9439  ;;  %8465 = vmatmul.mubr.msk.bf16.vlgmr.msra.gmra.mxu0 %vm4116_vm8, %v5437_v49  ;;  %v5433_v24 = vmul.f32 %v9438_v19, %v9424_v55  ;;  %v9147_v49 = vld [vmem:[#allocation55 + $0xe4] ss:$16 sps:$4 sm:$0xff]   ;;  %v9148_v19 = vld [vmem:[#allocation55 + $0xe8] ss:$16 sps:$4 sm:$0xff]  }
0x1507   : > { %v5434_v52 = vmul.f32 %v9440_v50, %v9422_v31  ;;  %v9150_v50 = vld [vmem:[#allocation55 + $0xec] ss:$16 sps:$4 sm:$0xff]   ;;  %5832 = vmatprep.subr.bf16.mxu0 %v9147_v49 }
0x1508   : > { %v5438_v18 = vpack.c.bf16 %v5433_v24, %v5432_v25  ;;  %v9153_v25 = vld [vmem:[#allocation55 + $0xc4] ss:$16 sps:$4 sm:$0xff]   ;;  %v9156_v24 = vld [vmem:[#allocation55 + $0xcc] ss:$16 sps:$4 sm:$0xff]   ;;  %5873 = vmatprep.subr.bf16.mxu1 %v9150_v50  ;;  %5833 = vmatpush1.bf16.msra.mxu0 %v9145_v41 }
0x1509   : > { %v9442_v36 = vpop.eup %9441  ;;  %5834 = vmatprep.subr.bf16.mxu0 %v9153_v25  ;;  %v9200_v41 = vld [vmem:[#allocation58 + $0xb0] sm:$0xff]   ;;  %v9201_v49 = vld [vmem:[#allocation58 + $0x68] sm:$0xff]  }
0x150a   : > { %v5435_v46 = vmul.f32 %v9442_v36, %v9426_v12  ;;  %8468 = vmatprep.mubr.msk.bf16.mxu0 %vm4116_vm8, %v5438_v18  ;;  %v9151_v36 = vld [vmem:[#allocation55 + $0xc0] ss:$16 sps:$4 sm:$0xff]   ;;  %v9154_v18 = vld [vmem:[#allocation55 + $0xc8] ss:$16 sps:$4 sm:$0xff]  }
0x150b   : > { %v9203_v50 = vld [vmem:[#allocation58 + $0x28] sm:$0xff]  }
0x150c   : > { %v5439_v5 = vpack.c.bf16 %v5435_v46, %v5434_v52  ;;  %5835 = vmatpush1.bf16.msra.mxu0 %v9151_v36  ;;  %v9204_v25 = vld [vmem:[#allocation58 + $0xa8] sm:$0xff]   ;;  %v9206_v36 = vld [vmem:[#allocation58 + $0xe0] sm:$0xff]  }
0x150d   : > { %5836 = vmatprep.subr.bf16.mxu0 %v9159_v4  ;;  %v9213_v4 = vld [vmem:[#allocation58 + $0x50] sm:$0xff]  }
0x150e   : > { %8469 = vmatmul.mubr.msk.bf16.gmra.mxu0 %vm4116_vm8, %v5439_v5 }
0x150f   : > { %5864 = vmatprep.mubr.bf16.mxu0 %v10761_v3 }
0x1510   : > { %5837 = vmatpush1.bf16.msra.mxu0 %v9157_v59  ;;  %v9215_v59 = vld [vmem:[#allocation58 + $0x10] sm:$0xff]  }
0x15c6   : > { %v8466_v11 = vpop.f32.mrf.mxu0 }
0x15c7   : > { %v5520_v47 = vmul.f32 %v9483_v32, %v8466_v11  ;;  %v9165_v11 = vld [vmem:[#allocation55 + $0x84] ss:$16 sps:$4 sm:$0xff]   ;;  %v9178_v32 = vld [vmem:[#allocation55 + $0x48] ss:$16 sps:$4 sm:$0xff]  }
0x15c8   : > { %v5487_v26 = vpop.f32.mrf.mxu0  ;;  %5838 = vmatprep.subr.bf16.mxu0 %v9165_v11  ;;  %v9217_v11 = vld [vmem:[#allocation58 + $0x48] sm:$0xff]  }
0x15c9   : > { %v5518_v58 = vmul.f32 %v9481_v22, %v5487_v26  ;;  %v9168_v26 = vld [vmem:[#allocation55 + $0x8c] ss:$16 sps:$4 sm:$0xff]   ;;  %v9171_v22 = vld [vmem:[#allocation55 + $0x64] ss:$16 sps:$4 sm:$0xff]  }
0x15ca   : > { %v8467_v15 = vpop.f32.mrf.mxu0 }
0x15cb   : > { %v5521_v31 = vmul.f32 %v9484_v0, %v8467_v15  ;;  %v9163_v15 = vld [vmem:[#allocation55 + $0x80] ss:$16 sps:$4 sm:$0xff]   ;;  %v9184_v0 = vld [vmem:[#allocation55 + $0x28] ss:$16 sps:$4 sm:$0xff]  }
0x15cc   : > { %v5490_v7 = vpop.f32.mrf.mxu0  ;;  %5839 = vmatpush1.bf16.msra.mxu0 %v9163_v15  ;;  %v9219_v15 = vld [vmem:[#allocation58 + $0x8] sm:$0xff]  }
0x15cd   : > { %v5519_v42 = vmul.f32 %v9482_v21, %v5490_v7  ;;  %v9166_v7 = vld [vmem:[#allocation55 + $0x88] ss:$16 sps:$4 sm:$0xff]   ;;  %5840 = vmatprep.subr.bf16.mxu0 %v9171_v22  ;;  %v9177_v21 = vld [vmem:[#allocation55 + $0x44] ss:$16 sps:$4 sm:$0xff]  }
0x15ce   : > { %v8470_v39 = vpop.f32.mrf.mxu0  ;;  %v9221_v22 = vld [vmem:[#allocation58 + $0x40] sm:$0xff]  }
0x15cf   : > { %v5526_v44 = vadd.f32 %v5519_v42, %v5518_v58  ;;  %v5524_v62 = vmul.f32 %v9487_v33, %v8470_v39  ;;  %v9174_v58 = vld [vmem:[#allocation55 + $0x6c] ss:$16 sps:$4 sm:$0xff]   ;;  %v9175_v39 = vld [vmem:[#allocation55 + $0x40] ss:$16 sps:$4 sm:$0xff]  }
0x15d0   : > { %v5503_v63 = vpop.f32.mrf.mxu0  ;;  %5841 = vmatpush1.bf16.msra.mxu0 %v9169_v53  ;;  %v9180_v42 = vld [vmem:[#allocation55 + $0x4c] ss:$16 sps:$4 sm:$0xff]   ;;  %v9223_v53 = vld [vmem:[#allocation58] sm:$0xff]  }
0x15d1   : > { %v5527_v55 = vadd.f32 %v5526_v44, %v5520_v47  ;;  %v5522_v14 = vmul.f32 %v9485_v2, %v5503_v63  ;;  %5842 = vmatprep.subr.bf16.mxu0 %v9177_v21  ;;  %v9183_v47 = vld [vmem:[#allocation55 + $0x24] ss:$16 sps:$4 sm:$0xff]   ;;  %v9186_v44 = vld [vmem:[#allocation55 + $0x2c] ss:$16 sps:$4 sm:$0xff]   ;;  %v9181_v63 = vld [vmem:[#allocation55 + $0x20] ss:$16 sps:$4 sm:$0xff]  }
0x15d2   : > { %v8471_v60 = vpop.f32.mrf.mxu0  ;;  %v9192_v2 = vld [vmem:[#allocation55 + $0xc] ss:$16 sps:$4 sm:$0xff]   ;;  %v5060_v21 = vld [vmem:[#allocation57] sm:$0xf] }
0x15d3   : > { %v5528_v12 = vadd.f32 %v5527_v55, %v5521_v31  ;;  %v5525_v61 = vmul.f32 %v9488_v8, %v8471_v60  ;;  %v9189_v31 = vld [vmem:[#allocation55 + $0x4] ss:$16 sps:$4 sm:$0xff]   ;;  %v9187_v55 = vld [vmem:[#allocation55] ss:$16 sps:$4 sm:$0xff]   ;;  %v9190_v60 = vld [vmem:[#allocation55 + $0x8] ss:$16 sps:$4 sm:$0xff]  }
0x15d4   : > { %v5506_v51 = vpop.f32.mrf.mxu0  ;;  %5843 = vmatpush1.bf16.msra.mxu0 %v9175_v39  ;;  %v5663_v39 = vrot.slane %v5060_v21, %v11888_v34 }
0x15d5   : > { %v5529_v17 = vadd.f32 %v5528_v12, %v5522_v14  ;;  %v5523_v56 = vmul.f32 %v9486_v57, %v5506_v51  ;;  %5844 = vmatprep.subr.bf16.mxu0 %v9183_v47  ;;  %v5667_v47 = vrot.slane %v5060_v21, %v11885_v20 }
0x15d7   : > { %v5530_v6 = vadd.f32 %v5529_v17, %v5523_v56 }
0x15d8   : > { %5845 = vmatpush1.bf16.msra.mxu0 %v9181_v63 }
0x15d9   : > { %v5531_v9 = vadd.f32 %v5530_v6, %v5524_v62  ;;  %5846 = vmatprep.subr.bf16.mxu0 %v9189_v31  ;;  %v5027_v62 = vld [vmem:[#allocation54] sm:$0x3] }
0x15da   : > { %v5643_v6 = vrot.slane %v5027_v62, %v11521_v27 }
0x15db   : > { %v5532_v16 = vadd.f32 %v5531_v9, %v5525_v61  ;;  %v5648_v9 = vrot.slane %v5027_v62, %v11524_v29 }
0x15dc   : > { %5847 = vmatpush1.bf16.msra.mxu0 %v9187_v55 }
0x15dd   : > { %v5533_v10 = vpack.c.bf16 %v5532_v16, %v5532_v16 }
0x15df   : > { %8489 = vmatmul.mubr.bf16.vlgmr.msra.gmra.mxu1 %v5533_v10 }
0x15e0   : > { %5905 = vmatprep.mubr.bf16.mxu1 %v10761_v3  ;;  %5874 = vmatpush1.bf16.msra.mxu1 %v9148_v19  ;;  %v9202_v19 = vld [vmem:[#allocation58 + $0xe8] sm:$0xff]  }
0x15e1   : > { %5875 = vmatprep.subr.bf16.mxu1 %v9156_v24  ;;  %v9205_v24 = vld [vmem:[#allocation58 + $0x60] sm:$0xff]  }
0x15e4   : > { %5876 = vmatpush1.bf16.msra.mxu1 %v9154_v18  ;;  %v9207_v18 = vld [vmem:[#allocation58 + $0x20] sm:$0xff]  }
0x15e5   : > { %5877 = vmatprep.subr.bf16.mxu1 %v9162_v13  ;;  %v9214_v13 = vld [vmem:[#allocation58 + $0xd0] sm:$0xff]  }
0x15e8   : > { %5878 = vmatpush1.bf16.msra.mxu1 %v9160_v40  ;;  %v9216_v40 = vld [vmem:[#allocation58 + $0x90] sm:$0xff]  }
0x15e9   : > { %5879 = vmatprep.subr.bf16.mxu1 %v9168_v26  ;;  %v9218_v26 = vld [vmem:[#allocation58 + $0xc8] sm:$0xff]  }
0x15ec   : > { %5880 = vmatpush1.bf16.msra.mxu1 %v9166_v7  ;;  %v9220_v7 = vld [vmem:[#allocation58 + $0x88] sm:$0xff]  }
0x15ed   : > { %5881 = vmatprep.subr.bf16.mxu1 %v9174_v58  ;;  %v9222_v58 = vld [vmem:[#allocation58 + $0xc0] sm:$0xff]  }
0x15f0   : > { %5882 = vmatpush1.bf16.msra.mxu1 %v9172_v1  ;;  %v9224_v1 = vld [vmem:[#allocation58 + $0x80] sm:$0xff]  }
0x15f1   : > { %5883 = vmatprep.subr.bf16.mxu1 %v9180_v42  ;;  %v5655_v42 = vrot.slane %v5060_v21, %v11521_v27 }
0x15f4   : > { %5884 = vmatpush1.bf16.msra.mxu1 %v9178_v32  ;;  %v5659_v32 = vrot.slane %v5060_v21, %v11524_v29 }
0x15f5   : > { %5885 = vmatprep.subr.bf16.mxu1 %v9186_v44 }
0x15f8   : > { %5886 = vmatpush1.bf16.msra.mxu1 %v9184_v0 }
0x15f9   : > { %5887 = vmatprep.subr.bf16.mxu1 %v9192_v2 }
0x15fc   : > { %5888 = vmatpush1.bf16.msra.mxu1 %v9190_v60 }
0x169f   : > { %v5622_v28 = vpop.f32.mrf.mxu1 }
0x16a0   : > { %v5623_v45 = vadd.f32 %v7942_v23, %v5622_v28  ;;  %v9193_v28 = vld [vmem:[#allocation58 + $0x78] sm:$0xff]  }
0x16a1   : > { %v8490_v48 = vpop.f32.mrf.mxu1  ;;  %8248 = vmatprep.subr.bf16.mxu0 %v9193_v28  ;;  %v7983_v28 = vld [vmem:[#allocation60] ss:$0 sm:$0xff] }
0x16a2   : > { %v5628_v35 = vadd.f32 %v5623_v45, %v4992_v38  ;;  %v9194_v38 = vld [vmem:[#allocation58 + $0xf8] sm:$0xff]  }
0x16a3   : > { %v5625_v54 = vpop.f32.mrf.mxu1  ;;  %v9195_v45 = vld [vmem:[#allocation58 + $0x38] sm:$0xff]   ;;  %8270 = vmatprep.subr.bf16.mxu1 %v9194_v38 }
0x16a4   : > { %5629 = vadd.xlane.f32.xlu0 %v5628_v35  ;;  %v9196_v48 = vld [vmem:[#allocation58 + $0xb8] sm:$0xff]   ;;  %v9198_v54 = vld [vmem:[#allocation58 + $0xf0] sm:$0xff]  }
0x16a5   : > { %v8491_v37 = vpop.f32.mrf.mxu1 }
0x16a6   : > { %v9199_v37 = vld [vmem:[#allocation58 + $0x30] sm:$0xff]  }
0x172d   : > { %v5630_v52 = vpop.xlane.xlu0 %5629 }
0x172e   : > { %v5631_v46 = vmul.f32 0.0078125, %v5630_v52  ;;  %v9208_v52 = vld [vmem:[#allocation58 + $0xa0] sm:$0xff]  }
0x1730   : > { %v12063_v5 = vsub.f32 %v5628_v35, %v5631_v46  ;;  %v9197_v35 = vld [vmem:[#allocation58 + $0x70] sm:$0xff]   ;;  %v9209_v46 = vld [vmem:[#allocation58 + $0x58] sm:$0xff]  }
0x1732   : > { %v5633_v30 = vmul.f32 %v12063_v5, %v12063_v5 }
0x1734   : > { %5634 = vadd.xlane.f32.xlu1 %v5633_v30  ;;  %v9211_v30 = vld [vmem:[#allocation58 + $0x18] sm:$0xff]  }
0x1738   : > { %4970 = vadd.xlane.f32.xlu1 %v4969_v43 }
0x17bd   : > { %v5635_v14 = vpop.xlane.xlu1 %5634 }
0x17be   : > { %v5636_v12 = vmul.f32 0.0078125, %v5635_v14 }
0x17c0   : > { %v5637_v51 = vadd.f32 1e-05, %v5636_v12 }
0x17c1   : > { %v4971_v17 = vpop.xlane.xlu1 %4970 }
0x17c2   : > { %9443 = vrsqrt.f32 %v5637_v51  ;;  %v4972_v57 = vmul.f32 0.0078125, %v4971_v17 }
0x17c4   : > { %v12069_v56 = vsub.f32 %v4969_v43, %v4972_v57  ;;  %v9212_v43 = vld [vmem:[#allocation58 + $0x98] sm:$0xff]  }
0x17c6   : > { %v4974_v33 = vmul.f32 %v12069_v56, %v12069_v56 }
0x17c8   : > { %4975 = vadd.xlane.f32.xlu1 %v4974_v33 }
0x17cf   : > { %v9444_v8 = vpop.eup %9443 }
0x17d0   : > { %v5639_v61 = vmul.f32 %v9444_v8, %v12063_v5  ;;  %v9210_v5 = vld [vmem:[#allocation58 + $0xd8] sm:$0xff]  }
0x17d2   : > { %v5644_v16 = vmul.f32 %v5643_v6, %v5639_v61 }
0x17d4   : > { %v12076_v10 = vadd.f32 %v5648_v9, %v5644_v16 }
0x17d6   : > { %v5650_v23 = vpack.c.bf16 %v12076_v10, %v12076_v10 }
0x17d8   : > { %5865 = vmatmul.mubr.bf16.vlgmr.msra.gmra.mxu0 %v5650_v23  ;;  %5906 = vmatmul.mubr.bf16.vlgmr.msra.gmra.mxu1 %v5650_v23 }
0x17d9   : > { %8249 = vmatpush3.bf16.msra.mxu0 %v9195_v45  ;;  %8271 = vmatpush3.bf16.msra.mxu1 %v9196_v48 }
0x17da   : > { %8250 = vmatprep.subr.bf16.mxu0 %v9197_v35  ;;  %8272 = vmatprep.subr.bf16.mxu1 %v9198_v54 }
0x17dd   : > { %8251 = vmatpush3.bf16.msra.mxu0 %v9199_v37  ;;  %8273 = vmatpush3.bf16.msra.mxu1 %v9200_v41 }
0x17de   : > { %8252 = vmatprep.subr.bf16.mxu0 %v9201_v49  ;;  %8274 = vmatprep.subr.bf16.mxu1 %v9202_v19 }
0x17e1   : > { %8253 = vmatpush3.bf16.msra.mxu0 %v9203_v50  ;;  %8275 = vmatpush3.bf16.msra.mxu1 %v9204_v25 }
0x17e2   : > { %8254 = vmatprep.subr.bf16.mxu0 %v9205_v24  ;;  %8276 = vmatprep.subr.bf16.mxu1 %v9206_v36 }
0x17e5   : > { %8255 = vmatpush3.bf16.msra.mxu0 %v9207_v18  ;;  %8277 = vmatpush3.bf16.msra.mxu1 %v9208_v52 }
0x17e6   : > { %8256 = vmatprep.subr.bf16.mxu0 %v9209_v46  ;;  %8278 = vmatprep.subr.bf16.mxu1 %v9210_v5  ;;  %v9227_v46 = vld [vmem:[#allocation63 + $0x74] ss:$8 sps:$4 sm:$0xff]   ;;  %v9225_v5 = vld [vmem:[#allocation63 + $0x70] ss:$8 sps:$4 sm:$0xff]  }
0x17e9   : > { %8257 = vmatpush3.bf16.msra.mxu0 %v9211_v30  ;;  %8279 = vmatpush3.bf16.msra.mxu1 %v9212_v43  ;;  %v9230_v30 = vld [vmem:[#allocation63 + $0x64] ss:$8 sps:$4 sm:$0xff]   ;;  %v9228_v43 = vld [vmem:[#allocation63 + $0x60] ss:$8 sps:$4 sm:$0xff]  }
0x17ea   : > { %8258 = vmatprep.subr.bf16.mxu0 %v9213_v4  ;;  %8280 = vmatprep.subr.bf16.mxu1 %v9214_v13  ;;  %v9233_v4 = vld [vmem:[#allocation63 + $0x54] ss:$8 sps:$4 sm:$0xff]   ;;  %v9231_v13 = vld [vmem:[#allocation63 + $0x50] ss:$8 sps:$4 sm:$0xff]  }
0x17ed   : > { %8259 = vmatpush3.bf16.msra.mxu0 %v9215_v59  ;;  %8281 = vmatpush3.bf16.msra.mxu1 %v9216_v40  ;;  %v9236_v59 = vld [vmem:[#allocation63 + $0x44] ss:$8 sps:$4 sm:$0xff]   ;;  %v9237_v40 = vld [vmem:[#allocation63 + $0x30] ss:$8 sps:$4 sm:$0xff]  }
0x17ee   : > { %8260 = vmatprep.subr.bf16.mxu0 %v9217_v11  ;;  %8282 = vmatprep.subr.bf16.mxu1 %v9218_v26  ;;  %v9239_v11 = vld [vmem:[#allocation63 + $0x34] ss:$8 sps:$4 sm:$0xff]   ;;  %v9242_v26 = vld [vmem:[#allocation63 + $0x24] ss:$8 sps:$4 sm:$0xff]  }
0x17f1   : > { %8261 = vmatpush3.bf16.msra.mxu0 %v9219_v15  ;;  %8283 = vmatpush3.bf16.msra.mxu1 %v9220_v7  ;;  %v9240_v15 = vld [vmem:[#allocation63 + $0x20] ss:$8 sps:$4 sm:$0xff]   ;;  %v9245_v7 = vld [vmem:[#allocation63 + $0x14] ss:$8 sps:$4 sm:$0xff]  }
0x17f2   : > { %8262 = vmatprep.subr.bf16.mxu0 %v9221_v22  ;;  %8284 = vmatprep.subr.bf16.mxu1 %v9222_v58  ;;  %v9243_v22 = vld [vmem:[#allocation63 + $0x10] ss:$8 sps:$4 sm:$0xff]   ;;  %v9248_v58 = vld [vmem:[#allocation63 + $0x4] ss:$8 sps:$4 sm:$0xff]  }
0x17f5   : > { %8263 = vmatpush3.bf16.msra.mxu0 %v9223_v53  ;;  %8285 = vmatpush3.bf16.msra.mxu1 %v9224_v1  ;;  %v9246_v53 = vld [vmem:[#allocation63] ss:$8 sps:$4 sm:$0xff]  }
0x17f6   : > { %6372 = vmatprep.subr.bf16.mxu0 %v9227_v46  ;;  %v9251_v1 = vld [vmem:[#allocation66 + $0x74] ss:$8 sps:$4 sm:$0xff]   ;;  %v9267_v46 = vld [vmem:[#allocation66 + $0x10] ss:$8 sps:$4 sm:$0xff]  }
0x1898   : > { %v5866_v44 = vpop.f32.mrf.mxu0  ;;  %v5907_v63 = vpop.f32.mrf.mxu1 }
0x1899   : > { %v5867_v0 = vadd.f32 %v5866_v44, %v5655_v42  ;;  %v5908_v31 = vadd.f32 %v5907_v63, %v5663_v39  ;;  %v5126_v63 = vld [vmem:[#allocation61] sm:$0x3] }
0x189a   : > { %v5868_v55 = vpop.f32.mrf.mxu0  ;;  %v5909_v60 = vpop.f32.mrf.mxu1 }
0x189b   : > { %v5869_v2 = vadd.f32 %v5868_v55, %v5659_v32  ;;  %v5910_v14 = vadd.f32 %v5909_v60, %v5667_v47  ;;  %v5914_v12 = vmax.f32 %v5867_v0, 0.0  ;;  %v5916_v51 = vmax.f32 %v5908_v31, 0.0  ;;  %v4976_v32 = vpop.xlane.xlu1 %4975 }
0x189c   : > { %v5870_v17 = vpop.f32.mrf.mxu0  ;;  %v5911_v57 = vpop.f32.mrf.mxu1  ;;  %v4977_v47 = vmul.f32 0.0078125, %v4976_v32  ;;  %v6215_v0 = vrot.slane %v5126_v63, %v11521_v27  ;;  %v6220_v60 = vrot.slane %v5126_v63, %v11524_v29  ;;  %v9287_v32 = vld [vmem:[%s12382_s14 + $0x40] sm:$0xff]   ;;  %v6238_v63 = vld [vmem:[#allocation64] sm:$0x3] }
0x189d   : > { %v5915_v33 = vmax.f32 %v5869_v2, 0.0  ;;  %v5917_v62 = vmax.f32 %v5910_v14, 0.0  ;;  %v5918_v9 = vpack.c.bf16 %v5914_v12, %v5914_v12  ;;  %v5920_v20 = vpack.c.bf16 %v5916_v51, %v5916_v51  ;;  %v3886_v57 = vld [vmem:[#allocation43] sm:$0x3] }
0x189e   : > { %v5871_v6 = vpop.f32.mrf.mxu0  ;;  %v5912_v34 = vpop.f32.mrf.mxu1  ;;  %v4978_v44 = vadd.f32 1e-05, %v4977_v47  ;;  %v9288_v47 = vld [vmem:[%s12382_s14] sm:$0xff]  }
0x189f   : > { %v5919_v8 = vpack.c.bf16 %v5915_v33, %v5915_v33  ;;  %v5921_v61 = vpack.c.bf16 %v5917_v62, %v5917_v62  ;;  %v4984_v62 = vrot.slane %v3886_v57, %v11521_v27 }
0x18a1   : > { %6152 = vmatprep.mubr.bf16.mxu0 %v5919_v8  ;;  %6192 = vmatprep.mubr.bf16.mxu1 %v5921_v61 }
0x18a2   : > { %6153 = vmatmul.mubr.bf16.vlgmr.msra.gmra.mxu0 %v5918_v9  ;;  %6193 = vmatmul.mubr.bf16.vlgmr.msra.gmra.mxu1 %v5920_v20  ;;  %v4989_v20 = vrot.slane %v3886_v57, %v11524_v29 }
0x18a3   : > { %6404 = vmatprep.mubr.bf16.mxu0 %v10761_v3  ;;  %6373 = vmatpush1.bf16.msra.mxu0 %v9225_v5  ;;  %v9272_v5 = vld [vmem:[#allocation66 + $0x4] ss:$8 sps:$4 sm:$0xff]  }
0x18a4   : > { %6374 = vmatprep.subr.bf16.mxu0 %v9230_v30 }
0x18a7   : > { %6375 = vmatpush1.bf16.msra.mxu0 %v9228_v43  ;;  %v9270_v43 = vld [vmem:[#allocation66] ss:$8 sps:$4 sm:$0xff]  }
0x18a8   : > { %6376 = vmatprep.subr.bf16.mxu0 %v9233_v4 }
0x18ab   : > { %6377 = vmatpush1.bf16.msra.mxu0 %v9231_v13 }
0x18ac   : > { %6378 = vmatprep.subr.bf16.mxu0 %v9236_v59  ;;  %v9273_v59 = vld [vmem:[%s12382_s14 + $0x78] sm:$0xff]  }
0x18ad   : > { %8292 = vmatprep.subr.bf16.mxu1 %v9273_v59 }
0x1962   : > { %v8264_v16 = vpop.f32.mrf.mxu0  ;;  %v8286_v23 = vpop.f32.mrf.mxu1 }
0x1964   : > { %v8265_v38 = vpop.f32.mrf.mxu0  ;;  %v8287_v45 = vpop.f32.mrf.mxu1 }
0x1965   : > { %v8266_v48 = vadd.f32 %v8265_v38, %v8264_v16  ;;  %v8288_v41 = vadd.f32 %v8287_v45, %v8286_v23  ;;  %v9249_v23 = vld [vmem:[#allocation66 + $0x70] ss:$8 sps:$4 sm:$0xff]   ;;  %v9254_v38 = vld [vmem:[#allocation66 + $0x64] ss:$8 sps:$4 sm:$0xff]  }
0x1966   : > { %v8267_v35 = vpop.f32.mrf.mxu0  ;;  %v8289_v54 = vpop.f32.mrf.mxu1 }
0x1967   : > { %v6155_v37 = vadd.f32 %v8266_v48, %v7983_v28  ;;  %v9252_v48 = vld [vmem:[#allocation66 + $0x60] ss:$8 sps:$4 sm:$0xff]   ;;  %v9257_v35 = vld [vmem:[#allocation66 + $0x54] ss:$8 sps:$4 sm:$0xff]   ;;  %v9255_v54 = vld [vmem:[#allocation66 + $0x50] ss:$8 sps:$4 sm:$0xff]  }
0x1968   : > { %v8268_v49 = vpop.f32.mrf.mxu0  ;;  %v8290_v19 = vpop.f32.mrf.mxu1 }
0x1969   : > { %v6195_v50 = vadd.f32 %v8288_v41, %v6155_v37  ;;  %v9260_v37 = vld [vmem:[#allocation66 + $0x44] ss:$8 sps:$4 sm:$0xff]   ;;  %v9258_v49 = vld [vmem:[#allocation66 + $0x40] ss:$8 sps:$4 sm:$0xff]   ;;  %v9263_v19 = vld [vmem:[#allocation66 + $0x34] ss:$8 sps:$4 sm:$0xff]  }
0x196b   : > { %v6200_v25 = vadd.f32 %v6195_v50, %v12076_v10  ;;  %v9234_v10 = vld [vmem:[#allocation63 + $0x40] ss:$8 sps:$4 sm:$0xff]  }
0x196c   : > { %6379 = vmatpush1.bf16.msra.mxu0 %v9234_v10  ;;  %v9274_v10 = vld [vmem:[%s12382_s14 + $0x38] sm:$0xff]  }
0x196d   : > { %6201 = vadd.xlane.f32.xlu0 %v6200_v25  ;;  %6380 = vmatprep.subr.bf16.mxu0 %v9239_v11  ;;  %v9276_v11 = vld [vmem:[%s12382_s14 + $0x30] sm:$0xff]  }
0x196e   : > { %8293 = vmatpush3.bf16.msra.mxu1 %v9274_v10 }
0x1970   : > { %6381 = vmatpush1.bf16.msra.mxu0 %v9237_v40  ;;  %v9275_v40 = vld [vmem:[%s12382_s14 + $0x70] sm:$0xff]  }
0x1971   : > { %6382 = vmatprep.subr.bf16.mxu0 %v9242_v26  ;;  %8294 = vmatprep.subr.bf16.mxu1 %v9275_v40  ;;  %v9277_v26 = vld [vmem:[%s12382_s14 + $0x68] sm:$0xff]  }
0x1972   : > { %8295 = vmatpush3.bf16.msra.mxu1 %v9276_v11 }
0x1973   : > { %8296 = vmatprep.subr.bf16.mxu1 %v9277_v26 }
0x1974   : > { %6383 = vmatpush1.bf16.msra.mxu0 %v9240_v15  ;;  %v9278_v15 = vld [vmem:[%s12382_s14 + $0x28] sm:$0xff]  }
0x1975   : > { %6384 = vmatprep.subr.bf16.mxu0 %v9245_v7  ;;  %v9279_v7 = vld [vmem:[%s12382_s14 + $0x60] sm:$0xff]  }
0x1976   : > { %8297 = vmatpush3.bf16.msra.mxu1 %v9278_v15 }
0x1977   : > { %8298 = vmatprep.subr.bf16.mxu1 %v9279_v7 }
0x1978   : > { %6385 = vmatpush1.bf16.msra.mxu0 %v9243_v22  ;;  %v9280_v22 = vld [vmem:[%s12382_s14 + $0x20] sm:$0xff]  }
0x1979   : > { %6386 = vmatprep.subr.bf16.mxu0 %v9248_v58  ;;  %v9281_v58 = vld [vmem:[%s12382_s14 + $0x58] sm:$0xff]  }
0x197a   : > { %8299 = vmatpush3.bf16.msra.mxu1 %v9280_v22 }
0x197b   : > { %8300 = vmatprep.subr.bf16.mxu1 %v9281_v58 }
0x197c   : > { %6387 = vmatpush1.bf16.msra.mxu0 %v9246_v53  ;;  %v9282_v53 = vld [vmem:[%s12382_s14 + $0x18] sm:$0xff]  }
0x197d   : > { %6782 = vmatprep.subr.bf16.mxu0 %v9251_v1  ;;  %v9283_v1 = vld [vmem:[%s12382_s14 + $0x50] sm:$0xff]  }
0x197e   : > { %8301 = vmatpush3.bf16.msra.mxu1 %v9282_v53 }
0x197f   : > { %8302 = vmatprep.subr.bf16.mxu1 %v9283_v1 }
0x19f6   : > { %v6202_v24 = vpop.xlane.xlu0 %6201 }
0x19f7   : > { %v6203_v36 = vmul.f32 0.0078125, %v6202_v24  ;;  %v9266_v24 = vld [vmem:[#allocation66 + $0x24] ss:$8 sps:$4 sm:$0xff]  }
0x19f9   : > { %v6204_v18 = vsub.f32 %v6200_v25, %v6203_v36  ;;  %v9261_v25 = vld [vmem:[#allocation66 + $0x30] ss:$8 sps:$4 sm:$0xff]   ;;  %v9264_v36 = vld [vmem:[#allocation66 + $0x20] ss:$8 sps:$4 sm:$0xff]  }
0x19fb   : > { %v6205_v52 = vmul.f32 %v6204_v18, %v6204_v18 }
0x19fd   : > { %6206 = vadd.xlane.f32.xlu0 %v6205_v52 }
0x1a86   : > { %v6207_v21 = vpop.xlane.xlu0 %6206 }
0x1a87   : > { %v6208_v42 = vmul.f32 0.0078125, %v6207_v21  ;;  %v9284_v21 = vld [vmem:[%s12382_s14 + $0x10] sm:$0xff]  }
0x1a88   : > { %8303 = vmatpush3.bf16.msra.mxu1 %v9284_v21 }
0x1a89   : > { %v6209_v39 = vadd.f32 1e-05, %v6208_v42  ;;  %v9285_v42 = vld [vmem:[%s12382_s14 + $0x48] sm:$0xff]  }
0x1a8a   : > { %8304 = vmatprep.subr.bf16.mxu1 %v9285_v42 }
0x1a8b   : > { %9445 = vrsqrt.f32 %v6209_v39  ;;  %v9286_v39 = vld [vmem:[%s12382_s14 + $0x8] sm:$0xff]  }
0x1a8c   : > { %9447 = vrsqrt.f32 %v4978_v44  ;;  %8305 = vmatpush3.bf16.msra.mxu1 %v9286_v39  ;;  %v9289_v44 = vld [vmem:[%s11016_s13 + $0x78] sm:$0xff]  }
0x1a8d   : > { %8306 = vmatprep.subr.bf16.mxu1 %v9287_v32 }
0x1a90   : > { %8307 = vmatpush3.bf16.msra.mxu1 %v9288_v47 }
0x1a91   : > { %8314 = vmatprep.subr.bf16.mxu1 %v9289_v44 }
0x1a98   : > { %v9446_v31 = vpop.eup %9445 }
0x1a99   : > { %v6211_v55 = vmul.f32 %v9446_v31, %v6204_v18  ;;  %v9448_v17 = vpop.eup %9447  ;;  %v9269_v18 = vld [vmem:[#allocation66 + $0x14] ss:$8 sps:$4 sm:$0xff]   ;;  %v6369_v31 = vrot.slane %v6238_v63, %v11524_v29 }
0x1a9a   : > { %v4980_v6 = vmul.f32 %v9448_v17, %v12069_v56 }
0x1a9b   : > { %v6216_v2 = vmul.f32 %v6215_v0, %v6211_v55  ;;  %v6365_v0 = vrot.slane %v6238_v63, %v11521_v27 }
0x1a9c   : > { %v4985_v61 = vmul.f32 %v4984_v62, %v4980_v6 }
0x1a9d   : > { %v12088_v14 = vadd.f32 %v6220_v60, %v6216_v2 }
0x1a9e   : > { %v12095_v45 = vadd.f32 %v4989_v20, %v4985_v61 }
0x1a9f   : > { %v6272_v12 = vrot.slane %v12088_v14, 4 }
0x1aa0   : > { %v6683_v56 = vrot.slane %v12095_v45, 4 }
0x1aa1   : > { %v6273_v51 = vadd.f32 %v6272_v12, %v12088_v14 }
0x1aa2   : > { %v6684_v41 = vadd.f32 %v6683_v56, %v12095_v45  ;;  %v6649_v56 = vld [vmem:[#allocation67] sm:$0x3] }
0x1aa3   : > { %v6274_v33 = vrot.slane %v6273_v51, 2 }
0x1aa4   : > { %v6685_v50 = vrot.slane %v6684_v41, 2 }
0x1aa5   : > { %v6275_v34 = vadd.f32 %v6274_v33, %v6273_v51 }
0x1aa7   : > { %v6276_v8 = vrot.slane %v6275_v34, 1 }
0x1aa9   : > { %v6277_v9 = vadd.f32 %v6276_v8, %v6275_v34 }
0x1aab   : > { %v6279_v16 = vmul.f32 0.125, %v6277_v9 }
0x1aad   : > { %v6280_v28 = vpack.c.bf16 %v6279_v16, %v6279_v16 }
0x1aaf   : > { %6405 = vmatmul.mubr.bf16.vlgmr.msra.gmra.mxu0 %v6280_v28 }
0x1ab0   : > { %6783 = vmatpush1.bf16.msra.mxu0 %v9249_v23  ;;  %6814 = vmatprep.mubr.bf16.mxu0 %v10761_v3  ;;  %v6686_v3 = vadd.f32 %v6685_v50, %v6684_v41  ;;  %v6775_v50 = vrot.slane %v6649_v56, %v11521_v27 }
0x1ab1   : > { %6784 = vmatprep.subr.bf16.mxu0 %v9254_v38 }
0x1ab2   : > { %v6687_v52 = vrot.slane %v6686_v3, 1 }
0x1ab4   : > { %6785 = vmatpush1.bf16.msra.mxu0 %v9252_v48  ;;  %v6688_v30 = vadd.f32 %v6687_v52, %v6686_v3  ;;  %v6779_v3 = vrot.slane %v6649_v56, %v11524_v29 }
0x1ab5   : > { %6786 = vmatprep.subr.bf16.mxu0 %v9257_v35 }
0x1ab6   : > { %v6689_v4 = vmul.f32 0.125, %v6688_v30 }
0x1ab8   : > { %6787 = vmatpush1.bf16.msra.mxu0 %v9255_v54  ;;  %v6690_v13 = vpack.c.bf16 %v6689_v4, %v6689_v4 }
0x1ab9   : > { %6788 = vmatprep.subr.bf16.mxu0 %v9260_v37 }
0x1abc   : > { %6789 = vmatpush1.bf16.msra.mxu0 %v9258_v49 }
0x1abd   : > { %6790 = vmatprep.subr.bf16.mxu0 %v9263_v19 }
0x1ac0   : > { %6791 = vmatpush1.bf16.msra.mxu0 %v9261_v25 }
0x1ac1   : > { %6792 = vmatprep.subr.bf16.mxu0 %v9266_v24 }
0x1ac4   : > { %6793 = vmatpush1.bf16.msra.mxu0 %v9264_v36 }
0x1ac5   : > { %6794 = vmatprep.subr.bf16.mxu0 %v9269_v18 }
0x1ac8   : > { %6795 = vmatpush1.bf16.msra.mxu0 %v9267_v46 }
0x1ac9   : > { %6796 = vmatprep.subr.bf16.mxu0 %v9272_v5 }
0x1acc   : > { %6797 = vmatpush1.bf16.msra.mxu0 %v9270_v43 }
0x1acf   : > { %6815 = vmatmul.mubr.bf16.vlgmr.msra.gmra.mxu0 %v6690_v13 }
0x1b6f   : > { %v6406_v55 = vpop.f32.mrf.mxu0 }
0x1b70   : > { %v12119_v60 = vadd.f32 %v6406_v55, %v6365_v0 }
0x1b71   : > { %v6408_v2 = vpop.f32.mrf.mxu0 }
0x1b72   : > { %v12122_v12 = vmul.f32 0.70710677, %v12119_v60  ;;  %v12124_v51 = vadd.f32 %v6408_v2, %v6369_v31  ;;  %v10763_v31 = vmov -1.0  }
0x1b73   : > { %v6410_v17 = vpop.f32.mrf.mxu0 }
0x1b74   : > { %v6421_v57 = vand.u32 2147483647, %v12122_v12  ;;  %v12128_v33 = vmul.f32 0.70710677, %v12124_v51  ;;  %vm6417_vm9 = vcmp.ge.f32.partialorder %v12122_v12, 0.0 }
0x1b75   : > { %v6411_v62 = vpop.f32.mrf.mxu0  ;;  %v6419_v55 = vsel %vm6417_vm9, 1.0, %v10763_v31 }
0x1b76   : > { %v6423_v6 = vmul.f32 0.3275911, %v6421_v57  ;;  %v6422_v34 = vand.u32 2147483647, %v12128_v33  ;;  %v6449_v20 = vsub.f32 0.0, %v6421_v57  ;;  %vm6418_vm10 = vcmp.ge.f32.partialorder %v12128_v33, 0.0 }
0x1b78   : > { %v6425_v8 = vadd.f32 1.0, %v6423_v6  ;;  %v6424_v61 = vmul.f32 0.3275911, %v6422_v34  ;;  %v6450_v16 = vsub.f32 0.0, %v6422_v34  ;;  %v6451_v23 = vmul.f32 %v6449_v20, %v6421_v57 }
0x1b79   : > { %v6420_v6 = vsel %vm6418_vm10, 1.0, %v10763_v31 }
0x1b7a   : > { %9449 = vrcp.f32 %v6425_v8  ;;  %v6426_v9 = vadd.f32 1.0, %v6424_v61  ;;  %v6452_v38 = vmul.f32 %v6450_v16, %v6422_v34  ;;  %v6453_v35 = vmul.f32 1.442695, %v6451_v23 }
0x1b7b   : > { %v6413_v8 = vmul.f32 0.5, %v12119_v60  ;;  %v6414_v61 = vmul.f32 0.5, %v12124_v51 }
0x1b7c   : > { %9451 = vrcp.f32 %v6426_v9  ;;  %v6455_v49 = vmul.f32 1.442695, %v6452_v38 }
0x1b7d   : > { %9453 = vpow2.f32 %v6453_v35  ;;  %v9290_v35 = vld [vmem:[%s11016_s13 + $0x38] sm:$0xff]  }
0x1b7e   : > { %9455 = vpow2.f32 %v6455_v49 }
0x1b87   : > { %v9450_v28 = vpop.eup %9449 }
0x1b88   : > { %v6431_v48 = vmul.f32 1.0614054, %v9450_v28 }
0x1b89   : > { %v9452_v54 = vpop.eup %9451 }
0x1b8a   : > { %v6433_v37 = vadd.f32 -1.4531521, %v6431_v48  ;;  %v6432_v41 = vmul.f32 1.0614054, %v9452_v54  ;;  %v9454_v21 = vpop.eup %9453 }
0x1b8b   : > { %v9456_v63 = vpop.eup %9455 }
0x1b8c   : > { %v6435_v19 = vmul.f32 %v9450_v28, %v6433_v37  ;;  %v6434_v25 = vadd.f32 -1.4531521, %v6432_v41  ;;  %v9291_v41 = vld [vmem:[%s11016_s13 + $0x70] sm:$0xff]  }
0x1b8e   : > { %v6437_v24 = vadd.f32 1.4214138, %v6435_v19  ;;  %v6436_v36 = vmul.f32 %v9452_v54, %v6434_v25 }
0x1b8f   : > { %v6816_v18 = vpop.f32.mrf.mxu0 }
0x1b90   : > { %v6439_v52 = vmul.f32 %v9450_v28, %v6437_v24  ;;  %v12133_v46 = vadd.f32 %v6816_v18, %v6775_v50  ;;  %v6438_v5 = vadd.f32 1.4214138, %v6436_v36  ;;  %v9292_v50 = vld [vmem:[%s11016_s13 + $0x30] sm:$0xff]   ;;  %v9293_v24 = vld [vmem:[%s11016_s13 + $0x68] sm:$0xff]  }
0x1b91   : > { %v6818_v30 = vpop.f32.mrf.mxu0 }
0x1b92   : > { %v6441_v43 = vadd.f32 -0.28449672, %v6439_v52  ;;  %v12136_v4 = vmul.f32 0.70710677, %v12133_v46  ;;  %v12138_v13 = vadd.f32 %v6818_v30, %v6779_v3  ;;  %v6440_v59 = vmul.f32 %v9452_v54, %v6438_v5  ;;  %v9294_v52 = vld [vmem:[%s11016_s13 + $0x28] sm:$0xff]   ;;  %v9295_v30 = vld [vmem:[%s11016_s13 + $0x60] sm:$0xff]  }
0x1b93   : > { %v6820_v27 = vpop.f32.mrf.mxu0 }
0x1b94   : > { %v6443_v10 = vmul.f32 %v9450_v28, %v6441_v43  ;;  %v6831_v40 = vand.u32 2147483647, %v12136_v4  ;;  %v6442_v29 = vadd.f32 -0.28449672, %v6440_v59  ;;  %v12142_v11 = vmul.f32 0.70710677, %v12138_v13 }
0x1b95   : > { %v6821_v26 = vpop.f32.mrf.mxu0  ;;  %vm6827_vm11 = vcmp.ge.f32.partialorder %v12136_v4, 0.0 }
0x1b96   : > { %v6445_v15 = vadd.f32 0.2548296, %v6443_v10  ;;  %v6833_v7 = vmul.f32 0.3275911, %v6831_v40  ;;  %v6444_v22 = vmul.f32 %v9452_v54, %v6442_v29  ;;  %v6832_v58 = vand.u32 2147483647, %v12142_v11 }
0x1b97   : > { %v6859_v12 = vsub.f32 0.0, %v6831_v40  ;;  %v9296_v10 = vld [vmem:[%s11016_s13 + $0x20] sm:$0xff]   ;;  %v9297_v29 = vld [vmem:[%s11016_s13 + $0x58] sm:$0xff]   ;;  %vm6828_vm12 = vcmp.ge.f32.partialorder %v12142_v11, 0.0 }
0x1b98   : > { %v6447_v53 = vmul.f32 %v9450_v28, %v6445_v15  ;;  %v6835_v1 = vadd.f32 1.0, %v6833_v7  ;;  %v6446_v42 = vadd.f32 0.2548296, %v6444_v22  ;;  %v6834_v39 = vmul.f32 0.3275911, %v6832_v58  ;;  %v9298_v22 = vld [vmem:[%s11016_s13 + $0x18] sm:$0xff]  }
0x1b99   : > { %v6860_v9 = vsub.f32 0.0, %v6832_v58  ;;  %v6861_v23 = vmul.f32 %v6859_v12, %v6831_v40 }
0x1b9a   : > { %v6457_v32 = vmul.f32 %v9454_v21, %v6447_v53  ;;  %9457 = vrcp.f32 %v6835_v1  ;;  %v6448_v47 = vmul.f32 %v9452_v54, %v6446_v42  ;;  %v6836_v44 = vadd.f32 1.0, %v6834_v39  ;;  %v9299_v53 = vld [vmem:[%s11016_s13 + $0x50] sm:$0xff]  }
0x1b9b   : > { %v6862_v38 = vmul.f32 %v6860_v9, %v6832_v58  ;;  %v6863_v37 = vmul.f32 1.442695, %v6861_v23 }
0x1b9c   : > { %v6459_v0 = vsub.f32 1.0, %v6457_v32  ;;  %v6458_v2 = vmul.f32 %v9456_v63, %v6448_v47  ;;  %9459 = vrcp.f32 %v6836_v44  ;;  %v9300_v32 = vld [vmem:[%s11016_s13 + $0x10] sm:$0xff]   ;;  %v9301_v63 = vld [vmem:[%s11016_s13 + $0x48] sm:$0xff]  }
0x1b9d   : > { %v6865_v19 = vmul.f32 1.442695, %v6862_v38  ;;  %9461 = vpow2.f32 %v6863_v37 }
0x1b9e   : > { %v6461_v17 = vmul.f32 %v6459_v0, %v6419_v55  ;;  %v6460_v57 = vsub.f32 1.0, %v6458_v2  ;;  %v6829_v0 = vsel %vm6827_vm11, 1.0, %v10763_v31 }
0x1b9f   : > { %9463 = vpow2.f32 %v6865_v19 }
0x1ba0   : > { %v6463_v62 = vadd.f32 1.0, %v6461_v17  ;;  %v6462_v34 = vmul.f32 %v6460_v57, %v6420_v6  ;;  %v9302_v57 = vld [vmem:[%s11016_s13 + $0x8] sm:$0xff]   ;;  %v9303_v6 = vld [vmem:[%s11016_s13 + $0x40] sm:$0xff]  }
0x1ba2   : > { %v6464_v20 = vadd.f32 1.0, %v6462_v34  ;;  %v6465_v16 = vmul.f32 %v6463_v62, %v6413_v8  ;;  %v6830_v62 = vsel %vm6828_vm12, 1.0, %v10763_v31  ;;  %v6823_v34 = vmul.f32 0.5, %v12133_v46 }
0x1ba3   : > { %v6824_v8 = vmul.f32 0.5, %v12138_v13 }
0x1ba4   : > { %v6466_v33 = vmul.f32 %v6464_v20, %v6414_v61  ;;  %v6467_v56 = vpack.c.bf16 %v6465_v16, %v6465_v16  ;;  %v9304_v61 = vld [vmem:[%s11016_s13] sm:$0xff]  }
0x1ba6   : > { %v6468_v48 = vpack.c.bf16 %v6466_v33, %v6466_v33 }
0x1ba7   : > { %v9458_v28 = vpop.eup %9457 }
0x1ba8   : > { %v6841_v54 = vmul.f32 1.0614054, %v9458_v28  ;;  %6597 = vmatprep.mubr.bf16.mxu1 %v6468_v48 }
0x1ba9   : > { %v9460_v49 = vpop.eup %9459  ;;  %6598 = vmatmul.mubr.bf16.vlgmr.msra.gmra.mxu1 %v6467_v56 }
0x1baa   : > { %v6843_v60 = vadd.f32 -1.4531521, %v6841_v54  ;;  %v6842_v51 = vmul.f32 1.0614054, %v9460_v49  ;;  %8315 = vmatpush3.bf16.msra.mxu1 %v9290_v35  ;;  %v9462_v1 = vpop.eup %9461 }
0x1bab   : > { %8316 = vmatprep.subr.bf16.mxu1 %v9291_v41 }
0x1bac   : > { %v6845_v25 = vmul.f32 %v9458_v28, %v6843_v60  ;;  %v6844_v3 = vadd.f32 -1.4531521, %v6842_v51  ;;  %v9464_v47 = vpop.eup %9463  ;;  %v6682_v51 = vld [vmem:[#allocation3] sm:$0x1] }
0x1bae   : > { %v6847_v36 = vadd.f32 1.4214138, %v6845_v25  ;;  %v6846_v18 = vmul.f32 %v9460_v49, %v6844_v3  ;;  %8317 = vmatpush3.bf16.msra.mxu1 %v9292_v50 }
0x1baf   : > { %8318 = vmatprep.subr.bf16.mxu1 %v9293_v24 }
0x1bb0   : > { %v6849_v5 = vmul.f32 %v9458_v28, %v6847_v36  ;;  %v6848_v43 = vadd.f32 1.4214138, %v6846_v18 }
0x1bb2   : > { %v6851_v59 = vadd.f32 -0.28449672, %v6849_v5  ;;  %v6850_v27 = vmul.f32 %v9460_v49, %v6848_v43  ;;  %8319 = vmatpush3.bf16.msra.mxu1 %v9294_v52 }
0x1bb3   : > { %8320 = vmatprep.subr.bf16.mxu1 %v9295_v30 }
0x1bb4   : > { %v6853_v40 = vmul.f32 %v9458_v28, %v6851_v59  ;;  %v6852_v26 = vadd.f32 -0.28449672, %v6850_v27 }
0x1bb6   : > { %v6855_v15 = vadd.f32 0.2548296, %v6853_v40  ;;  %v6854_v7 = vmul.f32 %v9460_v49, %v6852_v26  ;;  %8321 = vmatpush3.bf16.msra.mxu1 %v9296_v10 }
0x1bb7   : > { %8322 = vmatprep.subr.bf16.mxu1 %v9297_v29 }
0x1bb8   : > { %v6857_v58 = vmul.f32 %v9458_v28, %v6855_v15  ;;  %v6856_v21 = vadd.f32 0.2548296, %v6854_v7  ;;  %v6271_v28 = vld [vmem:[#allocation2] sm:$0x1] }
0x1bba   : > { %v6867_v42 = vmul.f32 %v9462_v1, %v6857_v58  ;;  %v6858_v39 = vmul.f32 %v9460_v49, %v6856_v21  ;;  %8323 = vmatpush3.bf16.msra.mxu1 %v9298_v22 }
0x1bbb   : > { %8324 = vmatprep.subr.bf16.mxu1 %v9299_v53 }
0x1bbc   : > { %v6869_v44 = vsub.f32 1.0, %v6867_v42  ;;  %v6868_v55 = vmul.f32 %v9464_v47, %v6858_v39 }
0x1bbe   : > { %v6871_v2 = vmul.f32 %v6869_v44, %v6829_v0  ;;  %v6870_v17 = vsub.f32 1.0, %v6868_v55  ;;  %8325 = vmatpush3.bf16.msra.mxu1 %v9300_v32 }
0x1bbf   : > { %8326 = vmatprep.subr.bf16.mxu1 %v9301_v63 }
0x1bc0   : > { %v6873_v4 = vadd.f32 1.0, %v6871_v2  ;;  %v6872_v12 = vmul.f32 %v6870_v17, %v6830_v62 }
0x1bc2   : > { %8327 = vmatpush3.bf16.msra.mxu1 %v9302_v57  ;;  %v6874_v9 = vadd.f32 1.0, %v6872_v12  ;;  %v6875_v20 = vmul.f32 %v6873_v4, %v6823_v34 }
0x1bc3   : > { %8328 = vmatprep.subr.bf16.mxu1 %v9303_v6 }
0x1bc4   : > { %v6876_v11 = vmul.f32 %v6874_v9, %v6824_v8  ;;  %v6877_v23 = vpack.c.bf16 %v6875_v20, %v6875_v20 }
0x1bc6   : > { %8329 = vmatpush3.bf16.msra.mxu1 %v9304_v61  ;;  %v6878_v16 = vpack.c.bf16 %v6876_v11, %v6876_v11 }
0x1bc8   : > { %7007 = vmatprep.mubr.bf16.mxu1 %v6878_v16 }
0x1bc9   : > { %7008 = vmatmul.mubr.bf16.vlgmr.msra.gmra.mxu1 %v6877_v23 }
0x1c69   : > { %v8308_v33 = vpop.f32.mrf.mxu1 }
0x1c6b   : > { %v8309_v38 = vpop.f32.mrf.mxu1 }
0x1c6c   : > { %v8310_v48 = vadd.f32 %v8309_v38, %v8308_v33 }
0x1c6d   : > { %v8311_v35 = vpop.f32.mrf.mxu1 }
0x1c6e   : > { %v6600_v56 = vadd.f32 %v8310_v48, %v6271_v28 }
0x1c6f   : > { %v8312_v46 = vpop.f32.mrf.mxu1 }
0x1c70   : > { %9465 = vtanh.f32 %v6600_v56 }
0x1c7d   : > { %v9466_v13 = vpop.eup %9465 }
0x1c7e   : > { %v6607_v54 = vmul.f32 0.70710677, %v9466_v13  ;;  %v6606_v44 = vmul.f32 0.5, %v9466_v13 }
0x1c80   : > { %v6610_v37 = vand.u32 2147483647, %v6607_v54  ;;  %vm6608_vm13 = vcmp.ge.f32.partialorder %v6607_v54, 0.0 }
0x1c81   : > { %v6609_v32 = vsel %vm6608_vm13, 1.0, %v10763_v31 }
0x1c82   : > { %v6611_v41 = vmul.f32 0.3275911, %v6610_v37  ;;  %v6624_v25 = vsub.f32 0.0, %v6610_v37 }
0x1c84   : > { %v6612_v49 = vadd.f32 1.0, %v6611_v41  ;;  %v6625_v18 = vmul.f32 %v6624_v25, %v6610_v37 }
0x1c86   : > { %9467 = vrcp.f32 %v6612_v49  ;;  %v6626_v30 = vmul.f32 1.442695, %v6625_v18 }
0x1c89   : > { %v8330_v60 = vpop.f32.mrf.mxu1 }
0x1c8b   : > { %v8331_v19 = vpop.f32.mrf.mxu1 }
0x1c8c   : > { %v8332_v50 = vadd.f32 %v8331_v19, %v8330_v60 }
0x1c8d   : > { %v8333_v24 = vpop.f32.mrf.mxu1 }
0x1c8e   : > { %v7010_v3 = vadd.f32 %v8332_v50, %v6682_v51 }
0x1c8f   : > { %v8334_v36 = vpop.f32.mrf.mxu1 }
0x1c90   : > { %9469 = vtanh.f32 %v7010_v3 }
0x1c91   : > { %9471 = vpow2.f32 %v6626_v30 }
0x1c93   : > { %v9468_v52 = vpop.eup %9467 }
0x1c94   : > { %v6615_v5 = vmul.f32 1.0614054, %v9468_v52 }
0x1c96   : > { %v6616_v43 = vadd.f32 -1.4531521, %v6615_v5 }
0x1c98   : > { %v6617_v59 = vmul.f32 %v9468_v52, %v6616_v43 }
0x1c9a   : > { %v6618_v27 = vadd.f32 1.4214138, %v6617_v59 }
0x1c9c   : > { %v6619_v10 = vmul.f32 %v9468_v52, %v6618_v27 }
0x1c9d   : > { %v9470_v40 = vpop.eup %9469 }
0x1c9e   : > { %v6620_v29 = vadd.f32 -0.28449672, %v6619_v10  ;;  %v7017_v26 = vmul.f32 0.70710677, %v9470_v40  ;;  %v9472_v21 = vpop.eup %9471  ;;  %v7016_v38 = vmul.f32 0.5, %v9470_v40 }
0x1ca0   : > { %v6621_v15 = vmul.f32 %v9468_v52, %v6620_v29  ;;  %v7020_v7 = vand.u32 2147483647, %v7017_v26  ;;  %vm7018_vm14 = vcmp.ge.f32.partialorder %v7017_v26, 0.0 }
0x1ca1   : > { %v7019_v33 = vsel %vm7018_vm14, 1.0, %v10763_v31 }
0x1ca2   : > { %v6622_v22 = vadd.f32 0.2548296, %v6621_v15  ;;  %v7021_v58 = vmul.f32 0.3275911, %v7020_v7  ;;  %v7034_v0 = vsub.f32 0.0, %v7020_v7 }
0x1ca4   : > { %v6623_v53 = vmul.f32 %v9468_v52, %v6622_v22  ;;  %v7022_v1 = vadd.f32 1.0, %v7021_v58  ;;  %v7035_v2 = vmul.f32 %v7034_v0, %v7020_v7 }
0x1ca6   : > { %v6628_v42 = vmul.f32 %v9472_v21, %v6623_v53  ;;  %9473 = vrcp.f32 %v7022_v1  ;;  %v7036_v4 = vmul.f32 1.442695, %v7035_v2 }
0x1ca8   : > { %v6629_v39 = vsub.f32 1.0, %v6628_v42  ;;  %9475 = vpow2.f32 %v7036_v4 }
0x1caa   : > { %v6630_v47 = vmul.f32 %v6629_v39, %v6609_v32 }
0x1cac   : > { %v6631_v63 = vadd.f32 1.0, %v6630_v47 }
0x1cae   : > { %v6632_v55 = vmul.f32 %v6631_v63, %v6606_v44 }
0x1cb0   : > { %8493 = vpush %v6632_v55 }
0x1cb3   : > { %v9474_v17 = vpop.eup %9473 }
0x1cb4   : > { %v7025_v57 = vmul.f32 1.0614054, %v9474_v17 }
0x1cb5   : > { %v9476_v11 = vpop.eup %9475 }
0x1cb6   : > { %v7026_v62 = vadd.f32 -1.4531521, %v7025_v57 }
0x1cb8   : > { %v7027_v6 = vmul.f32 %v9474_v17, %v7026_v62 }
0x1cba   : > { %v7028_v12 = vadd.f32 1.4214138, %v7027_v6 }
0x1cbc   : > { %v7029_v34 = vmul.f32 %v9474_v17, %v7028_v12 }
0x1cbe   : > { %v7030_v8 = vadd.f32 -0.28449672, %v7029_v34 }
0x1cc0   : > { %v7031_v61 = vmul.f32 %v9474_v17, %v7030_v8 }
0x1cc2   : > { %v7032_v9 = vadd.f32 0.2548296, %v7031_v61 }
0x1cc4   : > { %v7033_v20 = vmul.f32 %v9474_v17, %v7032_v9 }
0x1cc6   : > { %v7038_v16 = vmul.f32 %v9476_v11, %v7033_v20 }
0x1cc8   : > { %v7039_v23 = vsub.f32 1.0, %v7038_v16 }
0x1cca   : > { %v7040_v28 = vmul.f32 %v7039_v23, %v7019_v33 }
0x1ccc   : > { %v7041_v48 = vadd.f32 1.0, %v7040_v28 }
0x1cce   : > { %v7042_v35 = vmul.f32 %v7041_v48, %v7016_v38 }
0x1cd0   : > { %8495 = vpush %v7042_v35 }
0x1ce1   : > { %s8494_s15 = spop %8493 }
0x1ce2   : > { %v7045_v56 = vstv %s8494_s15 }
0x1ce3   : > { %v7047_v13 = vmul.f32 %v7045_v56, %v12088_v14 }
0x1d01   : > { %s8496_s3 = spop %8495 }
0x1d02   : > { %v7050_v46 = vstv %s8496_s3 }
0x1d03   : > { %v7052_v54 = vmul.f32 %v7050_v46, %v12095_v45 }
0x1d05   : > { %v7053_v37 = vadd.f32 %v7052_v54, %v7047_v13 }
0x1d07   : > { %7054 = vadd.xlane.f32.xlu0 %v7053_v37 }
0x1d90   : > { %v7055_v41 = vpop.xlane.xlu0 %7054 }
0x1d91   : > { %v7056_v31 = vmul.f32 0.0078125, %v7055_v41 }
0x1d93   : > { %v7057_v49 = vsub.f32 %v7053_v37, %v7056_v31 }
0x1d95   : > { %v7058_v60 = vmul.f32 %v7057_v49, %v7057_v49 }
0x1d97   : > { %7059 = vadd.xlane.f32.xlu1 %v7058_v60 }
0x1e20   : > { %v7060_v51 = vpop.xlane.xlu1 %7059 }
0x1e21   : > { %v7061_v19 = vmul.f32 0.0078125, %v7060_v51 }
0x1e23   : > { %v7062_v50 = vadd.f32 1e-05, %v7061_v19 }
0x1e25   : > { %9477 = vrsqrt.f32 %v7062_v50 }
0x1e32   : > { %v9478_v14 = vpop.eup %9477 }
0x1e33   : > { %v7064_v45 = vmul.f32 %v9478_v14, %v7057_v49 }
0x1e35   : > { %7065 = vst [vmem:[%s2144_s6] sm:$0xff] %v7064_v45 }
0x1e36   : > { %10518 = shalt.err (!%p10515_p0)
}
0x1e37   : > { %s10519_s22 = scalar_lea.hbm %s7078_s1, 128  ;;  %s10523_s17 = scalar_lea.hbm %s12383_s8, 256 }
0x1e38   : > { %p10520_p1 = scmp.ne.s32.totalorder %s7078_s1, %s10519_s22  ;;  %p10524_p2 = scmp.lt.s32.totalorder %s7078_s1, %s12383_s8 }
0x1e39   : > { %p10525_p10 = scmp.lt.s32.totalorder %s10523_s17, %s10519_s22 }
0x1e3a   : > { %p10521_p6 = pnand %p10520_p1, %p12385_p3 }
0x1e3b   : > { %p10526_p4 = por %p10525_p10, %p10524_p2 }
0x1e3c   : > { %p10522_p12 = pneg %p10521_p6 }
0x1e3e   : > { %p10527_p9 = pnand %p10526_p4, %p10522_p12 }
0x1e40   : > { %10530 = shalt.err (!%p10527_p9)
}
0x1e41   : > { %8661 = dma.vmem_to_hbm [thread:$0]  (%p12385_p3), %s7081_s7, 128, %s7078_s1, %s7067_s2  }
0x1e42 PF: > { %s12386_s12 = sld [smem:[#allocation137_spill]]  ;;  %p12389_p8 = scmp.ge.s32.totalorder %s10657_s23, 2 }
0x1e43   : > { %s12387_s15 = sld [smem:[#allocation141_spill]] }
0x1e48   : > { %s7092_s3 = sand.u32 1, %s12386_s12  }
0x1e49   : > { %p12388_p7 = scmp.ne.s32.totalorder %s12387_s15, 0  ;;  %s7093_s28 = scalar_lea.sflag [#allocation6], %s7092_s3 }
0x1e4b   : > { %p8671_p11 = pnand %p12389_p8, %p12388_p7 }
0x1e4d   : > { %p8672_p13 = pneg %p8671_p11 }
0x1e4f   : > { %10640 = dma.done.wait (%p8672_p13), %s7093_s28, 128  }
0x1e50   : > { %10642 = vsyncadd (%p8672_p13), %s7093_s28, 4294967168  ;;  %s12390_s23 = sld [smem:[#allocation138_spill]]  ;;  %s12392_s0 = smov %s10649_s9 }
0x1e51   : > { %s12391_s6 = sld [smem:[#allocation139_spill]]  ;;  %s12393_s9 = smov %s10653_s29 }
0x1e56   : > { %p143_p5 = scmp.ge.s32.totalorder %s12390_s23, 4  }
0x1e57   : > { %s12394_s29 = smov %s12391_s6 }
0x1e58   :  { %145 = sbr.rel (!%p143_p5) target bundleno = 130 (0x82), region = 502 }
0x1e5d   :  { %7098 = vsyncpa [#allocation5], 1 }
0x1e5e   :  { %7100 = vsyncpa [#allocation5 + $0x1], 1 }
0x1e5f   :  { %7101 = vsyncpa [#allocation8], 1 }
0x1e60   :  { %7103 = vsyncpa [#allocation8 + $0x1], 1 }
0x1e61   :  { %7104 = vsyncpa [#allocation11], 1 }
0x1e62   :  { %7105 = vsyncpa [#allocation14], 1 }
0x1e63   :  { %7106 = vsyncpa [#allocation17], 1 }
0x1e64   :  { %7107 = vsyncpa [#allocation20], 1 }
0x1e65   :  { %7108 = vsyncpa [#allocation23], 1 }
0x1e66   :  { %7109 = vsyncpa [#allocation26], 1 }
0x1e67   :  { %7110 = vsyncpa [#allocation29], 1 }
0x1e68   :  { %7111 = vsyncpa [#allocation32], 1 }
0x1e69   :  { %7112 = vsyncpa [#allocation35], 1 }
0x1e6a   :  { %7113 = vsyncpa [#allocation38], 1 }
0x1e6b   :  { %7114 = vsyncpa [#allocation41], 1 }
0x1e6c   :  { %7115 = vsyncpa [#allocation44], 1 }
0x1e6d   :  { %7116 = vsyncpa [#allocation47], 1 }
0x1e6e   :  { %7117 = vsyncpa [#allocation50], 1 }
0x1e6f   :  { %7118 = vsyncpa [#allocation53], 1 }
0x1e70   :  { %7119 = vsyncpa [#allocation56], 1 }
0x1e71   :  { %7120 = vsyncpa [#allocation59], 1 }
0x1e72   :  { %7121 = vsyncpa [#allocation62], 1 }
0x1e73   :  { %7122 = vsyncpa [#allocation65], 1 }
0x1e74   :  { %7123 = vsyncpa [#allocation68], 1 }
0x1e75   :  { %7124 = vsyncpa [#allocation6], 1 }
0x1e76   :  { %7126 = vsyncpa [#allocation6 + $0x1], 1 }

</bundles_post_ra>
